<compile_context>
chip_gen: v7x
topology: tpu7x:2x2x1
jax: 0.10.0
libtpu: 0.0.40
codegen_flags: <defaults>
</compile_context>

<pallas_src>
import functools

import numpy as np
import jax
import jax.numpy as jnp
from jax.experimental import pallas as pl
from jax.experimental.pallas import tpu as pltpu

LEAKY_SLOPE = 0.02
BN_EPS = 1e-5

# Order in which the prepared weights are passed to the fused kernel.
_W_NAMES = (
    "gh1", "bw1", "sc1", "sh1",
    "gh2", "bw2", "sc2", "sh2",
    "gh3", "bw3", "sc3", "sh3",
    "gh4", "bw4", "sc4", "sh4",
    "gh5", "bw5", "sc5", "sh5",
    "wz1", "wz2", "wxz1x", "wxz1z", "bxz1", "wxz2", "bxz2", "wxz3", "bxz3",
)


def _lrelu(v):
    return jnp.where(v > 0, v, LEAKY_SLOPE * v)


# ----------------------------------------------------------------------------
# Fused kernel: whole discriminator forward for a tile of `bt` samples.
# ----------------------------------------------------------------------------
def _fused_kernel(bt, *refs):
    x_ref, z_ref = refs[0], refs[1]
    o_ref = refs[-1]
    w = dict(zip(_W_NAMES, refs[2:-1]))
    f32, bf16 = jnp.float32, jnp.bfloat16

    def conv(X, n):
        """X: (H_in, W_in*Cin) bf16 -> (Ho, Wo*Cout) bf16 (conv + BN + lrelu)."""
        gh, bw = w[f"gh{n}"], w[f"bw{n}"]
        sc, sh = w[f"sc{n}"], w[f"sh{n}"]
        kh = gh.shape[0]
        acc = None
        for i in range(kh):                              # static tap loop (<=7)
            rows = jnp.dot(gh[i], X, preferred_element_type=f32)  # (Ho, Win*Cin)
            t = jnp.dot(rows.astype(bf16), bw[i], preferred_element_type=f32)
            acc = t if acc is None else acc + t
        y = _lrelu(acc * sc[...] + sh[...])              # folded BN/bias epilogue
        return y.astype(bf16)

    for si in range(bt):                                 # samples in this step
        h = x_ref[si]                                    # (64, 64*Cin) bf16
        h = conv(h, 1)                                   # (63, 63*h)
        h = conv(h, 2)                                   # (29, 29*2h)
        h = conv(h, 3)                                   # (13, 13*4h)
        h = conv(h, 4)                                   # (4,  4*4h)
        h_x = conv(h, 5)                                 # (1,  8h)

        z = z_ref[si]                                    # (1, latent) bf16
        h_z = _lrelu(jnp.dot(z, w["wz1"][...], preferred_element_type=f32))
        h_z = _lrelu(jnp.dot(h_z.astype(bf16), w["wz2"][...],
                             preferred_element_type=f32))

        # concat(h_x, h_z) folded into a split first lin_xz1 matmul
        t = (jnp.dot(h_x, w["wxz1x"][...], preferred_element_type=f32)
             + jnp.dot(h_z.astype(bf16), w["wxz1z"][...],
                       preferred_element_type=f32)
             + w["bxz1"][...])
        t = _lrelu(t)
        t = _lrelu(jnp.dot(t.astype(bf16), w["wxz2"][...],
                           preferred_element_type=f32) + w["bxz2"][...])
        # final 1-unit linear as a lane reduction (avoids an N=1 matmul)
        pred = (jnp.sum(t * w["wxz3"][...].astype(f32), axis=1, keepdims=True)
                + w["bxz3"][...])
        o_ref[si] = pred                                 # (1, 1) f32


def _batch_tile(batch):
    """Amortize per-step overhead while keeping >=2 'parallel' grid steps."""
    for bt in (8, 4, 2):
        if batch % bt == 0 and batch // bt >= 2:
            return bt
    return 1


@jax.jit
def ali_discriminator_forward(ip, x_nchw, z):
    """x_nchw: (B, C, 64, 64) f32, z: (B, latent) f32 -> (B, 1) f32."""
    bf16 = jnp.bfloat16
    B, C, H, W = x_nchw.shape
    bt = _batch_tile(B)

    # NCHW -> (B, H, W*C): lane dim carries W*C, rows carry H.
    x3 = jnp.transpose(x_nchw, (0, 2, 3, 1)).reshape(B, H, W * C).astype(bf16)
    z3 = z.reshape(B, 1, -1).astype(bf16)
    weights = [ip[k] for k in _W_NAMES]

    def const_spec(a):
        zeros = (0,) * a.ndim
        return pl.BlockSpec(a.shape, lambda b, _z=zeros: _z)   # VMEM-resident

    out = pl.pallas_call(
        functools.partial(_fused_kernel, bt),
        out_shape=jax.ShapeDtypeStruct((B, 1, 1), jnp.float32),
        grid=(B // bt,),
        in_specs=[pl.BlockSpec((bt, H, W * C), lambda b: (b, 0, 0)),
                  pl.BlockSpec((bt, 1, z3.shape[2]), lambda b: (b, 0, 0))]
                 + [const_spec(a) for a in weights],
        out_specs=pl.BlockSpec((bt, 1, 1), lambda b: (b, 0, 0)),
        compiler_params=pltpu.CompilerParams(
            dimension_semantics=("parallel",),
            vmem_limit_bytes=48 * 1024 * 1024),
    )(x3, z3, *weights)
    return out.reshape(B, 1)


# ----------------------------------------------------------------------------
# One-time parameter preparation (outside the jitted forward)
# ----------------------------------------------------------------------------
def _conv_geoms(n_channels, h_size):
    # (kernel, stride, Cout) for conv_1..conv_5; 64x64 input is fixed.
    arch = ((2, 1, h_size), (7, 2, h_size * 2), (5, 2, h_size * 4),
            (7, 2, h_size * 4), (4, 1, h_size * 8))
    geoms, H, Cin = [], 64, n_channels
    for k, s, Cout in arch:
        Ho = (H - k) // s + 1
        geoms.append(dict(H_in=H, Cin=Cin, k=k, s=s, Ho=Ho, Cout=Cout))
        H, Cin = Ho, Cout
    return geoms


def prepare_inference_params(p, n_channels=3, h_size=8):
    """Fold BN, build row-gather + banded conv matrices, transpose Linears,
    cast MXU operands to bf16."""
    bf16, f32 = jnp.bfloat16, jnp.float32
    ip = {}
    for n, g in enumerate(_conv_geoms(n_channels, h_size), start=1):
        K = np.asarray(p[f"conv{n}_w"], np.float32)       # (Cout, Cin, k, k)
        k, s, H_in, Ho = g["k"], g["s"], g["H_in"], g["Ho"]
        Cin, Cout = g["Cin"], g["Cout"]
        # one-hot row gathers: gh[i, ho, ho*s + i] = 1
        gh = np.zeros((k, Ho, H_in), np.float32)
        for i in range(k):
            gh[i, np.arange(Ho), np.arange(Ho) * s + i] = 1.0
        # banded (W,Cin)->(Wo,Cout) matrices: 1-D conv along W + channel
        # contraction folded into a single matmul, one matrix per kernel row.
        bw = np.zeros((k, H_in, Cin, Ho, Cout), np.float32)
        for i in range(k):
            for j in range(k):
                kij = K[:, :, i, j].T                     # (Cin, Cout)
                for wo in range(Ho):
                    bw[i, wo * s + j, :, wo, :] = kij
        bw = bw.reshape(k, H_in * Cin, Ho * Cout)
        # BN / bias folded into per-output-column scale & shift
        if n == 1:
            scale = np.ones((Cout,), np.float32)
            shift = np.asarray(p["conv1_b"], np.float32)
        else:
            gma = np.asarray(p[f"bn{n}_g"], np.float32)
            bta = np.asarray(p[f"bn{n}_b"], np.float32)
            mu = np.asarray(p[f"bn{n}_m"], np.float32)
            var = np.asarray(p[f"bn{n}_v"], np.float32)
            scale = gma / np.sqrt(var + BN_EPS)
            shift = bta - mu * scale
        ip[f"gh{n}"] = jnp.asarray(gh, bf16)
        ip[f"bw{n}"] = jnp.asarray(bw, bf16)
        ip[f"sc{n}"] = jnp.asarray(np.tile(scale, Ho)[None, :], f32)
        ip[f"sh{n}"] = jnp.asarray(np.tile(shift, Ho)[None, :], f32)
    ip["wz1"] = jnp.asarray(np.asarray(p["lin_z1_w"], np.float32).T, bf16)
    ip["wz2"] = jnp.asarray(np.asarray(p["lin_z2_w"], np.float32).T, bf16)
    wxz1 = np.asarray(p["lin_xz1_w"], np.float32).T       # (8h + fc, 2fc)
    ip["wxz1x"] = jnp.asarray(wxz1[: h_size * 8], bf16)
    ip["wxz1z"] = jnp.asarray(wxz1[h_size * 8:], bf16)
    ip["bxz1"] = jnp.asarray(np.asarray(p["lin_xz1_b"], np.float32)[None, :], f32)
    ip["wxz2"] = jnp.asarray(np.asarray(p["lin_xz2_w"], np.float32).T, bf16)
    ip["bxz2"] = jnp.asarray(np.asarray(p["lin_xz2_b"], np.float32)[None, :], f32)
    ip["wxz3"] = jnp.asarray(np.asarray(p["lin_xz3_w"], np.float32), bf16)
    ip["bxz3"] = jnp.asarray(np.asarray(p["lin_xz3_b"], np.float32).reshape(1, 1), f32)
    return ip


# ----------------------------------------------------------------------------
# Deterministic parameter construction (PyTorch shapes)
# ----------------------------------------------------------------------------
def make_params(key, n_channels=3, h_size=8, latent_size=32):
    fc_h = h_size * 16
    ks = jax.random.split(key, 32)
    it = iter(range(32))

    def nrm(shape, s=0.02):
        return jax.random.normal(ks[next(it)], shape, jnp.float32) * s

    p = {}
    p["conv1_w"] = nrm((h_size, n_channels, 2, 2));      p["conv1_b"] = nrm((h_size,))
    p["conv2_w"] = nrm((h_size * 2, h_size, 7, 7))
    p["conv3_w"] = nrm((h_size * 4, h_size * 2, 5, 5))
    p["conv4_w"] = nrm((h_size * 4, h_size * 4, 7, 7))
    p["conv5_w"] = nrm((h_size * 8, h_size * 4, 4, 4))
    for name, c in (("bn2", h_size * 2), ("bn3", h_size * 4),
                    ("bn4", h_size * 4), ("bn5", h_size * 8)):
        p[name + "_g"] = 1.0 + nrm((c,), 0.1)
        p[name + "_b"] = nrm((c,), 0.1)
        p[name + "_m"] = nrm((c,), 0.1)
        p[name + "_v"] = 1.0 + jnp.abs(nrm((c,), 0.1))
    p["lin_z1_w"] = nrm((fc_h, latent_size))
    p["lin_z2_w"] = nrm((fc_h, fc_h))
    p["lin_xz1_w"] = nrm((fc_h * 2, h_size * 8 + fc_h)); p["lin_xz1_b"] = nrm((fc_h * 2,))
    p["lin_xz2_w"] = nrm((fc_h * 2, fc_h * 2));          p["lin_xz2_b"] = nrm((fc_h * 2,))
    p["lin_xz3_w"] = nrm((1, fc_h * 2));                 p["lin_xz3_b"] = nrm((1,))
    return p


# ----------------------------------------------------------------------------
# Pure-JAX f32 reference (correctness check)
# ----------------------------------------------------------------------------
def _ref_forward(params, x_nchw, z, h_size=8):
    p = params
    lrelu = lambda v: jnp.where(v > 0, v, LEAKY_SLOPE * v)

    def conv(x, w, stride):
        return jax.lax.conv_general_dilated(
            x, jnp.transpose(w, (2, 3, 1, 0)), (stride, stride), "VALID",
            dimension_numbers=("NHWC", "HWIO", "NHWC"))

    def bn(x, g, b, m, v):
        return (x - m) / jnp.sqrt(v + BN_EPS) * g + b

    x = jnp.transpose(x_nchw, (0, 2, 3, 1))
    h = lrelu(conv(x, p["conv1_w"], 1) + p["conv1_b"])
    h = lrelu(bn(conv(h, p["conv2_w"], 2), p["bn2_g"], p["bn2_b"], p["bn2_m"], p["bn2_v"]))
    h = lrelu(bn(conv(h, p["conv3_w"], 2), p["bn3_g"], p["bn3_b"], p["bn3_m"], p["bn3_v"]))
    h = lrelu(bn(conv(h, p["conv4_w"], 2), p["bn4_g"], p["bn4_b"], p["bn4_m"], p["bn4_v"]))
    h = lrelu(bn(conv(h, p["conv5_w"], 1), p["bn5_g"], p["bn5_b"], p["bn5_m"], p["bn5_v"]))
    h_x = h.reshape(-1, h_size * 8)
    h_z = lrelu(z @ p["lin_z1_w"].T)
    h_z = lrelu(h_z @ p["lin_z2_w"].T)
    hc = jnp.concatenate([h_x, h_z], axis=1)
    hc = lrelu(hc @ p["lin_xz1_w"].T + p["lin_xz1_b"])
    hc = lrelu(hc @ p["lin_xz2_w"].T + p["lin_xz2_b"])
    return hc @ p["lin_xz3_w"].T + p["lin_xz3_b"]


# ----------------------------------------------------------------------------
if __name__ == "__main__":
    B, C, H, W = 2, 3, 64, 64       # 64x64 input is fixed by the conv chain
    H_SIZE, LATENT = 8, 32          # small widths for a quick synthetic run

    key = jax.random.PRNGKey(0)
    kx, kz, kp = jax.random.split(key, 3)
    x = jax.random.normal(kx, (B, C, H, W), jnp.float32)
    z = jax.random.normal(kz, (B, LATENT), jnp.float32)
    params = make_params(kp, n_channels=C, h_size=H_SIZE, latent_size=LATENT)
    ip = prepare_inference_params(params, n_channels=C, h_size=H_SIZE)

    pred = ali_discriminator_forward(ip, x, z)
    pred = jax.block_until_ready(pred)

    ref = _ref_forward(params, x, z, h_size=H_SIZE)
    assert pred.shape == (B, 1), pred.shape
    # bf16 matmul operands with f32 accumulation -> compare at bf16 tolerance
    assert jnp.allclose(pred, ref, atol=1e-2, rtol=1e-2), (pred, ref)

    print("KERNEL_OK")
</pallas_src>

<mosaic_0001>
module attributes {stable_mosaic.version = 11 : i64} {
  func.func @_fused_kernel(%arg0: i32, %arg1: memref<1x64x192xbf16, #tpu.memory_space<vmem>>, %arg2: memref<1x1x32xbf16, #tpu.memory_space<vmem>>, %arg3: memref<2x63x64xbf16, #tpu.memory_space<vmem>>, %arg4: memref<2x192x504xbf16, #tpu.memory_space<vmem>>, %arg5: memref<1x504xf32, #tpu.memory_space<vmem>>, %arg6: memref<1x504xf32, #tpu.memory_space<vmem>>, %arg7: memref<7x29x63xbf16, #tpu.memory_space<vmem>>, %arg8: memref<7x504x464xbf16, #tpu.memory_space<vmem>>, %arg9: memref<1x464xf32, #tpu.memory_space<vmem>>, %arg10: memref<1x464xf32, #tpu.memory_space<vmem>>, %arg11: memref<5x13x29xbf16, #tpu.memory_space<vmem>>, %arg12: memref<5x464x416xbf16, #tpu.memory_space<vmem>>, %arg13: memref<1x416xf32, #tpu.memory_space<vmem>>, %arg14: memref<1x416xf32, #tpu.memory_space<vmem>>, %arg15: memref<7x4x13xbf16, #tpu.memory_space<vmem>>, %arg16: memref<7x416x128xbf16, #tpu.memory_space<vmem>>, %arg17: memref<1x128xf32, #tpu.memory_space<vmem>>, %arg18: memref<1x128xf32, #tpu.memory_space<vmem>>, %arg19: memref<4x1x4xbf16, #tpu.memory_space<vmem>>, %arg20: memref<4x128x64xbf16, #tpu.memory_space<vmem>>, %arg21: memref<1x64xf32, #tpu.memory_space<vmem>>, %arg22: memref<1x64xf32, #tpu.memory_space<vmem>>, %arg23: memref<32x128xbf16, #tpu.memory_space<vmem>>, %arg24: memref<128x128xbf16, #tpu.memory_space<vmem>>, %arg25: memref<64x256xbf16, #tpu.memory_space<vmem>>, %arg26: memref<128x256xbf16, #tpu.memory_space<vmem>>, %arg27: memref<1x256xf32, #tpu.memory_space<vmem>>, %arg28: memref<256x256xbf16, #tpu.memory_space<vmem>>, %arg29: memref<1x256xf32, #tpu.memory_space<vmem>>, %arg30: memref<1x256xbf16, #tpu.memory_space<vmem>>, %arg31: memref<1x1xf32, #tpu.memory_space<vmem>>, %arg32: memref<1x1x1xf32, #tpu.memory_space<vmem>>) attributes {dimension_semantics = [#tpu.dimension_semantics<parallel>], iteration_bounds = array<i64: 2>, scalar_prefetch = 0 : i64, scratch_operands = 0 : i64, tpu.core_type = #tpu.core_type<tc>, window_params = [{transform_indices = @transform_0, window_bounds = array<i64: 1, 64, 192>}, {transform_indices = @transform_1, window_bounds = array<i64: 1, 1, 32>}, {pipeline_mode = #tpu.pipeline_mode<synchronous>, transform_indices = @transform_2, window_bounds = array<i64: 2, 63, 64>}, {pipeline_mode = #tpu.pipeline_mode<synchronous>, transform_indices = @transform_3, window_bounds = array<i64: 2, 192, 504>}, {pipeline_mode = #tpu.pipeline_mode<synchronous>, transform_indices = @transform_4, window_bounds = array<i64: 1, 504>}, {pipeline_mode = #tpu.pipeline_mode<synchronous>, transform_indices = @transform_5, window_bounds = array<i64: 1, 504>}, {pipeline_mode = #tpu.pipeline_mode<synchronous>, transform_indices = @transform_6, window_bounds = array<i64: 7, 29, 63>}, {pipeline_mode = #tpu.pipeline_mode<synchronous>, transform_indices = @transform_7, window_bounds = array<i64: 7, 504, 464>}, {pipeline_mode = #tpu.pipeline_mode<synchronous>, transform_indices = @transform_8, window_bounds = array<i64: 1, 464>}, {pipeline_mode = #tpu.pipeline_mode<synchronous>, transform_indices = @transform_9, window_bounds = array<i64: 1, 464>}, {pipeline_mode = #tpu.pipeline_mode<synchronous>, transform_indices = @transform_10, window_bounds = array<i64: 5, 13, 29>}, {pipeline_mode = #tpu.pipeline_mode<synchronous>, transform_indices = @transform_11, window_bounds = array<i64: 5, 464, 416>}, {pipeline_mode = #tpu.pipeline_mode<synchronous>, transform_indices = @transform_12, window_bounds = array<i64: 1, 416>}, {pipeline_mode = #tpu.pipeline_mode<synchronous>, transform_indices = @transform_13, window_bounds = array<i64: 1, 416>}, {pipeline_mode = #tpu.pipeline_mode<synchronous>, transform_indices = @transform_14, window_bounds = array<i64: 7, 4, 13>}, {pipeline_mode = #tpu.pipeline_mode<synchronous>, transform_indices = @transform_15, window_bounds = array<i64: 7, 416, 128>}, {pipeline_mode = #tpu.pipeline_mode<synchronous>, transform_indices = @transform_16, window_bounds = array<i64: 1, 128>}, {pipeline_mode = #tpu.pipeline_mode<synchronous>, transform_indices = @transform_17, window_bounds = array<i64: 1, 128>}, {pipeline_mode = #tpu.pipeline_mode<synchronous>, transform_indices = @transform_18, window_bounds = array<i64: 4, 1, 4>}, {pipeline_mode = #tpu.pipeline_mode<synchronous>, transform_indices = @transform_19, window_bounds = array<i64: 4, 128, 64>}, {pipeline_mode = #tpu.pipeline_mode<synchronous>, transform_indices = @transform_20, window_bounds = array<i64: 1, 64>}, {pipeline_mode = #tpu.pipeline_mode<synchronous>, transform_indices = @transform_21, window_bounds = array<i64: 1, 64>}, {pipeline_mode = #tpu.pipeline_mode<synchronous>, transform_indices = @transform_22, window_bounds = array<i64: 32, 128>}, {pipeline_mode = #tpu.pipeline_mode<synchronous>, transform_indices = @transform_23, window_bounds = array<i64: 128, 128>}, {pipeline_mode = #tpu.pipeline_mode<synchronous>, transform_indices = @transform_24, window_bounds = array<i64: 64, 256>}, {pipeline_mode = #tpu.pipeline_mode<synchronous>, transform_indices = @transform_25, window_bounds = array<i64: 128, 256>}, {pipeline_mode = #tpu.pipeline_mode<synchronous>, transform_indices = @transform_26, window_bounds = array<i64: 1, 256>}, {pipeline_mode = #tpu.pipeline_mode<synchronous>, transform_indices = @transform_27, window_bounds = array<i64: 256, 256>}, {pipeline_mode = #tpu.pipeline_mode<synchronous>, transform_indices = @transform_28, window_bounds = array<i64: 1, 256>}, {pipeline_mode = #tpu.pipeline_mode<synchronous>, transform_indices = @transform_29, window_bounds = array<i64: 1, 256>}, {pipeline_mode = #tpu.pipeline_mode<synchronous>, transform_indices = @transform_30, window_bounds = array<i64: 1, 1>}, {transform_indices = @transform_31, window_bounds = array<i64: 1, 1, 1>}]} {
    %c0 = arith.constant 0 : index
    %c0_0 = arith.constant 0 : index
    %c0_1 = arith.constant 0 : index
    %0 = vector.load %arg1[%c0, %c0_0, %c0_1] : memref<1x64x192xbf16, #tpu.memory_space<vmem>>, vector<1x64x192xbf16>
    %1 = vector.shape_cast %0 : vector<1x64x192xbf16> to vector<64x192xbf16>
    %c0_2 = arith.constant 0 : index
    %c0_3 = arith.constant 0 : index
    %c0_4 = arith.constant 0 : index
    %2 = vector.load %arg3[%c0_2, %c0_3, %c0_4] : memref<2x63x64xbf16, #tpu.memory_space<vmem>>, vector<1x63x64xbf16>
    %3 = vector.shape_cast %2 : vector<1x63x64xbf16> to vector<63x64xbf16>
    %cst = arith.constant dense<0.000000e+00> : vector<63x192xf32>
    %4 = tpu.matmul %3, %1, %cst {dimension_numbers = #tpu.dot_dimension_numbers<[1], [0], [0], [1], [0, 0, 1, 1], [], []>} : vector<63x64xbf16>, vector<64x192xbf16>, vector<63x192xf32> -> vector<63x192xf32>
    %5 = arith.truncf %4 : vector<63x192xf32> to vector<63x192xbf16>
    %c0_5 = arith.constant 0 : index
    %c0_6 = arith.constant 0 : index
    %c0_7 = arith.constant 0 : index
    %6 = vector.load %arg4[%c0_5, %c0_6, %c0_7] : memref<2x192x504xbf16, #tpu.memory_space<vmem>>, vector<1x192x504xbf16>
    %7 = vector.shape_cast %6 : vector<1x192x504xbf16> to vector<192x504xbf16>
    %cst_8 = arith.constant dense<0.000000e+00> : vector<63x504xf32>
    %8 = tpu.matmul %5, %7, %cst_8 {dimension_numbers = #tpu.dot_dimension_numbers<[1], [0], [0], [1], [0, 0, 1, 1], [], []>} : vector<63x192xbf16>, vector<192x504xbf16>, vector<63x504xf32> -> vector<63x504xf32>
    %c1 = arith.constant 1 : index
    %c0_9 = arith.constant 0 : index
    %c0_10 = arith.constant 0 : index
    %9 = vector.load %arg3[%c1, %c0_9, %c0_10] : memref<2x63x64xbf16, #tpu.memory_space<vmem>>, vector<1x63x64xbf16>
    %10 = vector.shape_cast %9 : vector<1x63x64xbf16> to vector<63x64xbf16>
    %cst_11 = arith.constant dense<0.000000e+00> : vector<63x192xf32>
    %11 = tpu.matmul %10, %1, %cst_11 {dimension_numbers = #tpu.dot_dimension_numbers<[1], [0], [0], [1], [0, 0, 1, 1], [], []>} : vector<63x64xbf16>, vector<64x192xbf16>, vector<63x192xf32> -> vector<63x192xf32>
    %12 = arith.truncf %11 : vector<63x192xf32> to vector<63x192xbf16>
    %c1_12 = arith.constant 1 : index
    %c0_13 = arith.constant 0 : index
    %c0_14 = arith.constant 0 : index
    %13 = vector.load %arg4[%c1_12, %c0_13, %c0_14] : memref<2x192x504xbf16, #tpu.memory_space<vmem>>, vector<1x192x504xbf16>
    %14 = vector.shape_cast %13 : vector<1x192x504xbf16> to vector<192x504xbf16>
    %cst_15 = arith.constant dense<0.000000e+00> : vector<63x504xf32>
    %15 = tpu.matmul %12, %14, %cst_15 {dimension_numbers = #tpu.dot_dimension_numbers<[1], [0], [0], [1], [0, 0, 1, 1], [], []>} : vector<63x192xbf16>, vector<192x504xbf16>, vector<63x504xf32> -> vector<63x504xf32>
    %16 = arith.addf %8, %15 : vector<63x504xf32>
    %c0_16 = arith.constant 0 : index
    %c0_17 = arith.constant 0 : index
    %17 = vector.load %arg5[%c0_16, %c0_17] : memref<1x504xf32, #tpu.memory_space<vmem>>, vector<1x504xf32>
    %18 = vector.broadcast %17 : vector<1x504xf32> to vector<63x504xf32>
    %19 = arith.mulf %16, %18 : vector<63x504xf32>
    %c0_18 = arith.constant 0 : index
    %c0_19 = arith.constant 0 : index
    %20 = vector.load %arg6[%c0_18, %c0_19] : memref<1x504xf32, #tpu.memory_space<vmem>>, vector<1x504xf32>
    %21 = vector.broadcast %20 : vector<1x504xf32> to vector<63x504xf32>
    %22 = arith.addf %19, %21 : vector<63x504xf32>
    %cst_20 = arith.constant 0.000000e+00 : f32
    %23 = vector.broadcast %cst_20 : f32 to vector<63x504xf32>
    %24 = arith.cmpf ogt, %22, %23 : vector<63x504xf32>
    %cst_21 = arith.constant 2.000000e-02 : f32
    %25 = vector.broadcast %cst_21 : f32 to vector<63x504xf32>
    %26 = arith.mulf %25, %22 : vector<63x504xf32>
    %27 = arith.select %24, %22, %26 : vector<63x504xi1>, vector<63x504xf32>
    %28 = arith.truncf %27 : vector<63x504xf32> to vector<63x504xbf16>
    %c0_22 = arith.constant 0 : index
    %c0_23 = arith.constant 0 : index
    %c0_24 = arith.constant 0 : index
    %29 = vector.load %arg7[%c0_22, %c0_23, %c0_24] : memref<7x29x63xbf16, #tpu.memory_space<vmem>>, vector<1x29x63xbf16>
    %30 = vector.shape_cast %29 : vector<1x29x63xbf16> to vector<29x63xbf16>
    %cst_25 = arith.constant dense<0.000000e+00> : vector<29x504xf32>
    %31 = tpu.matmul %30, %28, %cst_25 {dimension_numbers = #tpu.dot_dimension_numbers<[1], [0], [0], [1], [0, 0, 1, 1], [], []>} : vector<29x63xbf16>, vector<63x504xbf16>, vector<29x504xf32> -> vector<29x504xf32>
    %32 = arith.truncf %31 : vector<29x504xf32> to vector<29x504xbf16>
    %c0_26 = arith.constant 0 : index
    %c0_27 = arith.constant 0 : index
    %c0_28 = arith.constant 0 : index
    %33 = vector.load %arg8[%c0_26, %c0_27, %c0_28] : memref<7x504x464xbf16, #tpu.memory_space<vmem>>, vector<1x504x464xbf16>
    %34 = vector.shape_cast %33 : vector<1x504x464xbf16> to vector<504x464xbf16>
    %cst_29 = arith.constant dense<0.000000e+00> : vector<29x464xf32>
    %35 = tpu.matmul %32, %34, %cst_29 {dimension_numbers = #tpu.dot_dimension_numbers<[1], [0], [0], [1], [0, 0, 1, 1], [], []>} : vector<29x504xbf16>, vector<504x464xbf16>, vector<29x464xf32> -> vector<29x464xf32>
    %c1_30 = arith.constant 1 : index
    %c0_31 = arith.constant 0 : index
    %c0_32 = arith.constant 0 : index
    %36 = vector.load %arg7[%c1_30, %c0_31, %c0_32] : memref<7x29x63xbf16, #tpu.memory_space<vmem>>, vector<1x29x63xbf16>
    %37 = vector.shape_cast %36 : vector<1x29x63xbf16> to vector<29x63xbf16>
    %cst_33 = arith.constant dense<0.000000e+00> : vector<29x504xf32>
    %38 = tpu.matmul %37, %28, %cst_33 {dimension_numbers = #tpu.dot_dimension_numbers<[1], [0], [0], [1], [0, 0, 1, 1], [], []>} : vector<29x63xbf16>, vector<63x504xbf16>, vector<29x504xf32> -> vector<29x504xf32>
    %39 = arith.truncf %38 : vector<29x504xf32> to vector<29x504xbf16>
    %c1_34 = arith.constant 1 : index
    %c0_35 = arith.constant 0 : index
    %c0_36 = arith.constant 0 : index
    %40 = vector.load %arg8[%c1_34, %c0_35, %c0_36] : memref<7x504x464xbf16, #tpu.memory_space<vmem>>, vector<1x504x464xbf16>
    %41 = vector.shape_cast %40 : vector<1x504x464xbf16> to vector<504x464xbf16>
    %cst_37 = arith.constant dense<0.000000e+00> : vector<29x464xf32>
    %42 = tpu.matmul %39, %41, %cst_37 {dimension_numbers = #tpu.dot_dimension_numbers<[1], [0], [0], [1], [0, 0, 1, 1], [], []>} : vector<29x504xbf16>, vector<504x464xbf16>, vector<29x464xf32> -> vector<29x464xf32>
    %43 = arith.addf %35, %42 : vector<29x464xf32>
    %c2 = arith.constant 2 : index
    %c0_38 = arith.constant 0 : index
    %c0_39 = arith.constant 0 : index
    %44 = vector.load %arg7[%c2, %c0_38, %c0_39] : memref<7x29x63xbf16, #tpu.memory_space<vmem>>, vector<1x29x63xbf16>
    %45 = vector.shape_cast %44 : vector<1x29x63xbf16> to vector<29x63xbf16>
    %cst_40 = arith.constant dense<0.000000e+00> : vector<29x504xf32>
    %46 = tpu.matmul %45, %28, %cst_40 {dimension_numbers = #tpu.dot_dimension_numbers<[1], [0], [0], [1], [0, 0, 1, 1], [], []>} : vector<29x63xbf16>, vector<63x504xbf16>, vector<29x504xf32> -> vector<29x504xf32>
    %47 = arith.truncf %46 : vector<29x504xf32> to vector<29x504xbf16>
    %c2_41 = arith.constant 2 : index
    %c0_42 = arith.constant 0 : index
    %c0_43 = arith.constant 0 : index
    %48 = vector.load %arg8[%c2_41, %c0_42, %c0_43] : memref<7x504x464xbf16, #tpu.memory_space<vmem>>, vector<1x504x464xbf16>
    %49 = vector.shape_cast %48 : vector<1x504x464xbf16> to vector<504x464xbf16>
    %cst_44 = arith.constant dense<0.000000e+00> : vector<29x464xf32>
    %50 = tpu.matmul %47, %49, %cst_44 {dimension_numbers = #tpu.dot_dimension_numbers<[1], [0], [0], [1], [0, 0, 1, 1], [], []>} : vector<29x504xbf16>, vector<504x464xbf16>, vector<29x464xf32> -> vector<29x464xf32>
    %51 = arith.addf %43, %50 : vector<29x464xf32>
    %c3 = arith.constant 3 : index
    %c0_45 = arith.constant 0 : index
    %c0_46 = arith.constant 0 : index
    %52 = vector.load %arg7[%c3, %c0_45, %c0_46] : memref<7x29x63xbf16, #tpu.memory_space<vmem>>, vector<1x29x63xbf16>
    %53 = vector.shape_cast %52 : vector<1x29x63xbf16> to vector<29x63xbf16>
    %cst_47 = arith.constant dense<0.000000e+00> : vector<29x504xf32>
    %54 = tpu.matmul %53, %28, %cst_47 {dimension_numbers = #tpu.dot_dimension_numbers<[1], [0], [0], [1], [0, 0, 1, 1], [], []>} : vector<29x63xbf16>, vector<63x504xbf16>, vector<29x504xf32> -> vector<29x504xf32>
    %55 = arith.truncf %54 : vector<29x504xf32> to vector<29x504xbf16>
    %c3_48 = arith.constant 3 : index
    %c0_49 = arith.constant 0 : index
    %c0_50 = arith.constant 0 : index
    %56 = vector.load %arg8[%c3_48, %c0_49, %c0_50] : memref<7x504x464xbf16, #tpu.memory_space<vmem>>, vector<1x504x464xbf16>
    %57 = vector.shape_cast %56 : vector<1x504x464xbf16> to vector<504x464xbf16>
    %cst_51 = arith.constant dense<0.000000e+00> : vector<29x464xf32>
    %58 = tpu.matmul %55, %57, %cst_51 {dimension_numbers = #tpu.dot_dimension_numbers<[1], [0], [0], [1], [0, 0, 1, 1], [], []>} : vector<29x504xbf16>, vector<504x464xbf16>, vector<29x464xf32> -> vector<29x464xf32>
    %59 = arith.addf %51, %58 : vector<29x464xf32>
    %c4 = arith.constant 4 : index
    %c0_52 = arith.constant 0 : index
    %c0_53 = arith.constant 0 : index
    %60 = vector.load %arg7[%c4, %c0_52, %c0_53] : memref<7x29x63xbf16, #tpu.memory_space<vmem>>, vector<1x29x63xbf16>
    %61 = vector.shape_cast %60 : vector<1x29x63xbf16> to vector<29x63xbf16>
    %cst_54 = arith.constant dense<0.000000e+00> : vector<29x504xf32>
    %62 = tpu.matmul %61, %28, %cst_54 {dimension_numbers = #tpu.dot_dimension_numbers<[1], [0], [0], [1], [0, 0, 1, 1], [], []>} : vector<29x63xbf16>, vector<63x504xbf16>, vector<29x504xf32> -> vector<29x504xf32>
    %63 = arith.truncf %62 : vector<29x504xf32> to vector<29x504xbf16>
    %c4_55 = arith.constant 4 : index
    %c0_56 = arith.constant 0 : index
    %c0_57 = arith.constant 0 : index
    %64 = vector.load %arg8[%c4_55, %c0_56, %c0_57] : memref<7x504x464xbf16, #tpu.memory_space<vmem>>, vector<1x504x464xbf16>
    %65 = vector.shape_cast %64 : vector<1x504x464xbf16> to vector<504x464xbf16>
    %cst_58 = arith.constant dense<0.000000e+00> : vector<29x464xf32>
    %66 = tpu.matmul %63, %65, %cst_58 {dimension_numbers = #tpu.dot_dimension_numbers<[1], [0], [0], [1], [0, 0, 1, 1], [], []>} : vector<29x504xbf16>, vector<504x464xbf16>, vector<29x464xf32> -> vector<29x464xf32>
    %67 = arith.addf %59, %66 : vector<29x464xf32>
    %c5 = arith.constant 5 : index
    %c0_59 = arith.constant 0 : index
    %c0_60 = arith.constant 0 : index
    %68 = vector.load %arg7[%c5, %c0_59, %c0_60] : memref<7x29x63xbf16, #tpu.memory_space<vmem>>, vector<1x29x63xbf16>
    %69 = vector.shape_cast %68 : vector<1x29x63xbf16> to vector<29x63xbf16>
    %cst_61 = arith.constant dense<0.000000e+00> : vector<29x504xf32>
    %70 = tpu.matmul %69, %28, %cst_61 {dimension_numbers = #tpu.dot_dimension_numbers<[1], [0], [0], [1], [0, 0, 1, 1], [], []>} : vector<29x63xbf16>, vector<63x504xbf16>, vector<29x504xf32> -> vector<29x504xf32>
    %71 = arith.truncf %70 : vector<29x504xf32> to vector<29x504xbf16>
    %c5_62 = arith.constant 5 : index
    %c0_63 = arith.constant 0 : index
    %c0_64 = arith.constant 0 : index
    %72 = vector.load %arg8[%c5_62, %c0_63, %c0_64] : memref<7x504x464xbf16, #tpu.memory_space<vmem>>, vector<1x504x464xbf16>
    %73 = vector.shape_cast %72 : vector<1x504x464xbf16> to vector<504x464xbf16>
    %cst_65 = arith.constant dense<0.000000e+00> : vector<29x464xf32>
    %74 = tpu.matmul %71, %73, %cst_65 {dimension_numbers = #tpu.dot_dimension_numbers<[1], [0], [0], [1], [0, 0, 1, 1], [], []>} : vector<29x504xbf16>, vector<504x464xbf16>, vector<29x464xf32> -> vector<29x464xf32>
    %75 = arith.addf %67, %74 : vector<29x464xf32>
    %c6 = arith.constant 6 : index
    %c0_66 = arith.constant 0 : index
    %c0_67 = arith.constant 0 : index
    %76 = vector.load %arg7[%c6, %c0_66, %c0_67] : memref<7x29x63xbf16, #tpu.memory_space<vmem>>, vector<1x29x63xbf16>
    %77 = vector.shape_cast %76 : vector<1x29x63xbf16> to vector<29x63xbf16>
    %cst_68 = arith.constant dense<0.000000e+00> : vector<29x504xf32>
    %78 = tpu.matmul %77, %28, %cst_68 {dimension_numbers = #tpu.dot_dimension_numbers<[1], [0], [0], [1], [0, 0, 1, 1], [], []>} : vector<29x63xbf16>, vector<63x504xbf16>, vector<29x504xf32> -> vector<29x504xf32>
    %79 = arith.truncf %78 : vector<29x504xf32> to vector<29x504xbf16>
    %c6_69 = arith.constant 6 : index
    %c0_70 = arith.constant 0 : index
    %c0_71 = arith.constant 0 : index
    %80 = vector.load %arg8[%c6_69, %c0_70, %c0_71] : memref<7x504x464xbf16, #tpu.memory_space<vmem>>, vector<1x504x464xbf16>
    %81 = vector.shape_cast %80 : vector<1x504x464xbf16> to vector<504x464xbf16>
    %cst_72 = arith.constant dense<0.000000e+00> : vector<29x464xf32>
    %82 = tpu.matmul %79, %81, %cst_72 {dimension_numbers = #tpu.dot_dimension_numbers<[1], [0], [0], [1], [0, 0, 1, 1], [], []>} : vector<29x504xbf16>, vector<504x464xbf16>, vector<29x464xf32> -> vector<29x464xf32>
    %83 = arith.addf %75, %82 : vector<29x464xf32>
    %c0_73 = arith.constant 0 : index
    %c0_74 = arith.constant 0 : index
    %84 = vector.load %arg9[%c0_73, %c0_74] : memref<1x464xf32, #tpu.memory_space<vmem>>, vector<1x464xf32>
    %85 = vector.broadcast %84 : vector<1x464xf32> to vector<29x464xf32>
    %86 = arith.mulf %83, %85 : vector<29x464xf32>
    %c0_75 = arith.constant 0 : index
    %c0_76 = arith.constant 0 : index
    %87 = vector.load %arg10[%c0_75, %c0_76] : memref<1x464xf32, #tpu.memory_space<vmem>>, vector<1x464xf32>
    %88 = vector.broadcast %87 : vector<1x464xf32> to vector<29x464xf32>
    %89 = arith.addf %86, %88 : vector<29x464xf32>
    %cst_77 = arith.constant 0.000000e+00 : f32
    %90 = vector.broadcast %cst_77 : f32 to vector<29x464xf32>
    %91 = arith.cmpf ogt, %89, %90 : vector<29x464xf32>
    %cst_78 = arith.constant 2.000000e-02 : f32
    %92 = vector.broadcast %cst_78 : f32 to vector<29x464xf32>
    %93 = arith.mulf %92, %89 : vector<29x464xf32>
    %94 = arith.select %91, %89, %93 : vector<29x464xi1>, vector<29x464xf32>
    %95 = arith.truncf %94 : vector<29x464xf32> to vector<29x464xbf16>
    %c0_79 = arith.constant 0 : index
    %c0_80 = arith.constant 0 : index
    %c0_81 = arith.constant 0 : index
    %96 = vector.load %arg11[%c0_79, %c0_80, %c0_81] : memref<5x13x29xbf16, #tpu.memory_space<vmem>>, vector<1x13x29xbf16>
    %97 = vector.shape_cast %96 : vector<1x13x29xbf16> to vector<13x29xbf16>
    %cst_82 = arith.constant dense<0.000000e+00> : vector<13x464xf32>
    %98 = tpu.matmul %97, %95, %cst_82 {dimension_numbers = #tpu.dot_dimension_numbers<[1], [0], [0], [1], [0, 0, 1, 1], [], []>} : vector<13x29xbf16>, vector<29x464xbf16>, vector<13x464xf32> -> vector<13x464xf32>
    %99 = arith.truncf %98 : vector<13x464xf32> to vector<13x464xbf16>
    %c0_83 = arith.constant 0 : index
    %c0_84 = arith.constant 0 : index
    %c0_85 = arith.constant 0 : index
    %100 = vector.load %arg12[%c0_83, %c0_84, %c0_85] : memref<5x464x416xbf16, #tpu.memory_space<vmem>>, vector<1x464x416xbf16>
    %101 = vector.shape_cast %100 : vector<1x464x416xbf16> to vector<464x416xbf16>
    %cst_86 = arith.constant dense<0.000000e+00> : vector<13x416xf32>
    %102 = tpu.matmul %99, %101, %cst_86 {dimension_numbers = #tpu.dot_dimension_numbers<[1], [0], [0], [1], [0, 0, 1, 1], [], []>} : vector<13x464xbf16>, vector<464x416xbf16>, vector<13x416xf32> -> vector<13x416xf32>
    %c1_87 = arith.constant 1 : index
    %c0_88 = arith.constant 0 : index
    %c0_89 = arith.constant 0 : index
    %103 = vector.load %arg11[%c1_87, %c0_88, %c0_89] : memref<5x13x29xbf16, #tpu.memory_space<vmem>>, vector<1x13x29xbf16>
    %104 = vector.shape_cast %103 : vector<1x13x29xbf16> to vector<13x29xbf16>
    %cst_90 = arith.constant dense<0.000000e+00> : vector<13x464xf32>
    %105 = tpu.matmul %104, %95, %cst_90 {dimension_numbers = #tpu.dot_dimension_numbers<[1], [0], [0], [1], [0, 0, 1, 1], [], []>} : vector<13x29xbf16>, vector<29x464xbf16>, vector<13x464xf32> -> vector<13x464xf32>
    %106 = arith.truncf %105 : vector<13x464xf32> to vector<13x464xbf16>
    %c1_91 = arith.constant 1 : index
    %c0_92 = arith.constant 0 : index
    %c0_93 = arith.constant 0 : index
    %107 = vector.load %arg12[%c1_91, %c0_92, %c0_93] : memref<5x464x416xbf16, #tpu.memory_space<vmem>>, vector<1x464x416xbf16>
    %108 = vector.shape_cast %107 : vector<1x464x416xbf16> to vector<464x416xbf16>
    %cst_94 = arith.constant dense<0.000000e+00> : vector<13x416xf32>
    %109 = tpu.matmul %106, %108, %cst_94 {dimension_numbers = #tpu.dot_dimension_numbers<[1], [0], [0], [1], [0, 0, 1, 1], [], []>} : vector<13x464xbf16>, vector<464x416xbf16>, vector<13x416xf32> -> vector<13x416xf32>
    %110 = arith.addf %102, %109 : vector<13x416xf32>
    %c2_95 = arith.constant 2 : index
    %c0_96 = arith.constant 0 : index
    %c0_97 = arith.constant 0 : index
    %111 = vector.load %arg11[%c2_95, %c0_96, %c0_97] : memref<5x13x29xbf16, #tpu.memory_space<vmem>>, vector<1x13x29xbf16>
    %112 = vector.shape_cast %111 : vector<1x13x29xbf16> to vector<13x29xbf16>
    %cst_98 = arith.constant dense<0.000000e+00> : vector<13x464xf32>
    %113 = tpu.matmul %112, %95, %cst_98 {dimension_numbers = #tpu.dot_dimension_numbers<[1], [0], [0], [1], [0, 0, 1, 1], [], []>} : vector<13x29xbf16>, vector<29x464xbf16>, vector<13x464xf32> -> vector<13x464xf32>
    %114 = arith.truncf %113 : vector<13x464xf32> to vector<13x464xbf16>
    %c2_99 = arith.constant 2 : index
    %c0_100 = arith.constant 0 : index
    %c0_101 = arith.constant 0 : index
    %115 = vector.load %arg12[%c2_99, %c0_100, %c0_101] : memref<5x464x416xbf16, #tpu.memory_space<vmem>>, vector<1x464x416xbf16>
    %116 = vector.shape_cast %115 : vector<1x464x416xbf16> to vector<464x416xbf16>
    %cst_102 = arith.constant dense<0.000000e+00> : vector<13x416xf32>
    %117 = tpu.matmul %114, %116, %cst_102 {dimension_numbers = #tpu.dot_dimension_numbers<[1], [0], [0], [1], [0, 0, 1, 1], [], []>} : vector<13x464xbf16>, vector<464x416xbf16>, vector<13x416xf32> -> vector<13x416xf32>
    %118 = arith.addf %110, %117 : vector<13x416xf32>
    %c3_103 = arith.constant 3 : index
    %c0_104 = arith.constant 0 : index
    %c0_105 = arith.constant 0 : index
    %119 = vector.load %arg11[%c3_103, %c0_104, %c0_105] : memref<5x13x29xbf16, #tpu.memory_space<vmem>>, vector<1x13x29xbf16>
    %120 = vector.shape_cast %119 : vector<1x13x29xbf16> to vector<13x29xbf16>
    %cst_106 = arith.constant dense<0.000000e+00> : vector<13x464xf32>
    %121 = tpu.matmul %120, %95, %cst_106 {dimension_numbers = #tpu.dot_dimension_numbers<[1], [0], [0], [1], [0, 0, 1, 1], [], []>} : vector<13x29xbf16>, vector<29x464xbf16>, vector<13x464xf32> -> vector<13x464xf32>
    %122 = arith.truncf %121 : vector<13x464xf32> to vector<13x464xbf16>
    %c3_107 = arith.constant 3 : index
    %c0_108 = arith.constant 0 : index
    %c0_109 = arith.constant 0 : index
    %123 = vector.load %arg12[%c3_107, %c0_108, %c0_109] : memref<5x464x416xbf16, #tpu.memory_space<vmem>>, vector<1x464x416xbf16>
    %124 = vector.shape_cast %123 : vector<1x464x416xbf16> to vector<464x416xbf16>
    %cst_110 = arith.constant dense<0.000000e+00> : vector<13x416xf32>
    %125 = tpu.matmul %122, %124, %cst_110 {dimension_numbers = #tpu.dot_dimension_numbers<[1], [0], [0], [1], [0, 0, 1, 1], [], []>} : vector<13x464xbf16>, vector<464x416xbf16>, vector<13x416xf32> -> vector<13x416xf32>
    %126 = arith.addf %118, %125 : vector<13x416xf32>
    %c4_111 = arith.constant 4 : index
    %c0_112 = arith.constant 0 : index
    %c0_113 = arith.constant 0 : index
    %127 = vector.load %arg11[%c4_111, %c0_112, %c0_113] : memref<5x13x29xbf16, #tpu.memory_space<vmem>>, vector<1x13x29xbf16>
    %128 = vector.shape_cast %127 : vector<1x13x29xbf16> to vector<13x29xbf16>
    %cst_114 = arith.constant dense<0.000000e+00> : vector<13x464xf32>
    %129 = tpu.matmul %128, %95, %cst_114 {dimension_numbers = #tpu.dot_dimension_numbers<[1], [0], [0], [1], [0, 0, 1, 1], [], []>} : vector<13x29xbf16>, vector<29x464xbf16>, vector<13x464xf32> -> vector<13x464xf32>
    %130 = arith.truncf %129 : vector<13x464xf32> to vector<13x464xbf16>
    %c4_115 = arith.constant 4 : index
    %c0_116 = arith.constant 0 : index
    %c0_117 = arith.constant 0 : index
    %131 = vector.load %arg12[%c4_115, %c0_116, %c0_117] : memref<5x464x416xbf16, #tpu.memory_space<vmem>>, vector<1x464x416xbf16>
    %132 = vector.shape_cast %131 : vector<1x464x416xbf16> to vector<464x416xbf16>
    %cst_118 = arith.constant dense<0.000000e+00> : vector<13x416xf32>
    %133 = tpu.matmul %130, %132, %cst_118 {dimension_numbers = #tpu.dot_dimension_numbers<[1], [0], [0], [1], [0, 0, 1, 1], [], []>} : vector<13x464xbf16>, vector<464x416xbf16>, vector<13x416xf32> -> vector<13x416xf32>
    %134 = arith.addf %126, %133 : vector<13x416xf32>
    %c0_119 = arith.constant 0 : index
    %c0_120 = arith.constant 0 : index
    %135 = vector.load %arg13[%c0_119, %c0_120] : memref<1x416xf32, #tpu.memory_space<vmem>>, vector<1x416xf32>
    %136 = vector.broadcast %135 : vector<1x416xf32> to vector<13x416xf32>
    %137 = arith.mulf %134, %136 : vector<13x416xf32>
    %c0_121 = arith.constant 0 : index
    %c0_122 = arith.constant 0 : index
    %138 = vector.load %arg14[%c0_121, %c0_122] : memref<1x416xf32, #tpu.memory_space<vmem>>, vector<1x416xf32>
    %139 = vector.broadcast %138 : vector<1x416xf32> to vector<13x416xf32>
    %140 = arith.addf %137, %139 : vector<13x416xf32>
    %cst_123 = arith.constant 0.000000e+00 : f32
    %141 = vector.broadcast %cst_123 : f32 to vector<13x416xf32>
    %142 = arith.cmpf ogt, %140, %141 : vector<13x416xf32>
    %cst_124 = arith.constant 2.000000e-02 : f32
    %143 = vector.broadcast %cst_124 : f32 to vector<13x416xf32>
    %144 = arith.mulf %143, %140 : vector<13x416xf32>
    %145 = arith.select %142, %140, %144 : vector<13x416xi1>, vector<13x416xf32>
    %146 = arith.truncf %145 : vector<13x416xf32> to vector<13x416xbf16>
    %c0_125 = arith.constant 0 : index
    %c0_126 = arith.constant 0 : index
    %c0_127 = arith.constant 0 : index
    %147 = vector.load %arg15[%c0_125, %c0_126, %c0_127] : memref<7x4x13xbf16, #tpu.memory_space<vmem>>, vector<1x4x13xbf16>
    %148 = vector.shape_cast %147 : vector<1x4x13xbf16> to vector<4x13xbf16>
    %cst_128 = arith.constant dense<0.000000e+00> : vector<4x416xf32>
    %149 = tpu.matmul %148, %146, %cst_128 {dimension_numbers = #tpu.dot_dimension_numbers<[1], [0], [0], [1], [0, 0, 1, 1], [], []>} : vector<4x13xbf16>, vector<13x416xbf16>, vector<4x416xf32> -> vector<4x416xf32>
    %150 = arith.truncf %149 : vector<4x416xf32> to vector<4x416xbf16>
    %c0_129 = arith.constant 0 : index
    %c0_130 = arith.constant 0 : index
    %c0_131 = arith.constant 0 : index
    %151 = vector.load %arg16[%c0_129, %c0_130, %c0_131] : memref<7x416x128xbf16, #tpu.memory_space<vmem>>, vector<1x416x128xbf16>
    %152 = vector.shape_cast %151 : vector<1x416x128xbf16> to vector<416x128xbf16>
    %cst_132 = arith.constant dense<0.000000e+00> : vector<4x128xf32>
    %153 = tpu.matmul %150, %152, %cst_132 {dimension_numbers = #tpu.dot_dimension_numbers<[1], [0], [0], [1], [0, 0, 1, 1], [], []>} : vector<4x416xbf16>, vector<416x128xbf16>, vector<4x128xf32> -> vector<4x128xf32>
    %c1_133 = arith.constant 1 : index
    %c0_134 = arith.constant 0 : index
    %c0_135 = arith.constant 0 : index
    %154 = vector.load %arg15[%c1_133, %c0_134, %c0_135] : memref<7x4x13xbf16, #tpu.memory_space<vmem>>, vector<1x4x13xbf16>
    %155 = vector.shape_cast %154 : vector<1x4x13xbf16> to vector<4x13xbf16>
    %cst_136 = arith.constant dense<0.000000e+00> : vector<4x416xf32>
    %156 = tpu.matmul %155, %146, %cst_136 {dimension_numbers = #tpu.dot_dimension_numbers<[1], [0], [0], [1], [0, 0, 1, 1], [], []>} : vector<4x13xbf16>, vector<13x416xbf16>, vector<4x416xf32> -> vector<4x416xf32>
    %157 = arith.truncf %156 : vector<4x416xf32> to vector<4x416xbf16>
    %c1_137 = arith.constant 1 : index
    %c0_138 = arith.constant 0 : index
    %c0_139 = arith.constant 0 : index
    %158 = vector.load %arg16[%c1_137, %c0_138, %c0_139] : memref<7x416x128xbf16, #tpu.memory_space<vmem>>, vector<1x416x128xbf16>
    %159 = vector.shape_cast %158 : vector<1x416x128xbf16> to vector<416x128xbf16>
    %cst_140 = arith.constant dense<0.000000e+00> : vector<4x128xf32>
    %160 = tpu.matmul %157, %159, %cst_140 {dimension_numbers = #tpu.dot_dimension_numbers<[1], [0], [0], [1], [0, 0, 1, 1], [], []>} : vector<4x416xbf16>, vector<416x128xbf16>, vector<4x128xf32> -> vector<4x128xf32>
    %161 = arith.addf %153, %160 : vector<4x128xf32>
    %c2_141 = arith.constant 2 : index
    %c0_142 = arith.constant 0 : index
    %c0_143 = arith.constant 0 : index
    %162 = vector.load %arg15[%c2_141, %c0_142, %c0_143] : memref<7x4x13xbf16, #tpu.memory_space<vmem>>, vector<1x4x13xbf16>
    %163 = vector.shape_cast %162 : vector<1x4x13xbf16> to vector<4x13xbf16>
    %cst_144 = arith.constant dense<0.000000e+00> : vector<4x416xf32>
    %164 = tpu.matmul %163, %146, %cst_144 {dimension_numbers = #tpu.dot_dimension_numbers<[1], [0], [0], [1], [0, 0, 1, 1], [], []>} : vector<4x13xbf16>, vector<13x416xbf16>, vector<4x416xf32> -> vector<4x416xf32>
    %165 = arith.truncf %164 : vector<4x416xf32> to vector<4x416xbf16>
    %c2_145 = arith.constant 2 : index
    %c0_146 = arith.constant 0 : index
    %c0_147 = arith.constant 0 : index
    %166 = vector.load %arg16[%c2_145, %c0_146, %c0_147] : memref<7x416x128xbf16, #tpu.memory_space<vmem>>, vector<1x416x128xbf16>
    %167 = vector.shape_cast %166 : vector<1x416x128xbf16> to vector<416x128xbf16>
    %cst_148 = arith.constant dense<0.000000e+00> : vector<4x128xf32>
    %168 = tpu.matmul %165, %167, %cst_148 {dimension_numbers = #tpu.dot_dimension_numbers<[1], [0], [0], [1], [0, 0, 1, 1], [], []>} : vector<4x416xbf16>, vector<416x128xbf16>, vector<4x128xf32> -> vector<4x128xf32>
    %169 = arith.addf %161, %168 : vector<4x128xf32>
    %c3_149 = arith.constant 3 : index
    %c0_150 = arith.constant 0 : index
    %c0_151 = arith.constant 0 : index
    %170 = vector.load %arg15[%c3_149, %c0_150, %c0_151] : memref<7x4x13xbf16, #tpu.memory_space<vmem>>, vector<1x4x13xbf16>
    %171 = vector.shape_cast %170 : vector<1x4x13xbf16> to vector<4x13xbf16>
    %cst_152 = arith.constant dense<0.000000e+00> : vector<4x416xf32>
    %172 = tpu.matmul %171, %146, %cst_152 {dimension_numbers = #tpu.dot_dimension_numbers<[1], [0], [0], [1], [0, 0, 1, 1], [], []>} : vector<4x13xbf16>, vector<13x416xbf16>, vector<4x416xf32> -> vector<4x416xf32>
    %173 = arith.truncf %172 : vector<4x416xf32> to vector<4x416xbf16>
    %c3_153 = arith.constant 3 : index
    %c0_154 = arith.constant 0 : index
    %c0_155 = arith.constant 0 : index
    %174 = vector.load %arg16[%c3_153, %c0_154, %c0_155] : memref<7x416x128xbf16, #tpu.memory_space<vmem>>, vector<1x416x128xbf16>
    %175 = vector.shape_cast %174 : vector<1x416x128xbf16> to vector<416x128xbf16>
    %cst_156 = arith.constant dense<0.000000e+00> : vector<4x128xf32>
    %176 = tpu.matmul %173, %175, %cst_156 {dimension_numbers = #tpu.dot_dimension_numbers<[1], [0], [0], [1], [0, 0, 1, 1], [], []>} : vector<4x416xbf16>, vector<416x128xbf16>, vector<4x128xf32> -> vector<4x128xf32>
    %177 = arith.addf %169, %176 : vector<4x128xf32>
    %c4_157 = arith.constant 4 : index
    %c0_158 = arith.constant 0 : index
    %c0_159 = arith.constant 0 : index
    %178 = vector.load %arg15[%c4_157, %c0_158, %c0_159] : memref<7x4x13xbf16, #tpu.memory_space<vmem>>, vector<1x4x13xbf16>
    %179 = vector.shape_cast %178 : vector<1x4x13xbf16> to vector<4x13xbf16>
    %cst_160 = arith.constant dense<0.000000e+00> : vector<4x416xf32>
    %180 = tpu.matmul %179, %146, %cst_160 {dimension_numbers = #tpu.dot_dimension_numbers<[1], [0], [0], [1], [0, 0, 1, 1], [], []>} : vector<4x13xbf16>, vector<13x416xbf16>, vector<4x416xf32> -> vector<4x416xf32>
    %181 = arith.truncf %180 : vector<4x416xf32> to vector<4x416xbf16>
    %c4_161 = arith.constant 4 : index
    %c0_162 = arith.constant 0 : index
    %c0_163 = arith.constant 0 : index
    %182 = vector.load %arg16[%c4_161, %c0_162, %c0_163] : memref<7x416x128xbf16, #tpu.memory_space<vmem>>, vector<1x416x128xbf16>
    %183 = vector.shape_cast %182 : vector<1x416x128xbf16> to vector<416x128xbf16>
    %cst_164 = arith.constant dense<0.000000e+00> : vector<4x128xf32>
    %184 = tpu.matmul %181, %183, %cst_164 {dimension_numbers = #tpu.dot_dimension_numbers<[1], [0], [0], [1], [0, 0, 1, 1], [], []>} : vector<4x416xbf16>, vector<416x128xbf16>, vector<4x128xf32> -> vector<4x128xf32>
    %185 = arith.addf %177, %184 : vector<4x128xf32>
    %c5_165 = arith.constant 5 : index
    %c0_166 = arith.constant 0 : index
    %c0_167 = arith.constant 0 : index
    %186 = vector.load %arg15[%c5_165, %c0_166, %c0_167] : memref<7x4x13xbf16, #tpu.memory_space<vmem>>, vector<1x4x13xbf16>
    %187 = vector.shape_cast %186 : vector<1x4x13xbf16> to vector<4x13xbf16>
    %cst_168 = arith.constant dense<0.000000e+00> : vector<4x416xf32>
    %188 = tpu.matmul %187, %146, %cst_168 {dimension_numbers = #tpu.dot_dimension_numbers<[1], [0], [0], [1], [0, 0, 1, 1], [], []>} : vector<4x13xbf16>, vector<13x416xbf16>, vector<4x416xf32> -> vector<4x416xf32>
    %189 = arith.truncf %188 : vector<4x416xf32> to vector<4x416xbf16>
    %c5_169 = arith.constant 5 : index
    %c0_170 = arith.constant 0 : index
    %c0_171 = arith.constant 0 : index
    %190 = vector.load %arg16[%c5_169, %c0_170, %c0_171] : memref<7x416x128xbf16, #tpu.memory_space<vmem>>, vector<1x416x128xbf16>
    %191 = vector.shape_cast %190 : vector<1x416x128xbf16> to vector<416x128xbf16>
    %cst_172 = arith.constant dense<0.000000e+00> : vector<4x128xf32>
    %192 = tpu.matmul %189, %191, %cst_172 {dimension_numbers = #tpu.dot_dimension_numbers<[1], [0], [0], [1], [0, 0, 1, 1], [], []>} : vector<4x416xbf16>, vector<416x128xbf16>, vector<4x128xf32> -> vector<4x128xf32>
    %193 = arith.addf %185, %192 : vector<4x128xf32>
    %c6_173 = arith.constant 6 : index
    %c0_174 = arith.constant 0 : index
    %c0_175 = arith.constant 0 : index
    %194 = vector.load %arg15[%c6_173, %c0_174, %c0_175] : memref<7x4x13xbf16, #tpu.memory_space<vmem>>, vector<1x4x13xbf16>
    %195 = vector.shape_cast %194 : vector<1x4x13xbf16> to vector<4x13xbf16>
    %cst_176 = arith.constant dense<0.000000e+00> : vector<4x416xf32>
    %196 = tpu.matmul %195, %146, %cst_176 {dimension_numbers = #tpu.dot_dimension_numbers<[1], [0], [0], [1], [0, 0, 1, 1], [], []>} : vector<4x13xbf16>, vector<13x416xbf16>, vector<4x416xf32> -> vector<4x416xf32>
    %197 = arith.truncf %196 : vector<4x416xf32> to vector<4x416xbf16>
    %c6_177 = arith.constant 6 : index
    %c0_178 = arith.constant 0 : index
    %c0_179 = arith.constant 0 : index
    %198 = vector.load %arg16[%c6_177, %c0_178, %c0_179] : memref<7x416x128xbf16, #tpu.memory_space<vmem>>, vector<1x416x128xbf16>
    %199 = vector.shape_cast %198 : vector<1x416x128xbf16> to vector<416x128xbf16>
    %cst_180 = arith.constant dense<0.000000e+00> : vector<4x128xf32>
    %200 = tpu.matmul %197, %199, %cst_180 {dimension_numbers = #tpu.dot_dimension_numbers<[1], [0], [0], [1], [0, 0, 1, 1], [], []>} : vector<4x416xbf16>, vector<416x128xbf16>, vector<4x128xf32> -> vector<4x128xf32>
    %201 = arith.addf %193, %200 : vector<4x128xf32>
    %c0_181 = arith.constant 0 : index
    %c0_182 = arith.constant 0 : index
    %202 = vector.load %arg17[%c0_181, %c0_182] : memref<1x128xf32, #tpu.memory_space<vmem>>, vector<1x128xf32>
    %203 = vector.broadcast %202 : vector<1x128xf32> to vector<4x128xf32>
    %204 = arith.mulf %201, %203 : vector<4x128xf32>
    %c0_183 = arith.constant 0 : index
    %c0_184 = arith.constant 0 : index
    %205 = vector.load %arg18[%c0_183, %c0_184] : memref<1x128xf32, #tpu.memory_space<vmem>>, vector<1x128xf32>
    %206 = vector.broadcast %205 : vector<1x128xf32> to vector<4x128xf32>
    %207 = arith.addf %204, %206 : vector<4x128xf32>
    %cst_185 = arith.constant 0.000000e+00 : f32
    %208 = vector.broadcast %cst_185 : f32 to vector<4x128xf32>
    %209 = arith.cmpf ogt, %207, %208 : vector<4x128xf32>
    %cst_186 = arith.constant 2.000000e-02 : f32
    %210 = vector.broadcast %cst_186 : f32 to vector<4x128xf32>
    %211 = arith.mulf %210, %207 : vector<4x128xf32>
    %212 = arith.select %209, %207, %211 : vector<4x128xi1>, vector<4x128xf32>
    %213 = arith.truncf %212 : vector<4x128xf32> to vector<4x128xbf16>
    %c0_187 = arith.constant 0 : index
    %c0_188 = arith.constant 0 : index
    %c0_189 = arith.constant 0 : index
    %214 = vector.load %arg19[%c0_187, %c0_188, %c0_189] : memref<4x1x4xbf16, #tpu.memory_space<vmem>>, vector<1x1x4xbf16>
    %215 = vector.shape_cast %214 : vector<1x1x4xbf16> to vector<1x4xbf16>
    %cst_190 = arith.constant dense<0.000000e+00> : vector<1x128xf32>
    %216 = tpu.matmul %215, %213, %cst_190 {dimension_numbers = #tpu.dot_dimension_numbers<[1], [0], [0], [1], [0, 0, 1, 1], [], []>} : vector<1x4xbf16>, vector<4x128xbf16>, vector<1x128xf32> -> vector<1x128xf32>
    %217 = arith.truncf %216 : vector<1x128xf32> to vector<1x128xbf16>
    %c0_191 = arith.constant 0 : index
    %c0_192 = arith.constant 0 : index
    %c0_193 = arith.constant 0 : index
    %218 = vector.load %arg20[%c0_191, %c0_192, %c0_193] : memref<4x128x64xbf16, #tpu.memory_space<vmem>>, vector<1x128x64xbf16>
    %219 = vector.shape_cast %218 : vector<1x128x64xbf16> to vector<128x64xbf16>
    %cst_194 = arith.constant dense<0.000000e+00> : vector<1x64xf32>
    %220 = tpu.matmul %217, %219, %cst_194 {dimension_numbers = #tpu.dot_dimension_numbers<[1], [0], [0], [1], [0, 0, 1, 1], [], []>} : vector<1x128xbf16>, vector<128x64xbf16>, vector<1x64xf32> -> vector<1x64xf32>
    %c1_195 = arith.constant 1 : index
    %c0_196 = arith.constant 0 : index
    %c0_197 = arith.constant 0 : index
    %221 = vector.load %arg19[%c1_195, %c0_196, %c0_197] : memref<4x1x4xbf16, #tpu.memory_space<vmem>>, vector<1x1x4xbf16>
    %222 = vector.shape_cast %221 : vector<1x1x4xbf16> to vector<1x4xbf16>
    %cst_198 = arith.constant dense<0.000000e+00> : vector<1x128xf32>
    %223 = tpu.matmul %222, %213, %cst_198 {dimension_numbers = #tpu.dot_dimension_numbers<[1], [0], [0], [1], [0, 0, 1, 1], [], []>} : vector<1x4xbf16>, vector<4x128xbf16>, vector<1x128xf32> -> vector<1x128xf32>
    %224 = arith.truncf %223 : vector<1x128xf32> to vector<1x128xbf16>
    %c1_199 = arith.constant 1 : index
    %c0_200 = arith.constant 0 : index
    %c0_201 = arith.constant 0 : index
    %225 = vector.load %arg20[%c1_199, %c0_200, %c0_201] : memref<4x128x64xbf16, #tpu.memory_space<vmem>>, vector<1x128x64xbf16>
    %226 = vector.shape_cast %225 : vector<1x128x64xbf16> to vector<128x64xbf16>
    %cst_202 = arith.constant dense<0.000000e+00> : vector<1x64xf32>
    %227 = tpu.matmul %224, %226, %cst_202 {dimension_numbers = #tpu.dot_dimension_numbers<[1], [0], [0], [1], [0, 0, 1, 1], [], []>} : vector<1x128xbf16>, vector<128x64xbf16>, vector<1x64xf32> -> vector<1x64xf32>
    %228 = arith.addf %220, %227 : vector<1x64xf32>
    %c2_203 = arith.constant 2 : index
    %c0_204 = arith.constant 0 : index
    %c0_205 = arith.constant 0 : index
    %229 = vector.load %arg19[%c2_203, %c0_204, %c0_205] : memref<4x1x4xbf16, #tpu.memory_space<vmem>>, vector<1x1x4xbf16>
    %230 = vector.shape_cast %229 : vector<1x1x4xbf16> to vector<1x4xbf16>
    %cst_206 = arith.constant dense<0.000000e+00> : vector<1x128xf32>
    %231 = tpu.matmul %230, %213, %cst_206 {dimension_numbers = #tpu.dot_dimension_numbers<[1], [0], [0], [1], [0, 0, 1, 1], [], []>} : vector<1x4xbf16>, vector<4x128xbf16>, vector<1x128xf32> -> vector<1x128xf32>
    %232 = arith.truncf %231 : vector<1x128xf32> to vector<1x128xbf16>
    %c2_207 = arith.constant 2 : index
    %c0_208 = arith.constant 0 : index
    %c0_209 = arith.constant 0 : index
    %233 = vector.load %arg20[%c2_207, %c0_208, %c0_209] : memref<4x128x64xbf16, #tpu.memory_space<vmem>>, vector<1x128x64xbf16>
    %234 = vector.shape_cast %233 : vector<1x128x64xbf16> to vector<128x64xbf16>
    %cst_210 = arith.constant dense<0.000000e+00> : vector<1x64xf32>
    %235 = tpu.matmul %232, %234, %cst_210 {dimension_numbers = #tpu.dot_dimension_numbers<[1], [0], [0], [1], [0, 0, 1, 1], [], []>} : vector<1x128xbf16>, vector<128x64xbf16>, vector<1x64xf32> -> vector<1x64xf32>
    %236 = arith.addf %228, %235 : vector<1x64xf32>
    %c3_211 = arith.constant 3 : index
    %c0_212 = arith.constant 0 : index
    %c0_213 = arith.constant 0 : index
    %237 = vector.load %arg19[%c3_211, %c0_212, %c0_213] : memref<4x1x4xbf16, #tpu.memory_space<vmem>>, vector<1x1x4xbf16>
    %238 = vector.shape_cast %237 : vector<1x1x4xbf16> to vector<1x4xbf16>
    %cst_214 = arith.constant dense<0.000000e+00> : vector<1x128xf32>
    %239 = tpu.matmul %238, %213, %cst_214 {dimension_numbers = #tpu.dot_dimension_numbers<[1], [0], [0], [1], [0, 0, 1, 1], [], []>} : vector<1x4xbf16>, vector<4x128xbf16>, vector<1x128xf32> -> vector<1x128xf32>
    %240 = arith.truncf %239 : vector<1x128xf32> to vector<1x128xbf16>
    %c3_215 = arith.constant 3 : index
    %c0_216 = arith.constant 0 : index
    %c0_217 = arith.constant 0 : index
    %241 = vector.load %arg20[%c3_215, %c0_216, %c0_217] : memref<4x128x64xbf16, #tpu.memory_space<vmem>>, vector<1x128x64xbf16>
    %242 = vector.shape_cast %241 : vector<1x128x64xbf16> to vector<128x64xbf16>
    %cst_218 = arith.constant dense<0.000000e+00> : vector<1x64xf32>
    %243 = tpu.matmul %240, %242, %cst_218 {dimension_numbers = #tpu.dot_dimension_numbers<[1], [0], [0], [1], [0, 0, 1, 1], [], []>} : vector<1x128xbf16>, vector<128x64xbf16>, vector<1x64xf32> -> vector<1x64xf32>
    %244 = arith.addf %236, %243 : vector<1x64xf32>
    %c0_219 = arith.constant 0 : index
    %c0_220 = arith.constant 0 : index
    %245 = vector.load %arg21[%c0_219, %c0_220] : memref<1x64xf32, #tpu.memory_space<vmem>>, vector<1x64xf32>
    %246 = arith.mulf %244, %245 : vector<1x64xf32>
    %c0_221 = arith.constant 0 : index
    %c0_222 = arith.constant 0 : index
    %247 = vector.load %arg22[%c0_221, %c0_222] : memref<1x64xf32, #tpu.memory_space<vmem>>, vector<1x64xf32>
    %248 = arith.addf %246, %247 : vector<1x64xf32>
    %cst_223 = arith.constant 0.000000e+00 : f32
    %249 = vector.broadcast %cst_223 : f32 to vector<1x64xf32>
    %250 = arith.cmpf ogt, %248, %249 : vector<1x64xf32>
    %cst_224 = arith.constant 2.000000e-02 : f32
    %251 = vector.broadcast %cst_224 : f32 to vector<1x64xf32>
    %252 = arith.mulf %251, %248 : vector<1x64xf32>
    %253 = arith.select %250, %248, %252 : vector<1x64xi1>, vector<1x64xf32>
    %254 = arith.truncf %253 : vector<1x64xf32> to vector<1x64xbf16>
    %c0_225 = arith.constant 0 : index
    %c0_226 = arith.constant 0 : index
    %c0_227 = arith.constant 0 : index
    %255 = vector.load %arg2[%c0_225, %c0_226, %c0_227] : memref<1x1x32xbf16, #tpu.memory_space<vmem>>, vector<1x1x32xbf16>
    %256 = vector.shape_cast %255 : vector<1x1x32xbf16> to vector<1x32xbf16>
    %c0_228 = arith.constant 0 : index
    %c0_229 = arith.constant 0 : index
    %257 = vector.load %arg23[%c0_228, %c0_229] : memref<32x128xbf16, #tpu.memory_space<vmem>>, vector<32x128xbf16>
    %cst_230 = arith.constant dense<0.000000e+00> : vector<1x128xf32>
    %258 = tpu.matmul %256, %257, %cst_230 {dimension_numbers = #tpu.dot_dimension_numbers<[1], [0], [0], [1], [0, 0, 1, 1], [], []>} : vector<1x32xbf16>, vector<32x128xbf16>, vector<1x128xf32> -> vector<1x128xf32>
    %cst_231 = arith.constant 0.000000e+00 : f32
    %259 = vector.broadcast %cst_231 : f32 to vector<1x128xf32>
    %260 = arith.cmpf ogt, %258, %259 : vector<1x128xf32>
    %cst_232 = arith.constant 2.000000e-02 : f32
    %261 = vector.broadcast %cst_232 : f32 to vector<1x128xf32>
    %262 = arith.mulf %261, %258 : vector<1x128xf32>
    %263 = arith.select %260, %258, %262 : vector<1x128xi1>, vector<1x128xf32>
    %264 = arith.truncf %263 : vector<1x128xf32> to vector<1x128xbf16>
    %c0_233 = arith.constant 0 : index
    %c0_234 = arith.constant 0 : index
    %265 = vector.load %arg24[%c0_233, %c0_234] : memref<128x128xbf16, #tpu.memory_space<vmem>>, vector<128x128xbf16>
    %cst_235 = arith.constant dense<0.000000e+00> : vector<1x128xf32>
    %266 = tpu.matmul %264, %265, %cst_235 {dimension_numbers = #tpu.dot_dimension_numbers<[1], [0], [0], [1], [0, 0, 1, 1], [], []>} : vector<1x128xbf16>, vector<128x128xbf16>, vector<1x128xf32> -> vector<1x128xf32>
    %cst_236 = arith.constant 0.000000e+00 : f32
    %267 = vector.broadcast %cst_236 : f32 to vector<1x128xf32>
    %268 = arith.cmpf ogt, %266, %267 : vector<1x128xf32>
    %cst_237 = arith.constant 2.000000e-02 : f32
    %269 = vector.broadcast %cst_237 : f32 to vector<1x128xf32>
    %270 = arith.mulf %269, %266 : vector<1x128xf32>
    %271 = arith.select %268, %266, %270 : vector<1x128xi1>, vector<1x128xf32>
    %c0_238 = arith.constant 0 : index
    %c0_239 = arith.constant 0 : index
    %272 = vector.load %arg25[%c0_238, %c0_239] : memref<64x256xbf16, #tpu.memory_space<vmem>>, vector<64x256xbf16>
    %cst_240 = arith.constant dense<0.000000e+00> : vector<1x256xf32>
    %273 = tpu.matmul %254, %272, %cst_240 {dimension_numbers = #tpu.dot_dimension_numbers<[1], [0], [0], [1], [0, 0, 1, 1], [], []>} : vector<1x64xbf16>, vector<64x256xbf16>, vector<1x256xf32> -> vector<1x256xf32>
    %274 = arith.truncf %271 : vector<1x128xf32> to vector<1x128xbf16>
    %c0_241 = arith.constant 0 : index
    %c0_242 = arith.constant 0 : index
    %275 = vector.load %arg26[%c0_241, %c0_242] : memref<128x256xbf16, #tpu.memory_space<vmem>>, vector<128x256xbf16>
    %cst_243 = arith.constant dense<0.000000e+00> : vector<1x256xf32>
    %276 = tpu.matmul %274, %275, %cst_243 {dimension_numbers = #tpu.dot_dimension_numbers<[1], [0], [0], [1], [0, 0, 1, 1], [], []>} : vector<1x128xbf16>, vector<128x256xbf16>, vector<1x256xf32> -> vector<1x256xf32>
    %277 = arith.addf %273, %276 : vector<1x256xf32>
    %c0_244 = arith.constant 0 : index
    %c0_245 = arith.constant 0 : index
    %278 = vector.load %arg27[%c0_244, %c0_245] : memref<1x256xf32, #tpu.memory_space<vmem>>, vector<1x256xf32>
    %279 = arith.addf %277, %278 : vector<1x256xf32>
    %cst_246 = arith.constant 0.000000e+00 : f32
    %280 = vector.broadcast %cst_246 : f32 to vector<1x256xf32>
    %281 = arith.cmpf ogt, %279, %280 : vector<1x256xf32>
    %cst_247 = arith.constant 2.000000e-02 : f32
    %282 = vector.broadcast %cst_247 : f32 to vector<1x256xf32>
    %283 = arith.mulf %282, %279 : vector<1x256xf32>
    %284 = arith.select %281, %279, %283 : vector<1x256xi1>, vector<1x256xf32>
    %285 = arith.truncf %284 : vector<1x256xf32> to vector<1x256xbf16>
    %c0_248 = arith.constant 0 : index
    %c0_249 = arith.constant 0 : index
    %286 = vector.load %arg28[%c0_248, %c0_249] : memref<256x256xbf16, #tpu.memory_space<vmem>>, vector<256x256xbf16>
    %cst_250 = arith.constant dense<0.000000e+00> : vector<1x256xf32>
    %287 = tpu.matmul %285, %286, %cst_250 {dimension_numbers = #tpu.dot_dimension_numbers<[1], [0], [0], [1], [0, 0, 1, 1], [], []>} : vector<1x256xbf16>, vector<256x256xbf16>, vector<1x256xf32> -> vector<1x256xf32>
    %c0_251 = arith.constant 0 : index
    %c0_252 = arith.constant 0 : index
    %288 = vector.load %arg29[%c0_251, %c0_252] : memref<1x256xf32, #tpu.memory_space<vmem>>, vector<1x256xf32>
    %289 = arith.addf %287, %288 : vector<1x256xf32>
    %cst_253 = arith.constant 0.000000e+00 : f32
    %290 = vector.broadcast %cst_253 : f32 to vector<1x256xf32>
    %291 = arith.cmpf ogt, %289, %290 : vector<1x256xf32>
    %cst_254 = arith.constant 2.000000e-02 : f32
    %292 = vector.broadcast %cst_254 : f32 to vector<1x256xf32>
    %293 = arith.mulf %292, %289 : vector<1x256xf32>
    %294 = arith.select %291, %289, %293 : vector<1x256xi1>, vector<1x256xf32>
    %c0_255 = arith.constant 0 : index
    %c0_256 = arith.constant 0 : index
    %295 = vector.load %arg30[%c0_255, %c0_256] : memref<1x256xbf16, #tpu.memory_space<vmem>>, vector<1x256xbf16>
    %296 = arith.extf %295 : vector<1x256xbf16> to vector<1x256xf32>
    %297 = arith.mulf %294, %296 : vector<1x256xf32>
    %cst_257 = arith.constant dense<0.000000e+00> : vector<1xf32>
    %298 = vector.multi_reduction <add>, %297, %cst_257 [1] : vector<1x256xf32> to vector<1xf32>
    %299 = vector.shape_cast %298 : vector<1xf32> to vector<1x1xf32>
    %c0_258 = arith.constant 0 : index
    %c0_259 = arith.constant 0 : index
    %300 = vector.load %arg31[%c0_258, %c0_259] : memref<1x1xf32, #tpu.memory_space<vmem>>, vector<1x1xf32>
    %301 = arith.addf %299, %300 : vector<1x1xf32>
    %c0_260 = arith.constant 0 : index
    %c0_261 = arith.constant 0 : index
    %c0_262 = arith.constant 0 : index
    %302 = vector.load %arg32[%c0_260, %c0_261, %c0_262] : memref<1x1x1xf32, #tpu.memory_space<vmem>>, vector<1x1x1xf32>
    %303 = vector.shape_cast %302 : vector<1x1x1xf32> to vector<1x1xf32>
    %304 = vector.shape_cast %301 : vector<1x1xf32> to vector<1x1x1xf32>
    tpu.vector_store %arg32[%c0_260, %c0_261, %c0_262], %304 {strides = array<i32>} : memref<1x1x1xf32, #tpu.memory_space<vmem>>, vector<1x1x1xf32>,
    return
  }
  func.func @transform_0(%arg0: i32) -> (i32, i32, i32) {
    %c0_i32 = arith.constant 0 : i32
    %c0_i32_0 = arith.constant 0 : i32
    %c0_i32_1 = arith.constant 0 : i32
    return %arg0, %c0_i32, %c0_i32_0 : i32, i32, i32
  }
  func.func @transform_1(%arg0: i32) -> (i32, i32, i32) {
    %c0_i32 = arith.constant 0 : i32
    %c0_i32_0 = arith.constant 0 : i32
    %c0_i32_1 = arith.constant 0 : i32
    return %arg0, %c0_i32, %c0_i32_0 : i32, i32, i32
  }
  func.func @transform_2(%arg0: i32) -> (i32, i32, i32) {
    %c0_i32 = arith.constant 0 : i32
    %c0_i32_0 = arith.constant 0 : i32
    %c0_i32_1 = arith.constant 0 : i32
    %c0_i32_2 = arith.constant 0 : i32
    return %c0_i32, %c0_i32_0, %c0_i32_1 : i32, i32, i32
  }
  func.func @transform_3(%arg0: i32) -> (i32, i32, i32) {
    %c0_i32 = arith.constant 0 : i32
    %c0_i32_0 = arith.constant 0 : i32
    %c0_i32_1 = arith.constant 0 : i32
    %c0_i32_2 = arith.constant 0 : i32
    return %c0_i32, %c0_i32_0, %c0_i32_1 : i32, i32, i32
  }
  func.func @transform_4(%arg0: i32) -> (i32, i32) {
    %c0_i32 = arith.constant 0 : i32
    %c0_i32_0 = arith.constant 0 : i32
    %c0_i32_1 = arith.constant 0 : i32
    return %c0_i32, %c0_i32_0 : i32, i32
  }
  func.func @transform_5(%arg0: i32) -> (i32, i32) {
    %c0_i32 = arith.constant 0 : i32
    %c0_i32_0 = arith.constant 0 : i32
    %c0_i32_1 = arith.constant 0 : i32
    return %c0_i32, %c0_i32_0 : i32, i32
  }
  func.func @transform_6(%arg0: i32) -> (i32, i32, i32) {
    %c0_i32 = arith.constant 0 : i32
    %c0_i32_0 = arith.constant 0 : i32
    %c0_i32_1 = arith.constant 0 : i32
    %c0_i32_2 = arith.constant 0 : i32
    return %c0_i32, %c0_i32_0, %c0_i32_1 : i32, i32, i32
  }
  func.func @transform_7(%arg0: i32) -> (i32, i32, i32) {
    %c0_i32 = arith.constant 0 : i32
    %c0_i32_0 = arith.constant 0 : i32
    %c0_i32_1 = arith.constant 0 : i32
    %c0_i32_2 = arith.constant 0 : i32
    return %c0_i32, %c0_i32_0, %c0_i32_1 : i32, i32, i32
  }
  func.func @transform_8(%arg0: i32) -> (i32, i32) {
    %c0_i32 = arith.constant 0 : i32
    %c0_i32_0 = arith.constant 0 : i32
    %c0_i32_1 = arith.constant 0 : i32
    return %c0_i32, %c0_i32_0 : i32, i32
  }
  func.func @transform_9(%arg0: i32) -> (i32, i32) {
    %c0_i32 = arith.constant 0 : i32
    %c0_i32_0 = arith.constant 0 : i32
    %c0_i32_1 = arith.constant 0 : i32
    return %c0_i32, %c0_i32_0 : i32, i32
  }
  func.func @transform_10(%arg0: i32) -> (i32, i32, i32) {
    %c0_i32 = arith.constant 0 : i32
    %c0_i32_0 = arith.constant 0 : i32
    %c0_i32_1 = arith.constant 0 : i32
    %c0_i32_2 = arith.constant 0 : i32
    return %c0_i32, %c0_i32_0, %c0_i32_1 : i32, i32, i32
  }
  func.func @transform_11(%arg0: i32) -> (i32, i32, i32) {
    %c0_i32 = arith.constant 0 : i32
    %c0_i32_0 = arith.constant 0 : i32
    %c0_i32_1 = arith.constant 0 : i32
    %c0_i32_2 = arith.constant 0 : i32
    return %c0_i32, %c0_i32_0, %c0_i32_1 : i32, i32, i32
  }
  func.func @transform_12(%arg0: i32) -> (i32, i32) {
    %c0_i32 = arith.constant 0 : i32
    %c0_i32_0 = arith.constant 0 : i32
    %c0_i32_1 = arith.constant 0 : i32
    return %c0_i32, %c0_i32_0 : i32, i32
  }
  func.func @transform_13(%arg0: i32) -> (i32, i32) {
    %c0_i32 = arith.constant 0 : i32
    %c0_i32_0 = arith.constant 0 : i32
    %c0_i32_1 = arith.constant 0 : i32
    return %c0_i32, %c0_i32_0 : i32, i32
  }
  func.func @transform_14(%arg0: i32) -> (i32, i32, i32) {
    %c0_i32 = arith.constant 0 : i32
    %c0_i32_0 = arith.constant 0 : i32
    %c0_i32_1 = arith.constant 0 : i32
    %c0_i32_2 = arith.constant 0 : i32
    return %c0_i32, %c0_i32_0, %c0_i32_1 : i32, i32, i32
  }
  func.func @transform_15(%arg0: i32) -> (i32, i32, i32) {
    %c0_i32 = arith.constant 0 : i32
    %c0_i32_0 = arith.constant 0 : i32
    %c0_i32_1 = arith.constant 0 : i32
    %c0_i32_2 = arith.constant 0 : i32
    return %c0_i32, %c0_i32_0, %c0_i32_1 : i32, i32, i32
  }
  func.func @transform_16(%arg0: i32) -> (i32, i32) {
    %c0_i32 = arith.constant 0 : i32
    %c0_i32_0 = arith.constant 0 : i32
    %c0_i32_1 = arith.constant 0 : i32
    return %c0_i32, %c0_i32_0 : i32, i32
  }
  func.func @transform_17(%arg0: i32) -> (i32, i32) {
    %c0_i32 = arith.constant 0 : i32
    %c0_i32_0 = arith.constant 0 : i32
    %c0_i32_1 = arith.constant 0 : i32
    return %c0_i32, %c0_i32_0 : i32, i32
  }
  func.func @transform_18(%arg0: i32) -> (i32, i32, i32) {
    %c0_i32 = arith.constant 0 : i32
    %c0_i32_0 = arith.constant 0 : i32
    %c0_i32_1 = arith.constant 0 : i32
    %c0_i32_2 = arith.constant 0 : i32
    return %c0_i32, %c0_i32_0, %c0_i32_1 : i32, i32, i32
  }
  func.func @transform_19(%arg0: i32) -> (i32, i32, i32) {
    %c0_i32 = arith.constant 0 : i32
    %c0_i32_0 = arith.constant 0 : i32
    %c0_i32_1 = arith.constant 0 : i32
    %c0_i32_2 = arith.constant 0 : i32
    return %c0_i32, %c0_i32_0, %c0_i32_1 : i32, i32, i32
  }
  func.func @transform_20(%arg0: i32) -> (i32, i32) {
    %c0_i32 = arith.constant 0 : i32
    %c0_i32_0 = arith.constant 0 : i32
    %c0_i32_1 = arith.constant 0 : i32
    return %c0_i32, %c0_i32_0 : i32, i32
  }
  func.func @transform_21(%arg0: i32) -> (i32, i32) {
    %c0_i32 = arith.constant 0 : i32
    %c0_i32_0 = arith.constant 0 : i32
    %c0_i32_1 = arith.constant 0 : i32
    return %c0_i32, %c0_i32_0 : i32, i32
  }
  func.func @transform_22(%arg0: i32) -> (i32, i32) {
    %c0_i32 = arith.constant 0 : i32
    %c0_i32_0 = arith.constant 0 : i32
    %c0_i32_1 = arith.constant 0 : i32
    return %c0_i32, %c0_i32_0 : i32, i32
  }
  func.func @transform_23(%arg0: i32) -> (i32, i32) {
    %c0_i32 = arith.constant 0 : i32
    %c0_i32_0 = arith.constant 0 : i32
    %c0_i32_1 = arith.constant 0 : i32
    return %c0_i32, %c0_i32_0 : i32, i32
  }
  func.func @transform_24(%arg0: i32) -> (i32, i32) {
    %c0_i32 = arith.constant 0 : i32
    %c0_i32_0 = arith.constant 0 : i32
    %c0_i32_1 = arith.constant 0 : i32
    return %c0_i32, %c0_i32_0 : i32, i32
  }
  func.func @transform_25(%arg0: i32) -> (i32, i32) {
    %c0_i32 = arith.constant 0 : i32
    %c0_i32_0 = arith.constant 0 : i32
    %c0_i32_1 = arith.constant 0 : i32
    return %c0_i32, %c0_i32_0 : i32, i32
  }
  func.func @transform_26(%arg0: i32) -> (i32, i32) {
    %c0_i32 = arith.constant 0 : i32
    %c0_i32_0 = arith.constant 0 : i32
    %c0_i32_1 = arith.constant 0 : i32
    return %c0_i32, %c0_i32_0 : i32, i32
  }
  func.func @transform_27(%arg0: i32) -> (i32, i32) {
    %c0_i32 = arith.constant 0 : i32
    %c0_i32_0 = arith.constant 0 : i32
    %c0_i32_1 = arith.constant 0 : i32
    return %c0_i32, %c0_i32_0 : i32, i32
  }
  func.func @transform_28(%arg0: i32) -> (i32, i32) {
    %c0_i32 = arith.constant 0 : i32
    %c0_i32_0 = arith.constant 0 : i32
    %c0_i32_1 = arith.constant 0 : i32
    return %c0_i32, %c0_i32_0 : i32, i32
  }
  func.func @transform_29(%arg0: i32) -> (i32, i32) {
    %c0_i32 = arith.constant 0 : i32
    %c0_i32_0 = arith.constant 0 : i32
    %c0_i32_1 = arith.constant 0 : i32
    return %c0_i32, %c0_i32_0 : i32, i32
  }
  func.func @transform_30(%arg0: i32) -> (i32, i32) {
    %c0_i32 = arith.constant 0 : i32
    %c0_i32_0 = arith.constant 0 : i32
    %c0_i32_1 = arith.constant 0 : i32
    return %c0_i32, %c0_i32_0 : i32, i32
  }
  func.func @transform_31(%arg0: i32) -> (i32, i32, i32) {
    %c0_i32 = arith.constant 0 : i32
    %c0_i32_0 = arith.constant 0 : i32
    %c0_i32_1 = arith.constant 0 : i32
    return %arg0, %c0_i32, %c0_i32_0 : i32, i32, i32
  }
}

</mosaic_0001>

<bundles_post_ra>
// kernel: ali_discriminator_forward.1
= control target key start
LH: loop header
LB: loop body
LE: loop exit
PB: predicated region body
PF: predicated region fallthrough
CT: control target
= control target key end

     0   :  { %s26729_s6 = smov 1   ;;  %s26730_s10 = smov 2   ;;  %s29812_s0 = inlined_call_operand.smem [shape: u32[32], index: -1, kind: input, shape index: {}] }
   0x1   :  { %s26772_s5 = sld [smem:[%s29812_s0]]   ;;  %s26731_s14 = smov 3  }
   0x2   :  { %s26777_s9 = sld [smem:[%s29812_s0 + %s26729_s6]]   ;;  %s26732_s18 = smov 4  }
   0x3   :  { %s26782_s13 = sld [smem:[%s29812_s0 + %s26730_s10]]   ;;  %s26733_s22 = smov 5  }
   0x4   :  { %s26787_s17 = sld [smem:[%s29812_s0 + %s26731_s14]]   ;;  %s26734_s26 = smov 6  }
   0x5   :  { %s26792_s21 = sld [smem:[%s29812_s0 + %s26732_s18]]   ;;  %s26735_s30 = smov 7  }
   0x6   :  { %s26797_s25 = sld [smem:[%s29812_s0 + %s26733_s22]]   ;;  %s26736_s4 = smov 8  }
   0x7   :  { %s26802_s29 = sld [smem:[%s29812_s0 + %s26734_s26]]   ;;  %s26737_s10 = smov 9  }
   0x8   :  { %29821 = sst [smem:[#allocation3_spill]] %s26777_s9  ;;  %s26738_s15 = smov 10  }
   0x9   :  { %s26807_s3 = sld [smem:[%s29812_s0 + %s26735_s30]]   ;;  %s26739_s20 = smov 11  }
   0xa   :  { %s26812_s8 = sld [smem:[%s29812_s0 + %s26736_s4]]   ;;  %s26740_s26 = smov 12  }
   0xb   :  { %s26817_s14 = sld [smem:[%s29812_s0 + %s26737_s10]]   ;;  %s26741_s1 = smov 13  }
   0xc   :  { %s26822_s19 = sld [smem:[%s29812_s0 + %s26738_s15]]   ;;  %s26742_s7 = smov 14  }
   0xd   :  { %s26827_s24 = sld [smem:[%s29812_s0 + %s26739_s20]]   ;;  %s26743_s15 = smov 15  }
   0xe   :  { %s26832_s30 = sld [smem:[%s29812_s0 + %s26740_s26]]   ;;  %s26744_s22 = smov 16  }
   0xf   :  { %s26837_s6 = sld [smem:[%s29812_s0 + %s26741_s1]]   ;;  %s26745_s28 = smov 17  }
  0x10   :  { %s26842_s12 = sld [smem:[%s29812_s0 + %s26742_s7]]   ;;  %s26746_s7 = smov 18  }
  0x11   :  { %s26847_s20 = sld [smem:[%s29812_s0 + %s26743_s15]]   ;;  %s26747_s15 = smov 19  }
  0x12   :  { %s26852_s27 = sld [smem:[%s29812_s0 + %s26744_s22]]   ;;  %s26748_s22 = smov 20  }
  0x13   :  { %s26857_s4 = sld [smem:[%s29812_s0 + %s26745_s28]]   ;;  %s26749_s28 = smov 21  }
  0x14   :  { %s26862_s9 = sld [smem:[%s29812_s0 + %s26746_s7]]   ;;  %s26750_s7 = smov 22  }
  0x15   :  { %s26759_s16 = smov 31  }
  0x17   :  { %29822 = sst [smem:[#allocation4_spill]] %s26847_s20 }
  0x18   :  { %29823 = sst [smem:[#allocation5_spill]] %s26852_s27 }
  0x19   :  { %29824 = sst [smem:[#allocation6_spill]] %s26857_s4 }
  0x1a   :  { %29825 = sst [smem:[#allocation7_spill]] %s26862_s9 }
  0x1b   :  { %s26867_s20 = sld [smem:[%s29812_s0 + %s26747_s15]]   ;;  %s26751_s15 = smov 23  }
  0x1c   :  { %s26872_s27 = sld [smem:[%s29812_s0 + %s26748_s22]]   ;;  %s26752_s22 = smov 24  }
  0x1d   :  { %s26877_s4 = sld [smem:[%s29812_s0 + %s26749_s28]]   ;;  %s26753_s28 = smov 25  }
  0x1e   :  { %s26882_s9 = sld [smem:[%s29812_s0 + %s26750_s7]]   ;;  %s26754_s7 = smov 26  }
  0x21   :  { %29826 = sst [smem:[#allocation8_spill]] %s26867_s20 }
  0x22   :  { %29827 = sst [smem:[#allocation9_spill]] %s26872_s27 }
  0x23   :  { %29828 = sst [smem:[#allocation10_spill]] %s26877_s4 }
  0x24   :  { %29829 = sst [smem:[#allocation11_spill]] %s26882_s9 }
  0x25   :  { %s26887_s20 = sld [smem:[%s29812_s0 + %s26751_s15]]   ;;  %s26755_s15 = smov 27  }
  0x26   :  { %s26892_s27 = sld [smem:[%s29812_s0 + %s26752_s22]]   ;;  %s26756_s22 = smov 28  }
  0x27   :  { %s26897_s4 = sld [smem:[%s29812_s0 + %s26753_s28]]   ;;  %s26757_s28 = smov 29  }
  0x28   :  { %s26902_s9 = sld [smem:[%s29812_s0 + %s26754_s7]]   ;;  %s26758_s7 = smov 30  }
  0x2b   :  { %29830 = sst [smem:[#allocation12_spill]] %s26887_s20 }
  0x2c   :  { %29831 = sst [smem:[#allocation13_spill]] %s26892_s27 }
  0x2d   :  { %29832 = sst [smem:[#allocation14_spill]] %s26897_s4 }
  0x2e   :  { %29833 = sst [smem:[#allocation15_spill]] %s26902_s9 }
  0x2f   :  { %s26907_s20 = sld [smem:[%s29812_s0 + %s26755_s15]]  }
  0x30   :  { %s26912_s27 = sld [smem:[%s29812_s0 + %s26756_s22]]   ;;  %s26927_s22 = smov 0  }
  0x31   :  { %s26917_s4 = sld [smem:[%s29812_s0 + %s26757_s28]]  }
  0x32   :  { %s19571_s9 = sld [smem:[%s29812_s0 + %s26758_s7]]  }
  0x35   :  { %29834 = sst [smem:[#allocation16_spill]] %s26907_s20 }
  0x36   :  { %s26925_s20 = sld [smem:[%s29812_s0 + %s26759_s16]]  }
  0x38   :  { %v68_v0 = vstv %s19571_s9 }
  0x39   :  { %69 = vst [vmem:[#allocation2] sm:$0x1] %v68_v0 }
  0x3a LB: > { %s19573_s23 = sadd.s32 4294967295, %s26727_s22   ;;  %p19577_p0 = scmp.ge.s32.totalorder %s26727_s22, 1  ;;  %s26727_s22 = sphi %s26927_s22, %s75_s22  }
  0x3b   : > { %p879_p1 = scmp.lt.s32.totalorder %s26727_s22, 3 }
  0x3d   : > { %p880_p2 = pnand %p19577_p0, %p879_p1 }
  0x3e   : > { %p960_p3 = scmp.lt.s32.totalorder (!%p880_p2), %s19573_s23, 1  ;;  %v26760_v1 = vmov (!%p880_p2), 0   ;;  %v24052_v10 = vld [vmem:[%s26787_s17 + $0x184] ss:$16 sps:$4 sm:$0xff] (!%p880_p2)   ;;  %v24055_v11 = vld [vmem:[%s26787_s17 + $0x18c] ss:$16 sps:$4 sm:$0xff] (!%p880_p2)  }
  0x3f   : > { %883 = sbr.rel (%p880_p2) target bundleno = 6736 (0x1a50), region = 144  ;;  %1263 = vmatprep.mubr.bf16.mxu1 (!%p880_p2), %v26760_v1  ;;  %1093 = vmatprep.mubr.bf16.mxu0 (!%p880_p2), %v26760_v1  ;;  %v24042_v12 = vld [vmem:[%s26782_s13 + $0x20] sm:$0xff] (!%p880_p2)   ;;  %vm1048_vm0 = vcmask (!%p880_p2), 523264   ;;  %v24053_v15 = vld [vmem:[%s26787_s17 + $0x188] ss:$16 sps:$4 sm:$0xff] (!%p880_p2)   ;;  %v24044_v29 = vld [vmem:[%s26782_s13 + $0x30] sm:$0xff] (!%p880_p2)  }
  0x40   : > { %v24046_v13 = vld [vmem:[%s26782_s13] sm:$0xff] (!%p880_p2)   ;;  %v24061_v17 = vld [vmem:[%s26787_s17 + $0x1ac] ss:$16 sps:$4 sm:$0xff] (!%p880_p2)   ;;  %v24059_v20 = vld [vmem:[%s26787_s17 + $0x1a8] ss:$16 sps:$4 sm:$0xff] (!%p880_p2)   ;;  %vm10471_vm1 = vcmask (!%p880_p2), 1045504  }
  0x41   : > { %v24050_v14 = vld [vmem:[%s26787_s17 + $0x180] ss:$16 sps:$4 sm:$0xff] (!%p880_p2)   ;;  %v24058_v16 = vld [vmem:[%s26787_s17 + $0x1a4] ss:$16 sps:$4 sm:$0xff] (!%p880_p2)   ;;  %v24043_v19 = vld [vmem:[%s26782_s13 + $0x28] sm:$0xff] (!%p880_p2)   ;;  %vm2398_vm2 = vcmask (!%p880_p2), 1046528  }
  0x42   : > { %v24056_v18 = vld [vmem:[%s26787_s17 + $0x1a0] ss:$16 sps:$4 sm:$0xff] (!%p880_p2)   ;;  %v24064_v21 = vld [vmem:[%s26787_s17 + $0x1c4] ss:$16 sps:$4 sm:$0xff] (!%p880_p2)   ;;  %v24067_v22 = vld [vmem:[%s26787_s17 + $0x1cc] ss:$16 sps:$4 sm:$0xff] (!%p880_p2)  }
  0x43   : > { %v24047_v23 = vld [vmem:[%s26782_s13 + $0x8] sm:$0xff] (!%p880_p2)   ;;  %v24062_v24 = vld [vmem:[%s26787_s17 + $0x1c0] ss:$16 sps:$4 sm:$0xff] (!%p880_p2)   ;;  %v24070_v26 = vld [vmem:[%s26787_s17 + $0x1e4] ss:$16 sps:$4 sm:$0xff] (!%p880_p2)   ;;  %s29835_s26 = sld [smem:[#allocation4_spill]] (!%p880_p2) }
  0x44   : > { %v24065_v25 = vld [vmem:[%s26787_s17 + $0x1c8] ss:$16 sps:$4 sm:$0xff] (!%p880_p2)   ;;  %v24073_v27 = vld [vmem:[%s26787_s17 + $0x1ec] ss:$16 sps:$4 sm:$0xff] (!%p880_p2)   ;;  %v24068_v28 = vld [vmem:[%s26787_s17 + $0x1e0] ss:$16 sps:$4 sm:$0xff] (!%p880_p2)  }
  0x45   : > { %v24071_v30 = vld [vmem:[%s26787_s17 + $0x1e8] ss:$16 sps:$4 sm:$0xff] (!%p880_p2)   ;;  %v24076_v31 = vld [vmem:[%s26787_s17 + $0x204] ss:$16 sps:$4 sm:$0xff] (!%p880_p2)   ;;  %v24079_v32 = vld [vmem:[%s26787_s17 + $0x20c] ss:$16 sps:$4 sm:$0xff] (!%p880_p2)  }
  0x46   : > { %s29850_s23 = smov (!%p960_p3, %s19573_s23), 1  ;;  %v24048_v33 = vld [vmem:[%s26782_s13 + $0x10] sm:$0xff]   ;;  %v24077_v35 = vld [vmem:[%s26787_s17 + $0x208] ss:$16 sps:$4 sm:$0xff]   ;;  %v24085_v37 = vld [vmem:[%s26787_s17 + $0x22c] ss:$16 sps:$4 sm:$0xff]  }
  0x47   : > { %s23289_s0 = sshll.u32 %s29850_s23, 6  ;;  %v24074_v34 = vld [vmem:[%s26787_s17 + $0x200] ss:$16 sps:$4 sm:$0xff]   ;;  %v24082_v36 = vld [vmem:[%s26787_s17 + $0x224] ss:$16 sps:$4 sm:$0xff]   ;;  %v24045_v40 = vld [vmem:[%s26782_s13 + $0x38] sm:$0xff]  }
  0x48   : > { %s964_s9 = scalar_lea.vmem %s26772_s5, %s23289_s0  ;;  %v24080_v38 = vld [vmem:[%s26787_s17 + $0x220] ss:$16 sps:$4 sm:$0xff]   ;;  %v24083_v39 = vld [vmem:[%s26787_s17 + $0x228] ss:$16 sps:$4 sm:$0xff]   ;;  %v24088_v42 = vld [vmem:[%s26787_s17 + $0x244] ss:$16 sps:$4 sm:$0xff]  }
  0x49   : > { %v24030_v2 = vld [vmem:[%s964_s9 + $0x4] ss:$8 sps:$4 sm:$0xff]   ;;  %v24032_v3 = vld [vmem:[%s964_s9] ss:$8 sps:$4 sm:$0xff]   ;;  %v24033_v4 = vld [vmem:[%s964_s9 + $0x14] ss:$8 sps:$4 sm:$0xff]  }
  0x4a   : > { %1231 = vmatprep.subr.bf16.mxu1 %v24030_v2  ;;  %1061 = vmatprep.subr.bf16.mxu0 %v24030_v2  ;;  %v24035_v5 = vld [vmem:[%s964_s9 + $0x10] ss:$8 sps:$4 sm:$0xff]   ;;  %v24036_v6 = vld [vmem:[%s964_s9 + $0x24] ss:$8 sps:$4 sm:$0xff]   ;;  %v24038_v7 = vld [vmem:[%s964_s9 + $0x20] ss:$8 sps:$4 sm:$0xff]  }
  0x4b   : > { %1232 = vmatpush1.bf16.msra.mxu1 %v24032_v3  ;;  %1062 = vmatpush1.bf16.msra.mxu0 %v24032_v3  ;;  %v24039_v8 = vld [vmem:[%s964_s9 + $0x34] ss:$8 sps:$4 sm:$0xff]   ;;  %v24041_v9 = vld [vmem:[%s964_s9 + $0x30] ss:$8 sps:$4 sm:$0xff]   ;;  %s29836_s28 = sld [smem:[#allocation5_spill]]  ;;  %s29837_s1 = sld [smem:[#allocation6_spill]] }
  0x4c   : > { %1233 = vmatprep.subr.bf16.mxu1 %v24033_v4  ;;  %1063 = vmatprep.subr.bf16.mxu0 %v24033_v4  ;;  %v24049_v41 = vld [vmem:[%s26782_s13 + $0x18] sm:$0xff]   ;;  %v24086_v44 = vld [vmem:[%s26787_s17 + $0x240] ss:$16 sps:$4 sm:$0xff]   ;;  %v24094_v46 = vld [vmem:[%s26787_s17 + $0x264] ss:$16 sps:$4 sm:$0xff]   ;;  %s29838_s2 = sld [smem:[#allocation7_spill]] }
  0x4d   : > { %v24091_v43 = vld [vmem:[%s26787_s17 + $0x24c] ss:$16 sps:$4 sm:$0xff]   ;;  %v24089_v45 = vld [vmem:[%s26787_s17 + $0x248] ss:$16 sps:$4 sm:$0xff]   ;;  %v24092_v48 = vld [vmem:[%s26787_s17 + $0x260] ss:$16 sps:$4 sm:$0xff]  }
  0x4e   : > { %v24097_v47 = vld [vmem:[%s26787_s17 + $0x26c] ss:$16 sps:$4 sm:$0xff]   ;;  %v24095_v49 = vld [vmem:[%s26787_s17 + $0x268] ss:$16 sps:$4 sm:$0xff]   ;;  %v24100_v50 = vld [vmem:[%s26787_s17 + $0x284] ss:$16 sps:$4 sm:$0xff]  }
  0x4f   : > { %1234 = vmatpush1.bf16.msra.mxu1 %v24035_v5  ;;  %1064 = vmatpush1.bf16.msra.mxu0 %v24035_v5  ;;  %v24103_v51 = vld [vmem:[%s26787_s17 + $0x28c] ss:$16 sps:$4 sm:$0xff]   ;;  %v24098_v52 = vld [vmem:[%s26787_s17 + $0x280] ss:$16 sps:$4 sm:$0xff]   ;;  %v24101_v53 = vld [vmem:[%s26787_s17 + $0x288] ss:$16 sps:$4 sm:$0xff]  }
  0x50   : > { %1235 = vmatprep.subr.bf16.mxu1 %v24036_v6  ;;  %1065 = vmatprep.subr.bf16.mxu0 %v24036_v6  ;;  %v24106_v54 = vld [vmem:[%s26787_s17 + $0x2a4] ss:$16 sps:$4 sm:$0xff]   ;;  %v24109_v55 = vld [vmem:[%s26787_s17 + $0x2ac] ss:$16 sps:$4 sm:$0xff]   ;;  %v24104_v56 = vld [vmem:[%s26787_s17 + $0x2a0] ss:$16 sps:$4 sm:$0xff]  }
  0x51   : > { %v24107_v57 = vld [vmem:[%s26787_s17 + $0x2a8] ss:$16 sps:$4 sm:$0xff]   ;;  %v24112_v58 = vld [vmem:[%s26787_s17 + $0x2c4] ss:$16 sps:$4 sm:$0xff]   ;;  %v24115_v59 = vld [vmem:[%s26787_s17 + $0x2cc] ss:$16 sps:$4 sm:$0xff]  }
  0x52   : > { %v24110_v60 = vld [vmem:[%s26787_s17 + $0x2c0] ss:$16 sps:$4 sm:$0xff]   ;;  %v24113_v61 = vld [vmem:[%s26787_s17 + $0x2c8] ss:$16 sps:$4 sm:$0xff]   ;;  %v24118_v62 = vld [vmem:[%s26787_s17 + $0x2e4] ss:$16 sps:$4 sm:$0xff]  }
  0x53   : > { %1236 = vmatpush1.bf16.msra.mxu1 %v24038_v7  ;;  %1066 = vmatpush1.bf16.msra.mxu0 %v24038_v7  ;;  %v24121_v63 = vld [vmem:[%s26787_s17 + $0x2ec] ss:$16 sps:$4 sm:$0xff]   ;;  %v24116_v0 = vld [vmem:[%s26787_s17 + $0x2e0] ss:$16 sps:$4 sm:$0xff]   ;;  %v24119_v2 = vld [vmem:[%s26787_s17 + $0x2e8] ss:$16 sps:$4 sm:$0xff]  }
  0x54   : > { %1237 = vmatprep.subr.bf16.mxu1 %v24039_v8  ;;  %1067 = vmatprep.subr.bf16.mxu0 %v24039_v8  ;;  %v24124_v3 = vld [vmem:[%s26787_s17 + $0x4] ss:$16 sps:$4 sm:$0xff]   ;;  %v24127_v4 = vld [vmem:[%s26787_s17 + $0xc] ss:$16 sps:$4 sm:$0xff]   ;;  %s29839_s7 = sld [smem:[#allocation11_spill]]  ;;  %s29840_s10 = sld [smem:[#allocation8_spill]] }
  0x55   : > { %s29841_s11 = sld [smem:[#allocation3_spill]]  ;;  %s29842_s15 = sld [smem:[#allocation12_spill]] }
  0x56   : > { %s29843_s18 = sld [smem:[#allocation14_spill]]  ;;  %s29844_s0 = sld [smem:[#allocation13_spill]] }
  0x57   : > { %1238 = vmatpush1.bf16.msra.mxu1 %v24041_v9  ;;  %1068 = vmatpush1.bf16.msra.mxu0 %v24041_v9  ;;  %s29845_s9 = sld [smem:[#allocation16_spill]] }
  0x58   : > { %1613 = vmatprep.subr.bf16.mxu0 %v24052_v10  ;;  %1686 = vmatprep.subr.bf16.mxu1 %v24055_v11  ;;  %v24122_v10 = vld [vmem:[%s26787_s17] ss:$16 sps:$4 sm:$0xff]   ;;  %v24125_v11 = vld [vmem:[%s26787_s17 + $0x8] ss:$16 sps:$4 sm:$0xff]  }
  0x5a   : > { %19608 = vmatmul.mubr.msk.bf16.vlgmr.msra.gmra.mrb[0].mxu1 %vm1048_vm0, %v24042_v12  ;;  %19592 = vmatmul.mubr.msk.bf16.vlgmr.msra.gmra.mrb[0].mxu0 %vm1048_vm0, %v24046_v13 }
  0x5b   : > { %1273 = vmatprep.mubr.bf16.mxu1 %v26760_v1  ;;  %1103 = vmatprep.mubr.bf16.mxu0 %v26760_v1  ;;  %s967_s16 = scalar_lea.vmem %s29841_s11, %s29850_s23  ;;  %s29848_s11 = sld [smem:[#allocation15_spill]] }
  0x5c   : > { %1614 = vmatpush1.bf16.msra.mxu0 %v24050_v14  ;;  %1687 = vmatpush1.bf16.msra.mxu1 %v24053_v15  ;;  %v24130_v15 = vld [vmem:[%s26787_s17 + $0x24] ss:$16 sps:$4 sm:$0xff]  }
  0x5d   : > { %1615 = vmatprep.subr.bf16.mxu0 %v24058_v16  ;;  %1688 = vmatprep.subr.bf16.mxu1 %v24061_v17  ;;  %v24133_v16 = vld [vmem:[%s26787_s17 + $0x2c] ss:$16 sps:$4 sm:$0xff]  }
  0x60   : > { %1616 = vmatpush1.bf16.msra.mxu0 %v24056_v18  ;;  %1689 = vmatpush1.bf16.msra.mxu1 %v24059_v20 }
  0x61   : > { %1617 = vmatprep.subr.bf16.mxu0 %v24064_v21  ;;  %1690 = vmatprep.subr.bf16.mxu1 %v24067_v22  ;;  %v24128_v21 = vld [vmem:[%s26787_s17 + $0x20] ss:$16 sps:$4 sm:$0xff]   ;;  %v24131_v22 = vld [vmem:[%s26787_s17 + $0x28] ss:$16 sps:$4 sm:$0xff]  }
  0x62   : > { %19609 = vmatmul.mubr.msk.bf16.gmra.mrb[4].mxu1 %vm1048_vm0, %v24043_v19  ;;  %19593 = vmatmul.mubr.msk.bf16.gmra.mrb[4].mxu0 %vm1048_vm0, %v24047_v23  ;;  %v24136_v23 = vld [vmem:[%s26787_s17 + $0x44] ss:$16 sps:$4 sm:$0xff]  }
  0x63   : > { %1283 = vmatprep.mubr.bf16.mxu1 %v26760_v1  ;;  %1113 = vmatprep.mubr.bf16.mxu0 %v26760_v1 }
  0x64   : > { %1618 = vmatpush1.bf16.msra.mxu0 %v24062_v24  ;;  %1691 = vmatpush1.bf16.msra.mxu1 %v24065_v25  ;;  %v24139_v24 = vld [vmem:[%s26787_s17 + $0x4c] ss:$16 sps:$4 sm:$0xff]  }
  0x65   : > { %1619 = vmatprep.subr.bf16.mxu0 %v24070_v26  ;;  %1692 = vmatprep.subr.bf16.mxu1 %v24073_v27 }
  0x68   : > { %1620 = vmatpush1.bf16.msra.mxu0 %v24068_v28  ;;  %1693 = vmatpush1.bf16.msra.mxu1 %v24071_v30  ;;  %v24137_v30 = vld [vmem:[%s26787_s17 + $0x48] ss:$16 sps:$4 sm:$0xff]  }
  0x69   : > { %1621 = vmatprep.subr.bf16.mxu0 %v24076_v31  ;;  %1694 = vmatprep.subr.bf16.mxu1 %v24079_v32 }
  0x6a   : > { %19610 = vmatmul.mubr.msk.bf16.gmra.mrb[8].mxu1 %vm1048_vm0, %v24044_v29  ;;  %19594 = vmatmul.mubr.msk.bf16.gmra.mrb[8].mxu0 %vm1048_vm0, %v24048_v33  ;;  %v24134_v29 = vld [vmem:[%s26787_s17 + $0x40] ss:$16 sps:$4 sm:$0xff]   ;;  %v24142_v33 = vld [vmem:[%s26787_s17 + $0x64] ss:$16 sps:$4 sm:$0xff]  }
  0x6b   : > { %1293 = vmatprep.mubr.bf16.mxu1 %v26760_v1  ;;  %1123 = vmatprep.mubr.bf16.mxu0 %v26760_v1 }
  0x6c   : > { %1622 = vmatpush1.bf16.msra.mxu0 %v24074_v34  ;;  %1695 = vmatpush1.bf16.msra.mxu1 %v24077_v35  ;;  %v24145_v34 = vld [vmem:[%s26787_s17 + $0x6c] ss:$16 sps:$4 sm:$0xff]  }
  0x6d   : > { %1623 = vmatprep.subr.bf16.mxu0 %v24082_v36  ;;  %1696 = vmatprep.subr.bf16.mxu1 %v24085_v37 }
  0x70   : > { %1624 = vmatpush1.bf16.msra.mxu0 %v24080_v38  ;;  %1697 = vmatpush1.bf16.msra.mxu1 %v24083_v39 }
  0x71   : > { %1625 = vmatprep.subr.bf16.mxu0 %v24088_v42  ;;  %1698 = vmatprep.subr.bf16.mxu1 %v24091_v43  ;;  %v24143_v42 = vld [vmem:[%s26787_s17 + $0x68] ss:$16 sps:$4 sm:$0xff]   ;;  %v24148_v43 = vld [vmem:[%s26787_s17 + $0x84] ss:$16 sps:$4 sm:$0xff]  }
  0x72   : > { %19611 = vmatmul.mubr.msk.bf16.gmra.mrb[12].mxu1 %vm1048_vm0, %v24045_v40  ;;  %19595 = vmatmul.mubr.msk.bf16.gmra.mrb[12].mxu0 %vm1048_vm0, %v24049_v41  ;;  %v24140_v41 = vld [vmem:[%s26787_s17 + $0x60] ss:$16 sps:$4 sm:$0xff]  }
  0x74   : > { %1626 = vmatpush1.bf16.msra.mxu0 %v24086_v44  ;;  %1699 = vmatpush1.bf16.msra.mxu1 %v24089_v45  ;;  %v24151_v44 = vld [vmem:[%s26787_s17 + $0x8c] ss:$16 sps:$4 sm:$0xff]  }
  0x75   : > { %1627 = vmatprep.subr.bf16.mxu0 %v24094_v46  ;;  %1700 = vmatprep.subr.bf16.mxu1 %v24097_v47 }
  0x78   : > { %1628 = vmatpush1.bf16.msra.mxu0 %v24092_v48  ;;  %1701 = vmatpush1.bf16.msra.mxu1 %v24095_v49  ;;  %v24146_v49 = vld [vmem:[%s26787_s17 + $0x80] ss:$16 sps:$4 sm:$0xff]  }
  0x79   : > { %1629 = vmatprep.subr.bf16.mxu0 %v24100_v50  ;;  %1702 = vmatprep.subr.bf16.mxu1 %v24103_v51  ;;  %v24149_v50 = vld [vmem:[%s26787_s17 + $0x88] ss:$16 sps:$4 sm:$0xff]  }
  0x7c   : > { %1630 = vmatpush1.bf16.msra.mxu0 %v24098_v52  ;;  %1703 = vmatpush1.bf16.msra.mxu1 %v24101_v53  ;;  %v24154_v53 = vld [vmem:[%s26787_s17 + $0xa4] ss:$16 sps:$4 sm:$0xff]  }
  0x7d   : > { %1631 = vmatprep.subr.bf16.mxu0 %v24106_v54  ;;  %1704 = vmatprep.subr.bf16.mxu1 %v24109_v55  ;;  %v24157_v54 = vld [vmem:[%s26787_s17 + $0xac] ss:$16 sps:$4 sm:$0xff]  }
  0x80   : > { %1632 = vmatpush1.bf16.msra.mxu0 %v24104_v56  ;;  %1705 = vmatpush1.bf16.msra.mxu1 %v24107_v57 }
  0x81   : > { %1633 = vmatprep.subr.bf16.mxu0 %v24112_v58  ;;  %1706 = vmatprep.subr.bf16.mxu1 %v24115_v59 }
  0x84   : > { %1634 = vmatpush1.bf16.msra.mxu0 %v24110_v60  ;;  %1707 = vmatpush1.bf16.msra.mxu1 %v24113_v61  ;;  %v24152_v61 = vld [vmem:[%s26787_s17 + $0xa0] ss:$16 sps:$4 sm:$0xff]  }
  0x85   : > { %1635 = vmatprep.subr.bf16.mxu0 %v24118_v62  ;;  %1708 = vmatprep.subr.bf16.mxu1 %v24121_v63  ;;  %v24155_v62 = vld [vmem:[%s26787_s17 + $0xa8] ss:$16 sps:$4 sm:$0xff]   ;;  %v24160_v63 = vld [vmem:[%s26787_s17 + $0xc4] ss:$16 sps:$4 sm:$0xff]  }
  0x88   : > { %1636 = vmatpush1.bf16.msra.mxu0 %v24116_v0  ;;  %1709 = vmatpush1.bf16.msra.mxu1 %v24119_v2  ;;  %v24163_v0 = vld [vmem:[%s26787_s17 + $0xcc] ss:$16 sps:$4 sm:$0xff]  }
  0x89   : > { %2011 = vmatprep.subr.bf16.mxu0 %v24124_v3  ;;  %2084 = vmatprep.subr.bf16.mxu1 %v24127_v4 }
 0x12d   : > { %v1265_v5 = vpop.f32.mrb[0].mxu1  ;;  %v1095_v6 = vpop.f32.mrb[0].mxu0 }
 0x12e   : > { %v1267_v7 = vpop.f32.mrb[1].mxu1  ;;  %v1097_v8 = vpop.f32.mrb[1].mxu0 }
 0x12f   : > { %v1269_v9 = vpop.f32.mrb[2].mxu1  ;;  %v1099_v12 = vpop.f32.mrb[2].mxu0 }
 0x130   : > { %v1304_v13 = vpack.c.bf16 %v1269_v9, %v1265_v5  ;;  %v1271_v14 = vpop.f32.mrb[3].mxu1  ;;  %v27017_v17 = vpack.c.bf16 %v1099_v12, %v1095_v6  ;;  %v1101_v18 = vpop.f32.mrb[3].mxu0  ;;  %v24158_v6 = vld [vmem:[%s26787_s17 + $0xc0] ss:$16 sps:$4 sm:$0xff]  }
 0x131   : > { %v1305_v19 = vpack.c.bf16 %v1271_v14, %v1267_v7  ;;  %v27019_v20 = vpack.c.bf16 %v1101_v18, %v1097_v8  ;;  %v24161_v7 = vld [vmem:[%s26787_s17 + $0xc8] ss:$16 sps:$4 sm:$0xff]  }
 0x133   : > { %19708 = vmatprep.mubr.msk.bf16.mxu0 %vm1048_vm0, %v1305_v19  ;;  %19712 = vmatprep.mubr.msk.bf16.mxu1 %vm1048_vm0, %v1305_v19  ;;  %v24164_v19 = vld [vmem:[%s26787_s17 + $0xe0] ss:$16 sps:$4 sm:$0xff]  }
 0x134   : > { %1646 = vmatmul.mubr.bf16.vlgmr.msra.gmra.mrb[16].mxu0 %v1304_v13  ;;  %1719 = vmatmul.mubr.bf16.vlgmr.msra.gmra.mrb[16].mxu1 %v1304_v13 }
 0x135   : > { %2012 = vmatpush1.bf16.msra.mxu0 %v24122_v10  ;;  %2085 = vmatpush1.bf16.msra.mxu1 %v24125_v11  ;;  %v1275_v25 = vpop.f32.mrb[4].mxu1  ;;  %v1105_v26 = vpop.f32.mrb[4].mxu0  ;;  %v24166_v10 = vld [vmem:[%s26787_s17 + $0xe4] ss:$16 sps:$4 sm:$0xff]   ;;  %v24169_v11 = vld [vmem:[%s26787_s17 + $0xec] ss:$16 sps:$4 sm:$0xff]  }
 0x136   : > { %2013 = vmatprep.subr.bf16.mxu0 %v24130_v15  ;;  %2086 = vmatprep.subr.bf16.mxu1 %v24133_v16  ;;  %v1277_v27 = vpop.f32.mrb[5].mxu1  ;;  %v1107_v28 = vpop.f32.mrb[5].mxu0 }
 0x137   : > { %v1279_v31 = vpop.f32.mrb[6].mxu1  ;;  %v1109_v32 = vpop.f32.mrb[6].mxu0 }
 0x138   : > { %v1306_v35 = vpack.c.bf16 %v1279_v31, %v1275_v25  ;;  %v1281_v36 = vpop.f32.mrb[7].mxu1  ;;  %v27031_v37 = vpack.c.bf16 %v1109_v32, %v1105_v26  ;;  %v1111_v38 = vpop.f32.mrb[7].mxu0  ;;  %v24173_v25 = vld [vmem:[%s26787_s17 + $0x108] ss:$16 sps:$4 sm:$0xff]   ;;  %v24178_v26 = vld [vmem:[%s26787_s17 + $0x124] ss:$16 sps:$4 sm:$0xff]  }
 0x139   : > { %2014 = vmatpush1.bf16.msra.mxu0 %v24128_v21  ;;  %2087 = vmatpush1.bf16.msra.mxu1 %v24131_v22  ;;  %v1307_v39 = vpack.c.bf16 %v1281_v36, %v1277_v27  ;;  %v27033_v40 = vpack.c.bf16 %v1111_v38, %v1107_v28  ;;  %v24167_v21 = vld [vmem:[%s26787_s17 + $0xe8] ss:$16 sps:$4 sm:$0xff]   ;;  %v24172_v22 = vld [vmem:[%s26787_s17 + $0x104] ss:$16 sps:$4 sm:$0xff]   ;;  %v24181_v27 = vld [vmem:[%s26787_s17 + $0x12c] ss:$16 sps:$4 sm:$0xff]  }
 0x13a   : > { %2015 = vmatprep.subr.bf16.mxu0 %v24136_v23  ;;  %2088 = vmatprep.subr.bf16.mxu1 %v24139_v24  ;;  %v24175_v23 = vld [vmem:[%s26787_s17 + $0x10c] ss:$16 sps:$4 sm:$0xff]   ;;  %v24170_v24 = vld [vmem:[%s26787_s17 + $0x100] ss:$16 sps:$4 sm:$0xff]   ;;  %v24185_v32 = vld [vmem:[%s26787_s17 + $0x148] ss:$16 sps:$4 sm:$0xff]  }
 0x13b   : > { %19709 = vmatprep.mubr.msk.bf16.mxu0 %vm1048_vm0, %v1307_v39  ;;  %19713 = vmatprep.mubr.msk.bf16.mxu1 %vm1048_vm0, %v1307_v39  ;;  %v24176_v28 = vld [vmem:[%s26787_s17 + $0x120] ss:$16 sps:$4 sm:$0xff]   ;;  %v24187_v31 = vld [vmem:[%s26787_s17 + $0x14c] ss:$16 sps:$4 sm:$0xff]   ;;  %v24191_v36 = vld [vmem:[%s26787_s17 + $0x168] ss:$16 sps:$4 sm:$0xff]   ;;  %v2159_v39 = vlaneseq }
 0x13c   : > { %1656 = vmatmul.mubr.bf16.gmra.mrb[20].mxu0 %v1306_v35  ;;  %1729 = vmatmul.mubr.bf16.gmra.mrb[20].mxu1 %v1306_v35  ;;  %v24188_v35 = vld [vmem:[%s26787_s17 + $0x160] ss:$16 sps:$4 sm:$0xff]  }
 0x13d   : > { %2016 = vmatpush1.bf16.msra.mxu0 %v24134_v29  ;;  %2089 = vmatpush1.bf16.msra.mxu1 %v24137_v30  ;;  %v1285_v45 = vpop.f32.mrb[8].mxu1  ;;  %v1115_v46 = vpop.f32.mrb[8].mxu0  ;;  %v24179_v29 = vld [vmem:[%s26787_s17 + $0x128] ss:$16 sps:$4 sm:$0xff]   ;;  %v24184_v30 = vld [vmem:[%s26787_s17 + $0x144] ss:$16 sps:$4 sm:$0xff]  }
 0x13e   : > { %2017 = vmatprep.subr.bf16.mxu0 %v24142_v33  ;;  %2090 = vmatprep.subr.bf16.mxu1 %v24145_v34  ;;  %v1287_v47 = vpop.f32.mrb[9].mxu1  ;;  %v1117_v48 = vpop.f32.mrb[9].mxu0  ;;  %v24190_v33 = vld [vmem:[%s26787_s17 + $0x164] ss:$16 sps:$4 sm:$0xff]   ;;  %v24193_v34 = vld [vmem:[%s26787_s17 + $0x16c] ss:$16 sps:$4 sm:$0xff]  }
 0x13f   : > { %v1289_v51 = vpop.f32.mrb[10].mxu1  ;;  %v1119_v52 = vpop.f32.mrb[10].mxu0 }
 0x140   : > { %v1308_v55 = vpack.c.bf16 %v1289_v51, %v1285_v45  ;;  %v1291_v56 = vpop.f32.mrb[11].mxu1  ;;  %v27045_v57 = vpack.c.bf16 %v1119_v52, %v1115_v46  ;;  %v1121_v58 = vpop.f32.mrb[11].mxu0 }
 0x141   : > { %2018 = vmatpush1.bf16.msra.mxu0 %v24140_v41  ;;  %2091 = vmatpush1.bf16.msra.mxu1 %v24143_v42  ;;  %v1309_v59 = vpack.c.bf16 %v1291_v56, %v1287_v47  ;;  %v27047_v60 = vpack.c.bf16 %v1121_v58, %v1117_v48  ;;  %v2157_v41 = vld [vmem:[%s26792_s21] sm:$0xf] }
 0x142   : > { %2019 = vmatprep.subr.bf16.mxu0 %v24148_v43  ;;  %2092 = vmatprep.subr.bf16.mxu1 %v24151_v44  ;;  %v2211_v44 = vld [vmem:[%s26797_s25] sm:$0xf] }
 0x143   : > { %19710 = vmatprep.mubr.msk.bf16.mxu0 %vm1048_vm0, %v1309_v59  ;;  %19714 = vmatprep.mubr.msk.bf16.mxu1 %vm1048_vm0, %v1309_v59 }
 0x144   : > { %1666 = vmatmul.mubr.bf16.gmra.mrb[24].mxu0 %v1308_v55  ;;  %1739 = vmatmul.mubr.bf16.gmra.mrb[24].mxu1 %v1308_v55 }
 0x145   : > { %2020 = vmatpush1.bf16.msra.mxu0 %v24146_v49  ;;  %2093 = vmatpush1.bf16.msra.mxu1 %v24149_v50  ;;  %v1295_v2 = vpop.f32.mrb[12].mxu1  ;;  %v1125_v3 = vpop.f32.mrb[12].mxu0 }
 0x146   : > { %2021 = vmatprep.subr.bf16.mxu0 %v24154_v53  ;;  %2094 = vmatprep.subr.bf16.mxu1 %v24157_v54  ;;  %v1297_v4 = vpop.f32.mrb[13].mxu1  ;;  %v1127_v5 = vpop.f32.mrb[13].mxu0 }
 0x147   : > { %v1299_v8 = vpop.f32.mrb[14].mxu1  ;;  %v1129_v9 = vpop.f32.mrb[14].mxu0 }
 0x148   : > { %v1310_v12 = vpack.c.bf16 %v1299_v8, %v1295_v2  ;;  %v1301_v13 = vpop.f32.mrb[15].mxu1  ;;  %v27059_v14 = vpack.c.bf16 %v1129_v9, %v1125_v3  ;;  %v1131_v15 = vpop.f32.mrb[15].mxu0 }
 0x149   : > { %2022 = vmatpush1.bf16.msra.mxu0 %v24152_v61  ;;  %2095 = vmatpush1.bf16.msra.mxu1 %v24155_v62  ;;  %v1311_v16 = vpack.c.bf16 %v1301_v13, %v1297_v4  ;;  %v1141_v18 = vpack.c.bf16 %v1131_v15, %v1127_v5 }
 0x14a   : > { %2023 = vmatprep.subr.bf16.mxu0 %v24160_v63  ;;  %2096 = vmatprep.subr.bf16.mxu1 %v24163_v0 }
 0x14b   : > { %19711 = vmatprep.mubr.msk.bf16.mxu0 %vm1048_vm0, %v1311_v16  ;;  %19715 = vmatprep.mubr.msk.bf16.mxu1 %vm1048_vm0, %v1311_v16 }
 0x14c   : > { %1676 = vmatmul.mubr.bf16.gmra.mrb[28].mxu0 %v1310_v12  ;;  %1749 = vmatmul.mubr.bf16.gmra.mrb[28].mxu1 %v1310_v12 }
 0x14d   : > { %2024 = vmatpush1.bf16.msra.mxu0 %v24158_v6  ;;  %2097 = vmatpush1.bf16.msra.mxu1 %v24161_v7 }
 0x14e   : > { %2025 = vmatprep.subr.bf16.mxu0 %v24166_v10  ;;  %2098 = vmatprep.subr.bf16.mxu1 %v24169_v11 }
 0x14f   : > { %19764 = vmatprep.mubr.msk.bf16.mxu0 %vm1048_vm0, %v27019_v20  ;;  %19768 = vmatprep.mubr.msk.bf16.mxu1 %vm1048_vm0, %v27019_v20  ;;  %v24182_v20 = vld [vmem:[%s26787_s17 + $0x140] ss:$16 sps:$4 sm:$0xff]  }
 0x151   : > { %2026 = vmatpush1.bf16.msra.mxu0 %v24164_v19  ;;  %2099 = vmatpush1.bf16.msra.mxu1 %v24167_v21 }
 0x152   : > { %2027 = vmatprep.subr.bf16.mxu0 %v24172_v22  ;;  %2100 = vmatprep.subr.bf16.mxu1 %v24175_v23 }
 0x155   : > { %2028 = vmatpush1.bf16.msra.mxu0 %v24170_v24  ;;  %2101 = vmatpush1.bf16.msra.mxu1 %v24173_v25 }
 0x156   : > { %2029 = vmatprep.subr.bf16.mxu0 %v24178_v26  ;;  %2102 = vmatprep.subr.bf16.mxu1 %v24181_v27 }
 0x159   : > { %2030 = vmatpush1.bf16.msra.mxu0 %v24176_v28  ;;  %2103 = vmatpush1.bf16.msra.mxu1 %v24179_v29 }
 0x15a   : > { %2031 = vmatprep.subr.bf16.mxu0 %v24184_v30  ;;  %2104 = vmatprep.subr.bf16.mxu1 %v24187_v31 }
 0x15d   : > { %2032 = vmatpush1.bf16.msra.mxu0 %v24182_v20  ;;  %2105 = vmatpush1.bf16.msra.mxu1 %v24185_v32 }
 0x15e   : > { %2033 = vmatprep.subr.bf16.mxu0 %v24190_v33  ;;  %2106 = vmatprep.subr.bf16.mxu1 %v24193_v34 }
 0x161   : > { %2034 = vmatpush1.bf16.msra.mxu0 %v24188_v35  ;;  %2107 = vmatpush1.bf16.msra.mxu1 %v24191_v36 }
 0x164   : > { %2044 = vmatmul.mubr.bf16.vlgmr.msra.gmra.mrb[16].mxu0 %v27017_v17  ;;  %2117 = vmatmul.mubr.bf16.vlgmr.msra.gmra.mrb[16].mxu1 %v27017_v17  ;;  %v26761_v17 = vmov 65535  }
 0x165   : > { %19765 = vmatprep.mubr.msk.bf16.mxu0 %vm1048_vm0, %v27033_v40  ;;  %19769 = vmatprep.mubr.msk.bf16.mxu1 %vm1048_vm0, %v27033_v40  ;;  %v2160_v40 = vshrl.u32 %v2159_v39, 7 }
 0x167   : > { %v27110_v42 = vsub.s32 0, %v2160_v40  ;;  %v27112_v43 = vsub.s32 2, %v2160_v40  ;;  %v27115_v45 = vsub.s32 1, %v2160_v40  ;;  %v27117_v46 = vsub.s32 3, %v2160_v40 }
 0x169   : > { %v27120_v47 = vrot.slane %v2157_v41, %v27110_v42  ;;  %v27123_v48 = vrot.slane %v2157_v41, %v27112_v43  ;;  %v27126_v49 = vrot.slane %v2157_v41, %v27115_v45  ;;  %v27129_v50 = vrot.slane %v2157_v41, %v27117_v46 }
 0x16a   : > { %v27132_v51 = vrot.slane %v2211_v44, %v27110_v42  ;;  %v27135_v52 = vrot.slane %v2211_v44, %v27112_v43  ;;  %v27138_v55 = vrot.slane %v2211_v44, %v27115_v45  ;;  %v27141_v56 = vrot.slane %v2211_v44, %v27117_v46 }
 0x16c   : > { %2054 = vmatmul.mubr.bf16.gmra.mrb[20].mxu0 %v27031_v37  ;;  %2127 = vmatmul.mubr.bf16.gmra.mrb[20].mxu1 %v27031_v37  ;;  %v10472_v37 = vsel %vm10471_vm1, 4294967295, %v26761_v17 }
 0x16d   : > { %19766 = vmatprep.mubr.msk.bf16.mxu0 %vm1048_vm0, %v27047_v60  ;;  %19770 = vmatprep.mubr.msk.bf16.mxu1 %vm1048_vm0, %v27047_v60  ;;  %v27107_v38 = vsel %vm2398_vm2, %v10472_v37, 0 }
 0x174   : > { %2064 = vmatmul.mubr.bf16.gmra.mrb[24].mxu0 %v27045_v57  ;;  %2137 = vmatmul.mubr.bf16.gmra.mrb[24].mxu1 %v27045_v57 }
 0x175   : > { %19767 = vmatprep.mubr.msk.bf16.mxu0 %vm1048_vm0, %v1141_v18  ;;  %19771 = vmatprep.mubr.msk.bf16.mxu1 %vm1048_vm0, %v1141_v18 }
 0x17c   : > { %2074 = vmatmul.mubr.bf16.gmra.mrb[28].mxu0 %v27059_v14  ;;  %2147 = vmatmul.mubr.bf16.gmra.mrb[28].mxu1 %v27059_v14 }
 0x17d   : > { %2446 = vmatprep.mubr.bf16.mxu0 %v26760_v1  ;;  %2499 = vmatprep.mubr.bf16.mxu1 %v26760_v1 }
 0x237   : > { %v2045_v53 = vpop.f32.mrb[16].mxu0  ;;  %v2118_v54 = vpop.f32.mrb[16].mxu1 }
 0x238   : > { %v2179_v57 = vmul.f32 %v27120_v47, %v2045_v53  ;;  %v2181_v58 = vmul.f32 %v27123_v48, %v2118_v54  ;;  %v2047_v59 = vpop.f32.mrb[17].mxu0  ;;  %v2120_v60 = vpop.f32.mrb[17].mxu1 }
 0x239   : > { %v2180_v61 = vmul.f32 %v27126_v49, %v2047_v59  ;;  %v2182_v62 = vmul.f32 %v27129_v50, %v2120_v60  ;;  %v2049_v63 = vpop.f32.mrb[18].mxu0  ;;  %v2122_v0 = vpop.f32.mrb[18].mxu1 }
 0x23a   : > { %v2233_v2 = vadd.f32 %v27132_v51, %v2179_v57  ;;  %v2235_v3 = vadd.f32 %v27135_v52, %v2181_v58  ;;  %v2183_v4 = vmul.f32 %v27120_v47, %v2049_v63  ;;  %v2185_v5 = vmul.f32 %v27123_v48, %v2122_v0  ;;  %v2051_v6 = vpop.f32.mrb[19].mxu0  ;;  %v2124_v7 = vpop.f32.mrb[19].mxu1 }
 0x23b   : > { %v2234_v8 = vadd.f32 %v27138_v55, %v2180_v61  ;;  %v2236_v9 = vadd.f32 %v27141_v56, %v2182_v62  ;;  %v2184_v10 = vmul.f32 %v27126_v49, %v2051_v6  ;;  %v2186_v11 = vmul.f32 %v27129_v50, %v2124_v7 }
 0x23c   : > { %vm2265_vm3 = vcmp.gt.f32.partialorder %v2233_v2, 0.0  ;;  %v2297_v12 = vmul.f32 0.02, %v2233_v2  ;;  %vm2267_vm4 = vcmp.gt.f32.partialorder %v2235_v3, 0.0  ;;  %v2299_v13 = vmul.f32 0.02, %v2235_v3 }
 0x23d   : > { %vm2266_vm5 = vcmp.gt.f32.partialorder %v2234_v8, 0.0  ;;  %v2298_v14 = vmul.f32 0.02, %v2234_v8  ;;  %vm2268_vm6 = vcmp.gt.f32.partialorder %v2236_v9, 0.0  ;;  %v2300_v15 = vmul.f32 0.02, %v2236_v9 }
 0x23e   : > { %v2329_v16 = vsel %vm2265_vm3, %v2233_v2, %v2297_v12  ;;  %v2331_v18 = vsel %vm2267_vm4, %v2235_v3, %v2299_v13  ;;  %v2237_v19 = vadd.f32 %v27132_v51, %v2183_v4  ;;  %v2239_v21 = vadd.f32 %v27135_v52, %v2185_v5 }
 0x23f   : > { %v2330_v22 = vsel %vm2266_vm5, %v2234_v8, %v2298_v14  ;;  %v2332_v23 = vsel %vm2268_vm6, %v2236_v9, %v2300_v15  ;;  %v2238_v24 = vadd.f32 %v27138_v55, %v2184_v10  ;;  %v2240_v25 = vadd.f32 %v27141_v56, %v2186_v11  ;;  %v2055_v26 = vpop.f32.mrb[20].mxu0  ;;  %v2128_v27 = vpop.f32.mrb[20].mxu1 }
 0x240   : > { %vm2269_vm7 = vcmp.gt.f32.partialorder %v2237_v19, 0.0  ;;  %v2301_v28 = vmul.f32 0.02, %v2237_v19  ;;  %vm2271_vm8 = vcmp.gt.f32.partialorder %v2239_v21, 0.0  ;;  %v2303_v29 = vmul.f32 0.02, %v2239_v21 }
 0x241   : > { %vm2270_vm9 = vcmp.gt.f32.partialorder %v2238_v24, 0.0  ;;  %v2302_v30 = vmul.f32 0.02, %v2238_v24  ;;  %vm2272_vm10 = vcmp.gt.f32.partialorder %v2240_v25, 0.0  ;;  %v2304_v31 = vmul.f32 0.02, %v2240_v25 }
 0x242   : > { %v2333_v20 = vsel %vm2269_vm7, %v2237_v19, %v2301_v28  ;;  %v2335_v32 = vsel %vm2271_vm8, %v2239_v21, %v2303_v29  ;;  %v2187_v33 = vmul.f32 %v27120_v47, %v2055_v26  ;;  %v2189_v34 = vmul.f32 %v27123_v48, %v2128_v27  ;;  %v2057_v35 = vpop.f32.mrb[21].mxu0  ;;  %v2130_v36 = vpop.f32.mrb[21].mxu1 }
 0x243   : > { %v27161_v37 = vpack.c.bf16 %v2333_v20, %v2329_v16  ;;  %v27163_v39 = vpack.c.bf16 %v2335_v32, %v2331_v18  ;;  %v2334_v40 = vsel %vm2270_vm9, %v2238_v24, %v2302_v30  ;;  %v2336_v41 = vsel %vm2272_vm10, %v2240_v25, %v2304_v31  ;;  %v2059_v44 = vpop.f32.mrb[22].mxu0  ;;  %v2132_v53 = vpop.f32.mrb[22].mxu1 }
 0x244   : > { %v27165_v54 = vpack.c.bf16 %v2334_v40, %v2330_v22  ;;  %v27167_v57 = vpack.c.bf16 %v2336_v41, %v2332_v23  ;;  %v2241_v58 = vadd.f32 %v27132_v51, %v2187_v33  ;;  %v2243_v59 = vadd.f32 %v27135_v52, %v2189_v34  ;;  %v2061_v60 = vpop.f32.mrb[23].mxu0  ;;  %v2134_v61 = vpop.f32.mrb[23].mxu1 }
 0x245   : > { %v2188_v62 = vmul.f32 %v27126_v49, %v2057_v35  ;;  %v2190_v63 = vmul.f32 %v27129_v50, %v2130_v36  ;;  %v2191_v0 = vmul.f32 %v27120_v47, %v2059_v44  ;;  %v2193_v2 = vmul.f32 %v27123_v48, %v2132_v53 }
 0x246   : > { %vm2273_vm11 = vcmp.gt.f32.partialorder %v2241_v58, 0.0  ;;  %v2305_v3 = vmul.f32 0.02, %v2241_v58  ;;  %vm2275_vm12 = vcmp.gt.f32.partialorder %v2243_v59, 0.0  ;;  %v2307_v4 = vmul.f32 0.02, %v2243_v59  ;;  %2414 = vmatprep.subr.bf16.mxu0 %v27165_v54  ;;  %2467 = vmatprep.subr.bf16.mxu1 %v27167_v57 }
 0x247   : > { %v2242_v5 = vadd.f32 %v27138_v55, %v2188_v62  ;;  %v2244_v6 = vadd.f32 %v27141_v56, %v2190_v63  ;;  %v2245_v7 = vadd.f32 %v27132_v51, %v2191_v0  ;;  %v2247_v8 = vadd.f32 %v27135_v52, %v2193_v2  ;;  %2415 = vmatpush1.bf16.msra.mxu0 %v27161_v37  ;;  %v2065_v9 = vpop.f32.mrb[24].mxu0  ;;  %v2138_v10 = vpop.f32.mrb[24].mxu1 }
 0x248   : > { %v2337_v11 = vsel %vm2273_vm11, %v2241_v58, %v2305_v3  ;;  %v2339_v12 = vsel %vm2275_vm12, %v2243_v59, %v2307_v4  ;;  %v2192_v13 = vmul.f32 %v27126_v49, %v2061_v60  ;;  %v2194_v14 = vmul.f32 %v27129_v50, %v2134_v61  ;;  %2468 = vmatpush1.bf16.msra.mxu1 %v27163_v39  ;;  %v2067_v15 = vpop.f32.mrb[25].mxu0  ;;  %v2140_v16 = vpop.f32.mrb[25].mxu1 }
 0x249   : > { %vm2274_vm13 = vcmp.gt.f32.partialorder %v2242_v5, 0.0  ;;  %v2306_v18 = vmul.f32 0.02, %v2242_v5  ;;  %vm2276_vm14 = vcmp.gt.f32.partialorder %v2244_v6, 0.0  ;;  %v2308_v19 = vmul.f32 0.02, %v2244_v6 }
 0x24a   : > { %vm2277_vm15 = vcmp.gt.f32.partialorder %v2245_v7, 0.0  ;;  %v2309_v21 = vmul.f32 0.02, %v2245_v7  ;;  %vm2279_vm1 = vcmp.gt.f32.partialorder %v2247_v8, 0.0  ;;  %v2311_v22 = vmul.f32 0.02, %v2247_v8 }
 0x24b   : > { %v2338_v23 = vsel %vm2274_vm13, %v2242_v5, %v2306_v18  ;;  %v2340_v24 = vsel %vm2276_vm14, %v2244_v6, %v2308_v19  ;;  %v2246_v25 = vadd.f32 %v27138_v55, %v2192_v13  ;;  %v2248_v26 = vadd.f32 %v27141_v56, %v2194_v14  ;;  %v2069_v27 = vpop.f32.mrb[26].mxu0  ;;  %v2142_v28 = vpop.f32.mrb[26].mxu1 }
 0x24c   : > { %v2341_v29 = vsel %vm2277_vm15, %v2245_v7, %v2309_v21  ;;  %v2343_v30 = vsel %vm2279_vm1, %v2247_v8, %v2311_v22  ;;  %v2195_v31 = vmul.f32 %v27120_v47, %v2065_v9  ;;  %v2197_v20 = vmul.f32 %v27123_v48, %v2138_v10  ;;  %v2071_v32 = vpop.f32.mrb[27].mxu0  ;;  %v2144_v33 = vpop.f32.mrb[27].mxu1 }
 0x24d   : > { %v27189_v34 = vpack.c.bf16 %v2341_v29, %v2337_v11  ;;  %v27191_v35 = vpack.c.bf16 %v2343_v30, %v2339_v12  ;;  %vm2278_vm3 = vcmp.gt.f32.partialorder %v2246_v25, 0.0  ;;  %v2310_v36 = vmul.f32 0.02, %v2246_v25 }
 0x24e   : > { %vm2280_vm4 = vcmp.gt.f32.partialorder %v2248_v26, 0.0  ;;  %v2312_v40 = vmul.f32 0.02, %v2248_v26  ;;  %v2249_v41 = vadd.f32 %v27132_v51, %v2195_v31  ;;  %v2251_v44 = vadd.f32 %v27135_v52, %v2197_v20 }
 0x24f   : > { %v2342_v53 = vsel %vm2278_vm3, %v2246_v25, %v2310_v36  ;;  %v2196_v58 = vmul.f32 %v27126_v49, %v2067_v15  ;;  %v2198_v59 = vmul.f32 %v27129_v50, %v2140_v16  ;;  %v2199_v60 = vmul.f32 %v27120_v47, %v2069_v27  ;;  %v2075_v61 = vpop.f32.mrb[28].mxu0  ;;  %v2148_v62 = vpop.f32.mrb[28].mxu1 }
 0x250   : > { %v27198_v63 = vpack.c.bf16 %v2342_v53, %v2338_v23  ;;  %v2344_v0 = vsel %vm2280_vm4, %v2248_v26, %v2312_v40  ;;  %vm2281_vm5 = vcmp.gt.f32.partialorder %v2249_v41, 0.0  ;;  %v2313_v2 = vmul.f32 0.02, %v2249_v41  ;;  %v2077_v3 = vpop.f32.mrb[29].mxu0  ;;  %v2150_v4 = vpop.f32.mrb[29].mxu1 }
 0x251   : > { %v27200_v5 = vpack.c.bf16 %v2344_v0, %v2340_v24  ;;  %vm2283_vm6 = vcmp.gt.f32.partialorder %v2251_v44, 0.0  ;;  %v2315_v6 = vmul.f32 0.02, %v2251_v44  ;;  %v2250_v7 = vadd.f32 %v27138_v55, %v2196_v58  ;;  %v2079_v8 = vpop.f32.mrb[30].mxu0  ;;  %v2152_v9 = vpop.f32.mrb[30].mxu1 }
 0x252   : > { %v2252_v10 = vadd.f32 %v27141_v56, %v2198_v59  ;;  %v2253_v11 = vadd.f32 %v27132_v51, %v2199_v60  ;;  %v2201_v12 = vmul.f32 %v27123_v48, %v2142_v28  ;;  %2416 = vmatprep.subr.bf16.mxu0 %v27198_v63  ;;  %v2081_v13 = vpop.f32.mrb[31].mxu0  ;;  %v2154_v14 = vpop.f32.mrb[31].mxu1  ;;  %v2345_v15 = vsel %vm2281_vm5, %v2249_v41, %v2313_v2 }
 0x253   : > { %v2347_v16 = vsel %vm2283_vm6, %v2251_v44, %v2315_v6  ;;  %v2200_v18 = vmul.f32 %v27126_v49, %v2071_v32  ;;  %2469 = vmatprep.subr.bf16.mxu1 %v27200_v5  ;;  %2417 = vmatpush1.bf16.msra.mxu0 %v27189_v34  ;;  %vm2282_vm7 = vcmp.gt.f32.partialorder %v2250_v7, 0.0  ;;  %v2314_v19 = vmul.f32 0.02, %v2250_v7 }
 0x254   : > { %vm2285_vm8 = vcmp.gt.f32.partialorder %v2253_v11, 0.0  ;;  %v2317_v21 = vmul.f32 0.02, %v2253_v11  ;;  %2470 = vmatpush1.bf16.msra.mxu1 %v27191_v35  ;;  %vm2284_vm9 = vcmp.gt.f32.partialorder %v2252_v10, 0.0  ;;  %v2255_v22 = vadd.f32 %v27135_v52, %v2201_v12 }
 0x255   : > { %v2254_v23 = vadd.f32 %v27138_v55, %v2200_v18  ;;  %v2202_v24 = vmul.f32 %v27129_v50, %v2144_v33  ;;  %v2316_v25 = vmul.f32 0.02, %v2252_v10  ;;  %v2203_v27 = vmul.f32 %v27120_v47, %v2075_v61 }
 0x256   : > { %v2349_v26 = vsel %vm2285_vm8, %v2253_v11, %v2317_v21  ;;  %v2205_v28 = vmul.f32 %v27123_v48, %v2148_v62  ;;  %vm2287_vm10 = vcmp.gt.f32.partialorder %v2255_v22, 0.0  ;;  %v2319_v30 = vmul.f32 0.02, %v2255_v22 }
 0x257   : > { %v27217_v29 = vpack.c.bf16 %v2349_v26, %v2345_v15  ;;  %vm2286_vm11 = vcmp.gt.f32.partialorder %v2254_v23, 0.0  ;;  %v2346_v31 = vsel %vm2282_vm7, %v2250_v7, %v2314_v19  ;;  %v2318_v20 = vmul.f32 0.02, %v2254_v23 }
 0x258   : > { %v2256_v32 = vadd.f32 %v27141_v56, %v2202_v24  ;;  %v2257_v36 = vadd.f32 %v27132_v51, %v2203_v27  ;;  %v2351_v40 = vsel %vm2287_vm10, %v2255_v22, %v2319_v30  ;;  %v2259_v33 = vadd.f32 %v27135_v52, %v2205_v28  ;;  %v24194_v30 = vld [vmem:[%s26802_s29] sm:$0xff]  }
 0x259   : > { %v2204_v41 = vmul.f32 %v27126_v49, %v2077_v3  ;;  %v2207_v44 = vmul.f32 %v27120_v47, %v2079_v8  ;;  %v27225_v53 = vpack.c.bf16 %v2351_v40, %v2347_v16  ;;  %v2350_v58 = vsel %vm2286_vm11, %v2254_v23, %v2318_v20  ;;  %v24200_v40 = vld [vmem:[%s26807_s3 + $0x3f4] ss:$16 sps:$4 sm:$0xff]  }
 0x25a   : > { %vm2288_vm12 = vcmp.gt.f32.partialorder %v2256_v32, 0.0  ;;  %v2320_v59 = vmul.f32 0.02, %v2256_v32  ;;  %v27227_v60 = vpack.c.bf16 %v2350_v58, %v2346_v31  ;;  %v2206_v61 = vmul.f32 %v27129_v50, %v2150_v4  ;;  %v24206_v58 = vld [vmem:[%s26807_s3 + $0x414] ss:$16 sps:$4 sm:$0xff]  }
 0x25b   : > { %v2348_v62 = vsel %vm2284_vm9, %v2252_v10, %v2316_v25  ;;  %v2258_v2 = vadd.f32 %v27138_v55, %v2204_v41  ;;  %vm2399_vm13 = vcmask 1047552   ;;  %v2321_v3 = vmul.f32 0.02, %v2257_v36  ;;  %v24196_v41 = vld [vmem:[%s26802_s29 + $0x10] sm:$0xff]  }
 0x25c   : > { %v2352_v0 = vsel %vm2288_vm12, %v2256_v32, %v2320_v59  ;;  %v2261_v47 = vadd.f32 %v27132_v51, %v2207_v44  ;;  %v2209_v7 = vmul.f32 %v27123_v48, %v2152_v9  ;;  %2418 = vmatprep.subr.bf16.mxu0 %v27227_v60  ;;  %vm2289_vm14 = vcmp.gt.f32.partialorder %v2257_v36, 0.0  ;;  %v24198_v44 = vld [vmem:[%s26807_s3 + $0x3f0] ss:$16 sps:$4 sm:$0xff]   ;;  %v24201_v59 = vld [vmem:[%s26807_s3 + $0x3f8] ss:$16 sps:$4 sm:$0xff]  }
 0x25d   : > { %v27232_v6 = vpack.c.bf16 %v2352_v0, %v2348_v62  ;;  %v2323_v8 = vmul.f32 0.02, %v2259_v33  ;;  %v2400_v4 = vsel %vm2398_vm2, 4294967295, %v26761_v17  ;;  %2419 = vmatpush1.bf16.msra.mxu0 %v27217_v29  ;;  %v2260_v10 = vadd.f32 %v27141_v56, %v2206_v61  ;;  %v24204_v61 = vld [vmem:[%s26807_s3 + $0x410] ss:$16 sps:$4 sm:$0xff]  }
 0x25e   : > { %vm2293_vm15 = vcmp.gt.f32.partialorder %v2261_v47, 0.0  ;;  %v2325_v11 = vmul.f32 0.02, %v2261_v47  ;;  %v2263_v12 = vadd.f32 %v27135_v52, %v2209_v7  ;;  %vm2291_vm1 = vcmp.gt.f32.partialorder %v2259_v33, 0.0  ;;  %v24209_v62 = vld [vmem:[%s26807_s3 + $0x41c] ss:$16 sps:$4 sm:$0xff]  }
 0x25f   : > { %2471 = vmatprep.subr.bf16.mxu1 %v27232_v6  ;;  %vm2290_vm3 = vcmp.gt.f32.partialorder %v2258_v2, 0.0  ;;  %v2208_v48 = vmul.f32 %v27126_v49, %v2081_v13  ;;  %v2210_v51 = vmul.f32 %v27129_v50, %v2154_v14  ;;  %v2353_v9 = vsel %vm2289_vm14, %v2257_v36, %v2321_v3  ;;  %v24195_v36 = vld [vmem:[%s26802_s29 + $0x8] sm:$0x7f]   ;;  %v24212_v0 = vld [vmem:[%s26807_s3 + $0x434] ss:$16 sps:$4 sm:$0xff]  }
 0x260   : > { %2472 = vmatpush1.bf16.msra.mxu1 %v27225_v53  ;;  %v2357_v17 = vsel %vm2293_vm15, %v2261_v47, %v2325_v11  ;;  %vm2295_vm2 = vcmp.gt.f32.partialorder %v2263_v12, 0.0  ;;  %v2327_v15 = vmul.f32 0.02, %v2263_v12  ;;  %v2322_v16 = vmul.f32 0.02, %v2258_v2 }
 0x261   : > { %v2373_v18 = vpack.c.bf16 %v2357_v17, %v2353_v9  ;;  %v2262_v19 = vadd.f32 %v27138_v55, %v2208_v48  ;;  %v2264_v52 = vadd.f32 %v27141_v56, %v2210_v51  ;;  %v2355_v21 = vsel %vm2291_vm1, %v2259_v33, %v2323_v8  ;;  %v24203_v33 = vld [vmem:[%s26807_s3 + $0x3fc] ss:$16 sps:$4 sm:$0xff]   ;;  %v24207_v3 = vld [vmem:[%s26807_s3 + $0x418] ss:$16 sps:$4 sm:$0xff]   ;;  %v24210_v47 = vld [vmem:[%s26807_s3 + $0x430] ss:$16 sps:$4 sm:$0xff]  }
 0x262   : > { %vm2292_vm4 = vcmp.gt.f32.partialorder %v2260_v10, 0.0  ;;  %v2324_v22 = vmul.f32 0.02, %v2260_v10  ;;  %v2359_v23 = vsel %vm2295_vm2, %v2263_v12, %v2327_v15  ;;  %v2354_v14 = vsel %vm2290_vm3, %v2258_v2, %v2322_v16  ;;  %v24197_v2 = vld [vmem:[%s26802_s29 + $0x18] sm:$0x7f]  }
 0x263   : > { %v2375_v49 = vpack.c.bf16 %v2359_v23, %v2355_v21  ;;  %vm2294_vm5 = vcmp.gt.f32.partialorder %v2262_v19, 0.0  ;;  %v2326_v50 = vmul.f32 0.02, %v2262_v19  ;;  %vm2296_vm6 = vcmp.gt.f32.partialorder %v2264_v52, 0.0  ;;  %v24215_v7 = vld [vmem:[%s26807_s3 + $0x43c] ss:$16 sps:$4 sm:$0xff]  }
 0x264   : > { %v2328_v13 = vmul.f32 0.02, %v2264_v52  ;;  %v2401_v24 = vsel %vm2399_vm13, %v2400_v4, 0  ;;  %v2356_v26 = vsel %vm2292_vm4, %v2260_v10, %v2324_v22  ;;  %vm2391_vm7 = vcmask 515072   ;;  %v24218_v8 = vld [vmem:[%s26807_s3 + $0x454] ss:$16 sps:$4 sm:$0xff]  }
 0x265   : > { %v2358_v25 = vsel %vm2294_vm5, %v2262_v19, %v2326_v50  ;;  %v27253_v31 = vand.u32 %v2401_v24, %v2373_v18  ;;  %v27257_v32 = vand.u32 %v2401_v24, %v2375_v49  ;;  %v24213_v4 = vld [vmem:[%s26807_s3 + $0x438] ss:$16 sps:$4 sm:$0xff]   ;;  %v24216_v10 = vld [vmem:[%s26807_s3 + $0x450] ss:$16 sps:$4 sm:$0xff]   ;;  %v24221_v11 = vld [vmem:[%s26807_s3 + $0x45c] ss:$16 sps:$4 sm:$0xff]  }
 0x266   : > { %v2374_v27 = vpack.c.bf16 %v2358_v25, %v2354_v14  ;;  %v2360_v55 = vsel %vm2296_vm6, %v2264_v52, %v2328_v13  ;;  %v24224_v12 = vld [vmem:[%s26807_s3 + $0x474] ss:$16 sps:$4 sm:$0xff]   ;;  %v24219_v48 = vld [vmem:[%s26807_s3 + $0x458] ss:$16 sps:$4 sm:$0xff]   ;;  %v24222_v51 = vld [vmem:[%s26807_s3 + $0x470] ss:$16 sps:$4 sm:$0xff]  }
 0x267   : > { %v2376_v28 = vpack.c.bf16 %v2360_v55, %v2356_v26  ;;  %v24227_v9 = vld [vmem:[%s26807_s3 + $0x47c] ss:$16 sps:$4 sm:$0xff]   ;;  %v24230_v17 = vld [vmem:[%s26807_s3 + $0x494] ss:$16 sps:$4 sm:$0xff]   ;;  %v24225_v15 = vld [vmem:[%s26807_s3 + $0x478] ss:$16 sps:$4 sm:$0xff]  }
 0x268   : > { %v27250_v56 = vand.u32 %v2401_v24, %v2374_v27  ;;  %v24228_v16 = vld [vmem:[%s26807_s3 + $0x490] ss:$16 sps:$4 sm:$0xff]   ;;  %v24233_v18 = vld [vmem:[%s26807_s3 + $0x49c] ss:$16 sps:$4 sm:$0xff]   ;;  %v24236_v19 = vld [vmem:[%s26807_s3 + $0x4b4] ss:$16 sps:$4 sm:$0xff]  }
 0x269   : > { %v27255_v20 = vand.u32 %v2401_v24, %v2376_v28  ;;  %v24231_v52 = vld [vmem:[%s26807_s3 + $0x498] ss:$16 sps:$4 sm:$0xff]   ;;  %v24234_v21 = vld [vmem:[%s26807_s3 + $0x4b0] ss:$16 sps:$4 sm:$0xff]   ;;  %v24239_v22 = vld [vmem:[%s26807_s3 + $0x4bc] ss:$16 sps:$4 sm:$0xff]  }
 0x26a   : > { %2420 = vmatprep.subr.bf16.mxu0 %v27250_v56  ;;  %v24242_v23 = vld [vmem:[%s26807_s3 + $0x4d4] ss:$16 sps:$4 sm:$0xff]   ;;  %v24237_v49 = vld [vmem:[%s26807_s3 + $0x4b8] ss:$16 sps:$4 sm:$0xff]   ;;  %v24240_v50 = vld [vmem:[%s26807_s3 + $0x4d0] ss:$16 sps:$4 sm:$0xff]  }
 0x26b   : > { %2473 = vmatprep.subr.bf16.mxu1 %v27255_v20  ;;  %2421 = vmatpush1.bf16.msra.mxu0 %v27253_v31  ;;  %v24245_v13 = vld [vmem:[%s26807_s3 + $0x4dc] ss:$16 sps:$4 sm:$0xff]   ;;  %v24248_v14 = vld [vmem:[%s26807_s3 + $0x4f4] ss:$16 sps:$4 sm:$0xff]   ;;  %v24243_v24 = vld [vmem:[%s26807_s3 + $0x4d8] ss:$16 sps:$4 sm:$0xff]  }
 0x26c   : > { %2474 = vmatpush1.bf16.msra.mxu1 %v27257_v32  ;;  %2675 = vmatprep.subr.bf16.mxu0 %v27165_v54  ;;  %v24246_v25 = vld [vmem:[%s26807_s3 + $0x4f0] ss:$16 sps:$4 sm:$0xff]   ;;  %v24251_v26 = vld [vmem:[%s26807_s3 + $0x4fc] ss:$16 sps:$4 sm:$0xff]   ;;  %v24254_v27 = vld [vmem:[%s26807_s3 + $0x514] ss:$16 sps:$4 sm:$0xff]  }
 0x26d   : > { %2728 = vmatprep.subr.bf16.mxu1 %v27167_v57  ;;  %v24249_v55 = vld [vmem:[%s26807_s3 + $0x4f8] ss:$16 sps:$4 sm:$0xff]   ;;  %v24252_v28 = vld [vmem:[%s26807_s3 + $0x510] ss:$16 sps:$4 sm:$0xff]   ;;  %vm3546_vm8 = vcmask 982016   ;;  %vm3553_vm9 = vcmask 1043456  }
 0x26e   : > { %19774 = vmatmul.mubr.msk.bf16.vlgmr.msra.gmra.mrb[32].mxu0 %vm2391_vm7, %v24194_v30 }
 0x26f   : > { %19776 = vmatmul.mubr.msk.bf16.vlgmr.msra.gmra.mrb[32].mxu1 %vm2391_vm7, %v24194_v30  ;;  %2676 = vmatpush1.bf16.msra.mxu0 %v27161_v37  ;;  %v24257_v30 = vld [vmem:[%s26807_s3 + $0x51c] ss:$16 sps:$4 sm:$0xff]  }
 0x270   : > { %2729 = vmatpush1.bf16.msra.mxu1 %v27163_v39  ;;  %2677 = vmatprep.subr.bf16.mxu0 %v27198_v63 }
 0x271   : > { %2730 = vmatprep.subr.bf16.mxu1 %v27200_v5  ;;  %2456 = vmatprep.mubr.bf16.mxu0 %v26760_v1 }
 0x272   : > { %2509 = vmatprep.mubr.bf16.mxu1 %v26760_v1 }
 0x273   : > { %2678 = vmatpush1.bf16.msra.mxu0 %v27189_v34 }
 0x274   : > { %2731 = vmatpush1.bf16.msra.mxu1 %v27191_v35  ;;  %2679 = vmatprep.subr.bf16.mxu0 %v27227_v60 }
 0x275   : > { %2732 = vmatprep.subr.bf16.mxu1 %v27232_v6 }
 0x276   : > { %19775 = vmatmul.mubr.msk.bf16.gmra.mrb[36].mxu0 %vm2391_vm7, %v24195_v36 }
 0x277   : > { %2680 = vmatpush1.bf16.msra.mxu0 %v27217_v29  ;;  %2707 = vmatprep.mubr.bf16.mxu0 %v26760_v1 }
 0x278   : > { %2733 = vmatpush1.bf16.msra.mxu1 %v27225_v53  ;;  %2681 = vmatprep.subr.bf16.mxu0 %v27250_v56 }
 0x279   : > { %2734 = vmatprep.subr.bf16.mxu1 %v27255_v20  ;;  %19777 = vmatmul.mubr.msk.bf16.gmra.mrb[36].mxu1 %vm2391_vm7, %v24195_v36  ;;  %v24260_v36 = vld [vmem:[%s26807_s3 + $0x534] ss:$16 sps:$4 sm:$0xff]  }
 0x27a   : > { %2760 = vmatprep.mubr.bf16.mxu1 %v26760_v1 }
 0x27b   : > { %2682 = vmatpush1.bf16.msra.mxu0 %v27253_v31 }
 0x27c   : > { %2735 = vmatpush1.bf16.msra.mxu1 %v27257_v32  ;;  %3566 = vmatprep.subr.bf16.mxu0 %v24200_v40  ;;  %v24255_v40 = vld [vmem:[%s26807_s3 + $0x518] ss:$16 sps:$4 sm:$0xff]  }
 0x27d   : > { %3672 = vmatprep.subr.bf16.mxu1 %v24203_v33  ;;  %v24258_v33 = vld [vmem:[%s26807_s3 + $0x530] ss:$16 sps:$4 sm:$0xff]  }
 0x27e   : > { %19784 = vmatmul.mubr.msk.bf16.vlgmr.msra.gmra.mrb[40].mxu0 %vm2391_vm7, %v24196_v41 }
 0x27f   : > { %2717 = vmatprep.mubr.bf16.mxu0 %v26760_v1  ;;  %3567 = vmatpush1.bf16.msra.mxu0 %v24198_v44  ;;  %v24261_v44 = vld [vmem:[%s26807_s3 + $0x538] ss:$16 sps:$4 sm:$0xff]  }
 0x280   : > { %3568 = vmatprep.subr.bf16.mxu0 %v24206_v58  ;;  %v24266_v58 = vld [vmem:[%s26807_s3 + $0x554] ss:$16 sps:$4 sm:$0xff]  }
 0x281   : > { %19786 = vmatmul.mubr.msk.bf16.vlgmr.msra.gmra.mrb[40].mxu1 %vm2391_vm7, %v24196_v41  ;;  %v24263_v41 = vld [vmem:[%s26807_s3 + $0x53c] ss:$16 sps:$4 sm:$0xff]  }
 0x282   : > { %2770 = vmatprep.mubr.bf16.mxu1 %v26760_v1  ;;  %3673 = vmatpush1.bf16.msra.mxu1 %v24201_v59  ;;  %v24269_v59 = vld [vmem:[%s26807_s3 + $0x55c] ss:$16 sps:$4 sm:$0xff]  }
 0x283   : > { %3674 = vmatprep.subr.bf16.mxu1 %v24209_v62  ;;  %3569 = vmatpush1.bf16.msra.mxu0 %v24204_v61  ;;  %v24264_v61 = vld [vmem:[%s26807_s3 + $0x550] ss:$16 sps:$4 sm:$0xff]   ;;  %v24267_v62 = vld [vmem:[%s26807_s3 + $0x558] ss:$16 sps:$4 sm:$0xff]  }
 0x284   : > { %3570 = vmatprep.subr.bf16.mxu0 %v24212_v0  ;;  %v24270_v0 = vld [vmem:[%s26807_s3 + $0x570] ss:$16 sps:$4 sm:$0xff]  }
 0x286   : > { %19785 = vmatmul.mubr.msk.bf16.gmra.mrb[44].mxu0 %vm2391_vm7, %v24197_v2  ;;  %3675 = vmatpush1.bf16.msra.mxu1 %v24207_v3  ;;  %v24273_v3 = vld [vmem:[%s26807_s3 + $0x578] ss:$16 sps:$4 sm:$0xff]  }
 0x287   : > { %3676 = vmatprep.subr.bf16.mxu1 %v24215_v7  ;;  %3571 = vmatpush1.bf16.msra.mxu0 %v24210_v47  ;;  %v24275_v47 = vld [vmem:[%s26807_s3 + $0x57c] ss:$16 sps:$4 sm:$0xff]   ;;  %v24278_v7 = vld [vmem:[%s26807_s3 + $0x594] ss:$16 sps:$4 sm:$0xff]  }
 0x288   : > { %3572 = vmatprep.subr.bf16.mxu0 %v24218_v8  ;;  %v24281_v8 = vld [vmem:[%s26807_s3 + $0x59c] ss:$16 sps:$4 sm:$0xff]  }
 0x289   : > { %19787 = vmatmul.mubr.msk.bf16.gmra.mrb[44].mxu1 %vm2391_vm7, %v24197_v2  ;;  %v24272_v2 = vld [vmem:[%s26807_s3 + $0x574] ss:$16 sps:$4 sm:$0xff]  }
 0x28a   : > { %3677 = vmatpush1.bf16.msra.mxu1 %v24213_v4  ;;  %v24276_v4 = vld [vmem:[%s26807_s3 + $0x590] ss:$16 sps:$4 sm:$0xff]  }
 0x28b   : > { %3678 = vmatprep.subr.bf16.mxu1 %v24221_v11  ;;  %3573 = vmatpush1.bf16.msra.mxu0 %v24216_v10  ;;  %v24279_v10 = vld [vmem:[%s26807_s3 + $0x598] ss:$16 sps:$4 sm:$0xff]   ;;  %v24282_v11 = vld [vmem:[%s26807_s3 + $0x5b0] ss:$16 sps:$4 sm:$0xff]  }
 0x28c   : > { %3574 = vmatprep.subr.bf16.mxu0 %v24224_v12  ;;  %v24284_v12 = vld [vmem:[%s26807_s3 + $0x5b4] ss:$16 sps:$4 sm:$0xff]  }
 0x28e   : > { %3679 = vmatpush1.bf16.msra.mxu1 %v24219_v48  ;;  %v24285_v48 = vld [vmem:[%s26807_s3 + $0x5b8] ss:$16 sps:$4 sm:$0xff]  }
 0x28f   : > { %3680 = vmatprep.subr.bf16.mxu1 %v24227_v9  ;;  %3575 = vmatpush1.bf16.msra.mxu0 %v24222_v51  ;;  %v24287_v51 = vld [vmem:[%s26807_s3 + $0x5bc] ss:$16 sps:$4 sm:$0xff]   ;;  %v24290_v9 = vld [vmem:[%s26807_s3 + $0x5d4] ss:$16 sps:$4 sm:$0xff]  }
 0x290   : > { %3576 = vmatprep.subr.bf16.mxu0 %v24230_v17  ;;  %v24293_v17 = vld [vmem:[%s26807_s3 + $0x5dc] ss:$16 sps:$4 sm:$0xff]  }
 0x292   : > { %3681 = vmatpush1.bf16.msra.mxu1 %v24225_v15  ;;  %v24288_v15 = vld [vmem:[%s26807_s3 + $0x5d0] ss:$16 sps:$4 sm:$0xff]  }
 0x293   : > { %3682 = vmatprep.subr.bf16.mxu1 %v24233_v18  ;;  %3577 = vmatpush1.bf16.msra.mxu0 %v24228_v16  ;;  %v24291_v16 = vld [vmem:[%s26807_s3 + $0x5d8] ss:$16 sps:$4 sm:$0xff]   ;;  %v24296_v18 = vld [vmem:[%s26807_s3 + $0x5f4] ss:$16 sps:$4 sm:$0xff]  }
 0x294   : > { %3578 = vmatprep.subr.bf16.mxu0 %v24236_v19  ;;  %v24299_v19 = vld [vmem:[%s26807_s3 + $0x5fc] ss:$16 sps:$4 sm:$0xff]  }
 0x296   : > { %3683 = vmatpush1.bf16.msra.mxu1 %v24231_v52 }
 0x297   : > { %3684 = vmatprep.subr.bf16.mxu1 %v24239_v22  ;;  %3579 = vmatpush1.bf16.msra.mxu0 %v24234_v21 }
 0x298   : > { %3580 = vmatprep.subr.bf16.mxu0 %v24242_v23 }
 0x29a   : > { %3685 = vmatpush1.bf16.msra.mxu1 %v24237_v49 }
 0x29b   : > { %3686 = vmatprep.subr.bf16.mxu1 %v24245_v13  ;;  %3581 = vmatpush1.bf16.msra.mxu0 %v24240_v50 }
 0x29c   : > { %3582 = vmatprep.subr.bf16.mxu0 %v24248_v14 }
 0x29e   : > { %3687 = vmatpush1.bf16.msra.mxu1 %v24243_v24 }
 0x29f   : > { %3688 = vmatprep.subr.bf16.mxu1 %v24251_v26  ;;  %3583 = vmatpush1.bf16.msra.mxu0 %v24246_v25 }
 0x2a0   : > { %3584 = vmatprep.subr.bf16.mxu0 %v24254_v27 }
 0x2a2   : > { %3689 = vmatpush1.bf16.msra.mxu1 %v24249_v55 }
 0x2a3   : > { %3690 = vmatprep.subr.bf16.mxu1 %v24257_v30  ;;  %3585 = vmatpush1.bf16.msra.mxu0 %v24252_v28 }
 0x2a4   : > { %3586 = vmatprep.subr.bf16.mxu0 %v24260_v36 }
 0x2a6   : > { %3691 = vmatpush1.bf16.msra.mxu1 %v24255_v40 }
 0x2a7   : > { %3692 = vmatprep.subr.bf16.mxu1 %v24263_v41  ;;  %3587 = vmatpush1.bf16.msra.mxu0 %v24258_v33 }
 0x2a8   : > { %3588 = vmatprep.subr.bf16.mxu0 %v24266_v58 }
 0x2aa   : > { %3693 = vmatpush1.bf16.msra.mxu1 %v24261_v44 }
 0x2ab   : > { %3694 = vmatprep.subr.bf16.mxu1 %v24269_v59  ;;  %3589 = vmatpush1.bf16.msra.mxu0 %v24264_v61 }
 0x2ac   : > { %3590 = vmatprep.subr.bf16.mxu0 %v24272_v2 }
 0x2ae   : > { %3695 = vmatpush1.bf16.msra.mxu1 %v24267_v62 }
 0x2af   : > { %3696 = vmatprep.subr.bf16.mxu1 %v24275_v47  ;;  %3591 = vmatpush1.bf16.msra.mxu0 %v24270_v0  ;;  %v24294_v47 = vld [vmem:[%s26807_s3 + $0x5f0] ss:$16 sps:$4 sm:$0xff]  }
 0x2b0   : > { %3592 = vmatprep.subr.bf16.mxu0 %v24278_v7  ;;  %v24297_v7 = vld [vmem:[%s26807_s3 + $0x5f8] ss:$16 sps:$4 sm:$0xff]  }
 0x2b2   : > { %3697 = vmatpush1.bf16.msra.mxu1 %v24273_v3 }
 0x2b3   : > { %3698 = vmatprep.subr.bf16.mxu1 %v24281_v8  ;;  %3593 = vmatpush1.bf16.msra.mxu0 %v24276_v4 }
 0x2b4   : > { %3594 = vmatprep.subr.bf16.mxu0 %v24284_v12 }
 0x2b6   : > { %3699 = vmatpush1.bf16.msra.mxu1 %v24279_v10  ;;  %v24302_v10 = vld [vmem:[%s26807_s3 + $0x614] ss:$16 sps:$4 sm:$0xff]  }
 0x2b7   : > { %3700 = vmatprep.subr.bf16.mxu1 %v24287_v51  ;;  %3595 = vmatpush1.bf16.msra.mxu0 %v24282_v11  ;;  %v24305_v11 = vld [vmem:[%s26807_s3 + $0x61c] ss:$16 sps:$4 sm:$0xff]  }
 0x2b8   : > { %3596 = vmatprep.subr.bf16.mxu0 %v24290_v9 }
 0x2ba   : > { %3701 = vmatpush1.bf16.msra.mxu1 %v24285_v48 }
 0x2bb   : > { %3702 = vmatprep.subr.bf16.mxu1 %v24293_v17  ;;  %3597 = vmatpush1.bf16.msra.mxu0 %v24288_v15  ;;  %v24300_v17 = vld [vmem:[%s26807_s3 + $0x610] ss:$16 sps:$4 sm:$0xff]   ;;  %v24303_v15 = vld [vmem:[%s26807_s3 + $0x618] ss:$16 sps:$4 sm:$0xff]  }
 0x2bc   : > { %3619 = vmatprep.subr.bf16.mxu0 %v24296_v18 }
 0x2be   : > { %3703 = vmatpush1.bf16.msra.mxu1 %v24291_v16 }
 0x2bf   : > { %3725 = vmatprep.subr.bf16.mxu1 %v24299_v19  ;;  %v24308_v19 = vld [vmem:[%s26807_s3 + $0x634] ss:$16 sps:$4 sm:$0xff]  }
 0x341   : > { %v2448_v52 = vpop.f32.mrb[32].mxu0 }
 0x342   : > { %v2450_v21 = vpop.f32.mrb[33].mxu0  ;;  %v2501_v22 = vpop.f32.mrb[32].mxu1 }
 0x343   : > { %v2452_v23 = vpop.f32.mrb[34].mxu0  ;;  %v2503_v49 = vpop.f32.mrb[33].mxu1 }
 0x344   : > { %v27362_v50 = vpack.c.bf16 %v2452_v23, %v2448_v52  ;;  %v2454_v13 = vpop.f32.mrb[35].mxu0  ;;  %v2505_v14 = vpop.f32.mrb[34].mxu1  ;;  %v24311_v52 = vld [vmem:[%s26807_s3 + $0x63c] ss:$16 sps:$4 sm:$0xff]  }
 0x345   : > { %v27364_v24 = vpack.c.bf16 %v2454_v13, %v2450_v21  ;;  %v27366_v25 = vpack.c.bf16 %v2505_v14, %v2501_v22  ;;  %v2507_v26 = vpop.f32.mrb[35].mxu1  ;;  %v24309_v13 = vld [vmem:[%s26807_s3 + $0x638] ss:$16 sps:$4 sm:$0xff]  }
 0x346   : > { %v27368_v27 = vpack.c.bf16 %v2507_v26, %v2503_v49  ;;  %v24306_v49 = vld [vmem:[%s26807_s3 + $0x630] ss:$16 sps:$4 sm:$0xff]   ;;  %v24314_v26 = vld [vmem:[%s26807_s3 + $0x654] ss:$16 sps:$4 sm:$0xff]  }
 0x349   : > { %v2458_v55 = vpop.f32.mrb[36].mxu0 }
 0x34a   : > { %v2460_v28 = vpop.f32.mrb[37].mxu0 }
 0x34b   : > { %v2462_v30 = vpop.f32.mrb[38].mxu0 }
 0x34c   : > { %v27370_v36 = vpack.c.bf16 %v2462_v30, %v2458_v55  ;;  %v2464_v40 = vpop.f32.mrb[39].mxu0  ;;  %v2511_v33 = vpop.f32.mrb[36].mxu1  ;;  %v24317_v55 = vld [vmem:[%s26807_s3 + $0x65c] ss:$16 sps:$4 sm:$0xff]  }
 0x34d   : > { %v27372_v41 = vpack.c.bf16 %v2464_v40, %v2460_v28  ;;  %v2513_v44 = vpop.f32.mrb[37].mxu1 }
 0x34e   : > { %v2515_v58 = vpop.f32.mrb[38].mxu1 }
 0x34f   : > { %v27374_v59 = vpack.c.bf16 %v2515_v58, %v2511_v33  ;;  %v2517_v61 = vpop.f32.mrb[39].mxu1 }
 0x350   : > { %v27376_v62 = vpack.c.bf16 %v2517_v61, %v2513_v44  ;;  %v24312_v61 = vld [vmem:[%s26807_s3 + $0x650] ss:$16 sps:$4 sm:$0xff]  }
 0x351   : > { %v2709_v0 = vpop.f32.mrb[40].mxu0 }
 0x352   : > { %v2711_v2 = vpop.f32.mrb[41].mxu0 }
 0x353   : > { %v2713_v3 = vpop.f32.mrb[42].mxu0 }
 0x354   : > { %v2781_v8 = vpack.c.bf16 %v2713_v3, %v2709_v0  ;;  %v2715_v4 = vpop.f32.mrb[43].mxu0  ;;  %v2762_v12 = vpop.f32.mrb[40].mxu1  ;;  %v24315_v3 = vld [vmem:[%s26807_s3 + $0x658] ss:$16 sps:$4 sm:$0xff]  }
 0x355   : > { %v2782_v48 = vpack.c.bf16 %v2715_v4, %v2711_v2  ;;  %v2764_v51 = vpop.f32.mrb[41].mxu1  ;;  %v24318_v4 = vld [vmem:[%s26807_s3 + $0x670] ss:$16 sps:$4 sm:$0xff]  }
 0x356   : > { %v2766_v9 = vpop.f32.mrb[42].mxu1 }
 0x357   : > { %3598 = vmatprep.mubr.bf16.mxu0 %v2782_v48  ;;  %3704 = vmatprep.mubr.bf16.mxu1 %v2782_v48  ;;  %v27384_v16 = vpack.c.bf16 %v2766_v9, %v2762_v12  ;;  %v2768_v18 = vpop.f32.mrb[43].mxu1  ;;  %v24329_v12 = vld [vmem:[%s26807_s3 + $0x69c] ss:$16 sps:$4 sm:$0xff]   ;;  %v24324_v48 = vld [vmem:[%s26807_s3 + $0x690] ss:$16 sps:$4 sm:$0xff]  }
 0x358   : > { %3599 = vmatmul.mubr.bf16.vlgmr.msra.gmra.mrb[48].mxu0 %v2781_v8  ;;  %3705 = vmatmul.mubr.bf16.vlgmr.msra.gmra.mrb[48].mxu1 %v2781_v8  ;;  %v2784_v21 = vpack.c.bf16 %v2768_v18, %v2764_v51  ;;  %v24323_v8 = vld [vmem:[%s26807_s3 + $0x67c] ss:$16 sps:$4 sm:$0xff]   ;;  %v24327_v51 = vld [vmem:[%s26807_s3 + $0x698] ss:$16 sps:$4 sm:$0xff]   ;;  %v24332_v9 = vld [vmem:[%s26807_s3 + $0x6b4] ss:$16 sps:$4 sm:$0xff]  }
 0x359   : > { %3620 = vmatpush1.bf16.msra.mxu0 %v24294_v47  ;;  %3726 = vmatpush1.bf16.msra.mxu1 %v24297_v7  ;;  %v2719_v22 = vpop.f32.mrb[44].mxu0  ;;  %v24320_v47 = vld [vmem:[%s26807_s3 + $0x674] ss:$16 sps:$4 sm:$0xff]   ;;  %v24333_v18 = vld [vmem:[%s26807_s3 + $0x6b8] ss:$16 sps:$4 sm:$0xff]  }
 0x35a   : > { %3621 = vmatprep.subr.bf16.mxu0 %v24302_v10  ;;  %3727 = vmatprep.subr.bf16.mxu1 %v24305_v11  ;;  %v2721_v23 = vpop.f32.mrb[45].mxu0  ;;  %v24321_v10 = vld [vmem:[%s26807_s3 + $0x678] ss:$16 sps:$4 sm:$0xff]   ;;  %v24326_v11 = vld [vmem:[%s26807_s3 + $0x694] ss:$16 sps:$4 sm:$0xff]  }
 0x35b   : > { %v2723_v14 = vpop.f32.mrb[46].mxu0 }
 0x35c   : > { %v2785_v28 = vpack.c.bf16 %v2723_v14, %v2719_v22  ;;  %v2725_v30 = vpop.f32.mrb[47].mxu0  ;;  %v2772_v40 = vpop.f32.mrb[44].mxu1  ;;  %v24339_v22 = vld [vmem:[%s26807_s3 + $0x6d8] ss:$16 sps:$4 sm:$0xff]  }
 0x35d   : > { %3622 = vmatpush1.bf16.msra.mxu0 %v24300_v17  ;;  %3728 = vmatpush1.bf16.msra.mxu1 %v24303_v15  ;;  %v2786_v33 = vpack.c.bf16 %v2725_v30, %v2721_v23  ;;  %v2774_v44 = vpop.f32.mrb[45].mxu1  ;;  %v24335_v17 = vld [vmem:[%s26807_s3 + $0x6bc] ss:$16 sps:$4 sm:$0xff]   ;;  %v24330_v15 = vld [vmem:[%s26807_s3 + $0x6b0] ss:$16 sps:$4 sm:$0xff]  }
 0x35e   : > { %3623 = vmatprep.subr.bf16.mxu0 %v24308_v19  ;;  %3729 = vmatprep.subr.bf16.mxu1 %v24311_v52  ;;  %v2776_v58 = vpop.f32.mrb[46].mxu1  ;;  %v24338_v19 = vld [vmem:[%s26807_s3 + $0x6d4] ss:$16 sps:$4 sm:$0xff]   ;;  %v24341_v52 = vld [vmem:[%s26807_s3 + $0x6dc] ss:$16 sps:$4 sm:$0xff]  }
 0x35f   : > { %3608 = vmatprep.mubr.bf16.mxu0 %v2786_v33  ;;  %3714 = vmatprep.mubr.bf16.mxu1 %v2786_v33  ;;  %v27393_v0 = vpack.c.bf16 %v2776_v58, %v2772_v40  ;;  %v2778_v2 = vpop.f32.mrb[47].mxu1  ;;  %v24344_v23 = vld [vmem:[%s26807_s3 + $0x6f4] ss:$16 sps:$4 sm:$0xff]   ;;  %v24345_v14 = vld [vmem:[%s26807_s3 + $0x6f8] ss:$16 sps:$4 sm:$0xff]  }
 0x360   : > { %3609 = vmatmul.mubr.bf16.gmra.mrb[52].mxu0 %v2785_v28  ;;  %3715 = vmatmul.mubr.bf16.gmra.mrb[52].mxu1 %v2785_v28  ;;  %v27397_v7 = vpack.c.bf16 %v2778_v2, %v2774_v44  ;;  %v24348_v28 = vld [vmem:[%s26807_s3 + $0x710] ss:$16 sps:$4 sm:$0xff]   ;;  %v24351_v30 = vld [vmem:[%s26807_s3 + $0x718] ss:$16 sps:$4 sm:$0xff]   ;;  %v24356_v40 = vld [vmem:[%s26807_s3 + $0x734] ss:$16 sps:$4 sm:$0xff]  }
 0x361   : > { %3624 = vmatpush1.bf16.msra.mxu0 %v24306_v49  ;;  %3730 = vmatpush1.bf16.msra.mxu1 %v24309_v13  ;;  %v24347_v49 = vld [vmem:[%s26807_s3 + $0x6fc] ss:$16 sps:$4 sm:$0xff]   ;;  %v24342_v13 = vld [vmem:[%s26807_s3 + $0x6f0] ss:$16 sps:$4 sm:$0xff]   ;;  %v24357_v58 = vld [vmem:[%s26807_s3 + $0x738] ss:$16 sps:$4 sm:$0xff]  }
 0x362   : > { %3625 = vmatprep.subr.bf16.mxu0 %v24314_v26  ;;  %3731 = vmatprep.subr.bf16.mxu1 %v24317_v55  ;;  %v24350_v26 = vld [vmem:[%s26807_s3 + $0x714] ss:$16 sps:$4 sm:$0xff]   ;;  %v24353_v55 = vld [vmem:[%s26807_s3 + $0x71c] ss:$16 sps:$4 sm:$0xff]   ;;  %v24354_v44 = vld [vmem:[%s26807_s3 + $0x730] ss:$16 sps:$4 sm:$0xff]  }
 0x363   : > { %20043 = vmatprep.mubr.msk.bf16.mxu0 %vm3546_vm8, %v2784_v21  ;;  %20046 = vmatprep.mubr.msk.bf16.mxu1 %vm3546_vm8, %v2784_v21  ;;  %v24336_v21 = vld [vmem:[%s26807_s3 + $0x6d0] ss:$16 sps:$4 sm:$0xff]   ;;  %v24359_v33 = vld [vmem:[%s26807_s3 + $0x73c] ss:$16 sps:$4 sm:$0xff]  }
 0x364   : > { %v24365_v2 = vld [vmem:[%s26807_s3 + $0x75c] ss:$16 sps:$4 sm:$0xff]  }
 0x365   : > { %3626 = vmatpush1.bf16.msra.mxu0 %v24312_v61  ;;  %3732 = vmatpush1.bf16.msra.mxu1 %v24315_v3  ;;  %v24362_v61 = vld [vmem:[%s26807_s3 + $0x754] ss:$16 sps:$4 sm:$0xff]   ;;  %v24360_v3 = vld [vmem:[%s26807_s3 + $0x750] ss:$16 sps:$4 sm:$0xff]  }
 0x366   : > { %3627 = vmatprep.subr.bf16.mxu0 %v24320_v47  ;;  %3733 = vmatprep.subr.bf16.mxu1 %v24323_v8  ;;  %v24363_v47 = vld [vmem:[%s26807_s3 + $0x758] ss:$16 sps:$4 sm:$0xff]   ;;  %v24368_v8 = vld [vmem:[%s26807_s3 + $0x774] ss:$16 sps:$4 sm:$0xff]  }
 0x369   : > { %3628 = vmatpush1.bf16.msra.mxu0 %v24318_v4  ;;  %3734 = vmatpush1.bf16.msra.mxu1 %v24321_v10  ;;  %v24371_v4 = vld [vmem:[%s26807_s3 + $0x77c] ss:$16 sps:$4 sm:$0xff]   ;;  %v24366_v10 = vld [vmem:[%s26807_s3 + $0x770] ss:$16 sps:$4 sm:$0xff]  }
 0x36a   : > { %3629 = vmatprep.subr.bf16.mxu0 %v24326_v11  ;;  %3735 = vmatprep.subr.bf16.mxu1 %v24329_v12  ;;  %v24369_v11 = vld [vmem:[%s26807_s3 + $0x778] ss:$16 sps:$4 sm:$0xff]   ;;  %v24374_v12 = vld [vmem:[%s26807_s3 + $0x794] ss:$16 sps:$4 sm:$0xff]  }
 0x36d   : > { %3630 = vmatpush1.bf16.msra.mxu0 %v24324_v48  ;;  %3736 = vmatpush1.bf16.msra.mxu1 %v24327_v51  ;;  %v24377_v48 = vld [vmem:[%s26807_s3 + $0x79c] ss:$16 sps:$4 sm:$0xff]   ;;  %v24372_v51 = vld [vmem:[%s26807_s3 + $0x790] ss:$16 sps:$4 sm:$0xff]  }
 0x36e   : > { %3631 = vmatprep.subr.bf16.mxu0 %v24332_v9  ;;  %3737 = vmatprep.subr.bf16.mxu1 %v24335_v17  ;;  %v24375_v9 = vld [vmem:[%s26807_s3 + $0x798] ss:$16 sps:$4 sm:$0xff]   ;;  %v24380_v17 = vld [vmem:[%s26807_s3 + $0x7b4] ss:$16 sps:$4 sm:$0xff]  }
 0x371   : > { %3632 = vmatpush1.bf16.msra.mxu0 %v24330_v15  ;;  %3738 = vmatpush1.bf16.msra.mxu1 %v24333_v18  ;;  %v24383_v15 = vld [vmem:[%s26807_s3 + $0x7bc] ss:$16 sps:$4 sm:$0xff]   ;;  %v19912_v18 = vld [vmem:[%s26807_s3 + $0x7d0] sm:$0xff] }
 0x372   : > { %3633 = vmatprep.subr.bf16.mxu0 %v24338_v19  ;;  %3739 = vmatprep.subr.bf16.mxu1 %v24341_v52  ;;  %v19913_v19 = vld [vmem:[%s26807_s3 + $0x7d8] sm:$0xff]  ;;  %v24378_v52 = vld [vmem:[%s26807_s3 + $0x7b0] ss:$16 sps:$4 sm:$0xff]  }
 0x375   : > { %3634 = vmatpush1.bf16.msra.mxu0 %v24336_v21  ;;  %3740 = vmatpush1.bf16.msra.mxu1 %v24339_v22  ;;  %v24381_v21 = vld [vmem:[%s26807_s3 + $0x7b8] ss:$16 sps:$4 sm:$0xff]   ;;  %v20039_v22 = vcombine.high %v19912_v18, %v19912_v18 }
 0x376   : > { %3635 = vmatprep.subr.bf16.mxu0 %v24344_v23  ;;  %3741 = vmatprep.subr.bf16.mxu1 %v24347_v49  ;;  %v20041_v23 = vcombine.high %v19913_v19, %v19913_v19  ;;  %v20038_v49 = vcombine.low %v19912_v18, %v19912_v18  ;;  %v24429_v18 = vld [vmem:[%s26807_s3 + $0xcc] ss:$16 sps:$4 sm:$0xff]  }
 0x379   : > { %3636 = vmatpush1.bf16.msra.mxu0 %v24342_v13  ;;  %3742 = vmatpush1.bf16.msra.mxu1 %v24345_v14  ;;  %v20040_v13 = vcombine.low %v19913_v19, %v19913_v19  ;;  %v3555_v14 = vsel %vm3553_vm9, %v20038_v49, 0  ;;  %v24424_v19 = vld [vmem:[%s26807_s3 + $0xc0] ss:$16 sps:$4 sm:$0xff]   ;;  %v24433_v49 = vld [vmem:[%s26807_s3 + $0xe8] ss:$16 sps:$4 sm:$0xff]  }
 0x37a   : > { %3637 = vmatprep.subr.bf16.mxu0 %v24350_v26  ;;  %3743 = vmatprep.subr.bf16.mxu1 %v24353_v55  ;;  %v24390_v55 = vld [vmem:[%s26807_s3 + $0x4] ss:$16 sps:$4 sm:$0xff]  }
 0x37b   : > { %v3561_v26 = vsel %vm3553_vm9, %v20040_v13, 0  ;;  %v24438_v13 = vld [vmem:[%s26807_s3 + $0x104] ss:$16 sps:$4 sm:$0xff]  }
 0x37d   : > { %3638 = vmatpush1.bf16.msra.mxu0 %v24348_v28  ;;  %3744 = vmatpush1.bf16.msra.mxu1 %v24351_v30  ;;  %v24393_v28 = vld [vmem:[%s26807_s3 + $0xc] ss:$16 sps:$4 sm:$0xff]   ;;  %v24388_v30 = vld [vmem:[%s26807_s3] ss:$16 sps:$4 sm:$0xff]  }
 0x37e   : > { %3639 = vmatprep.subr.bf16.mxu0 %v24356_v40  ;;  %3745 = vmatprep.subr.bf16.mxu1 %v24359_v33  ;;  %v24391_v40 = vld [vmem:[%s26807_s3 + $0x8] ss:$16 sps:$4 sm:$0xff]   ;;  %v24396_v33 = vld [vmem:[%s26807_s3 + $0x24] ss:$16 sps:$4 sm:$0xff]  }
 0x381   : > { %3640 = vmatpush1.bf16.msra.mxu0 %v24354_v44  ;;  %3746 = vmatpush1.bf16.msra.mxu1 %v24357_v58  ;;  %v24399_v44 = vld [vmem:[%s26807_s3 + $0x2c] ss:$16 sps:$4 sm:$0xff]   ;;  %v24394_v58 = vld [vmem:[%s26807_s3 + $0x20] ss:$16 sps:$4 sm:$0xff]  }
 0x382   : > { %3641 = vmatprep.subr.bf16.mxu0 %v24362_v61  ;;  %3747 = vmatprep.subr.bf16.mxu1 %v24365_v2  ;;  %v24397_v61 = vld [vmem:[%s26807_s3 + $0x28] ss:$16 sps:$4 sm:$0xff]   ;;  %v24402_v2 = vld [vmem:[%s26807_s3 + $0x44] ss:$16 sps:$4 sm:$0xff]  }
 0x385   : > { %3642 = vmatpush1.bf16.msra.mxu0 %v24360_v3  ;;  %3748 = vmatpush1.bf16.msra.mxu1 %v24363_v47  ;;  %v24405_v3 = vld [vmem:[%s26807_s3 + $0x4c] ss:$16 sps:$4 sm:$0xff]   ;;  %v24403_v47 = vld [vmem:[%s26807_s3 + $0x48] ss:$16 sps:$4 sm:$0xff]  }
 0x386   : > { %3643 = vmatprep.subr.bf16.mxu0 %v24368_v8  ;;  %3749 = vmatprep.subr.bf16.mxu1 %v24371_v4  ;;  %v24408_v8 = vld [vmem:[%s26807_s3 + $0x64] ss:$16 sps:$4 sm:$0xff]   ;;  %v24411_v4 = vld [vmem:[%s26807_s3 + $0x6c] ss:$16 sps:$4 sm:$0xff]  }
 0x389   : > { %3644 = vmatpush1.bf16.msra.mxu0 %v24366_v10  ;;  %3750 = vmatpush1.bf16.msra.mxu1 %v24369_v11  ;;  %v24409_v10 = vld [vmem:[%s26807_s3 + $0x68] ss:$16 sps:$4 sm:$0xff]   ;;  %v24414_v11 = vld [vmem:[%s26807_s3 + $0x84] ss:$16 sps:$4 sm:$0xff]  }
 0x38a   : > { %3645 = vmatprep.subr.bf16.mxu0 %v24374_v12  ;;  %3751 = vmatprep.subr.bf16.mxu1 %v24377_v48  ;;  %v24417_v12 = vld [vmem:[%s26807_s3 + $0x8c] ss:$16 sps:$4 sm:$0xff]   ;;  %v24415_v48 = vld [vmem:[%s26807_s3 + $0x88] ss:$16 sps:$4 sm:$0xff]  }
 0x38d   : > { %3646 = vmatpush1.bf16.msra.mxu0 %v24372_v51  ;;  %3752 = vmatpush1.bf16.msra.mxu1 %v24375_v9  ;;  %v24420_v51 = vld [vmem:[%s26807_s3 + $0xa4] ss:$16 sps:$4 sm:$0xff]   ;;  %v24423_v9 = vld [vmem:[%s26807_s3 + $0xac] ss:$16 sps:$4 sm:$0xff]  }
 0x38e   : > { %3647 = vmatprep.subr.bf16.mxu0 %v24380_v17  ;;  %3753 = vmatprep.subr.bf16.mxu1 %v24383_v15  ;;  %v24421_v17 = vld [vmem:[%s26807_s3 + $0xa8] ss:$16 sps:$4 sm:$0xff]   ;;  %v24426_v15 = vld [vmem:[%s26807_s3 + $0xc4] ss:$16 sps:$4 sm:$0xff]  }
 0x391   : > { %3648 = vmatpush1.bf16.msra.mxu0 %v24378_v52  ;;  %3754 = vmatpush1.bf16.msra.mxu1 %v24381_v21  ;;  %v24427_v52 = vld [vmem:[%s26807_s3 + $0xc8] ss:$16 sps:$4 sm:$0xff]   ;;  %v24432_v21 = vld [vmem:[%s26807_s3 + $0xe4] ss:$16 sps:$4 sm:$0xff]  }
 0x392   : > { %20042 = vmatprep.subr.msk.bf16.mxu0 %vm3553_vm9, %v20039_v22  ;;  %20045 = vmatprep.subr.msk.bf16.mxu1 %vm3553_vm9, %v20041_v23  ;;  %v24435_v22 = vld [vmem:[%s26807_s3 + $0xec] ss:$16 sps:$4 sm:$0xff]   ;;  %v24430_v23 = vld [vmem:[%s26807_s3 + $0xe0] ss:$16 sps:$4 sm:$0xff]  }
 0x395   : > { %3650 = vmatpush1.bf16.msra.mxu0 %v3555_v14  ;;  %3756 = vmatpush1.bf16.msra.mxu1 %v3561_v26  ;;  %v24441_v14 = vld [vmem:[%s26807_s3 + $0x10c] ss:$16 sps:$4 sm:$0xff]   ;;  %v24436_v26 = vld [vmem:[%s26807_s3 + $0x100] ss:$16 sps:$4 sm:$0xff]  }
 0x396   : > { %4426 = vmatprep.subr.bf16.mxu0 %v24390_v55  ;;  %4532 = vmatprep.subr.bf16.mxu1 %v24393_v28  ;;  %v24439_v55 = vld [vmem:[%s26807_s3 + $0x108] ss:$16 sps:$4 sm:$0xff]   ;;  %v24444_v28 = vld [vmem:[%s26807_s3 + $0x124] ss:$16 sps:$4 sm:$0xff]  }
 0x398   : > { %3652 = vmatmul.mubr.bf16.vlgmr.msra.gmra.mrb[48].mxu0 %v27384_v16  ;;  %3758 = vmatmul.mubr.bf16.vlgmr.msra.gmra.mrb[48].mxu1 %v27384_v16  ;;  %v24400_v16 = vld [vmem:[%s26807_s3 + $0x40] ss:$16 sps:$4 sm:$0xff]  }
 0x399   : > { %4427 = vmatpush1.bf16.msra.mxu0 %v24388_v30  ;;  %4533 = vmatpush1.bf16.msra.mxu1 %v24391_v40  ;;  %v24447_v30 = vld [vmem:[%s26807_s3 + $0x12c] ss:$16 sps:$4 sm:$0xff]   ;;  %v24442_v40 = vld [vmem:[%s26807_s3 + $0x120] ss:$16 sps:$4 sm:$0xff]  }
 0x39a   : > { %4428 = vmatprep.subr.bf16.mxu0 %v24396_v33  ;;  %4534 = vmatprep.subr.bf16.mxu1 %v24399_v44  ;;  %v24445_v33 = vld [vmem:[%s26807_s3 + $0x128] ss:$16 sps:$4 sm:$0xff]   ;;  %v24450_v44 = vld [vmem:[%s26807_s3 + $0x144] ss:$16 sps:$4 sm:$0xff]  }
 0x39b   : > { %20044 = vmatprep.mubr.msk.bf16.mxu0 %vm3546_vm8, %v27397_v7  ;;  %20047 = vmatprep.mubr.msk.bf16.mxu1 %vm3546_vm8, %v27397_v7  ;;  %v24406_v7 = vld [vmem:[%s26807_s3 + $0x60] ss:$16 sps:$4 sm:$0xff]  }
 0x39d   : > { %4429 = vmatpush1.bf16.msra.mxu0 %v24394_v58  ;;  %4535 = vmatpush1.bf16.msra.mxu1 %v24397_v61  ;;  %v24453_v58 = vld [vmem:[%s26807_s3 + $0x14c] ss:$16 sps:$4 sm:$0xff]   ;;  %v24448_v61 = vld [vmem:[%s26807_s3 + $0x140] ss:$16 sps:$4 sm:$0xff]  }
 0x39e   : > { %4430 = vmatprep.subr.bf16.mxu0 %v24402_v2  ;;  %4536 = vmatprep.subr.bf16.mxu1 %v24405_v3  ;;  %v24451_v2 = vld [vmem:[%s26807_s3 + $0x148] ss:$16 sps:$4 sm:$0xff]   ;;  %v24456_v3 = vld [vmem:[%s26807_s3 + $0x164] ss:$16 sps:$4 sm:$0xff]  }
 0x3a0   : > { %3662 = vmatmul.mubr.bf16.gmra.mrb[52].mxu0 %v27393_v0  ;;  %3768 = vmatmul.mubr.bf16.gmra.mrb[52].mxu1 %v27393_v0  ;;  %v24412_v0 = vld [vmem:[%s26807_s3 + $0x80] ss:$16 sps:$4 sm:$0xff]  }
 0x3a1   : > { %4431 = vmatpush1.bf16.msra.mxu0 %v24400_v16  ;;  %4458 = vmatprep.mubr.bf16.mxu0 %v27364_v24  ;;  %v24459_v16 = vld [vmem:[%s26807_s3 + $0x16c] ss:$16 sps:$4 sm:$0xff]  }
 0x3a2   : > { %4537 = vmatpush1.bf16.msra.mxu1 %v24403_v47  ;;  %4564 = vmatprep.mubr.bf16.mxu1 %v27364_v24  ;;  %v24418_v24 = vld [vmem:[%s26807_s3 + $0xa0] ss:$16 sps:$4 sm:$0xff]  }
 0x3a3   : > { %4432 = vmatprep.subr.bf16.mxu0 %v24408_v8  ;;  %4538 = vmatprep.subr.bf16.mxu1 %v24411_v4  ;;  %v24454_v47 = vld [vmem:[%s26807_s3 + $0x160] ss:$16 sps:$4 sm:$0xff]   ;;  %v24457_v8 = vld [vmem:[%s26807_s3 + $0x168] ss:$16 sps:$4 sm:$0xff]   ;;  %v24462_v4 = vld [vmem:[%s26807_s3 + $0x184] ss:$16 sps:$4 sm:$0xff]  }
 0x3a5   : > { %4433 = vmatpush1.bf16.msra.mxu0 %v24406_v7  ;;  %v24465_v7 = vld [vmem:[%s26807_s3 + $0x18c] ss:$16 sps:$4 sm:$0xff]  }
 0x3a6   : > { %4539 = vmatpush1.bf16.msra.mxu1 %v24409_v10  ;;  %4434 = vmatprep.subr.bf16.mxu0 %v24414_v11  ;;  %v24460_v10 = vld [vmem:[%s26807_s3 + $0x180] ss:$16 sps:$4 sm:$0xff]   ;;  %v24463_v11 = vld [vmem:[%s26807_s3 + $0x188] ss:$16 sps:$4 sm:$0xff]  }
 0x3a7   : > { %4540 = vmatprep.subr.bf16.mxu1 %v24417_v12  ;;  %v24468_v12 = vld [vmem:[%s26807_s3 + $0x1a4] ss:$16 sps:$4 sm:$0xff]  }
 0x3a9   : > { %4435 = vmatpush1.bf16.msra.mxu0 %v24412_v0  ;;  %v24471_v0 = vld [vmem:[%s26807_s3 + $0x1ac] ss:$16 sps:$4 sm:$0xff]  }
 0x3aa   : > { %4541 = vmatpush1.bf16.msra.mxu1 %v24415_v48  ;;  %4436 = vmatprep.subr.bf16.mxu0 %v24420_v51  ;;  %v24466_v48 = vld [vmem:[%s26807_s3 + $0x1a0] ss:$16 sps:$4 sm:$0xff]   ;;  %v24469_v51 = vld [vmem:[%s26807_s3 + $0x1a8] ss:$16 sps:$4 sm:$0xff]  }
 0x3ab   : > { %4542 = vmatprep.subr.bf16.mxu1 %v24423_v9  ;;  %v24474_v9 = vld [vmem:[%s26807_s3 + $0x1c4] ss:$16 sps:$4 sm:$0xff]  }
 0x3ad   : > { %4437 = vmatpush1.bf16.msra.mxu0 %v24418_v24  ;;  %v24477_v24 = vld [vmem:[%s26807_s3 + $0x1cc] ss:$16 sps:$4 sm:$0xff]  }
 0x3ae   : > { %4543 = vmatpush1.bf16.msra.mxu1 %v24421_v17  ;;  %4438 = vmatprep.subr.bf16.mxu0 %v24426_v15  ;;  %v24472_v17 = vld [vmem:[%s26807_s3 + $0x1c0] ss:$16 sps:$4 sm:$0xff]   ;;  %v24475_v15 = vld [vmem:[%s26807_s3 + $0x1c8] ss:$16 sps:$4 sm:$0xff]  }
 0x3af   : > { %4544 = vmatprep.subr.bf16.mxu1 %v24429_v18  ;;  %v24480_v18 = vld [vmem:[%s26807_s3 + $0x1e4] ss:$16 sps:$4 sm:$0xff]  }
 0x3b1   : > { %4439 = vmatpush1.bf16.msra.mxu0 %v24424_v19  ;;  %v24483_v19 = vld [vmem:[%s26807_s3 + $0x1ec] ss:$16 sps:$4 sm:$0xff]  }
 0x3b2   : > { %4545 = vmatpush1.bf16.msra.mxu1 %v24427_v52  ;;  %4440 = vmatprep.subr.bf16.mxu0 %v24432_v21  ;;  %v24478_v52 = vld [vmem:[%s26807_s3 + $0x1e0] ss:$16 sps:$4 sm:$0xff]   ;;  %v24481_v21 = vld [vmem:[%s26807_s3 + $0x1e8] ss:$16 sps:$4 sm:$0xff]  }
 0x3b3   : > { %4546 = vmatprep.subr.bf16.mxu1 %v24435_v22  ;;  %v24486_v22 = vld [vmem:[%s26807_s3 + $0x204] ss:$16 sps:$4 sm:$0xff]  }
 0x3b5   : > { %4441 = vmatpush1.bf16.msra.mxu0 %v24430_v23  ;;  %v24489_v23 = vld [vmem:[%s26807_s3 + $0x20c] ss:$16 sps:$4 sm:$0xff]  }
 0x3b6   : > { %4547 = vmatpush1.bf16.msra.mxu1 %v24433_v49  ;;  %4442 = vmatprep.subr.bf16.mxu0 %v24438_v13  ;;  %v24484_v49 = vld [vmem:[%s26807_s3 + $0x200] ss:$16 sps:$4 sm:$0xff]   ;;  %v24487_v13 = vld [vmem:[%s26807_s3 + $0x208] ss:$16 sps:$4 sm:$0xff]  }
 0x3b7   : > { %4548 = vmatprep.subr.bf16.mxu1 %v24441_v14  ;;  %v24492_v14 = vld [vmem:[%s26807_s3 + $0x224] ss:$16 sps:$4 sm:$0xff]  }
 0x3b9   : > { %4443 = vmatpush1.bf16.msra.mxu0 %v24436_v26  ;;  %v24495_v26 = vld [vmem:[%s26807_s3 + $0x22c] ss:$16 sps:$4 sm:$0xff]  }
 0x3ba   : > { %4549 = vmatpush1.bf16.msra.mxu1 %v24439_v55  ;;  %4444 = vmatprep.subr.bf16.mxu0 %v24444_v28  ;;  %v24490_v55 = vld [vmem:[%s26807_s3 + $0x220] ss:$16 sps:$4 sm:$0xff]   ;;  %v24493_v28 = vld [vmem:[%s26807_s3 + $0x228] ss:$16 sps:$4 sm:$0xff]  }
 0x3bb   : > { %4550 = vmatprep.subr.bf16.mxu1 %v24447_v30  ;;  %v24498_v30 = vld [vmem:[%s26807_s3 + $0x244] ss:$16 sps:$4 sm:$0xff]  }
 0x3bd   : > { %4445 = vmatpush1.bf16.msra.mxu0 %v24442_v40  ;;  %v24501_v40 = vld [vmem:[%s26807_s3 + $0x24c] ss:$16 sps:$4 sm:$0xff]  }
 0x3be   : > { %4551 = vmatpush1.bf16.msra.mxu1 %v24445_v33  ;;  %4446 = vmatprep.subr.bf16.mxu0 %v24450_v44  ;;  %v24496_v33 = vld [vmem:[%s26807_s3 + $0x240] ss:$16 sps:$4 sm:$0xff]   ;;  %v24504_v44 = vld [vmem:[%s26807_s3 + $0x264] ss:$16 sps:$4 sm:$0xff]  }
 0x3bf   : > { %4552 = vmatprep.subr.bf16.mxu1 %v24453_v58  ;;  %v24502_v58 = vld [vmem:[%s26807_s3 + $0x260] ss:$16 sps:$4 sm:$0xff]  }
 0x3c1   : > { %4447 = vmatpush1.bf16.msra.mxu0 %v24448_v61  ;;  %v24505_v61 = vld [vmem:[%s26807_s3 + $0x268] ss:$16 sps:$4 sm:$0xff]  }
 0x3c2   : > { %4553 = vmatpush1.bf16.msra.mxu1 %v24451_v2  ;;  %4448 = vmatprep.subr.bf16.mxu0 %v24456_v3  ;;  %v24510_v2 = vld [vmem:[%s26807_s3 + $0x284] ss:$16 sps:$4 sm:$0xff]   ;;  %v24513_v3 = vld [vmem:[%s26807_s3 + $0x28c] ss:$16 sps:$4 sm:$0xff]  }
 0x3c3   : > { %4554 = vmatprep.subr.bf16.mxu1 %v24459_v16  ;;  %v24511_v16 = vld [vmem:[%s26807_s3 + $0x288] ss:$16 sps:$4 sm:$0xff]  }
 0x3c5   : > { %4449 = vmatpush1.bf16.msra.mxu0 %v24454_v47  ;;  %v24516_v47 = vld [vmem:[%s26807_s3 + $0x2a4] ss:$16 sps:$4 sm:$0xff]  }
 0x3c6   : > { %4555 = vmatpush1.bf16.msra.mxu1 %v24457_v8  ;;  %4450 = vmatprep.subr.bf16.mxu0 %v24462_v4  ;;  %v24514_v8 = vld [vmem:[%s26807_s3 + $0x2a0] ss:$16 sps:$4 sm:$0xff]   ;;  %v24517_v4 = vld [vmem:[%s26807_s3 + $0x2a8] ss:$16 sps:$4 sm:$0xff]  }
 0x3c7   : > { %4556 = vmatprep.subr.bf16.mxu1 %v24465_v7  ;;  %v24522_v7 = vld [vmem:[%s26807_s3 + $0x2c4] ss:$16 sps:$4 sm:$0xff]  }
 0x3c9   : > { %4451 = vmatpush1.bf16.msra.mxu0 %v24460_v10  ;;  %v24525_v10 = vld [vmem:[%s26807_s3 + $0x2cc] ss:$16 sps:$4 sm:$0xff]  }
 0x3ca   : > { %4557 = vmatpush1.bf16.msra.mxu1 %v24463_v11  ;;  %4452 = vmatprep.subr.bf16.mxu0 %v24468_v12  ;;  %v24520_v11 = vld [vmem:[%s26807_s3 + $0x2c0] ss:$16 sps:$4 sm:$0xff]   ;;  %v24523_v12 = vld [vmem:[%s26807_s3 + $0x2c8] ss:$16 sps:$4 sm:$0xff]  }
 0x3cb   : > { %4558 = vmatprep.subr.bf16.mxu1 %v24471_v0  ;;  %v24528_v0 = vld [vmem:[%s26807_s3 + $0x2e4] ss:$16 sps:$4 sm:$0xff]  }
 0x3cd   : > { %4453 = vmatpush1.bf16.msra.mxu0 %v24466_v48  ;;  %v24531_v48 = vld [vmem:[%s26807_s3 + $0x2ec] ss:$16 sps:$4 sm:$0xff]  }
 0x3ce   : > { %4559 = vmatpush1.bf16.msra.mxu1 %v24469_v51  ;;  %4454 = vmatprep.subr.bf16.mxu0 %v24474_v9  ;;  %v24526_v51 = vld [vmem:[%s26807_s3 + $0x2e0] ss:$16 sps:$4 sm:$0xff]   ;;  %v24529_v9 = vld [vmem:[%s26807_s3 + $0x2e8] ss:$16 sps:$4 sm:$0xff]  }
 0x3cf   : > { %4560 = vmatprep.subr.bf16.mxu1 %v24477_v24  ;;  %v24534_v24 = vld [vmem:[%s26807_s3 + $0x304] ss:$16 sps:$4 sm:$0xff]  }
 0x3d1   : > { %4455 = vmatpush1.bf16.msra.mxu0 %v24472_v17  ;;  %v24537_v17 = vld [vmem:[%s26807_s3 + $0x30c] ss:$16 sps:$4 sm:$0xff]  }
 0x3d2   : > { %4561 = vmatpush1.bf16.msra.mxu1 %v24475_v15  ;;  %4456 = vmatprep.subr.bf16.mxu0 %v24480_v18  ;;  %v24532_v15 = vld [vmem:[%s26807_s3 + $0x300] ss:$16 sps:$4 sm:$0xff]   ;;  %v24535_v18 = vld [vmem:[%s26807_s3 + $0x308] ss:$16 sps:$4 sm:$0xff]  }
 0x3d3   : > { %4562 = vmatprep.subr.bf16.mxu1 %v24483_v19  ;;  %v24540_v19 = vld [vmem:[%s26807_s3 + $0x324] ss:$16 sps:$4 sm:$0xff]  }
 0x3d5   : > { %4457 = vmatpush1.bf16.msra.mxu0 %v24478_v52  ;;  %v24543_v52 = vld [vmem:[%s26807_s3 + $0x32c] ss:$16 sps:$4 sm:$0xff]  }
 0x3d6   : > { %4563 = vmatpush1.bf16.msra.mxu1 %v24481_v21  ;;  %4479 = vmatprep.subr.bf16.mxu0 %v24486_v22  ;;  %v24538_v21 = vld [vmem:[%s26807_s3 + $0x320] ss:$16 sps:$4 sm:$0xff]   ;;  %v24541_v22 = vld [vmem:[%s26807_s3 + $0x328] ss:$16 sps:$4 sm:$0xff]  }
 0x3d7   : > { %4585 = vmatprep.subr.bf16.mxu1 %v24489_v23  ;;  %v24546_v23 = vld [vmem:[%s26807_s3 + $0x344] ss:$16 sps:$4 sm:$0xff]  }
 0x3d8   : > { %4459 = vmatmul.mubr.bf16.vlgmr.msra.gmra.mrb[48].mxu0 %v27362_v50 }
 0x3d9   : > { %4565 = vmatmul.mubr.bf16.vlgmr.msra.gmra.mrb[48].mxu1 %v27362_v50  ;;  %4468 = vmatprep.mubr.bf16.mxu0 %v27372_v41  ;;  %v24499_v50 = vld [vmem:[%s26807_s3 + $0x248] ss:$16 sps:$4 sm:$0xff]  }
 0x3da   : > { %4480 = vmatpush1.bf16.msra.mxu0 %v24484_v49  ;;  %4574 = vmatprep.mubr.bf16.mxu1 %v27372_v41  ;;  %v24507_v41 = vld [vmem:[%s26807_s3 + $0x26c] ss:$16 sps:$4 sm:$0xff]  }
 0x3db   : > { %4586 = vmatpush1.bf16.msra.mxu1 %v24487_v13  ;;  %4481 = vmatprep.subr.bf16.mxu0 %v24492_v14  ;;  %v24549_v49 = vld [vmem:[%s26807_s3 + $0x34c] ss:$16 sps:$4 sm:$0xff]   ;;  %v24544_v13 = vld [vmem:[%s26807_s3 + $0x340] ss:$16 sps:$4 sm:$0xff]   ;;  %v24547_v14 = vld [vmem:[%s26807_s3 + $0x348] ss:$16 sps:$4 sm:$0xff]  }
 0x3dc   : > { %4587 = vmatprep.subr.bf16.mxu1 %v24495_v26  ;;  %v24552_v26 = vld [vmem:[%s26807_s3 + $0x364] ss:$16 sps:$4 sm:$0xff]  }
 0x3de   : > { %4482 = vmatpush1.bf16.msra.mxu0 %v24490_v55  ;;  %v24555_v55 = vld [vmem:[%s26807_s3 + $0x36c] ss:$16 sps:$4 sm:$0xff]  }
 0x3df   : > { %4588 = vmatpush1.bf16.msra.mxu1 %v24493_v28  ;;  %4483 = vmatprep.subr.bf16.mxu0 %v24498_v30  ;;  %v24550_v28 = vld [vmem:[%s26807_s3 + $0x360] ss:$16 sps:$4 sm:$0xff]   ;;  %v24553_v30 = vld [vmem:[%s26807_s3 + $0x368] ss:$16 sps:$4 sm:$0xff]  }
 0x3e0   : > { %4469 = vmatmul.mubr.bf16.gmra.mrb[52].mxu0 %v27370_v36  ;;  %4589 = vmatprep.subr.bf16.mxu1 %v24501_v40  ;;  %v24558_v40 = vld [vmem:[%s26807_s3 + $0x384] ss:$16 sps:$4 sm:$0xff]  }
 0x3e1   : > { %4575 = vmatmul.mubr.bf16.gmra.mrb[52].mxu1 %v27370_v36  ;;  %20177 = vmatprep.mubr.msk.bf16.mxu0 %vm3546_vm8, %v27368_v27  ;;  %v24508_v36 = vld [vmem:[%s26807_s3 + $0x280] ss:$16 sps:$4 sm:$0xff]  }
 0x3e2   : > { %4484 = vmatpush1.bf16.msra.mxu0 %v24496_v33  ;;  %20180 = vmatprep.mubr.msk.bf16.mxu1 %vm3546_vm8, %v27368_v27  ;;  %v24519_v27 = vld [vmem:[%s26807_s3 + $0x2ac] ss:$16 sps:$4 sm:$0xff]  }
 0x3e3   : > { %4590 = vmatpush1.bf16.msra.mxu1 %v24499_v50  ;;  %4485 = vmatprep.subr.bf16.mxu0 %v24504_v44  ;;  %v24561_v33 = vld [vmem:[%s26807_s3 + $0x38c] ss:$16 sps:$4 sm:$0xff]   ;;  %v24556_v50 = vld [vmem:[%s26807_s3 + $0x380] ss:$16 sps:$4 sm:$0xff]   ;;  %v24559_v44 = vld [vmem:[%s26807_s3 + $0x388] ss:$16 sps:$4 sm:$0xff]  }
 0x3e4   : > { %4591 = vmatprep.subr.bf16.mxu1 %v24507_v41  ;;  %v24564_v41 = vld [vmem:[%s26807_s3 + $0x3a4] ss:$16 sps:$4 sm:$0xff]  }
 0x3e6   : > { %4486 = vmatpush1.bf16.msra.mxu0 %v24502_v58  ;;  %v24567_v58 = vld [vmem:[%s26807_s3 + $0x3ac] ss:$16 sps:$4 sm:$0xff]  }
 0x3e7   : > { %4592 = vmatpush1.bf16.msra.mxu1 %v24505_v61  ;;  %4487 = vmatprep.subr.bf16.mxu0 %v24510_v2  ;;  %v24562_v61 = vld [vmem:[%s26807_s3 + $0x3a0] ss:$16 sps:$4 sm:$0xff]   ;;  %v24565_v2 = vld [vmem:[%s26807_s3 + $0x3a8] ss:$16 sps:$4 sm:$0xff]  }
 0x3e8   : > { %4593 = vmatprep.subr.bf16.mxu1 %v24513_v3  ;;  %v24570_v3 = vld [vmem:[%s26807_s3 + $0x3c4] ss:$16 sps:$4 sm:$0xff]  }
 0x3ea   : > { %4488 = vmatpush1.bf16.msra.mxu0 %v24508_v36  ;;  %v24573_v36 = vld [vmem:[%s26807_s3 + $0x3cc] ss:$16 sps:$4 sm:$0xff]  }
 0x3eb   : > { %4594 = vmatpush1.bf16.msra.mxu1 %v24511_v16  ;;  %4489 = vmatprep.subr.bf16.mxu0 %v24516_v47  ;;  %v2652_v16 = vld [vmem:[%s26807_s3 + $0x3e0] sm:$0xff]  ;;  %v2653_v47 = vld [vmem:[%s26807_s3 + $0x3e8] sm:$0xff] }
 0x3ec   : > { %4595 = vmatprep.subr.bf16.mxu1 %v24519_v27  ;;  %v24568_v27 = vld [vmem:[%s26807_s3 + $0x3c0] ss:$16 sps:$4 sm:$0xff]  }
 0x3ee   : > { %4490 = vmatpush1.bf16.msra.mxu0 %v24514_v8  ;;  %v24571_v8 = vld [vmem:[%s26807_s3 + $0x3c8] ss:$16 sps:$4 sm:$0xff]  }
 0x3ef   : > { %4596 = vmatpush1.bf16.msra.mxu1 %v24517_v4  ;;  %4491 = vmatprep.subr.bf16.mxu0 %v24522_v7  ;;  %v20173_v4 = vcombine.high %v2652_v16, %v2652_v16  ;;  %v20172_v7 = vcombine.low %v2652_v16, %v2652_v16  ;;  %v24622_v16 = vld [vmem:[%s26807_s3 + $0x8c0] ss:$16 sps:$4 sm:$0xff]  }
 0x3f0   : > { %4597 = vmatprep.subr.bf16.mxu1 %v24525_v10  ;;  %v20175_v10 = vcombine.high %v2653_v47, %v2653_v47 }
 0x3f2   : > { %4492 = vmatpush1.bf16.msra.mxu0 %v24520_v11  ;;  %v20174_v11 = vcombine.low %v2653_v47, %v2653_v47  ;;  %v24625_v47 = vld [vmem:[%s26807_s3 + $0x8c8] ss:$16 sps:$4 sm:$0xff]  }
 0x3f3   : > { %4598 = vmatpush1.bf16.msra.mxu1 %v24523_v12  ;;  %4493 = vmatprep.subr.bf16.mxu0 %v24528_v0  ;;  %v4415_v12 = vsel %vm3553_vm9, %v20172_v7, 0  ;;  %v24631_v7 = vld [vmem:[%s26807_s3 + $0x8e8] ss:$16 sps:$4 sm:$0xff]  }
 0x3f4   : > { %4599 = vmatprep.subr.bf16.mxu1 %v24531_v48  ;;  %v4421_v0 = vsel %vm3553_vm9, %v20174_v11, 0  ;;  %v24578_v48 = vld [vmem:[%s26802_s29 + $0x20] sm:$0xff]   ;;  %v24639_v11 = vld [vmem:[%s26807_s3 + $0x90c] ss:$16 sps:$4 sm:$0xff]  }
 0x3f6   : > { %4494 = vmatpush1.bf16.msra.mxu0 %v24526_v51  ;;  %v24583_v51 = vld [vmem:[%s26807_s3 + $0x7e8] ss:$16 sps:$4 sm:$0xff]  }
 0x3f7   : > { %4600 = vmatpush1.bf16.msra.mxu1 %v24529_v9  ;;  %4495 = vmatprep.subr.bf16.mxu0 %v24534_v24  ;;  %v24588_v9 = vld [vmem:[%s26807_s3 + $0x804] ss:$16 sps:$4 sm:$0xff]   ;;  %v24591_v24 = vld [vmem:[%s26807_s3 + $0x80c] ss:$16 sps:$4 sm:$0xff]  }
 0x3f8   : > { %4601 = vmatprep.subr.bf16.mxu1 %v24537_v17  ;;  %v24586_v17 = vld [vmem:[%s26807_s3 + $0x800] ss:$16 sps:$4 sm:$0xff]  }
 0x3fa   : > { %4496 = vmatpush1.bf16.msra.mxu0 %v24532_v15  ;;  %v24589_v15 = vld [vmem:[%s26807_s3 + $0x808] ss:$16 sps:$4 sm:$0xff]  }
 0x3fb   : > { %4602 = vmatpush1.bf16.msra.mxu1 %v24535_v18  ;;  %4497 = vmatprep.subr.bf16.mxu0 %v24540_v19  ;;  %v24594_v18 = vld [vmem:[%s26807_s3 + $0x824] ss:$16 sps:$4 sm:$0xff]   ;;  %v24579_v19 = vld [vmem:[%s26802_s29 + $0x28] sm:$0x7f]  }
 0x3fc   : > { %4603 = vmatprep.subr.bf16.mxu1 %v24543_v52  ;;  %v24597_v52 = vld [vmem:[%s26807_s3 + $0x82c] ss:$16 sps:$4 sm:$0xff]  }
 0x3fe   : > { %4498 = vmatpush1.bf16.msra.mxu0 %v24538_v21  ;;  %v24592_v21 = vld [vmem:[%s26807_s3 + $0x820] ss:$16 sps:$4 sm:$0xff]  }
 0x3ff   : > { %4604 = vmatpush1.bf16.msra.mxu1 %v24541_v22  ;;  %4499 = vmatprep.subr.bf16.mxu0 %v24546_v23  ;;  %v24595_v22 = vld [vmem:[%s26807_s3 + $0x828] ss:$16 sps:$4 sm:$0xff]   ;;  %v24600_v23 = vld [vmem:[%s26807_s3 + $0x844] ss:$16 sps:$4 sm:$0xff]  }
 0x400   : > { %4605 = vmatprep.subr.bf16.mxu1 %v24549_v49  ;;  %v24603_v49 = vld [vmem:[%s26807_s3 + $0x84c] ss:$16 sps:$4 sm:$0xff]  }
 0x402   : > { %4500 = vmatpush1.bf16.msra.mxu0 %v24544_v13  ;;  %v24598_v13 = vld [vmem:[%s26807_s3 + $0x840] ss:$16 sps:$4 sm:$0xff]  }
 0x403   : > { %4606 = vmatpush1.bf16.msra.mxu1 %v24547_v14  ;;  %4501 = vmatprep.subr.bf16.mxu0 %v24552_v26  ;;  %v24601_v14 = vld [vmem:[%s26807_s3 + $0x848] ss:$16 sps:$4 sm:$0xff]   ;;  %v24606_v26 = vld [vmem:[%s26807_s3 + $0x864] ss:$16 sps:$4 sm:$0xff]  }
 0x404   : > { %4607 = vmatprep.subr.bf16.mxu1 %v24555_v55  ;;  %v24609_v55 = vld [vmem:[%s26807_s3 + $0x86c] ss:$16 sps:$4 sm:$0xff]  }
 0x406   : > { %4502 = vmatpush1.bf16.msra.mxu0 %v24550_v28  ;;  %v24604_v28 = vld [vmem:[%s26807_s3 + $0x860] ss:$16 sps:$4 sm:$0xff]  }
 0x407   : > { %4608 = vmatpush1.bf16.msra.mxu1 %v24553_v30  ;;  %4503 = vmatprep.subr.bf16.mxu0 %v24558_v40  ;;  %v24607_v30 = vld [vmem:[%s26807_s3 + $0x868] ss:$16 sps:$4 sm:$0xff]   ;;  %v24612_v40 = vld [vmem:[%s26807_s3 + $0x884] ss:$16 sps:$4 sm:$0xff]  }
 0x408   : > { %4609 = vmatprep.subr.bf16.mxu1 %v24561_v33  ;;  %v24615_v33 = vld [vmem:[%s26807_s3 + $0x88c] ss:$16 sps:$4 sm:$0xff]  }
 0x40a   : > { %4504 = vmatpush1.bf16.msra.mxu0 %v24556_v50  ;;  %v24610_v50 = vld [vmem:[%s26807_s3 + $0x880] ss:$16 sps:$4 sm:$0xff]  }
 0x40b   : > { %4610 = vmatpush1.bf16.msra.mxu1 %v24559_v44  ;;  %4505 = vmatprep.subr.bf16.mxu0 %v24564_v41  ;;  %v24613_v44 = vld [vmem:[%s26807_s3 + $0x888] ss:$16 sps:$4 sm:$0xff]   ;;  %v24618_v41 = vld [vmem:[%s26807_s3 + $0x8a4] ss:$16 sps:$4 sm:$0xff]  }
 0x40c   : > { %4611 = vmatprep.subr.bf16.mxu1 %v24567_v58  ;;  %v24621_v58 = vld [vmem:[%s26807_s3 + $0x8ac] ss:$16 sps:$4 sm:$0xff]  }
 0x40e   : > { %4506 = vmatpush1.bf16.msra.mxu0 %v24562_v61  ;;  %v24616_v61 = vld [vmem:[%s26807_s3 + $0x8a0] ss:$16 sps:$4 sm:$0xff]  }
 0x40f   : > { %4612 = vmatpush1.bf16.msra.mxu1 %v24565_v2  ;;  %4507 = vmatprep.subr.bf16.mxu0 %v24570_v3  ;;  %v24619_v2 = vld [vmem:[%s26807_s3 + $0x8a8] ss:$16 sps:$4 sm:$0xff]   ;;  %v24624_v3 = vld [vmem:[%s26807_s3 + $0x8c4] ss:$16 sps:$4 sm:$0xff]  }
 0x410   : > { %4613 = vmatprep.subr.bf16.mxu1 %v24573_v36  ;;  %v24627_v36 = vld [vmem:[%s26807_s3 + $0x8cc] ss:$16 sps:$4 sm:$0xff]  }
 0x412   : > { %4508 = vmatpush1.bf16.msra.mxu0 %v24568_v27  ;;  %v24630_v27 = vld [vmem:[%s26807_s3 + $0x8e4] ss:$16 sps:$4 sm:$0xff]  }
 0x413   : > { %4614 = vmatpush1.bf16.msra.mxu1 %v24571_v8  ;;  %20176 = vmatprep.subr.msk.bf16.mxu0 %vm3553_vm9, %v20173_v4  ;;  %v24633_v8 = vld [vmem:[%s26807_s3 + $0x8ec] ss:$16 sps:$4 sm:$0xff]   ;;  %v24628_v4 = vld [vmem:[%s26807_s3 + $0x8e0] ss:$16 sps:$4 sm:$0xff]  }
 0x414   : > { %20179 = vmatprep.subr.msk.bf16.mxu1 %vm3553_vm9, %v20175_v10  ;;  %v24636_v10 = vld [vmem:[%s26807_s3 + $0x904] ss:$16 sps:$4 sm:$0xff]  }
 0x416   : > { %4510 = vmatpush1.bf16.msra.mxu0 %v4415_v12  ;;  %v24634_v12 = vld [vmem:[%s26807_s3 + $0x900] ss:$16 sps:$4 sm:$0xff]  }
 0x417   : > { %4616 = vmatpush1.bf16.msra.mxu1 %v4421_v0  ;;  %4659 = vmatprep.subr.bf16.mxu0 %v27165_v54  ;;  %v24637_v0 = vld [vmem:[%s26807_s3 + $0x908] ss:$16 sps:$4 sm:$0xff]  }
 0x418   : > { %4712 = vmatprep.subr.bf16.mxu1 %v27167_v57 }
 0x419   : > { %4512 = vmatmul.mubr.bf16.vlgmr.msra.gmra.mrb[48].mxu0 %v27366_v25 }
 0x41a   : > { %4618 = vmatmul.mubr.bf16.vlgmr.msra.gmra.mrb[48].mxu1 %v27366_v25  ;;  %20178 = vmatprep.mubr.msk.bf16.mxu0 %vm3546_vm8, %v27376_v62  ;;  %v24582_v25 = vld [vmem:[%s26807_s3 + $0x7e4] ss:$16 sps:$4 sm:$0xff]  }
 0x41b   : > { %20181 = vmatprep.mubr.msk.bf16.mxu1 %vm3546_vm8, %v27376_v62  ;;  %4660 = vmatpush1.bf16.msra.mxu0 %v27161_v37  ;;  %v24585_v62 = vld [vmem:[%s26807_s3 + $0x7ec] ss:$16 sps:$4 sm:$0xff]  }
 0x41c   : > { %4713 = vmatpush1.bf16.msra.mxu1 %v27163_v39  ;;  %4661 = vmatprep.subr.bf16.mxu0 %v27198_v63 }
 0x41d   : > { %4714 = vmatprep.subr.bf16.mxu1 %v27200_v5 }
 0x41f   : > { %4662 = vmatpush1.bf16.msra.mxu0 %v27189_v34 }
 0x420   : > { %4715 = vmatpush1.bf16.msra.mxu1 %v27191_v35  ;;  %4663 = vmatprep.subr.bf16.mxu0 %v27227_v60 }
 0x421   : > { %4716 = vmatprep.subr.bf16.mxu1 %v27232_v6  ;;  %4522 = vmatmul.mubr.bf16.gmra.mrb[52].mxu0 %v27374_v59 }
 0x422   : > { %4628 = vmatmul.mubr.bf16.gmra.mrb[52].mxu1 %v27374_v59  ;;  %4691 = vmatprep.mubr.bf16.mxu0 %v26760_v1  ;;  %v24580_v59 = vld [vmem:[%s26807_s3 + $0x7e0] ss:$16 sps:$4 sm:$0xff]  }
 0x423   : > { %4664 = vmatpush1.bf16.msra.mxu0 %v27217_v29  ;;  %4744 = vmatprep.mubr.bf16.mxu1 %v26760_v1 }
 0x424   : > { %4717 = vmatpush1.bf16.msra.mxu1 %v27225_v53  ;;  %4665 = vmatprep.subr.bf16.mxu0 %v27250_v56 }
 0x425   : > { %4718 = vmatprep.subr.bf16.mxu1 %v27255_v20 }
 0x427   : > { %4666 = vmatpush1.bf16.msra.mxu0 %v27253_v31 }
 0x428   : > { %4719 = vmatpush1.bf16.msra.mxu1 %v27257_v32  ;;  %5548 = vmatprep.subr.bf16.mxu0 %v24582_v25  ;;  %v24642_v25 = vld [vmem:[%s26807_s3 + $0x924] ss:$16 sps:$4 sm:$0xff]  }
 0x429   : > { %5654 = vmatprep.subr.bf16.mxu1 %v24585_v62  ;;  %v24645_v62 = vld [vmem:[%s26807_s3 + $0x92c] ss:$16 sps:$4 sm:$0xff]  }
 0x42a   : > { %20188 = vmatmul.mubr.msk.bf16.vlgmr.msra.gmra.mrb[56].mxu0 %vm2391_vm7, %v24578_v48 }
 0x42b   : > { %4701 = vmatprep.mubr.bf16.mxu0 %v26760_v1  ;;  %20190 = vmatmul.mubr.msk.bf16.vlgmr.msra.gmra.mrb[56].mxu1 %vm2391_vm7, %v24578_v48  ;;  %v24640_v48 = vld [vmem:[%s26807_s3 + $0x920] ss:$16 sps:$4 sm:$0xff]  }
 0x42c   : > { %4754 = vmatprep.mubr.bf16.mxu1 %v26760_v1  ;;  %5549 = vmatpush1.bf16.msra.mxu0 %v24580_v59  ;;  %v24643_v59 = vld [vmem:[%s26807_s3 + $0x928] ss:$16 sps:$4 sm:$0xff]  }
 0x42d   : > { %5655 = vmatpush1.bf16.msra.mxu1 %v24583_v51  ;;  %5550 = vmatprep.subr.bf16.mxu0 %v24588_v9  ;;  %v24648_v51 = vld [vmem:[%s26807_s3 + $0x944] ss:$16 sps:$4 sm:$0xff]   ;;  %v24651_v9 = vld [vmem:[%s26807_s3 + $0x94c] ss:$16 sps:$4 sm:$0xff]  }
 0x42e   : > { %5656 = vmatprep.subr.bf16.mxu1 %v24591_v24  ;;  %v24646_v24 = vld [vmem:[%s26807_s3 + $0x940] ss:$16 sps:$4 sm:$0xff]  }
 0x430   : > { %5551 = vmatpush1.bf16.msra.mxu0 %v24586_v17  ;;  %v24649_v17 = vld [vmem:[%s26807_s3 + $0x948] ss:$16 sps:$4 sm:$0xff]  }
 0x431   : > { %5657 = vmatpush1.bf16.msra.mxu1 %v24589_v15  ;;  %5552 = vmatprep.subr.bf16.mxu0 %v24594_v18  ;;  %v24654_v15 = vld [vmem:[%s26807_s3 + $0x964] ss:$16 sps:$4 sm:$0xff]   ;;  %v24657_v18 = vld [vmem:[%s26807_s3 + $0x96c] ss:$16 sps:$4 sm:$0xff]  }
 0x432   : > { %20189 = vmatmul.mubr.msk.bf16.gmra.mrb[60].mxu0 %vm2391_vm7, %v24579_v19  ;;  %5658 = vmatprep.subr.bf16.mxu1 %v24597_v52  ;;  %v24655_v52 = vld [vmem:[%s26807_s3 + $0x968] ss:$16 sps:$4 sm:$0xff]  }
 0x433   : > { %20191 = vmatmul.mubr.msk.bf16.gmra.mrb[60].mxu1 %vm2391_vm7, %v24579_v19  ;;  %v24652_v19 = vld [vmem:[%s26807_s3 + $0x960] ss:$16 sps:$4 sm:$0xff]  }
 0x434   : > { %5553 = vmatpush1.bf16.msra.mxu0 %v24592_v21  ;;  %v24660_v21 = vld [vmem:[%s26807_s3 + $0x984] ss:$16 sps:$4 sm:$0xff]  }
 0x435   : > { %5659 = vmatpush1.bf16.msra.mxu1 %v24595_v22  ;;  %5554 = vmatprep.subr.bf16.mxu0 %v24600_v23  ;;  %v24663_v22 = vld [vmem:[%s26807_s3 + $0x98c] ss:$16 sps:$4 sm:$0xff]   ;;  %v24658_v23 = vld [vmem:[%s26807_s3 + $0x980] ss:$16 sps:$4 sm:$0xff]  }
 0x436   : > { %5660 = vmatprep.subr.bf16.mxu1 %v24603_v49  ;;  %v24661_v49 = vld [vmem:[%s26807_s3 + $0x988] ss:$16 sps:$4 sm:$0xff]  }
 0x438   : > { %5555 = vmatpush1.bf16.msra.mxu0 %v24598_v13  ;;  %v24666_v13 = vld [vmem:[%s26807_s3 + $0x9a4] ss:$16 sps:$4 sm:$0xff]  }
 0x439   : > { %5661 = vmatpush1.bf16.msra.mxu1 %v24601_v14  ;;  %5556 = vmatprep.subr.bf16.mxu0 %v24606_v26  ;;  %v24669_v14 = vld [vmem:[%s26807_s3 + $0x9ac] ss:$16 sps:$4 sm:$0xff]   ;;  %v24664_v26 = vld [vmem:[%s26807_s3 + $0x9a0] ss:$16 sps:$4 sm:$0xff]  }
 0x43a   : > { %5662 = vmatprep.subr.bf16.mxu1 %v24609_v55  ;;  %v24667_v55 = vld [vmem:[%s26807_s3 + $0x9a8] ss:$16 sps:$4 sm:$0xff]  }
 0x43c   : > { %5557 = vmatpush1.bf16.msra.mxu0 %v24604_v28  ;;  %v24672_v28 = vld [vmem:[%s26807_s3 + $0x9c4] ss:$16 sps:$4 sm:$0xff]  }
 0x43d   : > { %5663 = vmatpush1.bf16.msra.mxu1 %v24607_v30  ;;  %5558 = vmatprep.subr.bf16.mxu0 %v24612_v40  ;;  %v24675_v30 = vld [vmem:[%s26807_s3 + $0x9cc] ss:$16 sps:$4 sm:$0xff]   ;;  %v24670_v40 = vld [vmem:[%s26807_s3 + $0x9c0] ss:$16 sps:$4 sm:$0xff]  }
 0x43e   : > { %5664 = vmatprep.subr.bf16.mxu1 %v24615_v33  ;;  %v24673_v33 = vld [vmem:[%s26807_s3 + $0x9c8] ss:$16 sps:$4 sm:$0xff]  }
 0x440   : > { %5559 = vmatpush1.bf16.msra.mxu0 %v24610_v50  ;;  %v24678_v50 = vld [vmem:[%s26807_s3 + $0x9e4] ss:$16 sps:$4 sm:$0xff]  }
 0x441   : > { %5665 = vmatpush1.bf16.msra.mxu1 %v24613_v44  ;;  %5560 = vmatprep.subr.bf16.mxu0 %v24618_v41  ;;  %v24681_v44 = vld [vmem:[%s26807_s3 + $0x9ec] ss:$16 sps:$4 sm:$0xff]  }
 0x442   : > { %5666 = vmatprep.subr.bf16.mxu1 %v24621_v58 }
 0x444   : > { %5561 = vmatpush1.bf16.msra.mxu0 %v24616_v61 }
 0x445   : > { %5667 = vmatpush1.bf16.msra.mxu1 %v24619_v2  ;;  %5562 = vmatprep.subr.bf16.mxu0 %v24624_v3 }
 0x446   : > { %5668 = vmatprep.subr.bf16.mxu1 %v24627_v36 }
 0x448   : > { %5563 = vmatpush1.bf16.msra.mxu0 %v24622_v16 }
 0x449   : > { %5669 = vmatpush1.bf16.msra.mxu1 %v24625_v47  ;;  %5564 = vmatprep.subr.bf16.mxu0 %v24630_v27 }
 0x44a   : > { %5670 = vmatprep.subr.bf16.mxu1 %v24633_v8  ;;  %v24676_v8 = vld [vmem:[%s26807_s3 + $0x9e0] ss:$16 sps:$4 sm:$0xff]  }
 0x44c   : > { %5565 = vmatpush1.bf16.msra.mxu0 %v24628_v4  ;;  %v24679_v4 = vld [vmem:[%s26807_s3 + $0x9e8] ss:$16 sps:$4 sm:$0xff]  }
 0x44d   : > { %5671 = vmatpush1.bf16.msra.mxu1 %v24631_v7  ;;  %5566 = vmatprep.subr.bf16.mxu0 %v24636_v10 }
 0x44e   : > { %5672 = vmatprep.subr.bf16.mxu1 %v24639_v11  ;;  %v24684_v11 = vld [vmem:[%s26807_s3 + $0xa04] ss:$16 sps:$4 sm:$0xff]  }
 0x450   : > { %5567 = vmatpush1.bf16.msra.mxu0 %v24634_v12  ;;  %v24687_v12 = vld [vmem:[%s26807_s3 + $0xa0c] ss:$16 sps:$4 sm:$0xff]  }
 0x451   : > { %5673 = vmatpush1.bf16.msra.mxu1 %v24637_v0  ;;  %5568 = vmatprep.subr.bf16.mxu0 %v24642_v25  ;;  %v24682_v25 = vld [vmem:[%s26807_s3 + $0xa00] ss:$16 sps:$4 sm:$0xff]  }
 0x452   : > { %5674 = vmatprep.subr.bf16.mxu1 %v24645_v62  ;;  %v24685_v62 = vld [vmem:[%s26807_s3 + $0xa08] ss:$16 sps:$4 sm:$0xff]  }
 0x454   : > { %5569 = vmatpush1.bf16.msra.mxu0 %v24640_v48 }
 0x455   : > { %5675 = vmatpush1.bf16.msra.mxu1 %v24643_v59  ;;  %5570 = vmatprep.subr.bf16.mxu0 %v24648_v51  ;;  %v24690_v59 = vld [vmem:[%s26807_s3 + $0xa24] ss:$16 sps:$4 sm:$0xff]   ;;  %v24693_v51 = vld [vmem:[%s26807_s3 + $0xa2c] ss:$16 sps:$4 sm:$0xff]  }
 0x456   : > { %5676 = vmatprep.subr.bf16.mxu1 %v24651_v9 }
 0x458   : > { %5571 = vmatpush1.bf16.msra.mxu0 %v24646_v24 }
 0x459   : > { %5677 = vmatpush1.bf16.msra.mxu1 %v24649_v17  ;;  %5572 = vmatprep.subr.bf16.mxu0 %v24654_v15 }
 0x45a   : > { %5678 = vmatprep.subr.bf16.mxu1 %v24657_v18 }
 0x45c   : > { %5573 = vmatpush1.bf16.msra.mxu0 %v24652_v19 }
 0x45d   : > { %5679 = vmatpush1.bf16.msra.mxu1 %v24655_v52  ;;  %5574 = vmatprep.subr.bf16.mxu0 %v24660_v21  ;;  %v24688_v21 = vld [vmem:[%s26807_s3 + $0xa20] ss:$16 sps:$4 sm:$0xff]  }
 0x45e   : > { %5680 = vmatprep.subr.bf16.mxu1 %v24663_v22  ;;  %v24691_v22 = vld [vmem:[%s26807_s3 + $0xa28] ss:$16 sps:$4 sm:$0xff]  }
 0x460   : > { %5575 = vmatpush1.bf16.msra.mxu0 %v24658_v23 }
 0x461   : > { %5681 = vmatpush1.bf16.msra.mxu1 %v24661_v49  ;;  %5576 = vmatprep.subr.bf16.mxu0 %v24666_v13 }
 0x462   : > { %5682 = vmatprep.subr.bf16.mxu1 %v24669_v14  ;;  %v24696_v14 = vld [vmem:[%s26807_s3 + $0xa44] ss:$16 sps:$4 sm:$0xff]  }
 0x464   : > { %5577 = vmatpush1.bf16.msra.mxu0 %v24664_v26  ;;  %v24699_v26 = vld [vmem:[%s26807_s3 + $0xa4c] ss:$16 sps:$4 sm:$0xff]  }
 0x465   : > { %5683 = vmatpush1.bf16.msra.mxu1 %v24667_v55  ;;  %5578 = vmatprep.subr.bf16.mxu0 %v24672_v28  ;;  %v24694_v28 = vld [vmem:[%s26807_s3 + $0xa40] ss:$16 sps:$4 sm:$0xff]  }
 0x466   : > { %5684 = vmatprep.subr.bf16.mxu1 %v24675_v30  ;;  %v24697_v30 = vld [vmem:[%s26807_s3 + $0xa48] ss:$16 sps:$4 sm:$0xff]  }
 0x468   : > { %5579 = vmatpush1.bf16.msra.mxu0 %v24670_v40  ;;  %v24702_v40 = vld [vmem:[%s26807_s3 + $0xa64] ss:$16 sps:$4 sm:$0xff]  }
 0x469   : > { %5685 = vmatpush1.bf16.msra.mxu1 %v24673_v33  ;;  %5601 = vmatprep.subr.bf16.mxu0 %v24678_v50  ;;  %v24705_v33 = vld [vmem:[%s26807_s3 + $0xa6c] ss:$16 sps:$4 sm:$0xff]   ;;  %v24700_v50 = vld [vmem:[%s26807_s3 + $0xa60] ss:$16 sps:$4 sm:$0xff]  }
 0x46a   : > { %5707 = vmatprep.subr.bf16.mxu1 %v24681_v44  ;;  %v24703_v44 = vld [vmem:[%s26807_s3 + $0xa68] ss:$16 sps:$4 sm:$0xff]  }
 0x4fd   : > { %v4693_v41 = vpop.f32.mrb[56].mxu0 }
 0x4fe   : > { %v4695_v58 = vpop.f32.mrb[57].mxu0  ;;  %v4746_v61 = vpop.f32.mrb[56].mxu1 }
 0x4ff   : > { %v4697_v2 = vpop.f32.mrb[58].mxu0  ;;  %v4748_v3 = vpop.f32.mrb[57].mxu1 }
 0x500   : > { %v4765_v36 = vpack.c.bf16 %v4697_v2, %v4693_v41  ;;  %v4699_v16 = vpop.f32.mrb[59].mxu0  ;;  %v4750_v47 = vpop.f32.mrb[58].mxu1  ;;  %v24708_v41 = vld [vmem:[%s26807_s3 + $0xa84] ss:$16 sps:$4 sm:$0xff]   ;;  %v24709_v2 = vld [vmem:[%s26807_s3 + $0xa88] ss:$16 sps:$4 sm:$0xff]  }
 0x501   : > { %v4766_v27 = vpack.c.bf16 %v4699_v16, %v4695_v58  ;;  %v27702_v7 = vpack.c.bf16 %v4750_v47, %v4746_v61  ;;  %v4752_v10 = vpop.f32.mrb[59].mxu1  ;;  %v24711_v58 = vld [vmem:[%s26807_s3 + $0xa8c] ss:$16 sps:$4 sm:$0xff]   ;;  %v24706_v61 = vld [vmem:[%s26807_s3 + $0xa80] ss:$16 sps:$4 sm:$0xff]  }
 0x502   : > { %v4768_v0 = vpack.c.bf16 %v4752_v10, %v4748_v3  ;;  %v24714_v3 = vld [vmem:[%s26807_s3 + $0xaa4] ss:$16 sps:$4 sm:$0xff]   ;;  %v24712_v16 = vld [vmem:[%s26807_s3 + $0xaa0] ss:$16 sps:$4 sm:$0xff]   ;;  %v24715_v47 = vld [vmem:[%s26807_s3 + $0xaa8] ss:$16 sps:$4 sm:$0xff]  }
 0x503   : > { %5580 = vmatprep.mubr.bf16.mxu0 %v4766_v27  ;;  %5686 = vmatprep.mubr.bf16.mxu1 %v4766_v27  ;;  %v24720_v27 = vld [vmem:[%s26807_s3 + $0xac4] ss:$16 sps:$4 sm:$0xff]   ;;  %v24721_v10 = vld [vmem:[%s26807_s3 + $0xac8] ss:$16 sps:$4 sm:$0xff]  }
 0x504   : > { %5581 = vmatmul.mubr.bf16.vlgmr.msra.gmra.mrb[48].mxu0 %v4765_v36  ;;  %5687 = vmatmul.mubr.bf16.vlgmr.msra.gmra.mrb[48].mxu1 %v4765_v36  ;;  %v24717_v36 = vld [vmem:[%s26807_s3 + $0xaac] ss:$16 sps:$4 sm:$0xff]  }
 0x505   : > { %5602 = vmatpush1.bf16.msra.mxu0 %v24676_v8  ;;  %5708 = vmatpush1.bf16.msra.mxu1 %v24679_v4  ;;  %v4703_v48 = vpop.f32.mrb[60].mxu0  ;;  %v24723_v8 = vld [vmem:[%s26807_s3 + $0xacc] ss:$16 sps:$4 sm:$0xff]   ;;  %v24718_v4 = vld [vmem:[%s26807_s3 + $0xac0] ss:$16 sps:$4 sm:$0xff]  }
 0x506   : > { %5603 = vmatprep.subr.bf16.mxu0 %v24684_v11  ;;  %5709 = vmatprep.subr.bf16.mxu1 %v24687_v12  ;;  %v4705_v9 = vpop.f32.mrb[61].mxu0  ;;  %v4756_v24 = vpop.f32.mrb[60].mxu1  ;;  %v24726_v11 = vld [vmem:[%s26807_s3 + $0xae4] ss:$16 sps:$4 sm:$0xff]   ;;  %v24729_v12 = vld [vmem:[%s26807_s3 + $0xaec] ss:$16 sps:$4 sm:$0xff]  }
 0x507   : > { %v4707_v17 = vpop.f32.mrb[62].mxu0  ;;  %v4758_v15 = vpop.f32.mrb[61].mxu1 }
 0x508   : > { %v4769_v18 = vpack.c.bf16 %v4707_v17, %v4703_v48  ;;  %v4709_v19 = vpop.f32.mrb[63].mxu0  ;;  %v4760_v52 = vpop.f32.mrb[62].mxu1  ;;  %v24735_v48 = vld [vmem:[%s26807_s3 + $0xb0c] ss:$16 sps:$4 sm:$0xff]   ;;  %v24736_v17 = vld [vmem:[%s26807_s3 + $0xb20] ss:$16 sps:$4 sm:$0xff]  }
 0x509   : > { %5604 = vmatpush1.bf16.msra.mxu0 %v24682_v25  ;;  %5710 = vmatpush1.bf16.msra.mxu1 %v24685_v62  ;;  %v4770_v23 = vpack.c.bf16 %v4709_v19, %v4705_v9  ;;  %v27712_v49 = vpack.c.bf16 %v4760_v52, %v4756_v24  ;;  %v4762_v13 = vpop.f32.mrb[63].mxu1  ;;  %v24727_v25 = vld [vmem:[%s26807_s3 + $0xae8] ss:$16 sps:$4 sm:$0xff]   ;;  %v24732_v62 = vld [vmem:[%s26807_s3 + $0xb04] ss:$16 sps:$4 sm:$0xff]  }
 0x50a   : > { %5605 = vmatprep.subr.bf16.mxu0 %v24690_v59  ;;  %5711 = vmatprep.subr.bf16.mxu1 %v24693_v51  ;;  %v27716_v55 = vpack.c.bf16 %v4762_v13, %v4758_v15  ;;  %v24730_v59 = vld [vmem:[%s26807_s3 + $0xb00] ss:$16 sps:$4 sm:$0xff]   ;;  %v24733_v51 = vld [vmem:[%s26807_s3 + $0xb08] ss:$16 sps:$4 sm:$0xff]   ;;  %v24738_v9 = vld [vmem:[%s26807_s3 + $0xb24] ss:$16 sps:$4 sm:$0xff]  }
 0x50b   : > { %5590 = vmatprep.mubr.bf16.mxu0 %v4770_v23  ;;  %5696 = vmatprep.mubr.bf16.mxu1 %v4770_v23  ;;  %v24741_v24 = vld [vmem:[%s26807_s3 + $0xb2c] ss:$16 sps:$4 sm:$0xff]   ;;  %v24739_v15 = vld [vmem:[%s26807_s3 + $0xb28] ss:$16 sps:$4 sm:$0xff]   ;;  %v24742_v52 = vld [vmem:[%s26807_s3 + $0xb40] ss:$16 sps:$4 sm:$0xff]  }
 0x50c   : > { %5591 = vmatmul.mubr.bf16.gmra.mrb[52].mxu0 %v4769_v18  ;;  %5697 = vmatmul.mubr.bf16.gmra.mrb[52].mxu1 %v4769_v18  ;;  %v24744_v18 = vld [vmem:[%s26807_s3 + $0xb44] ss:$16 sps:$4 sm:$0xff]   ;;  %v24747_v19 = vld [vmem:[%s26807_s3 + $0xb4c] ss:$16 sps:$4 sm:$0xff]   ;;  %v24748_v13 = vld [vmem:[%s26807_s3 + $0xb60] ss:$16 sps:$4 sm:$0xff]  }
 0x50d   : > { %5606 = vmatpush1.bf16.msra.mxu0 %v24688_v21  ;;  %5712 = vmatpush1.bf16.msra.mxu1 %v24691_v22  ;;  %v24745_v21 = vld [vmem:[%s26807_s3 + $0xb48] ss:$16 sps:$4 sm:$0xff]   ;;  %v24750_v22 = vld [vmem:[%s26807_s3 + $0xb64] ss:$16 sps:$4 sm:$0xff]   ;;  %v24753_v23 = vld [vmem:[%s26807_s3 + $0xb6c] ss:$16 sps:$4 sm:$0xff]  }
 0x50e   : > { %5607 = vmatprep.subr.bf16.mxu0 %v24696_v14  ;;  %5713 = vmatprep.subr.bf16.mxu1 %v24699_v26  ;;  %v24751_v14 = vld [vmem:[%s26807_s3 + $0xb68] ss:$16 sps:$4 sm:$0xff]   ;;  %v24756_v26 = vld [vmem:[%s26807_s3 + $0xb84] ss:$16 sps:$4 sm:$0xff]  }
 0x50f   : > { %20447 = vmatprep.mubr.msk.bf16.mxu0 %vm3546_vm8, %v4768_v0  ;;  %20450 = vmatprep.mubr.msk.bf16.mxu1 %vm3546_vm8, %v4768_v0  ;;  %v24724_v0 = vld [vmem:[%s26807_s3 + $0xae0] ss:$16 sps:$4 sm:$0xff]  }
 0x511   : > { %5608 = vmatpush1.bf16.msra.mxu0 %v24694_v28  ;;  %5714 = vmatpush1.bf16.msra.mxu1 %v24697_v30  ;;  %v24759_v28 = vld [vmem:[%s26807_s3 + $0xb8c] ss:$16 sps:$4 sm:$0xff]   ;;  %v24754_v30 = vld [vmem:[%s26807_s3 + $0xb80] ss:$16 sps:$4 sm:$0xff]  }
 0x512   : > { %5609 = vmatprep.subr.bf16.mxu0 %v24702_v40  ;;  %5715 = vmatprep.subr.bf16.mxu1 %v24705_v33  ;;  %v24757_v40 = vld [vmem:[%s26807_s3 + $0xb88] ss:$16 sps:$4 sm:$0xff]   ;;  %v24762_v33 = vld [vmem:[%s26807_s3 + $0xba4] ss:$16 sps:$4 sm:$0xff]  }
 0x515   : > { %5610 = vmatpush1.bf16.msra.mxu0 %v24700_v50  ;;  %5716 = vmatpush1.bf16.msra.mxu1 %v24703_v44  ;;  %v24765_v50 = vld [vmem:[%s26807_s3 + $0xbac] ss:$16 sps:$4 sm:$0xff]   ;;  %v20316_v44 = vld [vmem:[%s26807_s3 + $0xbc0] sm:$0xff] }
 0x516   : > { %5611 = vmatprep.subr.bf16.mxu0 %v24708_v41  ;;  %5717 = vmatprep.subr.bf16.mxu1 %v24711_v58  ;;  %v20317_v41 = vld [vmem:[%s26807_s3 + $0xbc8] sm:$0xff]  ;;  %v24760_v58 = vld [vmem:[%s26807_s3 + $0xba0] ss:$16 sps:$4 sm:$0xff]  }
 0x519   : > { %5612 = vmatpush1.bf16.msra.mxu0 %v24706_v61  ;;  %5718 = vmatpush1.bf16.msra.mxu1 %v24709_v2  ;;  %v24763_v61 = vld [vmem:[%s26807_s3 + $0xba8] ss:$16 sps:$4 sm:$0xff]   ;;  %v20443_v2 = vcombine.high %v20316_v44, %v20316_v44 }
 0x51a   : > { %5613 = vmatprep.subr.bf16.mxu0 %v24714_v3  ;;  %5719 = vmatprep.subr.bf16.mxu1 %v24717_v36  ;;  %v20445_v3 = vcombine.high %v20317_v41, %v20317_v41  ;;  %v20442_v36 = vcombine.low %v20316_v44, %v20316_v44  ;;  %v24814_v44 = vld [vmem:[%s26807_s3 + $0xcb0] ss:$16 sps:$4 sm:$0xff]  }
 0x51d   : > { %5614 = vmatpush1.bf16.msra.mxu0 %v24712_v16  ;;  %5720 = vmatpush1.bf16.msra.mxu1 %v24715_v47  ;;  %v20444_v16 = vcombine.low %v20317_v41, %v20317_v41  ;;  %v5537_v47 = vsel %vm3553_vm9, %v20442_v36, 0  ;;  %v24817_v41 = vld [vmem:[%s26807_s3 + $0xcb8] ss:$16 sps:$4 sm:$0xff]   ;;  %v24828_v36 = vld [vmem:[%s26807_s3 + $0xcf4] ss:$16 sps:$4 sm:$0xff]  }
 0x51e   : > { %5615 = vmatprep.subr.bf16.mxu0 %v24720_v27  ;;  %5721 = vmatprep.subr.bf16.mxu1 %v24723_v8  ;;  %v24770_v8 = vld [vmem:[%s26802_s29 + $0x30] sm:$0xff]  }
 0x51f   : > { %v5543_v27 = vsel %vm3553_vm9, %v20444_v16, 0  ;;  %v24831_v16 = vld [vmem:[%s26807_s3 + $0xcfc] ss:$16 sps:$4 sm:$0xff]  }
 0x521   : > { %5616 = vmatpush1.bf16.msra.mxu0 %v24718_v4  ;;  %5722 = vmatpush1.bf16.msra.mxu1 %v24721_v10  ;;  %v24775_v4 = vld [vmem:[%s26807_s3 + $0xbd8] ss:$16 sps:$4 sm:$0xff]   ;;  %v24780_v10 = vld [vmem:[%s26807_s3 + $0xbf4] ss:$16 sps:$4 sm:$0xff]  }
 0x522   : > { %5617 = vmatprep.subr.bf16.mxu0 %v24726_v11  ;;  %5723 = vmatprep.subr.bf16.mxu1 %v24729_v12  ;;  %v24783_v11 = vld [vmem:[%s26807_s3 + $0xbfc] ss:$16 sps:$4 sm:$0xff]   ;;  %v24778_v12 = vld [vmem:[%s26807_s3 + $0xbf0] ss:$16 sps:$4 sm:$0xff]  }
 0x525   : > { %5618 = vmatpush1.bf16.msra.mxu0 %v24724_v0  ;;  %5724 = vmatpush1.bf16.msra.mxu1 %v24727_v25  ;;  %v24781_v0 = vld [vmem:[%s26807_s3 + $0xbf8] ss:$16 sps:$4 sm:$0xff]   ;;  %v24786_v25 = vld [vmem:[%s26807_s3 + $0xc14] ss:$16 sps:$4 sm:$0xff]  }
 0x526   : > { %5619 = vmatprep.subr.bf16.mxu0 %v24732_v62  ;;  %5725 = vmatprep.subr.bf16.mxu1 %v24735_v48  ;;  %v24789_v62 = vld [vmem:[%s26807_s3 + $0xc1c] ss:$16 sps:$4 sm:$0xff]  }
 0x527   : > { %v24771_v48 = vld [vmem:[%s26802_s29 + $0x38] sm:$0x7f]  }
 0x529   : > { %5620 = vmatpush1.bf16.msra.mxu0 %v24730_v59  ;;  %5726 = vmatpush1.bf16.msra.mxu1 %v24733_v51  ;;  %v24784_v59 = vld [vmem:[%s26807_s3 + $0xc10] ss:$16 sps:$4 sm:$0xff]   ;;  %v24787_v51 = vld [vmem:[%s26807_s3 + $0xc18] ss:$16 sps:$4 sm:$0xff]  }
 0x52a   : > { %5621 = vmatprep.subr.bf16.mxu0 %v24738_v9  ;;  %5727 = vmatprep.subr.bf16.mxu1 %v24741_v24  ;;  %v24792_v9 = vld [vmem:[%s26807_s3 + $0xc34] ss:$16 sps:$4 sm:$0xff]   ;;  %v24795_v24 = vld [vmem:[%s26807_s3 + $0xc3c] ss:$16 sps:$4 sm:$0xff]  }
 0x52d   : > { %5622 = vmatpush1.bf16.msra.mxu0 %v24736_v17  ;;  %5728 = vmatpush1.bf16.msra.mxu1 %v24739_v15  ;;  %v24790_v17 = vld [vmem:[%s26807_s3 + $0xc30] ss:$16 sps:$4 sm:$0xff]   ;;  %v24793_v15 = vld [vmem:[%s26807_s3 + $0xc38] ss:$16 sps:$4 sm:$0xff]  }
 0x52e   : > { %5623 = vmatprep.subr.bf16.mxu0 %v24744_v18  ;;  %5729 = vmatprep.subr.bf16.mxu1 %v24747_v19  ;;  %v24798_v18 = vld [vmem:[%s26807_s3 + $0xc54] ss:$16 sps:$4 sm:$0xff]   ;;  %v24801_v19 = vld [vmem:[%s26807_s3 + $0xc5c] ss:$16 sps:$4 sm:$0xff]  }
 0x531   : > { %5624 = vmatpush1.bf16.msra.mxu0 %v24742_v52  ;;  %5730 = vmatpush1.bf16.msra.mxu1 %v24745_v21  ;;  %v24796_v52 = vld [vmem:[%s26807_s3 + $0xc50] ss:$16 sps:$4 sm:$0xff]   ;;  %v24799_v21 = vld [vmem:[%s26807_s3 + $0xc58] ss:$16 sps:$4 sm:$0xff]  }
 0x532   : > { %5625 = vmatprep.subr.bf16.mxu0 %v24750_v22  ;;  %5731 = vmatprep.subr.bf16.mxu1 %v24753_v23  ;;  %v24804_v22 = vld [vmem:[%s26807_s3 + $0xc74] ss:$16 sps:$4 sm:$0xff]   ;;  %v24807_v23 = vld [vmem:[%s26807_s3 + $0xc7c] ss:$16 sps:$4 sm:$0xff]  }
 0x535   : > { %5626 = vmatpush1.bf16.msra.mxu0 %v24748_v13  ;;  %5732 = vmatpush1.bf16.msra.mxu1 %v24751_v14  ;;  %v24802_v13 = vld [vmem:[%s26807_s3 + $0xc70] ss:$16 sps:$4 sm:$0xff]   ;;  %v24805_v14 = vld [vmem:[%s26807_s3 + $0xc78] ss:$16 sps:$4 sm:$0xff]  }
 0x536   : > { %5627 = vmatprep.subr.bf16.mxu0 %v24756_v26  ;;  %5733 = vmatprep.subr.bf16.mxu1 %v24759_v28  ;;  %v24810_v26 = vld [vmem:[%s26807_s3 + $0xc94] ss:$16 sps:$4 sm:$0xff]   ;;  %v24813_v28 = vld [vmem:[%s26807_s3 + $0xc9c] ss:$16 sps:$4 sm:$0xff]  }
 0x539   : > { %5628 = vmatpush1.bf16.msra.mxu0 %v24754_v30  ;;  %5734 = vmatpush1.bf16.msra.mxu1 %v24757_v40  ;;  %v24808_v30 = vld [vmem:[%s26807_s3 + $0xc90] ss:$16 sps:$4 sm:$0xff]   ;;  %v24811_v40 = vld [vmem:[%s26807_s3 + $0xc98] ss:$16 sps:$4 sm:$0xff]  }
 0x53a   : > { %5629 = vmatprep.subr.bf16.mxu0 %v24762_v33  ;;  %5735 = vmatprep.subr.bf16.mxu1 %v24765_v50  ;;  %v24816_v33 = vld [vmem:[%s26807_s3 + $0xcb4] ss:$16 sps:$4 sm:$0xff]   ;;  %v24819_v50 = vld [vmem:[%s26807_s3 + $0xcbc] ss:$16 sps:$4 sm:$0xff]  }
 0x53d   : > { %5630 = vmatpush1.bf16.msra.mxu0 %v24760_v58  ;;  %5736 = vmatpush1.bf16.msra.mxu1 %v24763_v61  ;;  %v24822_v58 = vld [vmem:[%s26807_s3 + $0xcd4] ss:$16 sps:$4 sm:$0xff]   ;;  %v24825_v61 = vld [vmem:[%s26807_s3 + $0xcdc] ss:$16 sps:$4 sm:$0xff]  }
 0x53e   : > { %20446 = vmatprep.subr.msk.bf16.mxu0 %vm3553_vm9, %v20443_v2  ;;  %20449 = vmatprep.subr.msk.bf16.mxu1 %vm3553_vm9, %v20445_v3  ;;  %v24820_v2 = vld [vmem:[%s26807_s3 + $0xcd0] ss:$16 sps:$4 sm:$0xff]   ;;  %v24823_v3 = vld [vmem:[%s26807_s3 + $0xcd8] ss:$16 sps:$4 sm:$0xff]  }
 0x541   : > { %5632 = vmatpush1.bf16.msra.mxu0 %v5537_v47  ;;  %5738 = vmatpush1.bf16.msra.mxu1 %v5543_v27  ;;  %v24826_v47 = vld [vmem:[%s26807_s3 + $0xcf0] ss:$16 sps:$4 sm:$0xff]   ;;  %v24829_v27 = vld [vmem:[%s26807_s3 + $0xcf8] ss:$16 sps:$4 sm:$0xff]  }
 0x542   : > { %5797 = vmatprep.subr.bf16.mxu0 %v27165_v54  ;;  %5850 = vmatprep.subr.bf16.mxu1 %v27167_v57 }
 0x544   : > { %5634 = vmatmul.mubr.bf16.vlgmr.msra.gmra.mrb[48].mxu0 %v27702_v7  ;;  %5740 = vmatmul.mubr.bf16.vlgmr.msra.gmra.mrb[48].mxu1 %v27702_v7  ;;  %v24774_v7 = vld [vmem:[%s26807_s3 + $0xbd4] ss:$16 sps:$4 sm:$0xff]  }
 0x545   : > { %5798 = vmatpush1.bf16.msra.mxu0 %v27161_v37  ;;  %5851 = vmatpush1.bf16.msra.mxu1 %v27163_v39 }
 0x546   : > { %5799 = vmatprep.subr.bf16.mxu0 %v27198_v63  ;;  %5852 = vmatprep.subr.bf16.mxu1 %v27200_v5 }
 0x547   : > { %20448 = vmatprep.mubr.msk.bf16.mxu0 %vm3546_vm8, %v27716_v55  ;;  %20451 = vmatprep.mubr.msk.bf16.mxu1 %vm3546_vm8, %v27716_v55  ;;  %v24777_v55 = vld [vmem:[%s26807_s3 + $0xbdc] ss:$16 sps:$4 sm:$0xff]  }
 0x549   : > { %5800 = vmatpush1.bf16.msra.mxu0 %v27189_v34  ;;  %5853 = vmatpush1.bf16.msra.mxu1 %v27191_v35 }
 0x54a   : > { %5801 = vmatprep.subr.bf16.mxu0 %v27227_v60  ;;  %5854 = vmatprep.subr.bf16.mxu1 %v27232_v6 }
 0x54c   : > { %5644 = vmatmul.mubr.bf16.gmra.mrb[52].mxu0 %v27712_v49  ;;  %5750 = vmatmul.mubr.bf16.gmra.mrb[52].mxu1 %v27712_v49  ;;  %v24772_v49 = vld [vmem:[%s26807_s3 + $0xbd0] ss:$16 sps:$4 sm:$0xff]  }
 0x54d   : > { %5802 = vmatpush1.bf16.msra.mxu0 %v27217_v29  ;;  %5855 = vmatpush1.bf16.msra.mxu1 %v27225_v53 }
 0x54e   : > { %5803 = vmatprep.subr.bf16.mxu0 %v27250_v56  ;;  %5856 = vmatprep.subr.bf16.mxu1 %v27255_v20 }
 0x54f   : > { %5829 = vmatprep.mubr.bf16.mxu0 %v26760_v1  ;;  %5882 = vmatprep.mubr.bf16.mxu1 %v26760_v1 }
 0x551   : > { %5804 = vmatpush1.bf16.msra.mxu0 %v27253_v31  ;;  %5857 = vmatpush1.bf16.msra.mxu1 %v27257_v32 }
 0x552   : > { %6686 = vmatprep.subr.bf16.mxu0 %v24774_v7  ;;  %6792 = vmatprep.subr.bf16.mxu1 %v24777_v55  ;;  %v24834_v7 = vld [vmem:[%s26807_s3 + $0xd14] ss:$16 sps:$4 sm:$0xff]   ;;  %v24837_v55 = vld [vmem:[%s26807_s3 + $0xd1c] ss:$16 sps:$4 sm:$0xff]  }
 0x554   : > { %20458 = vmatmul.mubr.msk.bf16.vlgmr.msra.gmra.mrb[64].mxu0 %vm2391_vm7, %v24770_v8  ;;  %20460 = vmatmul.mubr.msk.bf16.vlgmr.msra.gmra.mrb[64].mxu1 %vm2391_vm7, %v24770_v8  ;;  %v24832_v8 = vld [vmem:[%s26807_s3 + $0xd10] ss:$16 sps:$4 sm:$0xff]  }
 0x555   : > { %5839 = vmatprep.mubr.bf16.mxu0 %v26760_v1  ;;  %5892 = vmatprep.mubr.bf16.mxu1 %v26760_v1 }
 0x556   : > { %6687 = vmatpush1.bf16.msra.mxu0 %v24772_v49  ;;  %6793 = vmatpush1.bf16.msra.mxu1 %v24775_v4  ;;  %v24835_v49 = vld [vmem:[%s26807_s3 + $0xd18] ss:$16 sps:$4 sm:$0xff]   ;;  %v24840_v4 = vld [vmem:[%s26807_s3 + $0xd34] ss:$16 sps:$4 sm:$0xff]  }
 0x557   : > { %6688 = vmatprep.subr.bf16.mxu0 %v24780_v10  ;;  %6794 = vmatprep.subr.bf16.mxu1 %v24783_v11  ;;  %v24843_v10 = vld [vmem:[%s26807_s3 + $0xd3c] ss:$16 sps:$4 sm:$0xff]   ;;  %v24838_v11 = vld [vmem:[%s26807_s3 + $0xd30] ss:$16 sps:$4 sm:$0xff]  }
 0x55a   : > { %6689 = vmatpush1.bf16.msra.mxu0 %v24778_v12  ;;  %6795 = vmatpush1.bf16.msra.mxu1 %v24781_v0  ;;  %v24841_v12 = vld [vmem:[%s26807_s3 + $0xd38] ss:$16 sps:$4 sm:$0xff]   ;;  %v24846_v0 = vld [vmem:[%s26807_s3 + $0xd54] ss:$16 sps:$4 sm:$0xff]  }
 0x55b   : > { %6690 = vmatprep.subr.bf16.mxu0 %v24786_v25  ;;  %6796 = vmatprep.subr.bf16.mxu1 %v24789_v62  ;;  %v24849_v25 = vld [vmem:[%s26807_s3 + $0xd5c] ss:$16 sps:$4 sm:$0xff]   ;;  %v24844_v62 = vld [vmem:[%s26807_s3 + $0xd50] ss:$16 sps:$4 sm:$0xff]  }
 0x55c   : > { %20459 = vmatmul.mubr.msk.bf16.gmra.mrb[68].mxu0 %vm2391_vm7, %v24771_v48  ;;  %20461 = vmatmul.mubr.msk.bf16.gmra.mrb[68].mxu1 %vm2391_vm7, %v24771_v48  ;;  %v24847_v48 = vld [vmem:[%s26807_s3 + $0xd58] ss:$16 sps:$4 sm:$0xff]  }
 0x55e   : > { %6691 = vmatpush1.bf16.msra.mxu0 %v24784_v59  ;;  %6797 = vmatpush1.bf16.msra.mxu1 %v24787_v51  ;;  %v24852_v59 = vld [vmem:[%s26807_s3 + $0xd74] ss:$16 sps:$4 sm:$0xff]   ;;  %v24855_v51 = vld [vmem:[%s26807_s3 + $0xd7c] ss:$16 sps:$4 sm:$0xff]  }
 0x55f   : > { %6692 = vmatprep.subr.bf16.mxu0 %v24792_v9  ;;  %6798 = vmatprep.subr.bf16.mxu1 %v24795_v24  ;;  %v24850_v9 = vld [vmem:[%s26807_s3 + $0xd70] ss:$16 sps:$4 sm:$0xff]   ;;  %v24853_v24 = vld [vmem:[%s26807_s3 + $0xd78] ss:$16 sps:$4 sm:$0xff]  }
 0x562   : > { %6693 = vmatpush1.bf16.msra.mxu0 %v24790_v17  ;;  %6799 = vmatpush1.bf16.msra.mxu1 %v24793_v15  ;;  %v24858_v17 = vld [vmem:[%s26807_s3 + $0xd94] ss:$16 sps:$4 sm:$0xff]   ;;  %v24861_v15 = vld [vmem:[%s26807_s3 + $0xd9c] ss:$16 sps:$4 sm:$0xff]  }
 0x563   : > { %6694 = vmatprep.subr.bf16.mxu0 %v24798_v18  ;;  %6800 = vmatprep.subr.bf16.mxu1 %v24801_v19  ;;  %v24856_v18 = vld [vmem:[%s26807_s3 + $0xd90] ss:$16 sps:$4 sm:$0xff]   ;;  %v24859_v19 = vld [vmem:[%s26807_s3 + $0xd98] ss:$16 sps:$4 sm:$0xff]  }
 0x566   : > { %6695 = vmatpush1.bf16.msra.mxu0 %v24796_v52  ;;  %6801 = vmatpush1.bf16.msra.mxu1 %v24799_v21  ;;  %v24864_v52 = vld [vmem:[%s26807_s3 + $0xdb4] ss:$16 sps:$4 sm:$0xff]   ;;  %v24867_v21 = vld [vmem:[%s26807_s3 + $0xdbc] ss:$16 sps:$4 sm:$0xff]  }
 0x567   : > { %6696 = vmatprep.subr.bf16.mxu0 %v24804_v22  ;;  %6802 = vmatprep.subr.bf16.mxu1 %v24807_v23  ;;  %v24862_v22 = vld [vmem:[%s26807_s3 + $0xdb0] ss:$16 sps:$4 sm:$0xff]   ;;  %v24865_v23 = vld [vmem:[%s26807_s3 + $0xdb8] ss:$16 sps:$4 sm:$0xff]  }
 0x56a   : > { %6697 = vmatpush1.bf16.msra.mxu0 %v24802_v13  ;;  %6803 = vmatpush1.bf16.msra.mxu1 %v24805_v14  ;;  %v24870_v13 = vld [vmem:[%s26807_s3 + $0xdd4] ss:$16 sps:$4 sm:$0xff]   ;;  %v24873_v14 = vld [vmem:[%s26807_s3 + $0xddc] ss:$16 sps:$4 sm:$0xff]  }
 0x56b   : > { %6698 = vmatprep.subr.bf16.mxu0 %v24810_v26  ;;  %6804 = vmatprep.subr.bf16.mxu1 %v24813_v28 }
 0x56e   : > { %6699 = vmatpush1.bf16.msra.mxu0 %v24808_v30  ;;  %6805 = vmatpush1.bf16.msra.mxu1 %v24811_v40 }
 0x56f   : > { %6700 = vmatprep.subr.bf16.mxu0 %v24816_v33  ;;  %6806 = vmatprep.subr.bf16.mxu1 %v24819_v50 }
 0x572   : > { %6701 = vmatpush1.bf16.msra.mxu0 %v24814_v44  ;;  %6807 = vmatpush1.bf16.msra.mxu1 %v24817_v41 }
 0x573   : > { %6702 = vmatprep.subr.bf16.mxu0 %v24822_v58  ;;  %6808 = vmatprep.subr.bf16.mxu1 %v24825_v61 }
 0x576   : > { %6703 = vmatpush1.bf16.msra.mxu0 %v24820_v2  ;;  %6809 = vmatpush1.bf16.msra.mxu1 %v24823_v3  ;;  %v24868_v3 = vld [vmem:[%s26807_s3 + $0xdd0] ss:$16 sps:$4 sm:$0xff]  }
 0x577   : > { %6704 = vmatprep.subr.bf16.mxu0 %v24828_v36  ;;  %6810 = vmatprep.subr.bf16.mxu1 %v24831_v16  ;;  %v24871_v36 = vld [vmem:[%s26807_s3 + $0xdd8] ss:$16 sps:$4 sm:$0xff]  }
 0x57a   : > { %6705 = vmatpush1.bf16.msra.mxu0 %v24826_v47  ;;  %6811 = vmatpush1.bf16.msra.mxu1 %v24829_v27  ;;  %v24876_v47 = vld [vmem:[%s26807_s3 + $0xdf4] ss:$16 sps:$4 sm:$0xff]   ;;  %v24879_v27 = vld [vmem:[%s26807_s3 + $0xdfc] ss:$16 sps:$4 sm:$0xff]  }
 0x57b   : > { %6706 = vmatprep.subr.bf16.mxu0 %v24834_v7  ;;  %6812 = vmatprep.subr.bf16.mxu1 %v24837_v55  ;;  %v24874_v7 = vld [vmem:[%s26807_s3 + $0xdf0] ss:$16 sps:$4 sm:$0xff]   ;;  %v24877_v55 = vld [vmem:[%s26807_s3 + $0xdf8] ss:$16 sps:$4 sm:$0xff]  }
 0x57e   : > { %6707 = vmatpush1.bf16.msra.mxu0 %v24832_v8  ;;  %6813 = vmatpush1.bf16.msra.mxu1 %v24835_v49 }
 0x57f   : > { %6708 = vmatprep.subr.bf16.mxu0 %v24840_v4  ;;  %6814 = vmatprep.subr.bf16.mxu1 %v24843_v10  ;;  %v24882_v4 = vld [vmem:[%s26807_s3 + $0xe14] ss:$16 sps:$4 sm:$0xff]   ;;  %v24885_v10 = vld [vmem:[%s26807_s3 + $0xe1c] ss:$16 sps:$4 sm:$0xff]  }
 0x582   : > { %6709 = vmatpush1.bf16.msra.mxu0 %v24838_v11  ;;  %6815 = vmatpush1.bf16.msra.mxu1 %v24841_v12 }
 0x583   : > { %6710 = vmatprep.subr.bf16.mxu0 %v24846_v0  ;;  %6816 = vmatprep.subr.bf16.mxu1 %v24849_v25 }
 0x586   : > { %6711 = vmatpush1.bf16.msra.mxu0 %v24844_v62  ;;  %6817 = vmatpush1.bf16.msra.mxu1 %v24847_v48 }
 0x587   : > { %6712 = vmatprep.subr.bf16.mxu0 %v24852_v59  ;;  %6818 = vmatprep.subr.bf16.mxu1 %v24855_v51 }
 0x58a   : > { %6713 = vmatpush1.bf16.msra.mxu0 %v24850_v9  ;;  %6819 = vmatpush1.bf16.msra.mxu1 %v24853_v24  ;;  %v24880_v9 = vld [vmem:[%s26807_s3 + $0xe10] ss:$16 sps:$4 sm:$0xff]   ;;  %v24883_v24 = vld [vmem:[%s26807_s3 + $0xe18] ss:$16 sps:$4 sm:$0xff]  }
 0x58b   : > { %6714 = vmatprep.subr.bf16.mxu0 %v24858_v17  ;;  %6820 = vmatprep.subr.bf16.mxu1 %v24861_v15 }
 0x58e   : > { %6715 = vmatpush1.bf16.msra.mxu0 %v24856_v18  ;;  %6821 = vmatpush1.bf16.msra.mxu1 %v24859_v19  ;;  %v24888_v18 = vld [vmem:[%s26807_s3 + $0xe34] ss:$16 sps:$4 sm:$0xff]   ;;  %v24891_v19 = vld [vmem:[%s26807_s3 + $0xe3c] ss:$16 sps:$4 sm:$0xff]  }
 0x58f   : > { %6716 = vmatprep.subr.bf16.mxu0 %v24864_v52  ;;  %6822 = vmatprep.subr.bf16.mxu1 %v24867_v21  ;;  %v24886_v52 = vld [vmem:[%s26807_s3 + $0xe30] ss:$16 sps:$4 sm:$0xff]   ;;  %v24889_v21 = vld [vmem:[%s26807_s3 + $0xe38] ss:$16 sps:$4 sm:$0xff]  }
 0x592   : > { %6717 = vmatpush1.bf16.msra.mxu0 %v24862_v22  ;;  %6823 = vmatpush1.bf16.msra.mxu1 %v24865_v23  ;;  %v24894_v22 = vld [vmem:[%s26807_s3 + $0xe54] ss:$16 sps:$4 sm:$0xff]   ;;  %v24897_v23 = vld [vmem:[%s26807_s3 + $0xe5c] ss:$16 sps:$4 sm:$0xff]  }
 0x593   : > { %6739 = vmatprep.subr.bf16.mxu0 %v24870_v13  ;;  %6845 = vmatprep.subr.bf16.mxu1 %v24873_v14  ;;  %v24892_v13 = vld [vmem:[%s26807_s3 + $0xe50] ss:$16 sps:$4 sm:$0xff]   ;;  %v24895_v14 = vld [vmem:[%s26807_s3 + $0xe58] ss:$16 sps:$4 sm:$0xff]  }
 0x627   : > { %v5831_v26 = vpop.f32.mrb[64].mxu0  ;;  %v5884_v28 = vpop.f32.mrb[64].mxu1 }
 0x628   : > { %v5833_v30 = vpop.f32.mrb[65].mxu0  ;;  %v5886_v40 = vpop.f32.mrb[65].mxu1 }
 0x629   : > { %v5835_v33 = vpop.f32.mrb[66].mxu0  ;;  %v5888_v50 = vpop.f32.mrb[66].mxu1 }
 0x62a   : > { %v5903_v44 = vpack.c.bf16 %v5835_v33, %v5831_v26  ;;  %v5837_v41 = vpop.f32.mrb[67].mxu0  ;;  %v27872_v58 = vpack.c.bf16 %v5888_v50, %v5884_v28  ;;  %v5890_v61 = vpop.f32.mrb[67].mxu1  ;;  %v24900_v26 = vld [vmem:[%s26807_s3 + $0xe74] ss:$16 sps:$4 sm:$0xff]   ;;  %v24903_v28 = vld [vmem:[%s26807_s3 + $0xe7c] ss:$16 sps:$4 sm:$0xff]  }
 0x62b   : > { %v5904_v2 = vpack.c.bf16 %v5837_v41, %v5833_v30  ;;  %v5906_v16 = vpack.c.bf16 %v5890_v61, %v5886_v40  ;;  %v24898_v30 = vld [vmem:[%s26807_s3 + $0xe70] ss:$16 sps:$4 sm:$0xff]   ;;  %v24901_v40 = vld [vmem:[%s26807_s3 + $0xe78] ss:$16 sps:$4 sm:$0xff]   ;;  %v24906_v33 = vld [vmem:[%s26807_s3 + $0xe94] ss:$16 sps:$4 sm:$0xff]  }
 0x62c   : > { %v24909_v50 = vld [vmem:[%s26807_s3 + $0xe9c] ss:$16 sps:$4 sm:$0xff]   ;;  %v24907_v41 = vld [vmem:[%s26807_s3 + $0xe98] ss:$16 sps:$4 sm:$0xff]   ;;  %v24912_v61 = vld [vmem:[%s26807_s3 + $0xeb4] ss:$16 sps:$4 sm:$0xff]  }
 0x62d   : > { %6718 = vmatprep.mubr.bf16.mxu0 %v5904_v2  ;;  %6824 = vmatprep.mubr.bf16.mxu1 %v5904_v2  ;;  %v24915_v2 = vld [vmem:[%s26807_s3 + $0xebc] ss:$16 sps:$4 sm:$0xff]  }
 0x62e   : > { %6719 = vmatmul.mubr.bf16.vlgmr.msra.gmra.mrb[48].mxu0 %v5903_v44  ;;  %6825 = vmatmul.mubr.bf16.vlgmr.msra.gmra.mrb[48].mxu1 %v5903_v44  ;;  %v24904_v44 = vld [vmem:[%s26807_s3 + $0xe90] ss:$16 sps:$4 sm:$0xff]  }
 0x62f   : > { %6740 = vmatpush1.bf16.msra.mxu0 %v24868_v3  ;;  %6846 = vmatpush1.bf16.msra.mxu1 %v24871_v36  ;;  %v5841_v8 = vpop.f32.mrb[68].mxu0  ;;  %v5894_v49 = vpop.f32.mrb[68].mxu1  ;;  %v24910_v3 = vld [vmem:[%s26807_s3 + $0xeb0] ss:$16 sps:$4 sm:$0xff]   ;;  %v24913_v36 = vld [vmem:[%s26807_s3 + $0xeb8] ss:$16 sps:$4 sm:$0xff]  }
 0x630   : > { %6741 = vmatprep.subr.bf16.mxu0 %v24876_v47  ;;  %6847 = vmatprep.subr.bf16.mxu1 %v24879_v27  ;;  %v5843_v11 = vpop.f32.mrb[69].mxu0  ;;  %v5896_v12 = vpop.f32.mrb[69].mxu1  ;;  %v24921_v47 = vld [vmem:[%s26807_s3 + $0xedc] ss:$16 sps:$4 sm:$0xff]   ;;  %v24916_v27 = vld [vmem:[%s26807_s3 + $0xed0] ss:$16 sps:$4 sm:$0xff]  }
 0x631   : > { %v5845_v0 = vpop.f32.mrb[70].mxu0  ;;  %v5898_v25 = vpop.f32.mrb[70].mxu1 }
 0x632   : > { %v5907_v62 = vpack.c.bf16 %v5845_v0, %v5841_v8  ;;  %v5847_v48 = vpop.f32.mrb[71].mxu0  ;;  %v27882_v59 = vpack.c.bf16 %v5898_v25, %v5894_v49  ;;  %v5900_v51 = vpop.f32.mrb[71].mxu1  ;;  %v24927_v8 = vld [vmem:[%s26807_s3 + $0xefc] ss:$16 sps:$4 sm:$0xff]   ;;  %v24922_v49 = vld [vmem:[%s26807_s3 + $0xef0] ss:$16 sps:$4 sm:$0xff]  }
 0x633   : > { %6742 = vmatpush1.bf16.msra.mxu0 %v24874_v7  ;;  %6848 = vmatpush1.bf16.msra.mxu1 %v24877_v55  ;;  %v5908_v17 = vpack.c.bf16 %v5847_v48, %v5843_v11  ;;  %v27886_v15 = vpack.c.bf16 %v5900_v51, %v5896_v12  ;;  %v24919_v7 = vld [vmem:[%s26807_s3 + $0xed8] ss:$16 sps:$4 sm:$0xff]   ;;  %v24924_v55 = vld [vmem:[%s26807_s3 + $0xef4] ss:$16 sps:$4 sm:$0xff]   ;;  %v24933_v11 = vld [vmem:[%s26807_s3 + $0xf1c] ss:$16 sps:$4 sm:$0xff]  }
 0x634   : > { %6743 = vmatprep.subr.bf16.mxu0 %v24882_v4  ;;  %6849 = vmatprep.subr.bf16.mxu1 %v24885_v10  ;;  %v24925_v4 = vld [vmem:[%s26807_s3 + $0xef8] ss:$16 sps:$4 sm:$0xff]   ;;  %v24930_v10 = vld [vmem:[%s26807_s3 + $0xf14] ss:$16 sps:$4 sm:$0xff]   ;;  %v24928_v12 = vld [vmem:[%s26807_s3 + $0xf10] ss:$16 sps:$4 sm:$0xff]  }
 0x635   : > { %6728 = vmatprep.mubr.bf16.mxu0 %v5908_v17  ;;  %6834 = vmatprep.mubr.bf16.mxu1 %v5908_v17  ;;  %v24931_v0 = vld [vmem:[%s26807_s3 + $0xf18] ss:$16 sps:$4 sm:$0xff]   ;;  %v24936_v25 = vld [vmem:[%s26807_s3 + $0xf34] ss:$16 sps:$4 sm:$0xff]   ;;  %v24934_v48 = vld [vmem:[%s26807_s3 + $0xf30] ss:$16 sps:$4 sm:$0xff]  }
 0x636   : > { %6729 = vmatmul.mubr.bf16.gmra.mrb[52].mxu0 %v5907_v62  ;;  %6835 = vmatmul.mubr.bf16.gmra.mrb[52].mxu1 %v5907_v62  ;;  %v24939_v62 = vld [vmem:[%s26807_s3 + $0xf3c] ss:$16 sps:$4 sm:$0xff]   ;;  %v24937_v51 = vld [vmem:[%s26807_s3 + $0xf38] ss:$16 sps:$4 sm:$0xff]   ;;  %v24940_v17 = vld [vmem:[%s26807_s3 + $0xf50] ss:$16 sps:$4 sm:$0xff]  }
 0x637   : > { %6744 = vmatpush1.bf16.msra.mxu0 %v24880_v9  ;;  %6850 = vmatpush1.bf16.msra.mxu1 %v24883_v24  ;;  %v24942_v9 = vld [vmem:[%s26807_s3 + $0xf54] ss:$16 sps:$4 sm:$0xff]   ;;  %v24945_v24 = vld [vmem:[%s26807_s3 + $0xf5c] ss:$16 sps:$4 sm:$0xff]  }
 0x638   : > { %6745 = vmatprep.subr.bf16.mxu0 %v24888_v18  ;;  %6851 = vmatprep.subr.bf16.mxu1 %v24891_v19  ;;  %v24943_v18 = vld [vmem:[%s26807_s3 + $0xf58] ss:$16 sps:$4 sm:$0xff]   ;;  %v24948_v19 = vld [vmem:[%s26807_s3 + $0xf74] ss:$16 sps:$4 sm:$0xff]  }
 0x639   : > { %20717 = vmatprep.mubr.msk.bf16.mxu0 %vm3546_vm8, %v5906_v16  ;;  %20720 = vmatprep.mubr.msk.bf16.mxu1 %vm3546_vm8, %v5906_v16  ;;  %v24918_v16 = vld [vmem:[%s26807_s3 + $0xed4] ss:$16 sps:$4 sm:$0xff]  }
 0x63b   : > { %6746 = vmatpush1.bf16.msra.mxu0 %v24886_v52  ;;  %6852 = vmatpush1.bf16.msra.mxu1 %v24889_v21  ;;  %v24951_v52 = vld [vmem:[%s26807_s3 + $0xf7c] ss:$16 sps:$4 sm:$0xff]   ;;  %v24946_v21 = vld [vmem:[%s26807_s3 + $0xf70] ss:$16 sps:$4 sm:$0xff]  }
 0x63c   : > { %6747 = vmatprep.subr.bf16.mxu0 %v24894_v22  ;;  %6853 = vmatprep.subr.bf16.mxu1 %v24897_v23  ;;  %v24949_v22 = vld [vmem:[%s26807_s3 + $0xf78] ss:$16 sps:$4 sm:$0xff]   ;;  %v24954_v23 = vld [vmem:[%s26807_s3 + $0xf94] ss:$16 sps:$4 sm:$0xff]  }
 0x63f   : > { %6748 = vmatpush1.bf16.msra.mxu0 %v24892_v13  ;;  %6854 = vmatpush1.bf16.msra.mxu1 %v24895_v14  ;;  %v24957_v13 = vld [vmem:[%s26807_s3 + $0xf9c] ss:$16 sps:$4 sm:$0xff]   ;;  %v20586_v14 = vld [vmem:[%s26807_s3 + $0xfb0] sm:$0xff] }
 0x640   : > { %6749 = vmatprep.subr.bf16.mxu0 %v24900_v26  ;;  %6855 = vmatprep.subr.bf16.mxu1 %v24903_v28  ;;  %v20587_v26 = vld [vmem:[%s26807_s3 + $0xfb8] sm:$0xff]  ;;  %v24952_v28 = vld [vmem:[%s26807_s3 + $0xf90] ss:$16 sps:$4 sm:$0xff]  }
 0x643   : > { %6750 = vmatpush1.bf16.msra.mxu0 %v24898_v30  ;;  %6856 = vmatpush1.bf16.msra.mxu1 %v24901_v40  ;;  %v24955_v30 = vld [vmem:[%s26807_s3 + $0xf98] ss:$16 sps:$4 sm:$0xff]   ;;  %v20713_v40 = vcombine.high %v20586_v14, %v20586_v14 }
 0x644   : > { %6751 = vmatprep.subr.bf16.mxu0 %v24906_v33  ;;  %6857 = vmatprep.subr.bf16.mxu1 %v24909_v50  ;;  %v20715_v33 = vcombine.high %v20587_v26, %v20587_v26  ;;  %v20712_v50 = vcombine.low %v20586_v14, %v20586_v14  ;;  %v25006_v14 = vld [vmem:[%s26807_s3 + $0x10a0] ss:$16 sps:$4 sm:$0xff]  }
 0x647   : > { %6752 = vmatpush1.bf16.msra.mxu0 %v24904_v44  ;;  %6858 = vmatpush1.bf16.msra.mxu1 %v24907_v41  ;;  %v20714_v44 = vcombine.low %v20587_v26, %v20587_v26  ;;  %v6675_v41 = vsel %vm3553_vm9, %v20712_v50, 0  ;;  %v25009_v26 = vld [vmem:[%s26807_s3 + $0x10a8] ss:$16 sps:$4 sm:$0xff]   ;;  %v25020_v50 = vld [vmem:[%s26807_s3 + $0x10e4] ss:$16 sps:$4 sm:$0xff]  }
 0x648   : > { %6753 = vmatprep.subr.bf16.mxu0 %v24912_v61  ;;  %6859 = vmatprep.subr.bf16.mxu1 %v24915_v2  ;;  %v24962_v2 = vld [vmem:[%s26802_s29 + $0x40] sm:$0xff]  }
 0x649   : > { %v6681_v61 = vsel %vm3553_vm9, %v20714_v44, 0  ;;  %v25023_v44 = vld [vmem:[%s26807_s3 + $0x10ec] ss:$16 sps:$4 sm:$0xff]  }
 0x64b   : > { %6754 = vmatpush1.bf16.msra.mxu0 %v24910_v3  ;;  %6860 = vmatpush1.bf16.msra.mxu1 %v24913_v36  ;;  %v24967_v3 = vld [vmem:[%s26807_s3 + $0xfc8] ss:$16 sps:$4 sm:$0xff]   ;;  %v24972_v36 = vld [vmem:[%s26807_s3 + $0xfe4] ss:$16 sps:$4 sm:$0xff]  }
 0x64c   : > { %6755 = vmatprep.subr.bf16.mxu0 %v24918_v16  ;;  %6861 = vmatprep.subr.bf16.mxu1 %v24921_v47  ;;  %v24975_v16 = vld [vmem:[%s26807_s3 + $0xfec] ss:$16 sps:$4 sm:$0xff]   ;;  %v24970_v47 = vld [vmem:[%s26807_s3 + $0xfe0] ss:$16 sps:$4 sm:$0xff]  }
 0x64f   : > { %6756 = vmatpush1.bf16.msra.mxu0 %v24916_v27  ;;  %6862 = vmatpush1.bf16.msra.mxu1 %v24919_v7  ;;  %v24973_v27 = vld [vmem:[%s26807_s3 + $0xfe8] ss:$16 sps:$4 sm:$0xff]   ;;  %v24978_v7 = vld [vmem:[%s26807_s3 + $0x1004] ss:$16 sps:$4 sm:$0xff]  }
 0x650   : > { %6757 = vmatprep.subr.bf16.mxu0 %v24924_v55  ;;  %6863 = vmatprep.subr.bf16.mxu1 %v24927_v8  ;;  %v24981_v55 = vld [vmem:[%s26807_s3 + $0x100c] ss:$16 sps:$4 sm:$0xff]  }
 0x651   : > { %v24963_v8 = vld [vmem:[%s26802_s29 + $0x48] sm:$0x7f]  }
 0x653   : > { %6758 = vmatpush1.bf16.msra.mxu0 %v24922_v49  ;;  %6864 = vmatpush1.bf16.msra.mxu1 %v24925_v4  ;;  %v24976_v49 = vld [vmem:[%s26807_s3 + $0x1000] ss:$16 sps:$4 sm:$0xff]   ;;  %v24979_v4 = vld [vmem:[%s26807_s3 + $0x1008] ss:$16 sps:$4 sm:$0xff]  }
 0x654   : > { %6759 = vmatprep.subr.bf16.mxu0 %v24930_v10  ;;  %6865 = vmatprep.subr.bf16.mxu1 %v24933_v11  ;;  %v24984_v10 = vld [vmem:[%s26807_s3 + $0x1024] ss:$16 sps:$4 sm:$0xff]   ;;  %v24987_v11 = vld [vmem:[%s26807_s3 + $0x102c] ss:$16 sps:$4 sm:$0xff]  }
 0x657   : > { %6760 = vmatpush1.bf16.msra.mxu0 %v24928_v12  ;;  %6866 = vmatpush1.bf16.msra.mxu1 %v24931_v0  ;;  %v24982_v12 = vld [vmem:[%s26807_s3 + $0x1020] ss:$16 sps:$4 sm:$0xff]   ;;  %v24985_v0 = vld [vmem:[%s26807_s3 + $0x1028] ss:$16 sps:$4 sm:$0xff]  }
 0x658   : > { %6761 = vmatprep.subr.bf16.mxu0 %v24936_v25  ;;  %6867 = vmatprep.subr.bf16.mxu1 %v24939_v62  ;;  %v24990_v25 = vld [vmem:[%s26807_s3 + $0x1044] ss:$16 sps:$4 sm:$0xff]   ;;  %v24993_v62 = vld [vmem:[%s26807_s3 + $0x104c] ss:$16 sps:$4 sm:$0xff]  }
 0x65b   : > { %6762 = vmatpush1.bf16.msra.mxu0 %v24934_v48  ;;  %6868 = vmatpush1.bf16.msra.mxu1 %v24937_v51  ;;  %v24988_v48 = vld [vmem:[%s26807_s3 + $0x1040] ss:$16 sps:$4 sm:$0xff]   ;;  %v24991_v51 = vld [vmem:[%s26807_s3 + $0x1048] ss:$16 sps:$4 sm:$0xff]  }
 0x65c   : > { %6763 = vmatprep.subr.bf16.mxu0 %v24942_v9  ;;  %6869 = vmatprep.subr.bf16.mxu1 %v24945_v24  ;;  %v24996_v9 = vld [vmem:[%s26807_s3 + $0x1064] ss:$16 sps:$4 sm:$0xff]   ;;  %v24999_v24 = vld [vmem:[%s26807_s3 + $0x106c] ss:$16 sps:$4 sm:$0xff]  }
 0x65f   : > { %6764 = vmatpush1.bf16.msra.mxu0 %v24940_v17  ;;  %6870 = vmatpush1.bf16.msra.mxu1 %v24943_v18  ;;  %v24994_v17 = vld [vmem:[%s26807_s3 + $0x1060] ss:$16 sps:$4 sm:$0xff]   ;;  %v24997_v18 = vld [vmem:[%s26807_s3 + $0x1068] ss:$16 sps:$4 sm:$0xff]  }
 0x660   : > { %6765 = vmatprep.subr.bf16.mxu0 %v24948_v19  ;;  %6871 = vmatprep.subr.bf16.mxu1 %v24951_v52  ;;  %v25002_v19 = vld [vmem:[%s26807_s3 + $0x1084] ss:$16 sps:$4 sm:$0xff]   ;;  %v25005_v52 = vld [vmem:[%s26807_s3 + $0x108c] ss:$16 sps:$4 sm:$0xff]  }
 0x663   : > { %6766 = vmatpush1.bf16.msra.mxu0 %v24946_v21  ;;  %6872 = vmatpush1.bf16.msra.mxu1 %v24949_v22  ;;  %v25000_v21 = vld [vmem:[%s26807_s3 + $0x1080] ss:$16 sps:$4 sm:$0xff]   ;;  %v25003_v22 = vld [vmem:[%s26807_s3 + $0x1088] ss:$16 sps:$4 sm:$0xff]  }
 0x664   : > { %6767 = vmatprep.subr.bf16.mxu0 %v24954_v23  ;;  %6873 = vmatprep.subr.bf16.mxu1 %v24957_v13  ;;  %v25008_v23 = vld [vmem:[%s26807_s3 + $0x10a4] ss:$16 sps:$4 sm:$0xff]   ;;  %v25011_v13 = vld [vmem:[%s26807_s3 + $0x10ac] ss:$16 sps:$4 sm:$0xff]  }
 0x667   : > { %6768 = vmatpush1.bf16.msra.mxu0 %v24952_v28  ;;  %6874 = vmatpush1.bf16.msra.mxu1 %v24955_v30  ;;  %v25014_v28 = vld [vmem:[%s26807_s3 + $0x10c4] ss:$16 sps:$4 sm:$0xff]   ;;  %v25017_v30 = vld [vmem:[%s26807_s3 + $0x10cc] ss:$16 sps:$4 sm:$0xff]  }
 0x668   : > { %20716 = vmatprep.subr.msk.bf16.mxu0 %vm3553_vm9, %v20713_v40  ;;  %20719 = vmatprep.subr.msk.bf16.mxu1 %vm3553_vm9, %v20715_v33  ;;  %v25012_v40 = vld [vmem:[%s26807_s3 + $0x10c0] ss:$16 sps:$4 sm:$0xff]   ;;  %v25015_v33 = vld [vmem:[%s26807_s3 + $0x10c8] ss:$16 sps:$4 sm:$0xff]  }
 0x66b   : > { %6770 = vmatpush1.bf16.msra.mxu0 %v6675_v41  ;;  %6876 = vmatpush1.bf16.msra.mxu1 %v6681_v61  ;;  %v25018_v41 = vld [vmem:[%s26807_s3 + $0x10e0] ss:$16 sps:$4 sm:$0xff]   ;;  %v25021_v61 = vld [vmem:[%s26807_s3 + $0x10e8] ss:$16 sps:$4 sm:$0xff]  }
 0x66c   : > { %6935 = vmatprep.subr.bf16.mxu0 %v27165_v54  ;;  %6988 = vmatprep.subr.bf16.mxu1 %v27167_v57 }
 0x66e   : > { %6772 = vmatmul.mubr.bf16.vlgmr.msra.gmra.mrb[48].mxu0 %v27872_v58  ;;  %6878 = vmatmul.mubr.bf16.vlgmr.msra.gmra.mrb[48].mxu1 %v27872_v58  ;;  %v24966_v58 = vld [vmem:[%s26807_s3 + $0xfc4] ss:$16 sps:$4 sm:$0xff]  }
 0x66f   : > { %6936 = vmatpush1.bf16.msra.mxu0 %v27161_v37  ;;  %6989 = vmatpush1.bf16.msra.mxu1 %v27163_v39 }
 0x670   : > { %6937 = vmatprep.subr.bf16.mxu0 %v27198_v63  ;;  %6990 = vmatprep.subr.bf16.mxu1 %v27200_v5 }
 0x671   : > { %20718 = vmatprep.mubr.msk.bf16.mxu0 %vm3546_vm8, %v27886_v15  ;;  %20721 = vmatprep.mubr.msk.bf16.mxu1 %vm3546_vm8, %v27886_v15  ;;  %v24969_v15 = vld [vmem:[%s26807_s3 + $0xfcc] ss:$16 sps:$4 sm:$0xff]  }
 0x673   : > { %6938 = vmatpush1.bf16.msra.mxu0 %v27189_v34  ;;  %6991 = vmatpush1.bf16.msra.mxu1 %v27191_v35 }
 0x674   : > { %6939 = vmatprep.subr.bf16.mxu0 %v27227_v60  ;;  %6992 = vmatprep.subr.bf16.mxu1 %v27232_v6 }
 0x676   : > { %6782 = vmatmul.mubr.bf16.gmra.mrb[52].mxu0 %v27882_v59  ;;  %6888 = vmatmul.mubr.bf16.gmra.mrb[52].mxu1 %v27882_v59  ;;  %v24964_v59 = vld [vmem:[%s26807_s3 + $0xfc0] ss:$16 sps:$4 sm:$0xff]  }
 0x677   : > { %6940 = vmatpush1.bf16.msra.mxu0 %v27217_v29  ;;  %6993 = vmatpush1.bf16.msra.mxu1 %v27225_v53 }
 0x678   : > { %6941 = vmatprep.subr.bf16.mxu0 %v27250_v56  ;;  %6994 = vmatprep.subr.bf16.mxu1 %v27255_v20 }
 0x679   : > { %6967 = vmatprep.mubr.bf16.mxu0 %v26760_v1  ;;  %7020 = vmatprep.mubr.bf16.mxu1 %v26760_v1 }
 0x67b   : > { %6942 = vmatpush1.bf16.msra.mxu0 %v27253_v31  ;;  %6995 = vmatpush1.bf16.msra.mxu1 %v27257_v32 }
 0x67c   : > { %7824 = vmatprep.subr.bf16.mxu0 %v24966_v58  ;;  %7930 = vmatprep.subr.bf16.mxu1 %v24969_v15  ;;  %v25026_v58 = vld [vmem:[%s26807_s3 + $0x1104] ss:$16 sps:$4 sm:$0xff]   ;;  %v25029_v15 = vld [vmem:[%s26807_s3 + $0x110c] ss:$16 sps:$4 sm:$0xff]  }
 0x67e   : > { %20728 = vmatmul.mubr.msk.bf16.vlgmr.msra.gmra.mrb[72].mxu0 %vm2391_vm7, %v24962_v2  ;;  %20730 = vmatmul.mubr.msk.bf16.vlgmr.msra.gmra.mrb[72].mxu1 %vm2391_vm7, %v24962_v2  ;;  %v25024_v2 = vld [vmem:[%s26807_s3 + $0x1100] ss:$16 sps:$4 sm:$0xff]  }
 0x67f   : > { %6977 = vmatprep.mubr.bf16.mxu0 %v26760_v1  ;;  %7030 = vmatprep.mubr.bf16.mxu1 %v26760_v1 }
 0x680   : > { %7825 = vmatpush1.bf16.msra.mxu0 %v24964_v59  ;;  %7931 = vmatpush1.bf16.msra.mxu1 %v24967_v3  ;;  %v25027_v59 = vld [vmem:[%s26807_s3 + $0x1108] ss:$16 sps:$4 sm:$0xff]   ;;  %v25032_v3 = vld [vmem:[%s26807_s3 + $0x1124] ss:$16 sps:$4 sm:$0xff]  }
 0x681   : > { %7826 = vmatprep.subr.bf16.mxu0 %v24972_v36  ;;  %7932 = vmatprep.subr.bf16.mxu1 %v24975_v16  ;;  %v25035_v36 = vld [vmem:[%s26807_s3 + $0x112c] ss:$16 sps:$4 sm:$0xff]   ;;  %v25030_v16 = vld [vmem:[%s26807_s3 + $0x1120] ss:$16 sps:$4 sm:$0xff]  }
 0x684   : > { %7827 = vmatpush1.bf16.msra.mxu0 %v24970_v47  ;;  %7933 = vmatpush1.bf16.msra.mxu1 %v24973_v27  ;;  %v25033_v47 = vld [vmem:[%s26807_s3 + $0x1128] ss:$16 sps:$4 sm:$0xff]   ;;  %v25038_v27 = vld [vmem:[%s26807_s3 + $0x1144] ss:$16 sps:$4 sm:$0xff]  }
 0x685   : > { %7828 = vmatprep.subr.bf16.mxu0 %v24978_v7  ;;  %7934 = vmatprep.subr.bf16.mxu1 %v24981_v55  ;;  %v25041_v7 = vld [vmem:[%s26807_s3 + $0x114c] ss:$16 sps:$4 sm:$0xff]   ;;  %v25036_v55 = vld [vmem:[%s26807_s3 + $0x1140] ss:$16 sps:$4 sm:$0xff]  }
 0x686   : > { %20729 = vmatmul.mubr.msk.bf16.gmra.mrb[76].mxu0 %vm2391_vm7, %v24963_v8  ;;  %20731 = vmatmul.mubr.msk.bf16.gmra.mrb[76].mxu1 %vm2391_vm7, %v24963_v8  ;;  %v25039_v8 = vld [vmem:[%s26807_s3 + $0x1148] ss:$16 sps:$4 sm:$0xff]  }
 0x688   : > { %7829 = vmatpush1.bf16.msra.mxu0 %v24976_v49  ;;  %7935 = vmatpush1.bf16.msra.mxu1 %v24979_v4  ;;  %v25044_v49 = vld [vmem:[%s26807_s3 + $0x1164] ss:$16 sps:$4 sm:$0xff]   ;;  %v25047_v4 = vld [vmem:[%s26807_s3 + $0x116c] ss:$16 sps:$4 sm:$0xff]  }
 0x689   : > { %7830 = vmatprep.subr.bf16.mxu0 %v24984_v10  ;;  %7936 = vmatprep.subr.bf16.mxu1 %v24987_v11  ;;  %v25042_v10 = vld [vmem:[%s26807_s3 + $0x1160] ss:$16 sps:$4 sm:$0xff]   ;;  %v25045_v11 = vld [vmem:[%s26807_s3 + $0x1168] ss:$16 sps:$4 sm:$0xff]  }
 0x68c   : > { %7831 = vmatpush1.bf16.msra.mxu0 %v24982_v12  ;;  %7937 = vmatpush1.bf16.msra.mxu1 %v24985_v0  ;;  %v25050_v12 = vld [vmem:[%s26807_s3 + $0x1184] ss:$16 sps:$4 sm:$0xff]   ;;  %v25053_v0 = vld [vmem:[%s26807_s3 + $0x118c] ss:$16 sps:$4 sm:$0xff]  }
 0x68d   : > { %7832 = vmatprep.subr.bf16.mxu0 %v24990_v25  ;;  %7938 = vmatprep.subr.bf16.mxu1 %v24993_v62  ;;  %v25048_v25 = vld [vmem:[%s26807_s3 + $0x1180] ss:$16 sps:$4 sm:$0xff]   ;;  %v25051_v62 = vld [vmem:[%s26807_s3 + $0x1188] ss:$16 sps:$4 sm:$0xff]  }
 0x690   : > { %7833 = vmatpush1.bf16.msra.mxu0 %v24988_v48  ;;  %7939 = vmatpush1.bf16.msra.mxu1 %v24991_v51  ;;  %v25056_v48 = vld [vmem:[%s26807_s3 + $0x11a4] ss:$16 sps:$4 sm:$0xff]   ;;  %v25059_v51 = vld [vmem:[%s26807_s3 + $0x11ac] ss:$16 sps:$4 sm:$0xff]  }
 0x691   : > { %7834 = vmatprep.subr.bf16.mxu0 %v24996_v9  ;;  %7940 = vmatprep.subr.bf16.mxu1 %v24999_v24  ;;  %v25054_v9 = vld [vmem:[%s26807_s3 + $0x11a0] ss:$16 sps:$4 sm:$0xff]   ;;  %v25057_v24 = vld [vmem:[%s26807_s3 + $0x11a8] ss:$16 sps:$4 sm:$0xff]  }
 0x694   : > { %7835 = vmatpush1.bf16.msra.mxu0 %v24994_v17  ;;  %7941 = vmatpush1.bf16.msra.mxu1 %v24997_v18  ;;  %v25062_v17 = vld [vmem:[%s26807_s3 + $0x11c4] ss:$16 sps:$4 sm:$0xff]   ;;  %v25065_v18 = vld [vmem:[%s26807_s3 + $0x11cc] ss:$16 sps:$4 sm:$0xff]  }
 0x695   : > { %7836 = vmatprep.subr.bf16.mxu0 %v25002_v19  ;;  %7942 = vmatprep.subr.bf16.mxu1 %v25005_v52 }
 0x698   : > { %7837 = vmatpush1.bf16.msra.mxu0 %v25000_v21  ;;  %7943 = vmatpush1.bf16.msra.mxu1 %v25003_v22 }
 0x699   : > { %7838 = vmatprep.subr.bf16.mxu0 %v25008_v23  ;;  %7944 = vmatprep.subr.bf16.mxu1 %v25011_v13 }
 0x69c   : > { %7839 = vmatpush1.bf16.msra.mxu0 %v25006_v14  ;;  %7945 = vmatpush1.bf16.msra.mxu1 %v25009_v26 }
 0x69d   : > { %7840 = vmatprep.subr.bf16.mxu0 %v25014_v28  ;;  %7946 = vmatprep.subr.bf16.mxu1 %v25017_v30 }
 0x6a0   : > { %7841 = vmatpush1.bf16.msra.mxu0 %v25012_v40  ;;  %7947 = vmatpush1.bf16.msra.mxu1 %v25015_v33  ;;  %v25060_v33 = vld [vmem:[%s26807_s3 + $0x11c0] ss:$16 sps:$4 sm:$0xff]  }
 0x6a1   : > { %7842 = vmatprep.subr.bf16.mxu0 %v25020_v50  ;;  %7948 = vmatprep.subr.bf16.mxu1 %v25023_v44  ;;  %v25063_v50 = vld [vmem:[%s26807_s3 + $0x11c8] ss:$16 sps:$4 sm:$0xff]  }
 0x6a4   : > { %7843 = vmatpush1.bf16.msra.mxu0 %v25018_v41  ;;  %7949 = vmatpush1.bf16.msra.mxu1 %v25021_v61  ;;  %v25068_v41 = vld [vmem:[%s26807_s3 + $0x11e4] ss:$16 sps:$4 sm:$0xff]   ;;  %v25071_v61 = vld [vmem:[%s26807_s3 + $0x11ec] ss:$16 sps:$4 sm:$0xff]  }
 0x6a5   : > { %7844 = vmatprep.subr.bf16.mxu0 %v25026_v58  ;;  %7950 = vmatprep.subr.bf16.mxu1 %v25029_v15  ;;  %v25066_v58 = vld [vmem:[%s26807_s3 + $0x11e0] ss:$16 sps:$4 sm:$0xff]   ;;  %v25069_v15 = vld [vmem:[%s26807_s3 + $0x11e8] ss:$16 sps:$4 sm:$0xff]  }
 0x6a8   : > { %7845 = vmatpush1.bf16.msra.mxu0 %v25024_v2  ;;  %7951 = vmatpush1.bf16.msra.mxu1 %v25027_v59 }
 0x6a9   : > { %7846 = vmatprep.subr.bf16.mxu0 %v25032_v3  ;;  %7952 = vmatprep.subr.bf16.mxu1 %v25035_v36  ;;  %v25074_v3 = vld [vmem:[%s26807_s3 + $0x1204] ss:$16 sps:$4 sm:$0xff]   ;;  %v25077_v36 = vld [vmem:[%s26807_s3 + $0x120c] ss:$16 sps:$4 sm:$0xff]  }
 0x6ac   : > { %7847 = vmatpush1.bf16.msra.mxu0 %v25030_v16  ;;  %7953 = vmatpush1.bf16.msra.mxu1 %v25033_v47 }
 0x6ad   : > { %7848 = vmatprep.subr.bf16.mxu0 %v25038_v27  ;;  %7954 = vmatprep.subr.bf16.mxu1 %v25041_v7 }
 0x6b0   : > { %7849 = vmatpush1.bf16.msra.mxu0 %v25036_v55  ;;  %7955 = vmatpush1.bf16.msra.mxu1 %v25039_v8 }
 0x6b1   : > { %7850 = vmatprep.subr.bf16.mxu0 %v25044_v49  ;;  %7956 = vmatprep.subr.bf16.mxu1 %v25047_v4 }
 0x6b4   : > { %7851 = vmatpush1.bf16.msra.mxu0 %v25042_v10  ;;  %7957 = vmatpush1.bf16.msra.mxu1 %v25045_v11  ;;  %v25072_v10 = vld [vmem:[%s26807_s3 + $0x1200] ss:$16 sps:$4 sm:$0xff]   ;;  %v25075_v11 = vld [vmem:[%s26807_s3 + $0x1208] ss:$16 sps:$4 sm:$0xff]  }
 0x6b5   : > { %7852 = vmatprep.subr.bf16.mxu0 %v25050_v12  ;;  %7958 = vmatprep.subr.bf16.mxu1 %v25053_v0 }
 0x6b8   : > { %7853 = vmatpush1.bf16.msra.mxu0 %v25048_v25  ;;  %7959 = vmatpush1.bf16.msra.mxu1 %v25051_v62  ;;  %v25080_v25 = vld [vmem:[%s26807_s3 + $0x1224] ss:$16 sps:$4 sm:$0xff]   ;;  %v25083_v62 = vld [vmem:[%s26807_s3 + $0x122c] ss:$16 sps:$4 sm:$0xff]  }
 0x6b9   : > { %7854 = vmatprep.subr.bf16.mxu0 %v25056_v48  ;;  %7960 = vmatprep.subr.bf16.mxu1 %v25059_v51  ;;  %v25078_v48 = vld [vmem:[%s26807_s3 + $0x1220] ss:$16 sps:$4 sm:$0xff]   ;;  %v25081_v51 = vld [vmem:[%s26807_s3 + $0x1228] ss:$16 sps:$4 sm:$0xff]  }
 0x6bc   : > { %7855 = vmatpush1.bf16.msra.mxu0 %v25054_v9  ;;  %7961 = vmatpush1.bf16.msra.mxu1 %v25057_v24  ;;  %v25086_v9 = vld [vmem:[%s26807_s3 + $0x1244] ss:$16 sps:$4 sm:$0xff]   ;;  %v25089_v24 = vld [vmem:[%s26807_s3 + $0x124c] ss:$16 sps:$4 sm:$0xff]  }
 0x6bd   : > { %7877 = vmatprep.subr.bf16.mxu0 %v25062_v17  ;;  %7983 = vmatprep.subr.bf16.mxu1 %v25065_v18  ;;  %v25084_v17 = vld [vmem:[%s26807_s3 + $0x1240] ss:$16 sps:$4 sm:$0xff]   ;;  %v25087_v18 = vld [vmem:[%s26807_s3 + $0x1248] ss:$16 sps:$4 sm:$0xff]  }
 0x751   : > { %v6969_v19 = vpop.f32.mrb[72].mxu0  ;;  %v7022_v52 = vpop.f32.mrb[72].mxu1 }
 0x752   : > { %v6971_v21 = vpop.f32.mrb[73].mxu0  ;;  %v7024_v22 = vpop.f32.mrb[73].mxu1 }
 0x753   : > { %v6973_v23 = vpop.f32.mrb[74].mxu0  ;;  %v7026_v13 = vpop.f32.mrb[74].mxu1 }
 0x754   : > { %v7041_v14 = vpack.c.bf16 %v6973_v23, %v6969_v19  ;;  %v6975_v26 = vpop.f32.mrb[75].mxu0  ;;  %v28044_v28 = vpack.c.bf16 %v7026_v13, %v7022_v52  ;;  %v7028_v30 = vpop.f32.mrb[75].mxu1  ;;  %v25092_v19 = vld [vmem:[%s26807_s3 + $0x1264] ss:$16 sps:$4 sm:$0xff]   ;;  %v25095_v52 = vld [vmem:[%s26807_s3 + $0x126c] ss:$16 sps:$4 sm:$0xff]  }
 0x755   : > { %v7042_v40 = vpack.c.bf16 %v6975_v26, %v6971_v21  ;;  %v7044_v44 = vpack.c.bf16 %v7028_v30, %v7024_v22  ;;  %v25090_v21 = vld [vmem:[%s26807_s3 + $0x1260] ss:$16 sps:$4 sm:$0xff]   ;;  %v25093_v22 = vld [vmem:[%s26807_s3 + $0x1268] ss:$16 sps:$4 sm:$0xff]   ;;  %v25098_v23 = vld [vmem:[%s26807_s3 + $0x1284] ss:$16 sps:$4 sm:$0xff]  }
 0x756   : > { %v25101_v13 = vld [vmem:[%s26807_s3 + $0x128c] ss:$16 sps:$4 sm:$0xff]   ;;  %v25099_v26 = vld [vmem:[%s26807_s3 + $0x1288] ss:$16 sps:$4 sm:$0xff]   ;;  %v25104_v30 = vld [vmem:[%s26807_s3 + $0x12a4] ss:$16 sps:$4 sm:$0xff]  }
 0x757   : > { %7856 = vmatprep.mubr.bf16.mxu0 %v7042_v40  ;;  %7962 = vmatprep.mubr.bf16.mxu1 %v7042_v40  ;;  %v25107_v40 = vld [vmem:[%s26807_s3 + $0x12ac] ss:$16 sps:$4 sm:$0xff]  }
 0x758   : > { %7857 = vmatmul.mubr.bf16.vlgmr.msra.gmra.mrb[48].mxu0 %v7041_v14  ;;  %7963 = vmatmul.mubr.bf16.vlgmr.msra.gmra.mrb[48].mxu1 %v7041_v14  ;;  %v25096_v14 = vld [vmem:[%s26807_s3 + $0x1280] ss:$16 sps:$4 sm:$0xff]  }
 0x759   : > { %7878 = vmatpush1.bf16.msra.mxu0 %v25060_v33  ;;  %7984 = vmatpush1.bf16.msra.mxu1 %v25063_v50  ;;  %v6979_v2 = vpop.f32.mrb[76].mxu0  ;;  %v7032_v59 = vpop.f32.mrb[76].mxu1  ;;  %v25102_v33 = vld [vmem:[%s26807_s3 + $0x12a0] ss:$16 sps:$4 sm:$0xff]   ;;  %v25105_v50 = vld [vmem:[%s26807_s3 + $0x12a8] ss:$16 sps:$4 sm:$0xff]  }
 0x75a   : > { %7879 = vmatprep.subr.bf16.mxu0 %v25068_v41  ;;  %7985 = vmatprep.subr.bf16.mxu1 %v25071_v61  ;;  %v6981_v16 = vpop.f32.mrb[77].mxu0  ;;  %v7034_v47 = vpop.f32.mrb[77].mxu1  ;;  %v25113_v41 = vld [vmem:[%s26807_s3 + $0x12cc] ss:$16 sps:$4 sm:$0xff]   ;;  %v25108_v61 = vld [vmem:[%s26807_s3 + $0x12c0] ss:$16 sps:$4 sm:$0xff]  }
 0x75b   : > { %v6983_v27 = vpop.f32.mrb[78].mxu0  ;;  %v7036_v7 = vpop.f32.mrb[78].mxu1 }
 0x75c   : > { %v7045_v55 = vpack.c.bf16 %v6983_v27, %v6979_v2  ;;  %v6985_v8 = vpop.f32.mrb[79].mxu0  ;;  %v28054_v49 = vpack.c.bf16 %v7036_v7, %v7032_v59  ;;  %v7038_v4 = vpop.f32.mrb[79].mxu1  ;;  %v25119_v2 = vld [vmem:[%s26807_s3 + $0x12ec] ss:$16 sps:$4 sm:$0xff]   ;;  %v25114_v59 = vld [vmem:[%s26807_s3 + $0x12e0] ss:$16 sps:$4 sm:$0xff]  }
 0x75d   : > { %7880 = vmatpush1.bf16.msra.mxu0 %v25066_v58  ;;  %7986 = vmatpush1.bf16.msra.mxu1 %v25069_v15  ;;  %v7046_v12 = vpack.c.bf16 %v6985_v8, %v6981_v16  ;;  %v28058_v0 = vpack.c.bf16 %v7038_v4, %v7034_v47  ;;  %v25111_v58 = vld [vmem:[%s26807_s3 + $0x12c8] ss:$16 sps:$4 sm:$0xff]   ;;  %v25116_v15 = vld [vmem:[%s26807_s3 + $0x12e4] ss:$16 sps:$4 sm:$0xff]   ;;  %v25125_v16 = vld [vmem:[%s26807_s3 + $0x130c] ss:$16 sps:$4 sm:$0xff]  }
 0x75e   : > { %7881 = vmatprep.subr.bf16.mxu0 %v25074_v3  ;;  %7987 = vmatprep.subr.bf16.mxu1 %v25077_v36  ;;  %v25117_v3 = vld [vmem:[%s26807_s3 + $0x12e8] ss:$16 sps:$4 sm:$0xff]   ;;  %v25122_v36 = vld [vmem:[%s26807_s3 + $0x1304] ss:$16 sps:$4 sm:$0xff]   ;;  %v25120_v47 = vld [vmem:[%s26807_s3 + $0x1300] ss:$16 sps:$4 sm:$0xff]  }
 0x75f   : > { %7866 = vmatprep.mubr.bf16.mxu0 %v7046_v12  ;;  %7972 = vmatprep.mubr.bf16.mxu1 %v7046_v12  ;;  %v25123_v27 = vld [vmem:[%s26807_s3 + $0x1308] ss:$16 sps:$4 sm:$0xff]   ;;  %v25128_v7 = vld [vmem:[%s26807_s3 + $0x1324] ss:$16 sps:$4 sm:$0xff]   ;;  %v25126_v8 = vld [vmem:[%s26807_s3 + $0x1320] ss:$16 sps:$4 sm:$0xff]  }
 0x760   : > { %7867 = vmatmul.mubr.bf16.gmra.mrb[52].mxu0 %v7045_v55  ;;  %7973 = vmatmul.mubr.bf16.gmra.mrb[52].mxu1 %v7045_v55  ;;  %v25131_v55 = vld [vmem:[%s26807_s3 + $0x132c] ss:$16 sps:$4 sm:$0xff]   ;;  %v25129_v4 = vld [vmem:[%s26807_s3 + $0x1328] ss:$16 sps:$4 sm:$0xff]   ;;  %v25132_v12 = vld [vmem:[%s26807_s3 + $0x1340] ss:$16 sps:$4 sm:$0xff]  }
 0x761   : > { %7882 = vmatpush1.bf16.msra.mxu0 %v25072_v10  ;;  %7988 = vmatpush1.bf16.msra.mxu1 %v25075_v11  ;;  %v25134_v10 = vld [vmem:[%s26807_s3 + $0x1344] ss:$16 sps:$4 sm:$0xff]   ;;  %v25137_v11 = vld [vmem:[%s26807_s3 + $0x134c] ss:$16 sps:$4 sm:$0xff]  }
 0x762   : > { %7883 = vmatprep.subr.bf16.mxu0 %v25080_v25  ;;  %7989 = vmatprep.subr.bf16.mxu1 %v25083_v62  ;;  %v25135_v25 = vld [vmem:[%s26807_s3 + $0x1348] ss:$16 sps:$4 sm:$0xff]   ;;  %v25140_v62 = vld [vmem:[%s26807_s3 + $0x1364] ss:$16 sps:$4 sm:$0xff]  }
 0x763   : > { %20987 = vmatprep.mubr.msk.bf16.mxu0 %vm3546_vm8, %v7044_v44  ;;  %20990 = vmatprep.mubr.msk.bf16.mxu1 %vm3546_vm8, %v7044_v44  ;;  %v25110_v44 = vld [vmem:[%s26807_s3 + $0x12c4] ss:$16 sps:$4 sm:$0xff]  }
 0x765   : > { %7884 = vmatpush1.bf16.msra.mxu0 %v25078_v48  ;;  %7990 = vmatpush1.bf16.msra.mxu1 %v25081_v51  ;;  %v25143_v48 = vld [vmem:[%s26807_s3 + $0x136c] ss:$16 sps:$4 sm:$0xff]   ;;  %v25138_v51 = vld [vmem:[%s26807_s3 + $0x1360] ss:$16 sps:$4 sm:$0xff]  }
 0x766   : > { %7885 = vmatprep.subr.bf16.mxu0 %v25086_v9  ;;  %7991 = vmatprep.subr.bf16.mxu1 %v25089_v24  ;;  %v25141_v9 = vld [vmem:[%s26807_s3 + $0x1368] ss:$16 sps:$4 sm:$0xff]   ;;  %v25146_v24 = vld [vmem:[%s26807_s3 + $0x1384] ss:$16 sps:$4 sm:$0xff]  }
 0x769   : > { %7886 = vmatpush1.bf16.msra.mxu0 %v25084_v17  ;;  %7992 = vmatpush1.bf16.msra.mxu1 %v25087_v18  ;;  %v25149_v17 = vld [vmem:[%s26807_s3 + $0x138c] ss:$16 sps:$4 sm:$0xff]   ;;  %v20856_v18 = vld [vmem:[%s26807_s3 + $0x13a0] sm:$0xff] }
 0x76a   : > { %7887 = vmatprep.subr.bf16.mxu0 %v25092_v19  ;;  %7993 = vmatprep.subr.bf16.mxu1 %v25095_v52  ;;  %v20857_v19 = vld [vmem:[%s26807_s3 + $0x13a8] sm:$0xff]  ;;  %v25144_v52 = vld [vmem:[%s26807_s3 + $0x1380] ss:$16 sps:$4 sm:$0xff]  }
 0x76d   : > { %7888 = vmatpush1.bf16.msra.mxu0 %v25090_v21  ;;  %7994 = vmatpush1.bf16.msra.mxu1 %v25093_v22  ;;  %v25147_v21 = vld [vmem:[%s26807_s3 + $0x1388] ss:$16 sps:$4 sm:$0xff]   ;;  %v20983_v22 = vcombine.high %v20856_v18, %v20856_v18 }
 0x76e   : > { %7889 = vmatprep.subr.bf16.mxu0 %v25098_v23  ;;  %7995 = vmatprep.subr.bf16.mxu1 %v25101_v13  ;;  %v20985_v23 = vcombine.high %v20857_v19, %v20857_v19  ;;  %v20982_v13 = vcombine.low %v20856_v18, %v20856_v18  ;;  %v25198_v18 = vld [vmem:[%s26807_s3 + $0x1490] ss:$16 sps:$4 sm:$0xff]  }
 0x771   : > { %7890 = vmatpush1.bf16.msra.mxu0 %v25096_v14  ;;  %7996 = vmatpush1.bf16.msra.mxu1 %v25099_v26  ;;  %v20984_v14 = vcombine.low %v20857_v19, %v20857_v19  ;;  %v7813_v26 = vsel %vm3553_vm9, %v20982_v13, 0  ;;  %v25201_v19 = vld [vmem:[%s26807_s3 + $0x1498] ss:$16 sps:$4 sm:$0xff]   ;;  %v25212_v13 = vld [vmem:[%s26807_s3 + $0x14d4] ss:$16 sps:$4 sm:$0xff]  }
 0x772   : > { %7891 = vmatprep.subr.bf16.mxu0 %v25104_v30  ;;  %7997 = vmatprep.subr.bf16.mxu1 %v25107_v40  ;;  %v25154_v40 = vld [vmem:[%s26802_s29 + $0x50] sm:$0xff]  }
 0x773   : > { %v7819_v30 = vsel %vm3553_vm9, %v20984_v14, 0  ;;  %v25215_v14 = vld [vmem:[%s26807_s3 + $0x14dc] ss:$16 sps:$4 sm:$0xff]  }
 0x775   : > { %7892 = vmatpush1.bf16.msra.mxu0 %v25102_v33  ;;  %7998 = vmatpush1.bf16.msra.mxu1 %v25105_v50  ;;  %v25159_v33 = vld [vmem:[%s26807_s3 + $0x13b8] ss:$16 sps:$4 sm:$0xff]   ;;  %v25164_v50 = vld [vmem:[%s26807_s3 + $0x13d4] ss:$16 sps:$4 sm:$0xff]  }
 0x776   : > { %7893 = vmatprep.subr.bf16.mxu0 %v25110_v44  ;;  %7999 = vmatprep.subr.bf16.mxu1 %v25113_v41  ;;  %v25167_v44 = vld [vmem:[%s26807_s3 + $0x13dc] ss:$16 sps:$4 sm:$0xff]   ;;  %v25162_v41 = vld [vmem:[%s26807_s3 + $0x13d0] ss:$16 sps:$4 sm:$0xff]  }
 0x779   : > { %7894 = vmatpush1.bf16.msra.mxu0 %v25108_v61  ;;  %8000 = vmatpush1.bf16.msra.mxu1 %v25111_v58  ;;  %v25165_v61 = vld [vmem:[%s26807_s3 + $0x13d8] ss:$16 sps:$4 sm:$0xff]   ;;  %v25170_v58 = vld [vmem:[%s26807_s3 + $0x13f4] ss:$16 sps:$4 sm:$0xff]  }
 0x77a   : > { %7895 = vmatprep.subr.bf16.mxu0 %v25116_v15  ;;  %8001 = vmatprep.subr.bf16.mxu1 %v25119_v2  ;;  %v25173_v15 = vld [vmem:[%s26807_s3 + $0x13fc] ss:$16 sps:$4 sm:$0xff]  }
 0x77b   : > { %v25155_v2 = vld [vmem:[%s26802_s29 + $0x58] sm:$0x7f]  }
 0x77d   : > { %7896 = vmatpush1.bf16.msra.mxu0 %v25114_v59  ;;  %8002 = vmatpush1.bf16.msra.mxu1 %v25117_v3  ;;  %v25168_v59 = vld [vmem:[%s26807_s3 + $0x13f0] ss:$16 sps:$4 sm:$0xff]   ;;  %v25171_v3 = vld [vmem:[%s26807_s3 + $0x13f8] ss:$16 sps:$4 sm:$0xff]  }
 0x77e   : > { %7897 = vmatprep.subr.bf16.mxu0 %v25122_v36  ;;  %8003 = vmatprep.subr.bf16.mxu1 %v25125_v16  ;;  %v25176_v36 = vld [vmem:[%s26807_s3 + $0x1414] ss:$16 sps:$4 sm:$0xff]   ;;  %v25179_v16 = vld [vmem:[%s26807_s3 + $0x141c] ss:$16 sps:$4 sm:$0xff]  }
 0x781   : > { %7898 = vmatpush1.bf16.msra.mxu0 %v25120_v47  ;;  %8004 = vmatpush1.bf16.msra.mxu1 %v25123_v27  ;;  %v25174_v47 = vld [vmem:[%s26807_s3 + $0x1410] ss:$16 sps:$4 sm:$0xff]   ;;  %v25177_v27 = vld [vmem:[%s26807_s3 + $0x1418] ss:$16 sps:$4 sm:$0xff]  }
 0x782   : > { %7899 = vmatprep.subr.bf16.mxu0 %v25128_v7  ;;  %8005 = vmatprep.subr.bf16.mxu1 %v25131_v55  ;;  %v25182_v7 = vld [vmem:[%s26807_s3 + $0x1434] ss:$16 sps:$4 sm:$0xff]   ;;  %v25185_v55 = vld [vmem:[%s26807_s3 + $0x143c] ss:$16 sps:$4 sm:$0xff]  }
 0x785   : > { %7900 = vmatpush1.bf16.msra.mxu0 %v25126_v8  ;;  %8006 = vmatpush1.bf16.msra.mxu1 %v25129_v4  ;;  %v25180_v8 = vld [vmem:[%s26807_s3 + $0x1430] ss:$16 sps:$4 sm:$0xff]   ;;  %v25183_v4 = vld [vmem:[%s26807_s3 + $0x1438] ss:$16 sps:$4 sm:$0xff]  }
 0x786   : > { %7901 = vmatprep.subr.bf16.mxu0 %v25134_v10  ;;  %8007 = vmatprep.subr.bf16.mxu1 %v25137_v11  ;;  %v25188_v10 = vld [vmem:[%s26807_s3 + $0x1454] ss:$16 sps:$4 sm:$0xff]   ;;  %v25191_v11 = vld [vmem:[%s26807_s3 + $0x145c] ss:$16 sps:$4 sm:$0xff]  }
 0x789   : > { %7902 = vmatpush1.bf16.msra.mxu0 %v25132_v12  ;;  %8008 = vmatpush1.bf16.msra.mxu1 %v25135_v25  ;;  %v25186_v12 = vld [vmem:[%s26807_s3 + $0x1450] ss:$16 sps:$4 sm:$0xff]   ;;  %v25189_v25 = vld [vmem:[%s26807_s3 + $0x1458] ss:$16 sps:$4 sm:$0xff]  }
 0x78a   : > { %7903 = vmatprep.subr.bf16.mxu0 %v25140_v62  ;;  %8009 = vmatprep.subr.bf16.mxu1 %v25143_v48  ;;  %v25194_v62 = vld [vmem:[%s26807_s3 + $0x1474] ss:$16 sps:$4 sm:$0xff]   ;;  %v25197_v48 = vld [vmem:[%s26807_s3 + $0x147c] ss:$16 sps:$4 sm:$0xff]  }
 0x78d   : > { %7904 = vmatpush1.bf16.msra.mxu0 %v25138_v51  ;;  %8010 = vmatpush1.bf16.msra.mxu1 %v25141_v9  ;;  %v25192_v51 = vld [vmem:[%s26807_s3 + $0x1470] ss:$16 sps:$4 sm:$0xff]   ;;  %v25195_v9 = vld [vmem:[%s26807_s3 + $0x1478] ss:$16 sps:$4 sm:$0xff]  }
 0x78e   : > { %7905 = vmatprep.subr.bf16.mxu0 %v25146_v24  ;;  %8011 = vmatprep.subr.bf16.mxu1 %v25149_v17  ;;  %v25200_v24 = vld [vmem:[%s26807_s3 + $0x1494] ss:$16 sps:$4 sm:$0xff]   ;;  %v25203_v17 = vld [vmem:[%s26807_s3 + $0x149c] ss:$16 sps:$4 sm:$0xff]  }
 0x791   : > { %7906 = vmatpush1.bf16.msra.mxu0 %v25144_v52  ;;  %8012 = vmatpush1.bf16.msra.mxu1 %v25147_v21  ;;  %v25206_v52 = vld [vmem:[%s26807_s3 + $0x14b4] ss:$16 sps:$4 sm:$0xff]   ;;  %v25209_v21 = vld [vmem:[%s26807_s3 + $0x14bc] ss:$16 sps:$4 sm:$0xff]  }
 0x792   : > { %20986 = vmatprep.subr.msk.bf16.mxu0 %vm3553_vm9, %v20983_v22  ;;  %20989 = vmatprep.subr.msk.bf16.mxu1 %vm3553_vm9, %v20985_v23  ;;  %v25204_v22 = vld [vmem:[%s26807_s3 + $0x14b0] ss:$16 sps:$4 sm:$0xff]   ;;  %v25207_v23 = vld [vmem:[%s26807_s3 + $0x14b8] ss:$16 sps:$4 sm:$0xff]  }
 0x795   : > { %7908 = vmatpush1.bf16.msra.mxu0 %v7813_v26  ;;  %8014 = vmatpush1.bf16.msra.mxu1 %v7819_v30  ;;  %v25210_v26 = vld [vmem:[%s26807_s3 + $0x14d0] ss:$16 sps:$4 sm:$0xff]   ;;  %v25213_v30 = vld [vmem:[%s26807_s3 + $0x14d8] ss:$16 sps:$4 sm:$0xff]  }
 0x796   : > { %8073 = vmatprep.subr.bf16.mxu0 %v27165_v54  ;;  %8126 = vmatprep.subr.bf16.mxu1 %v27167_v57 }
 0x798   : > { %7910 = vmatmul.mubr.bf16.vlgmr.msra.gmra.mrb[48].mxu0 %v28044_v28  ;;  %8016 = vmatmul.mubr.bf16.vlgmr.msra.gmra.mrb[48].mxu1 %v28044_v28  ;;  %v25158_v28 = vld [vmem:[%s26807_s3 + $0x13b4] ss:$16 sps:$4 sm:$0xff]  }
 0x799   : > { %8074 = vmatpush1.bf16.msra.mxu0 %v27161_v37  ;;  %8127 = vmatpush1.bf16.msra.mxu1 %v27163_v39 }
 0x79a   : > { %8075 = vmatprep.subr.bf16.mxu0 %v27198_v63  ;;  %8128 = vmatprep.subr.bf16.mxu1 %v27200_v5 }
 0x79b   : > { %20988 = vmatprep.mubr.msk.bf16.mxu0 %vm3546_vm8, %v28058_v0  ;;  %20991 = vmatprep.mubr.msk.bf16.mxu1 %vm3546_vm8, %v28058_v0  ;;  %v25161_v0 = vld [vmem:[%s26807_s3 + $0x13bc] ss:$16 sps:$4 sm:$0xff]  }
 0x79d   : > { %8076 = vmatpush1.bf16.msra.mxu0 %v27189_v34  ;;  %8129 = vmatpush1.bf16.msra.mxu1 %v27191_v35 }
 0x79e   : > { %8077 = vmatprep.subr.bf16.mxu0 %v27227_v60  ;;  %8130 = vmatprep.subr.bf16.mxu1 %v27232_v6 }
 0x7a0   : > { %7920 = vmatmul.mubr.bf16.gmra.mrb[52].mxu0 %v28054_v49  ;;  %8026 = vmatmul.mubr.bf16.gmra.mrb[52].mxu1 %v28054_v49  ;;  %v25156_v49 = vld [vmem:[%s26807_s3 + $0x13b0] ss:$16 sps:$4 sm:$0xff]  }
 0x7a1   : > { %8078 = vmatpush1.bf16.msra.mxu0 %v27217_v29  ;;  %8131 = vmatpush1.bf16.msra.mxu1 %v27225_v53 }
 0x7a2   : > { %8079 = vmatprep.subr.bf16.mxu0 %v27250_v56  ;;  %8132 = vmatprep.subr.bf16.mxu1 %v27255_v20 }
 0x7a3   : > { %8105 = vmatprep.mubr.bf16.mxu0 %v26760_v1  ;;  %8158 = vmatprep.mubr.bf16.mxu1 %v26760_v1 }
 0x7a5   : > { %8080 = vmatpush1.bf16.msra.mxu0 %v27253_v31  ;;  %8133 = vmatpush1.bf16.msra.mxu1 %v27257_v32 }
 0x7a6   : > { %8962 = vmatprep.subr.bf16.mxu0 %v25158_v28  ;;  %9068 = vmatprep.subr.bf16.mxu1 %v25161_v0  ;;  %v25218_v28 = vld [vmem:[%s26807_s3 + $0x14f4] ss:$16 sps:$4 sm:$0xff]   ;;  %v25221_v0 = vld [vmem:[%s26807_s3 + $0x14fc] ss:$16 sps:$4 sm:$0xff]  }
 0x7a8   : > { %20998 = vmatmul.mubr.msk.bf16.vlgmr.msra.gmra.mrb[80].mxu0 %vm2391_vm7, %v25154_v40  ;;  %21000 = vmatmul.mubr.msk.bf16.vlgmr.msra.gmra.mrb[80].mxu1 %vm2391_vm7, %v25154_v40  ;;  %v25216_v40 = vld [vmem:[%s26807_s3 + $0x14f0] ss:$16 sps:$4 sm:$0xff]  }
 0x7a9   : > { %8115 = vmatprep.mubr.bf16.mxu0 %v26760_v1  ;;  %8168 = vmatprep.mubr.bf16.mxu1 %v26760_v1 }
 0x7aa   : > { %8963 = vmatpush1.bf16.msra.mxu0 %v25156_v49  ;;  %9069 = vmatpush1.bf16.msra.mxu1 %v25159_v33  ;;  %v25219_v49 = vld [vmem:[%s26807_s3 + $0x14f8] ss:$16 sps:$4 sm:$0xff]   ;;  %v25224_v33 = vld [vmem:[%s26807_s3 + $0x1514] ss:$16 sps:$4 sm:$0xff]  }
 0x7ab   : > { %8964 = vmatprep.subr.bf16.mxu0 %v25164_v50  ;;  %9070 = vmatprep.subr.bf16.mxu1 %v25167_v44  ;;  %v25227_v50 = vld [vmem:[%s26807_s3 + $0x151c] ss:$16 sps:$4 sm:$0xff]   ;;  %v25222_v44 = vld [vmem:[%s26807_s3 + $0x1510] ss:$16 sps:$4 sm:$0xff]  }
 0x7ae   : > { %8965 = vmatpush1.bf16.msra.mxu0 %v25162_v41  ;;  %9071 = vmatpush1.bf16.msra.mxu1 %v25165_v61  ;;  %v25225_v41 = vld [vmem:[%s26807_s3 + $0x1518] ss:$16 sps:$4 sm:$0xff]   ;;  %v25230_v61 = vld [vmem:[%s26807_s3 + $0x1534] ss:$16 sps:$4 sm:$0xff]  }
 0x7af   : > { %8966 = vmatprep.subr.bf16.mxu0 %v25170_v58  ;;  %9072 = vmatprep.subr.bf16.mxu1 %v25173_v15  ;;  %v25233_v58 = vld [vmem:[%s26807_s3 + $0x153c] ss:$16 sps:$4 sm:$0xff]   ;;  %v25228_v15 = vld [vmem:[%s26807_s3 + $0x1530] ss:$16 sps:$4 sm:$0xff]  }
 0x7b0   : > { %20999 = vmatmul.mubr.msk.bf16.gmra.mrb[84].mxu0 %vm2391_vm7, %v25155_v2  ;;  %21001 = vmatmul.mubr.msk.bf16.gmra.mrb[84].mxu1 %vm2391_vm7, %v25155_v2  ;;  %v25231_v2 = vld [vmem:[%s26807_s3 + $0x1538] ss:$16 sps:$4 sm:$0xff]  }
 0x7b2   : > { %8967 = vmatpush1.bf16.msra.mxu0 %v25168_v59  ;;  %9073 = vmatpush1.bf16.msra.mxu1 %v25171_v3  ;;  %v25236_v59 = vld [vmem:[%s26807_s3 + $0x1554] ss:$16 sps:$4 sm:$0xff]   ;;  %v25239_v3 = vld [vmem:[%s26807_s3 + $0x155c] ss:$16 sps:$4 sm:$0xff]  }
 0x7b3   : > { %8968 = vmatprep.subr.bf16.mxu0 %v25176_v36  ;;  %9074 = vmatprep.subr.bf16.mxu1 %v25179_v16  ;;  %v25234_v36 = vld [vmem:[%s26807_s3 + $0x1550] ss:$16 sps:$4 sm:$0xff]   ;;  %v25237_v16 = vld [vmem:[%s26807_s3 + $0x1558] ss:$16 sps:$4 sm:$0xff]  }
 0x7b6   : > { %8969 = vmatpush1.bf16.msra.mxu0 %v25174_v47  ;;  %9075 = vmatpush1.bf16.msra.mxu1 %v25177_v27  ;;  %v25242_v47 = vld [vmem:[%s26807_s3 + $0x1574] ss:$16 sps:$4 sm:$0xff]   ;;  %v25245_v27 = vld [vmem:[%s26807_s3 + $0x157c] ss:$16 sps:$4 sm:$0xff]  }
 0x7b7   : > { %8970 = vmatprep.subr.bf16.mxu0 %v25182_v7  ;;  %9076 = vmatprep.subr.bf16.mxu1 %v25185_v55  ;;  %v25240_v7 = vld [vmem:[%s26807_s3 + $0x1570] ss:$16 sps:$4 sm:$0xff]   ;;  %v25243_v55 = vld [vmem:[%s26807_s3 + $0x1578] ss:$16 sps:$4 sm:$0xff]  }
 0x7ba   : > { %8971 = vmatpush1.bf16.msra.mxu0 %v25180_v8  ;;  %9077 = vmatpush1.bf16.msra.mxu1 %v25183_v4  ;;  %v25248_v8 = vld [vmem:[%s26807_s3 + $0x1594] ss:$16 sps:$4 sm:$0xff]   ;;  %v25251_v4 = vld [vmem:[%s26807_s3 + $0x159c] ss:$16 sps:$4 sm:$0xff]  }
 0x7bb   : > { %8972 = vmatprep.subr.bf16.mxu0 %v25188_v10  ;;  %9078 = vmatprep.subr.bf16.mxu1 %v25191_v11  ;;  %v25246_v10 = vld [vmem:[%s26807_s3 + $0x1590] ss:$16 sps:$4 sm:$0xff]   ;;  %v25249_v11 = vld [vmem:[%s26807_s3 + $0x1598] ss:$16 sps:$4 sm:$0xff]  }
 0x7be   : > { %8973 = vmatpush1.bf16.msra.mxu0 %v25186_v12  ;;  %9079 = vmatpush1.bf16.msra.mxu1 %v25189_v25  ;;  %v25254_v12 = vld [vmem:[%s26807_s3 + $0x15b4] ss:$16 sps:$4 sm:$0xff]   ;;  %v25257_v25 = vld [vmem:[%s26807_s3 + $0x15bc] ss:$16 sps:$4 sm:$0xff]  }
 0x7bf   : > { %8974 = vmatprep.subr.bf16.mxu0 %v25194_v62  ;;  %9080 = vmatprep.subr.bf16.mxu1 %v25197_v48 }
 0x7c2   : > { %8975 = vmatpush1.bf16.msra.mxu0 %v25192_v51  ;;  %9081 = vmatpush1.bf16.msra.mxu1 %v25195_v9 }
 0x7c3   : > { %8976 = vmatprep.subr.bf16.mxu0 %v25200_v24  ;;  %9082 = vmatprep.subr.bf16.mxu1 %v25203_v17 }
 0x7c6   : > { %8977 = vmatpush1.bf16.msra.mxu0 %v25198_v18  ;;  %9083 = vmatpush1.bf16.msra.mxu1 %v25201_v19 }
 0x7c7   : > { %8978 = vmatprep.subr.bf16.mxu0 %v25206_v52  ;;  %9084 = vmatprep.subr.bf16.mxu1 %v25209_v21 }
 0x7ca   : > { %8979 = vmatpush1.bf16.msra.mxu0 %v25204_v22  ;;  %9085 = vmatpush1.bf16.msra.mxu1 %v25207_v23  ;;  %v25252_v23 = vld [vmem:[%s26807_s3 + $0x15b0] ss:$16 sps:$4 sm:$0xff]  }
 0x7cb   : > { %8980 = vmatprep.subr.bf16.mxu0 %v25212_v13  ;;  %9086 = vmatprep.subr.bf16.mxu1 %v25215_v14  ;;  %v25255_v13 = vld [vmem:[%s26807_s3 + $0x15b8] ss:$16 sps:$4 sm:$0xff]  }
 0x7ce   : > { %8981 = vmatpush1.bf16.msra.mxu0 %v25210_v26  ;;  %9087 = vmatpush1.bf16.msra.mxu1 %v25213_v30  ;;  %v25260_v26 = vld [vmem:[%s26807_s3 + $0x15d4] ss:$16 sps:$4 sm:$0xff]   ;;  %v25263_v30 = vld [vmem:[%s26807_s3 + $0x15dc] ss:$16 sps:$4 sm:$0xff]  }
 0x7cf   : > { %8982 = vmatprep.subr.bf16.mxu0 %v25218_v28  ;;  %9088 = vmatprep.subr.bf16.mxu1 %v25221_v0  ;;  %v25258_v28 = vld [vmem:[%s26807_s3 + $0x15d0] ss:$16 sps:$4 sm:$0xff]   ;;  %v25261_v0 = vld [vmem:[%s26807_s3 + $0x15d8] ss:$16 sps:$4 sm:$0xff]  }
 0x7d2   : > { %8983 = vmatpush1.bf16.msra.mxu0 %v25216_v40  ;;  %9089 = vmatpush1.bf16.msra.mxu1 %v25219_v49 }
 0x7d3   : > { %8984 = vmatprep.subr.bf16.mxu0 %v25224_v33  ;;  %9090 = vmatprep.subr.bf16.mxu1 %v25227_v50  ;;  %v25266_v33 = vld [vmem:[%s26807_s3 + $0x15f4] ss:$16 sps:$4 sm:$0xff]   ;;  %v25269_v50 = vld [vmem:[%s26807_s3 + $0x15fc] ss:$16 sps:$4 sm:$0xff]  }
 0x7d6   : > { %8985 = vmatpush1.bf16.msra.mxu0 %v25222_v44  ;;  %9091 = vmatpush1.bf16.msra.mxu1 %v25225_v41 }
 0x7d7   : > { %8986 = vmatprep.subr.bf16.mxu0 %v25230_v61  ;;  %9092 = vmatprep.subr.bf16.mxu1 %v25233_v58 }
 0x7da   : > { %8987 = vmatpush1.bf16.msra.mxu0 %v25228_v15  ;;  %9093 = vmatpush1.bf16.msra.mxu1 %v25231_v2 }
 0x7db   : > { %8988 = vmatprep.subr.bf16.mxu0 %v25236_v59  ;;  %9094 = vmatprep.subr.bf16.mxu1 %v25239_v3 }
 0x7de   : > { %8989 = vmatpush1.bf16.msra.mxu0 %v25234_v36  ;;  %9095 = vmatpush1.bf16.msra.mxu1 %v25237_v16  ;;  %v25264_v36 = vld [vmem:[%s26807_s3 + $0x15f0] ss:$16 sps:$4 sm:$0xff]   ;;  %v25267_v16 = vld [vmem:[%s26807_s3 + $0x15f8] ss:$16 sps:$4 sm:$0xff]  }
 0x7df   : > { %8990 = vmatprep.subr.bf16.mxu0 %v25242_v47  ;;  %9096 = vmatprep.subr.bf16.mxu1 %v25245_v27 }
 0x7e2   : > { %8991 = vmatpush1.bf16.msra.mxu0 %v25240_v7  ;;  %9097 = vmatpush1.bf16.msra.mxu1 %v25243_v55  ;;  %v25272_v7 = vld [vmem:[%s26807_s3 + $0x1614] ss:$16 sps:$4 sm:$0xff]   ;;  %v25275_v55 = vld [vmem:[%s26807_s3 + $0x161c] ss:$16 sps:$4 sm:$0xff]  }
 0x7e3   : > { %8992 = vmatprep.subr.bf16.mxu0 %v25248_v8  ;;  %9098 = vmatprep.subr.bf16.mxu1 %v25251_v4  ;;  %v25270_v8 = vld [vmem:[%s26807_s3 + $0x1610] ss:$16 sps:$4 sm:$0xff]   ;;  %v25273_v4 = vld [vmem:[%s26807_s3 + $0x1618] ss:$16 sps:$4 sm:$0xff]  }
 0x7e6   : > { %8993 = vmatpush1.bf16.msra.mxu0 %v25246_v10  ;;  %9099 = vmatpush1.bf16.msra.mxu1 %v25249_v11  ;;  %v25278_v10 = vld [vmem:[%s26807_s3 + $0x1634] ss:$16 sps:$4 sm:$0xff]   ;;  %v25281_v11 = vld [vmem:[%s26807_s3 + $0x163c] ss:$16 sps:$4 sm:$0xff]  }
 0x7e7   : > { %9015 = vmatprep.subr.bf16.mxu0 %v25254_v12  ;;  %9121 = vmatprep.subr.bf16.mxu1 %v25257_v25  ;;  %v25276_v12 = vld [vmem:[%s26807_s3 + $0x1630] ss:$16 sps:$4 sm:$0xff]   ;;  %v25279_v25 = vld [vmem:[%s26807_s3 + $0x1638] ss:$16 sps:$4 sm:$0xff]  }
 0x87b   : > { %v8107_v62 = vpop.f32.mrb[80].mxu0  ;;  %v8160_v48 = vpop.f32.mrb[80].mxu1 }
 0x87c   : > { %v8109_v51 = vpop.f32.mrb[81].mxu0  ;;  %v8162_v9 = vpop.f32.mrb[81].mxu1 }
 0x87d   : > { %v8111_v24 = vpop.f32.mrb[82].mxu0  ;;  %v8164_v17 = vpop.f32.mrb[82].mxu1 }
 0x87e   : > { %v8179_v18 = vpack.c.bf16 %v8111_v24, %v8107_v62  ;;  %v8113_v19 = vpop.f32.mrb[83].mxu0  ;;  %v28216_v52 = vpack.c.bf16 %v8164_v17, %v8160_v48  ;;  %v8166_v21 = vpop.f32.mrb[83].mxu1  ;;  %v25284_v62 = vld [vmem:[%s26807_s3 + $0x1654] ss:$16 sps:$4 sm:$0xff]   ;;  %v25287_v48 = vld [vmem:[%s26807_s3 + $0x165c] ss:$16 sps:$4 sm:$0xff]  }
 0x87f   : > { %v8180_v22 = vpack.c.bf16 %v8113_v19, %v8109_v51  ;;  %v8182_v14 = vpack.c.bf16 %v8166_v21, %v8162_v9  ;;  %v25282_v51 = vld [vmem:[%s26807_s3 + $0x1650] ss:$16 sps:$4 sm:$0xff]   ;;  %v25285_v9 = vld [vmem:[%s26807_s3 + $0x1658] ss:$16 sps:$4 sm:$0xff]   ;;  %v25290_v24 = vld [vmem:[%s26807_s3 + $0x1674] ss:$16 sps:$4 sm:$0xff]  }
 0x880   : > { %v25293_v17 = vld [vmem:[%s26807_s3 + $0x167c] ss:$16 sps:$4 sm:$0xff]   ;;  %v25291_v19 = vld [vmem:[%s26807_s3 + $0x1678] ss:$16 sps:$4 sm:$0xff]   ;;  %v25296_v21 = vld [vmem:[%s26807_s3 + $0x1694] ss:$16 sps:$4 sm:$0xff]  }
 0x881   : > { %8994 = vmatprep.mubr.bf16.mxu0 %v8180_v22  ;;  %9100 = vmatprep.mubr.bf16.mxu1 %v8180_v22  ;;  %v25299_v22 = vld [vmem:[%s26807_s3 + $0x169c] ss:$16 sps:$4 sm:$0xff]  }
 0x882   : > { %8995 = vmatmul.mubr.bf16.vlgmr.msra.gmra.mrb[48].mxu0 %v8179_v18  ;;  %9101 = vmatmul.mubr.bf16.vlgmr.msra.gmra.mrb[48].mxu1 %v8179_v18  ;;  %v25288_v18 = vld [vmem:[%s26807_s3 + $0x1670] ss:$16 sps:$4 sm:$0xff]  }
 0x883   : > { %9016 = vmatpush1.bf16.msra.mxu0 %v25252_v23  ;;  %9122 = vmatpush1.bf16.msra.mxu1 %v25255_v13  ;;  %v8117_v40 = vpop.f32.mrb[84].mxu0  ;;  %v8170_v49 = vpop.f32.mrb[84].mxu1  ;;  %v25294_v23 = vld [vmem:[%s26807_s3 + $0x1690] ss:$16 sps:$4 sm:$0xff]   ;;  %v25297_v13 = vld [vmem:[%s26807_s3 + $0x1698] ss:$16 sps:$4 sm:$0xff]  }
 0x884   : > { %9017 = vmatprep.subr.bf16.mxu0 %v25260_v26  ;;  %9123 = vmatprep.subr.bf16.mxu1 %v25263_v30  ;;  %v8119_v44 = vpop.f32.mrb[85].mxu0  ;;  %v8172_v41 = vpop.f32.mrb[85].mxu1  ;;  %v25305_v26 = vld [vmem:[%s26807_s3 + $0x16bc] ss:$16 sps:$4 sm:$0xff]   ;;  %v25300_v30 = vld [vmem:[%s26807_s3 + $0x16b0] ss:$16 sps:$4 sm:$0xff]  }
 0x885   : > { %v8121_v61 = vpop.f32.mrb[86].mxu0  ;;  %v8174_v58 = vpop.f32.mrb[86].mxu1 }
 0x886   : > { %v8183_v15 = vpack.c.bf16 %v8121_v61, %v8117_v40  ;;  %v8123_v2 = vpop.f32.mrb[87].mxu0  ;;  %v28226_v59 = vpack.c.bf16 %v8174_v58, %v8170_v49  ;;  %v8176_v3 = vpop.f32.mrb[87].mxu1  ;;  %v25311_v40 = vld [vmem:[%s26807_s3 + $0x16dc] ss:$16 sps:$4 sm:$0xff]   ;;  %v25306_v49 = vld [vmem:[%s26807_s3 + $0x16d0] ss:$16 sps:$4 sm:$0xff]  }
 0x887   : > { %9018 = vmatpush1.bf16.msra.mxu0 %v25258_v28  ;;  %9124 = vmatpush1.bf16.msra.mxu1 %v25261_v0  ;;  %v8184_v47 = vpack.c.bf16 %v8123_v2, %v8119_v44  ;;  %v28230_v27 = vpack.c.bf16 %v8176_v3, %v8172_v41  ;;  %v25303_v28 = vld [vmem:[%s26807_s3 + $0x16b8] ss:$16 sps:$4 sm:$0xff]   ;;  %v25308_v0 = vld [vmem:[%s26807_s3 + $0x16d4] ss:$16 sps:$4 sm:$0xff]   ;;  %v25317_v44 = vld [vmem:[%s26807_s3 + $0x16fc] ss:$16 sps:$4 sm:$0xff]  }
 0x888   : > { %9019 = vmatprep.subr.bf16.mxu0 %v25266_v33  ;;  %9125 = vmatprep.subr.bf16.mxu1 %v25269_v50  ;;  %v25309_v33 = vld [vmem:[%s26807_s3 + $0x16d8] ss:$16 sps:$4 sm:$0xff]   ;;  %v25314_v50 = vld [vmem:[%s26807_s3 + $0x16f4] ss:$16 sps:$4 sm:$0xff]   ;;  %v25312_v41 = vld [vmem:[%s26807_s3 + $0x16f0] ss:$16 sps:$4 sm:$0xff]  }
 0x889   : > { %9004 = vmatprep.mubr.bf16.mxu0 %v8184_v47  ;;  %9110 = vmatprep.mubr.bf16.mxu1 %v8184_v47  ;;  %v25315_v61 = vld [vmem:[%s26807_s3 + $0x16f8] ss:$16 sps:$4 sm:$0xff]   ;;  %v25320_v58 = vld [vmem:[%s26807_s3 + $0x1714] ss:$16 sps:$4 sm:$0xff]   ;;  %v25318_v2 = vld [vmem:[%s26807_s3 + $0x1710] ss:$16 sps:$4 sm:$0xff]  }
 0x88a   : > { %9005 = vmatmul.mubr.bf16.gmra.mrb[52].mxu0 %v8183_v15  ;;  %9111 = vmatmul.mubr.bf16.gmra.mrb[52].mxu1 %v8183_v15  ;;  %v25323_v15 = vld [vmem:[%s26807_s3 + $0x171c] ss:$16 sps:$4 sm:$0xff]   ;;  %v25321_v3 = vld [vmem:[%s26807_s3 + $0x1718] ss:$16 sps:$4 sm:$0xff]   ;;  %v25324_v47 = vld [vmem:[%s26807_s3 + $0x1730] ss:$16 sps:$4 sm:$0xff]  }
 0x88b   : > { %9020 = vmatpush1.bf16.msra.mxu0 %v25264_v36  ;;  %9126 = vmatpush1.bf16.msra.mxu1 %v25267_v16  ;;  %v25326_v36 = vld [vmem:[%s26807_s3 + $0x1734] ss:$16 sps:$4 sm:$0xff]   ;;  %v25329_v16 = vld [vmem:[%s26807_s3 + $0x173c] ss:$16 sps:$4 sm:$0xff]  }
 0x88c   : > { %9021 = vmatprep.subr.bf16.mxu0 %v25272_v7  ;;  %9127 = vmatprep.subr.bf16.mxu1 %v25275_v55  ;;  %v25327_v7 = vld [vmem:[%s26807_s3 + $0x1738] ss:$16 sps:$4 sm:$0xff]   ;;  %v25332_v55 = vld [vmem:[%s26807_s3 + $0x1754] ss:$16 sps:$4 sm:$0xff]  }
 0x88d   : > { %21257 = vmatprep.mubr.msk.bf16.mxu0 %vm3546_vm8, %v8182_v14  ;;  %21260 = vmatprep.mubr.msk.bf16.mxu1 %vm3546_vm8, %v8182_v14  ;;  %v25302_v14 = vld [vmem:[%s26807_s3 + $0x16b4] ss:$16 sps:$4 sm:$0xff]  }
 0x88f   : > { %9022 = vmatpush1.bf16.msra.mxu0 %v25270_v8  ;;  %9128 = vmatpush1.bf16.msra.mxu1 %v25273_v4  ;;  %v25335_v8 = vld [vmem:[%s26807_s3 + $0x175c] ss:$16 sps:$4 sm:$0xff]   ;;  %v25330_v4 = vld [vmem:[%s26807_s3 + $0x1750] ss:$16 sps:$4 sm:$0xff]  }
 0x890   : > { %9023 = vmatprep.subr.bf16.mxu0 %v25278_v10  ;;  %9129 = vmatprep.subr.bf16.mxu1 %v25281_v11  ;;  %v25333_v10 = vld [vmem:[%s26807_s3 + $0x1758] ss:$16 sps:$4 sm:$0xff]   ;;  %v25338_v11 = vld [vmem:[%s26807_s3 + $0x1774] ss:$16 sps:$4 sm:$0xff]  }
 0x893   : > { %9024 = vmatpush1.bf16.msra.mxu0 %v25276_v12  ;;  %9130 = vmatpush1.bf16.msra.mxu1 %v25279_v25  ;;  %v25341_v12 = vld [vmem:[%s26807_s3 + $0x177c] ss:$16 sps:$4 sm:$0xff]   ;;  %v21126_v25 = vld [vmem:[%s26807_s3 + $0x1790] sm:$0xff] }
 0x894   : > { %9025 = vmatprep.subr.bf16.mxu0 %v25284_v62  ;;  %9131 = vmatprep.subr.bf16.mxu1 %v25287_v48  ;;  %v21127_v62 = vld [vmem:[%s26807_s3 + $0x1798] sm:$0xff]  ;;  %v25336_v48 = vld [vmem:[%s26807_s3 + $0x1770] ss:$16 sps:$4 sm:$0xff]  }
 0x897   : > { %9026 = vmatpush1.bf16.msra.mxu0 %v25282_v51  ;;  %9132 = vmatpush1.bf16.msra.mxu1 %v25285_v9  ;;  %v25339_v51 = vld [vmem:[%s26807_s3 + $0x1778] ss:$16 sps:$4 sm:$0xff]   ;;  %v21253_v9 = vcombine.high %v21126_v25, %v21126_v25 }
 0x898   : > { %9027 = vmatprep.subr.bf16.mxu0 %v25290_v24  ;;  %9133 = vmatprep.subr.bf16.mxu1 %v25293_v17  ;;  %v21255_v24 = vcombine.high %v21127_v62, %v21127_v62  ;;  %v21252_v17 = vcombine.low %v21126_v25, %v21126_v25  ;;  %v25414_v25 = vld [vmem:[%s26807_s3 + $0x1900] ss:$16 sps:$4 sm:$0xff]  }
 0x89b   : > { %9028 = vmatpush1.bf16.msra.mxu0 %v25288_v18  ;;  %9134 = vmatpush1.bf16.msra.mxu1 %v25291_v19  ;;  %v21254_v18 = vcombine.low %v21127_v62, %v21127_v62  ;;  %v8951_v19 = vsel %vm3553_vm9, %v21252_v17, 0  ;;  %v25417_v62 = vld [vmem:[%s26807_s3 + $0x1908] ss:$16 sps:$4 sm:$0xff]   ;;  %v25428_v17 = vld [vmem:[%s26807_s3 + $0x1944] ss:$16 sps:$4 sm:$0xff]  }
 0x89c   : > { %9029 = vmatprep.subr.bf16.mxu0 %v25296_v21  ;;  %9135 = vmatprep.subr.bf16.mxu1 %v25299_v22  ;;  %v25377_v22 = vld [vmem:[%s26807_s3 + $0x182c] ss:$16 sps:$4 sm:$0xff]  }
 0x89d   : > { %v8957_v21 = vsel %vm3553_vm9, %v21254_v18, 0  ;;  %v25431_v18 = vld [vmem:[%s26807_s3 + $0x194c] ss:$16 sps:$4 sm:$0xff]  }
 0x89f   : > { %9030 = vmatpush1.bf16.msra.mxu0 %v25294_v23  ;;  %9136 = vmatpush1.bf16.msra.mxu1 %v25297_v13  ;;  %v25372_v23 = vld [vmem:[%s26807_s3 + $0x1820] ss:$16 sps:$4 sm:$0xff]   ;;  %v25375_v13 = vld [vmem:[%s26807_s3 + $0x1828] ss:$16 sps:$4 sm:$0xff]  }
 0x8a0   : > { %9031 = vmatprep.subr.bf16.mxu0 %v25302_v14  ;;  %9137 = vmatprep.subr.bf16.mxu1 %v25305_v26  ;;  %v25380_v14 = vld [vmem:[%s26807_s3 + $0x1844] ss:$16 sps:$4 sm:$0xff]   ;;  %v25383_v26 = vld [vmem:[%s26807_s3 + $0x184c] ss:$16 sps:$4 sm:$0xff]  }
 0x8a3   : > { %9032 = vmatpush1.bf16.msra.mxu0 %v25300_v30  ;;  %9138 = vmatpush1.bf16.msra.mxu1 %v25303_v28  ;;  %v25378_v30 = vld [vmem:[%s26807_s3 + $0x1840] ss:$16 sps:$4 sm:$0xff]   ;;  %v25381_v28 = vld [vmem:[%s26807_s3 + $0x1848] ss:$16 sps:$4 sm:$0xff]  }
 0x8a4   : > { %9033 = vmatprep.subr.bf16.mxu0 %v25308_v0  ;;  %9139 = vmatprep.subr.bf16.mxu1 %v25311_v40  ;;  %v25386_v0 = vld [vmem:[%s26807_s3 + $0x1864] ss:$16 sps:$4 sm:$0xff]   ;;  %v25389_v40 = vld [vmem:[%s26807_s3 + $0x186c] ss:$16 sps:$4 sm:$0xff]  }
 0x8a7   : > { %9034 = vmatpush1.bf16.msra.mxu0 %v25306_v49  ;;  %9140 = vmatpush1.bf16.msra.mxu1 %v25309_v33  ;;  %v25384_v49 = vld [vmem:[%s26807_s3 + $0x1860] ss:$16 sps:$4 sm:$0xff]   ;;  %v25387_v33 = vld [vmem:[%s26807_s3 + $0x1868] ss:$16 sps:$4 sm:$0xff]  }
 0x8a8   : > { %9035 = vmatprep.subr.bf16.mxu0 %v25314_v50  ;;  %9141 = vmatprep.subr.bf16.mxu1 %v25317_v44  ;;  %v25392_v50 = vld [vmem:[%s26807_s3 + $0x1884] ss:$16 sps:$4 sm:$0xff]   ;;  %v25395_v44 = vld [vmem:[%s26807_s3 + $0x188c] ss:$16 sps:$4 sm:$0xff]  }
 0x8ab   : > { %9036 = vmatpush1.bf16.msra.mxu0 %v25312_v41  ;;  %9142 = vmatpush1.bf16.msra.mxu1 %v25315_v61  ;;  %v25390_v41 = vld [vmem:[%s26807_s3 + $0x1880] ss:$16 sps:$4 sm:$0xff]   ;;  %v25393_v61 = vld [vmem:[%s26807_s3 + $0x1888] ss:$16 sps:$4 sm:$0xff]  }
 0x8ac   : > { %9037 = vmatprep.subr.bf16.mxu0 %v25320_v58  ;;  %9143 = vmatprep.subr.bf16.mxu1 %v25323_v15  ;;  %v25398_v58 = vld [vmem:[%s26807_s3 + $0x18a4] ss:$16 sps:$4 sm:$0xff]   ;;  %v25401_v15 = vld [vmem:[%s26807_s3 + $0x18ac] ss:$16 sps:$4 sm:$0xff]  }
 0x8af   : > { %9038 = vmatpush1.bf16.msra.mxu0 %v25318_v2  ;;  %9144 = vmatpush1.bf16.msra.mxu1 %v25321_v3  ;;  %v25396_v2 = vld [vmem:[%s26807_s3 + $0x18a0] ss:$16 sps:$4 sm:$0xff]   ;;  %v25399_v3 = vld [vmem:[%s26807_s3 + $0x18a8] ss:$16 sps:$4 sm:$0xff]  }
 0x8b0   : > { %9039 = vmatprep.subr.bf16.mxu0 %v25326_v36  ;;  %9145 = vmatprep.subr.bf16.mxu1 %v25329_v16  ;;  %v25404_v36 = vld [vmem:[%s26807_s3 + $0x18c4] ss:$16 sps:$4 sm:$0xff]   ;;  %v25407_v16 = vld [vmem:[%s26807_s3 + $0x18cc] ss:$16 sps:$4 sm:$0xff]  }
 0x8b3   : > { %9040 = vmatpush1.bf16.msra.mxu0 %v25324_v47  ;;  %9146 = vmatpush1.bf16.msra.mxu1 %v25327_v7  ;;  %v25402_v47 = vld [vmem:[%s26807_s3 + $0x18c0] ss:$16 sps:$4 sm:$0xff]   ;;  %v25405_v7 = vld [vmem:[%s26807_s3 + $0x18c8] ss:$16 sps:$4 sm:$0xff]  }
 0x8b4   : > { %9041 = vmatprep.subr.bf16.mxu0 %v25332_v55  ;;  %9147 = vmatprep.subr.bf16.mxu1 %v25335_v8  ;;  %v25410_v55 = vld [vmem:[%s26807_s3 + $0x18e4] ss:$16 sps:$4 sm:$0xff]   ;;  %v25413_v8 = vld [vmem:[%s26807_s3 + $0x18ec] ss:$16 sps:$4 sm:$0xff]  }
 0x8b7   : > { %9042 = vmatpush1.bf16.msra.mxu0 %v25330_v4  ;;  %9148 = vmatpush1.bf16.msra.mxu1 %v25333_v10  ;;  %v25408_v4 = vld [vmem:[%s26807_s3 + $0x18e0] ss:$16 sps:$4 sm:$0xff]   ;;  %v25411_v10 = vld [vmem:[%s26807_s3 + $0x18e8] ss:$16 sps:$4 sm:$0xff]  }
 0x8b8   : > { %9043 = vmatprep.subr.bf16.mxu0 %v25338_v11  ;;  %9149 = vmatprep.subr.bf16.mxu1 %v25341_v12  ;;  %v25416_v11 = vld [vmem:[%s26807_s3 + $0x1904] ss:$16 sps:$4 sm:$0xff]   ;;  %v25419_v12 = vld [vmem:[%s26807_s3 + $0x190c] ss:$16 sps:$4 sm:$0xff]  }
 0x8bb   : > { %9044 = vmatpush1.bf16.msra.mxu0 %v25336_v48  ;;  %9150 = vmatpush1.bf16.msra.mxu1 %v25339_v51  ;;  %v25422_v48 = vld [vmem:[%s26807_s3 + $0x1924] ss:$16 sps:$4 sm:$0xff]   ;;  %v25425_v51 = vld [vmem:[%s26807_s3 + $0x192c] ss:$16 sps:$4 sm:$0xff]  }
 0x8bc   : > { %21256 = vmatprep.subr.msk.bf16.mxu0 %vm3553_vm9, %v21253_v9  ;;  %21259 = vmatprep.subr.msk.bf16.mxu1 %vm3553_vm9, %v21255_v24  ;;  %v25420_v9 = vld [vmem:[%s26807_s3 + $0x1920] ss:$16 sps:$4 sm:$0xff]   ;;  %v25423_v24 = vld [vmem:[%s26807_s3 + $0x1928] ss:$16 sps:$4 sm:$0xff]  }
 0x8bf   : > { %9046 = vmatpush1.bf16.msra.mxu0 %v8951_v19  ;;  %9152 = vmatpush1.bf16.msra.mxu1 %v8957_v21  ;;  %v25426_v19 = vld [vmem:[%s26807_s3 + $0x1940] ss:$16 sps:$4 sm:$0xff]   ;;  %v25429_v21 = vld [vmem:[%s26807_s3 + $0x1948] ss:$16 sps:$4 sm:$0xff]  }
 0x8c0   : > { %9211 = vmatprep.subr.bf16.mxu0 %v27165_v54  ;;  %9264 = vmatprep.subr.bf16.mxu1 %v27167_v57  ;;  %v25346_v54 = vld [vmem:[%s26802_s29 + $0x60] sm:$0xff]  }
 0x8c1   : > { %v25348_v57 = vld [vmem:[%s26807_s3 + $0x17a0] ss:$16 sps:$4 sm:$0xff]  }
 0x8c2   : > { %9048 = vmatmul.mubr.bf16.vlgmr.msra.gmra.mrb[48].mxu0 %v28216_v52  ;;  %9154 = vmatmul.mubr.bf16.vlgmr.msra.gmra.mrb[48].mxu1 %v28216_v52  ;;  %v25366_v52 = vld [vmem:[%s26807_s3 + $0x1800] ss:$16 sps:$4 sm:$0xff]  }
 0x8c3   : > { %9212 = vmatpush1.bf16.msra.mxu0 %v27161_v37  ;;  %9265 = vmatpush1.bf16.msra.mxu1 %v27163_v39  ;;  %v25350_v37 = vld [vmem:[%s26807_s3 + $0x17a4] ss:$16 sps:$4 sm:$0xff]   ;;  %v25353_v39 = vld [vmem:[%s26807_s3 + $0x17ac] ss:$16 sps:$4 sm:$0xff]  }
 0x8c4   : > { %9213 = vmatprep.subr.bf16.mxu0 %v27198_v63  ;;  %9266 = vmatprep.subr.bf16.mxu1 %v27200_v5  ;;  %v25359_v63 = vld [vmem:[%s26807_s3 + $0x17cc] ss:$16 sps:$4 sm:$0xff]   ;;  %v25354_v5 = vld [vmem:[%s26807_s3 + $0x17c0] ss:$16 sps:$4 sm:$0xff]  }
 0x8c5   : > { %21258 = vmatprep.mubr.msk.bf16.mxu0 %vm3546_vm8, %v28230_v27  ;;  %21261 = vmatprep.mubr.msk.bf16.mxu1 %vm3546_vm8, %v28230_v27  ;;  %v25374_v27 = vld [vmem:[%s26807_s3 + $0x1824] ss:$16 sps:$4 sm:$0xff]  }
 0x8c7   : > { %9214 = vmatpush1.bf16.msra.mxu0 %v27189_v34  ;;  %9267 = vmatpush1.bf16.msra.mxu1 %v27191_v35  ;;  %v25351_v34 = vld [vmem:[%s26807_s3 + $0x17a8] ss:$16 sps:$4 sm:$0xff]   ;;  %v25356_v35 = vld [vmem:[%s26807_s3 + $0x17c4] ss:$16 sps:$4 sm:$0xff]  }
 0x8c8   : > { %9215 = vmatprep.subr.bf16.mxu0 %v27227_v60  ;;  %9268 = vmatprep.subr.bf16.mxu1 %v27232_v6  ;;  %v25365_v60 = vld [vmem:[%s26807_s3 + $0x17ec] ss:$16 sps:$4 sm:$0xff]  }
 0x8c9   : > { %v25347_v6 = vld [vmem:[%s26802_s29 + $0x68] sm:$0x7f]  }
 0x8ca   : > { %9058 = vmatmul.mubr.bf16.gmra.mrb[52].mxu0 %v28226_v59  ;;  %9164 = vmatmul.mubr.bf16.gmra.mrb[52].mxu1 %v28226_v59  ;;  %v25369_v59 = vld [vmem:[%s26807_s3 + $0x1808] ss:$16 sps:$4 sm:$0xff]  }
 0x8cb   : > { %9216 = vmatpush1.bf16.msra.mxu0 %v27217_v29  ;;  %9269 = vmatpush1.bf16.msra.mxu1 %v27225_v53  ;;  %v25357_v29 = vld [vmem:[%s26807_s3 + $0x17c8] ss:$16 sps:$4 sm:$0xff]   ;;  %v25362_v53 = vld [vmem:[%s26807_s3 + $0x17e4] ss:$16 sps:$4 sm:$0xff]  }
 0x8cc   : > { %9217 = vmatprep.subr.bf16.mxu0 %v27250_v56  ;;  %9270 = vmatprep.subr.bf16.mxu1 %v27255_v20  ;;  %v25360_v56 = vld [vmem:[%s26807_s3 + $0x17e0] ss:$16 sps:$4 sm:$0xff]   ;;  %v25368_v20 = vld [vmem:[%s26807_s3 + $0x1804] ss:$16 sps:$4 sm:$0xff]  }
 0x8cd   : > { %9243 = vmatprep.mubr.bf16.mxu0 %v26760_v1  ;;  %9296 = vmatprep.mubr.bf16.mxu1 %v26760_v1 }
 0x8cf   : > { %9218 = vmatpush1.bf16.msra.mxu0 %v27253_v31  ;;  %9271 = vmatpush1.bf16.msra.mxu1 %v27257_v32  ;;  %v25363_v31 = vld [vmem:[%s26807_s3 + $0x17e8] ss:$16 sps:$4 sm:$0xff]   ;;  %v25371_v32 = vld [vmem:[%s26807_s3 + $0x180c] ss:$16 sps:$4 sm:$0xff]  }
 0x8d0   : > { %10100 = vmatprep.subr.bf16.mxu0 %v25350_v37  ;;  %10206 = vmatprep.subr.bf16.mxu1 %v25353_v39  ;;  %v25434_v37 = vld [vmem:[%s26807_s3 + $0x1964] ss:$16 sps:$4 sm:$0xff]   ;;  %v25437_v39 = vld [vmem:[%s26807_s3 + $0x196c] ss:$16 sps:$4 sm:$0xff]  }
 0x8d2   : > { %21268 = vmatmul.mubr.msk.bf16.vlgmr.msra.gmra.mrb[88].mxu0 %vm2391_vm7, %v25346_v54  ;;  %21270 = vmatmul.mubr.msk.bf16.vlgmr.msra.gmra.mrb[88].mxu1 %vm2391_vm7, %v25346_v54  ;;  %v25432_v54 = vld [vmem:[%s26807_s3 + $0x1960] ss:$16 sps:$4 sm:$0xff]  }
 0x8d3   : > { %9253 = vmatprep.mubr.bf16.mxu0 %v26760_v1  ;;  %9306 = vmatprep.mubr.bf16.mxu1 %v26760_v1 }
 0x8d4   : > { %10101 = vmatpush1.bf16.msra.mxu0 %v25348_v57  ;;  %10207 = vmatpush1.bf16.msra.mxu1 %v25351_v34  ;;  %v25435_v57 = vld [vmem:[%s26807_s3 + $0x1968] ss:$16 sps:$4 sm:$0xff]   ;;  %v25440_v34 = vld [vmem:[%s26807_s3 + $0x1984] ss:$16 sps:$4 sm:$0xff]  }
 0x8d5   : > { %10102 = vmatprep.subr.bf16.mxu0 %v25356_v35  ;;  %10208 = vmatprep.subr.bf16.mxu1 %v25359_v63  ;;  %v25443_v35 = vld [vmem:[%s26807_s3 + $0x198c] ss:$16 sps:$4 sm:$0xff]   ;;  %v25438_v63 = vld [vmem:[%s26807_s3 + $0x1980] ss:$16 sps:$4 sm:$0xff]  }
 0x8d8   : > { %10103 = vmatpush1.bf16.msra.mxu0 %v25354_v5  ;;  %10209 = vmatpush1.bf16.msra.mxu1 %v25357_v29  ;;  %v25441_v5 = vld [vmem:[%s26807_s3 + $0x1988] ss:$16 sps:$4 sm:$0xff]   ;;  %v25446_v29 = vld [vmem:[%s26807_s3 + $0x19a4] ss:$16 sps:$4 sm:$0xff]  }
 0x8d9   : > { %10104 = vmatprep.subr.bf16.mxu0 %v25362_v53  ;;  %10210 = vmatprep.subr.bf16.mxu1 %v25365_v60  ;;  %v25449_v53 = vld [vmem:[%s26807_s3 + $0x19ac] ss:$16 sps:$4 sm:$0xff]  }
 0x8da   : > { %21269 = vmatmul.mubr.msk.bf16.gmra.mrb[92].mxu0 %vm2391_vm7, %v25347_v6  ;;  %21271 = vmatmul.mubr.msk.bf16.gmra.mrb[92].mxu1 %vm2391_vm7, %v25347_v6 }
 0x8dc   : > { %10105 = vmatpush1.bf16.msra.mxu0 %v25360_v56  ;;  %10211 = vmatpush1.bf16.msra.mxu1 %v25363_v31 }
 0x8dd   : > { %10106 = vmatprep.subr.bf16.mxu0 %v25368_v20  ;;  %10212 = vmatprep.subr.bf16.mxu1 %v25371_v32 }
 0x8e0   : > { %10107 = vmatpush1.bf16.msra.mxu0 %v25366_v52  ;;  %10213 = vmatpush1.bf16.msra.mxu1 %v25369_v59 }
 0x8e1   : > { %10108 = vmatprep.subr.bf16.mxu0 %v25374_v27  ;;  %10214 = vmatprep.subr.bf16.mxu1 %v25377_v22 }
 0x8e4   : > { %10109 = vmatpush1.bf16.msra.mxu0 %v25372_v23  ;;  %10215 = vmatpush1.bf16.msra.mxu1 %v25375_v13  ;;  %v25444_v13 = vld [vmem:[%s26807_s3 + $0x19a0] ss:$16 sps:$4 sm:$0xff]  }
 0x8e5   : > { %10110 = vmatprep.subr.bf16.mxu0 %v25380_v14  ;;  %10216 = vmatprep.subr.bf16.mxu1 %v25383_v26  ;;  %v25447_v14 = vld [vmem:[%s26807_s3 + $0x19a8] ss:$16 sps:$4 sm:$0xff]  }
 0x8e8   : > { %10111 = vmatpush1.bf16.msra.mxu0 %v25378_v30  ;;  %10217 = vmatpush1.bf16.msra.mxu1 %v25381_v28  ;;  %v25452_v30 = vld [vmem:[%s26807_s3 + $0x19c4] ss:$16 sps:$4 sm:$0xff]   ;;  %v25455_v28 = vld [vmem:[%s26807_s3 + $0x19cc] ss:$16 sps:$4 sm:$0xff]  }
 0x8e9   : > { %10112 = vmatprep.subr.bf16.mxu0 %v25386_v0  ;;  %10218 = vmatprep.subr.bf16.mxu1 %v25389_v40  ;;  %v25450_v0 = vld [vmem:[%s26807_s3 + $0x19c0] ss:$16 sps:$4 sm:$0xff]   ;;  %v25453_v40 = vld [vmem:[%s26807_s3 + $0x19c8] ss:$16 sps:$4 sm:$0xff]  }
 0x8ec   : > { %10113 = vmatpush1.bf16.msra.mxu0 %v25384_v49  ;;  %10219 = vmatpush1.bf16.msra.mxu1 %v25387_v33 }
 0x8ed   : > { %10114 = vmatprep.subr.bf16.mxu0 %v25392_v50  ;;  %10220 = vmatprep.subr.bf16.mxu1 %v25395_v44  ;;  %v25458_v50 = vld [vmem:[%s26807_s3 + $0x19e4] ss:$16 sps:$4 sm:$0xff]   ;;  %v25461_v44 = vld [vmem:[%s26807_s3 + $0x19ec] ss:$16 sps:$4 sm:$0xff]  }
 0x8f0   : > { %10115 = vmatpush1.bf16.msra.mxu0 %v25390_v41  ;;  %10221 = vmatpush1.bf16.msra.mxu1 %v25393_v61 }
 0x8f1   : > { %10116 = vmatprep.subr.bf16.mxu0 %v25398_v58  ;;  %10222 = vmatprep.subr.bf16.mxu1 %v25401_v15 }
 0x8f4   : > { %10117 = vmatpush1.bf16.msra.mxu0 %v25396_v2  ;;  %10223 = vmatpush1.bf16.msra.mxu1 %v25399_v3 }
 0x8f5   : > { %10118 = vmatprep.subr.bf16.mxu0 %v25404_v36  ;;  %10224 = vmatprep.subr.bf16.mxu1 %v25407_v16 }
 0x8f8   : > { %10119 = vmatpush1.bf16.msra.mxu0 %v25402_v47  ;;  %10225 = vmatpush1.bf16.msra.mxu1 %v25405_v7  ;;  %v25456_v47 = vld [vmem:[%s26807_s3 + $0x19e0] ss:$16 sps:$4 sm:$0xff]   ;;  %v25459_v7 = vld [vmem:[%s26807_s3 + $0x19e8] ss:$16 sps:$4 sm:$0xff]  }
 0x8f9   : > { %10120 = vmatprep.subr.bf16.mxu0 %v25410_v55  ;;  %10226 = vmatprep.subr.bf16.mxu1 %v25413_v8 }
 0x8fc   : > { %10121 = vmatpush1.bf16.msra.mxu0 %v25408_v4  ;;  %10227 = vmatpush1.bf16.msra.mxu1 %v25411_v10  ;;  %v25464_v4 = vld [vmem:[%s26807_s3 + $0x1a04] ss:$16 sps:$4 sm:$0xff]   ;;  %v25467_v10 = vld [vmem:[%s26807_s3 + $0x1a0c] ss:$16 sps:$4 sm:$0xff]  }
 0x8fd   : > { %10122 = vmatprep.subr.bf16.mxu0 %v25416_v11  ;;  %10228 = vmatprep.subr.bf16.mxu1 %v25419_v12  ;;  %v25462_v11 = vld [vmem:[%s26807_s3 + $0x1a00] ss:$16 sps:$4 sm:$0xff]   ;;  %v25465_v12 = vld [vmem:[%s26807_s3 + $0x1a08] ss:$16 sps:$4 sm:$0xff]  }
 0x900   : > { %10123 = vmatpush1.bf16.msra.mxu0 %v25414_v25  ;;  %10229 = vmatpush1.bf16.msra.mxu1 %v25417_v62  ;;  %v25470_v25 = vld [vmem:[%s26807_s3 + $0x1a24] ss:$16 sps:$4 sm:$0xff]   ;;  %v25473_v62 = vld [vmem:[%s26807_s3 + $0x1a2c] ss:$16 sps:$4 sm:$0xff]  }
 0x901   : > { %10124 = vmatprep.subr.bf16.mxu0 %v25422_v48  ;;  %10230 = vmatprep.subr.bf16.mxu1 %v25425_v51  ;;  %v25468_v48 = vld [vmem:[%s26807_s3 + $0x1a20] ss:$16 sps:$4 sm:$0xff]   ;;  %v25471_v51 = vld [vmem:[%s26807_s3 + $0x1a28] ss:$16 sps:$4 sm:$0xff]  }
 0x904   : > { %10125 = vmatpush1.bf16.msra.mxu0 %v25420_v9  ;;  %10231 = vmatpush1.bf16.msra.mxu1 %v25423_v24  ;;  %v25476_v9 = vld [vmem:[%s26807_s3 + $0x1a44] ss:$16 sps:$4 sm:$0xff]   ;;  %v25479_v24 = vld [vmem:[%s26807_s3 + $0x1a4c] ss:$16 sps:$4 sm:$0xff]  }
 0x905   : > { %10126 = vmatprep.subr.bf16.mxu0 %v25428_v17  ;;  %10232 = vmatprep.subr.bf16.mxu1 %v25431_v18  ;;  %v25474_v17 = vld [vmem:[%s26807_s3 + $0x1a40] ss:$16 sps:$4 sm:$0xff]   ;;  %v25477_v18 = vld [vmem:[%s26807_s3 + $0x1a48] ss:$16 sps:$4 sm:$0xff]  }
 0x908   : > { %10127 = vmatpush1.bf16.msra.mxu0 %v25426_v19  ;;  %10233 = vmatpush1.bf16.msra.mxu1 %v25429_v21  ;;  %v25482_v19 = vld [vmem:[%s26807_s3 + $0x1a64] ss:$16 sps:$4 sm:$0xff]   ;;  %v25485_v21 = vld [vmem:[%s26807_s3 + $0x1a6c] ss:$16 sps:$4 sm:$0xff]  }
 0x909   : > { %10128 = vmatprep.subr.bf16.mxu0 %v25434_v37  ;;  %10234 = vmatprep.subr.bf16.mxu1 %v25437_v39  ;;  %v25480_v37 = vld [vmem:[%s26807_s3 + $0x1a60] ss:$16 sps:$4 sm:$0xff]   ;;  %v25483_v39 = vld [vmem:[%s26807_s3 + $0x1a68] ss:$16 sps:$4 sm:$0xff]  }
 0x90c   : > { %10129 = vmatpush1.bf16.msra.mxu0 %v25432_v54  ;;  %10235 = vmatpush1.bf16.msra.mxu1 %v25435_v57  ;;  %v25488_v54 = vld [vmem:[%s26807_s3 + $0x1a84] ss:$16 sps:$4 sm:$0xff]   ;;  %v25491_v57 = vld [vmem:[%s26807_s3 + $0x1a8c] ss:$16 sps:$4 sm:$0xff]  }
 0x90d   : > { %10130 = vmatprep.subr.bf16.mxu0 %v25440_v34  ;;  %10236 = vmatprep.subr.bf16.mxu1 %v25443_v35  ;;  %v25486_v34 = vld [vmem:[%s26807_s3 + $0x1a80] ss:$16 sps:$4 sm:$0xff]   ;;  %v25489_v35 = vld [vmem:[%s26807_s3 + $0x1a88] ss:$16 sps:$4 sm:$0xff]  }
 0x910   : > { %10131 = vmatpush1.bf16.msra.mxu0 %v25438_v63  ;;  %10237 = vmatpush1.bf16.msra.mxu1 %v25441_v5  ;;  %v25494_v63 = vld [vmem:[%s26807_s3 + $0x1aa4] ss:$16 sps:$4 sm:$0xff]   ;;  %v25497_v5 = vld [vmem:[%s26807_s3 + $0x1aac] ss:$16 sps:$4 sm:$0xff]  }
 0x911   : > { %10153 = vmatprep.subr.bf16.mxu0 %v25446_v29  ;;  %10259 = vmatprep.subr.bf16.mxu1 %v25449_v53  ;;  %v25492_v29 = vld [vmem:[%s26807_s3 + $0x1aa0] ss:$16 sps:$4 sm:$0xff]   ;;  %v25495_v53 = vld [vmem:[%s26807_s3 + $0x1aa8] ss:$16 sps:$4 sm:$0xff]  }
 0x9a5   : > { %v9245_v60 = vpop.f32.mrb[88].mxu0  ;;  %v9298_v6 = vpop.f32.mrb[88].mxu1 }
 0x9a6   : > { %v9247_v56 = vpop.f32.mrb[89].mxu0  ;;  %v9300_v31 = vpop.f32.mrb[89].mxu1 }
 0x9a7   : > { %v9249_v20 = vpop.f32.mrb[90].mxu0  ;;  %v9302_v32 = vpop.f32.mrb[90].mxu1 }
 0x9a8   : > { %v9317_v52 = vpack.c.bf16 %v9249_v20, %v9245_v60  ;;  %v9251_v59 = vpop.f32.mrb[91].mxu0  ;;  %v28388_v27 = vpack.c.bf16 %v9302_v32, %v9298_v6  ;;  %v9304_v22 = vpop.f32.mrb[91].mxu1  ;;  %v25500_v60 = vld [vmem:[%s26807_s3 + $0x1ac4] ss:$16 sps:$4 sm:$0xff]   ;;  %v25503_v6 = vld [vmem:[%s26807_s3 + $0x1acc] ss:$16 sps:$4 sm:$0xff]  }
 0x9a9   : > { %v9318_v23 = vpack.c.bf16 %v9251_v59, %v9247_v56  ;;  %v9320_v26 = vpack.c.bf16 %v9304_v22, %v9300_v31  ;;  %v25498_v56 = vld [vmem:[%s26807_s3 + $0x1ac0] ss:$16 sps:$4 sm:$0xff]   ;;  %v25501_v31 = vld [vmem:[%s26807_s3 + $0x1ac8] ss:$16 sps:$4 sm:$0xff]   ;;  %v25506_v20 = vld [vmem:[%s26807_s3 + $0x1ae4] ss:$16 sps:$4 sm:$0xff]  }
 0x9aa   : > { %v25509_v32 = vld [vmem:[%s26807_s3 + $0x1aec] ss:$16 sps:$4 sm:$0xff]   ;;  %v25507_v59 = vld [vmem:[%s26807_s3 + $0x1ae8] ss:$16 sps:$4 sm:$0xff]   ;;  %v25512_v22 = vld [vmem:[%s26807_s3 + $0x1b04] ss:$16 sps:$4 sm:$0xff]  }
 0x9ab   : > { %10132 = vmatprep.mubr.bf16.mxu0 %v9318_v23  ;;  %10238 = vmatprep.mubr.bf16.mxu1 %v9318_v23  ;;  %v25515_v23 = vld [vmem:[%s26807_s3 + $0x1b0c] ss:$16 sps:$4 sm:$0xff]  }
 0x9ac   : > { %10133 = vmatmul.mubr.bf16.vlgmr.msra.gmra.mrb[48].mxu0 %v9317_v52  ;;  %10239 = vmatmul.mubr.bf16.vlgmr.msra.gmra.mrb[48].mxu1 %v9317_v52  ;;  %v25504_v52 = vld [vmem:[%s26807_s3 + $0x1ae0] ss:$16 sps:$4 sm:$0xff]  }
 0x9ad   : > { %10154 = vmatpush1.bf16.msra.mxu0 %v25444_v13  ;;  %10260 = vmatpush1.bf16.msra.mxu1 %v25447_v14  ;;  %v9255_v49 = vpop.f32.mrb[92].mxu0  ;;  %v9308_v33 = vpop.f32.mrb[92].mxu1  ;;  %v25510_v13 = vld [vmem:[%s26807_s3 + $0x1b00] ss:$16 sps:$4 sm:$0xff]   ;;  %v25513_v14 = vld [vmem:[%s26807_s3 + $0x1b08] ss:$16 sps:$4 sm:$0xff]  }
 0x9ae   : > { %10155 = vmatprep.subr.bf16.mxu0 %v25452_v30  ;;  %10261 = vmatprep.subr.bf16.mxu1 %v25455_v28  ;;  %v9257_v41 = vpop.f32.mrb[93].mxu0  ;;  %v9310_v61 = vpop.f32.mrb[93].mxu1  ;;  %v25521_v30 = vld [vmem:[%s26807_s3 + $0x1b2c] ss:$16 sps:$4 sm:$0xff]   ;;  %v25516_v28 = vld [vmem:[%s26807_s3 + $0x1b20] ss:$16 sps:$4 sm:$0xff]  }
 0x9af   : > { %v9259_v58 = vpop.f32.mrb[94].mxu0  ;;  %v9312_v15 = vpop.f32.mrb[94].mxu1 }
 0x9b0   : > { %v9321_v2 = vpack.c.bf16 %v9259_v58, %v9255_v49  ;;  %v9261_v3 = vpop.f32.mrb[95].mxu0  ;;  %v28398_v36 = vpack.c.bf16 %v9312_v15, %v9308_v33  ;;  %v9314_v16 = vpop.f32.mrb[95].mxu1  ;;  %v25527_v49 = vld [vmem:[%s26807_s3 + $0x1b4c] ss:$16 sps:$4 sm:$0xff]   ;;  %v25522_v33 = vld [vmem:[%s26807_s3 + $0x1b40] ss:$16 sps:$4 sm:$0xff]  }
 0x9b1   : > { %10156 = vmatpush1.bf16.msra.mxu0 %v25450_v0  ;;  %10262 = vmatpush1.bf16.msra.mxu1 %v25453_v40  ;;  %v9322_v55 = vpack.c.bf16 %v9261_v3, %v9257_v41  ;;  %v28402_v8 = vpack.c.bf16 %v9314_v16, %v9310_v61  ;;  %v25519_v0 = vld [vmem:[%s26807_s3 + $0x1b28] ss:$16 sps:$4 sm:$0xff]   ;;  %v25524_v40 = vld [vmem:[%s26807_s3 + $0x1b44] ss:$16 sps:$4 sm:$0xff]   ;;  %v25533_v41 = vld [vmem:[%s26807_s3 + $0x1b6c] ss:$16 sps:$4 sm:$0xff]  }
 0x9b2   : > { %10157 = vmatprep.subr.bf16.mxu0 %v25458_v50  ;;  %10263 = vmatprep.subr.bf16.mxu1 %v25461_v44  ;;  %v25525_v50 = vld [vmem:[%s26807_s3 + $0x1b48] ss:$16 sps:$4 sm:$0xff]   ;;  %v25530_v44 = vld [vmem:[%s26807_s3 + $0x1b64] ss:$16 sps:$4 sm:$0xff]   ;;  %v25528_v15 = vld [vmem:[%s26807_s3 + $0x1b60] ss:$16 sps:$4 sm:$0xff]  }
 0x9b3   : > { %10142 = vmatprep.mubr.bf16.mxu0 %v9322_v55  ;;  %10248 = vmatprep.mubr.bf16.mxu1 %v9322_v55  ;;  %v21396_v61 = vld [vmem:[%s26807_s3 + $0x1b80] sm:$0xff]  ;;  %v21397_v58 = vld [vmem:[%s26807_s3 + $0x1b88] sm:$0xff] }
 0x9b4   : > { %10143 = vmatmul.mubr.bf16.gmra.mrb[52].mxu0 %v9321_v2  ;;  %10249 = vmatmul.mubr.bf16.gmra.mrb[52].mxu1 %v9321_v2  ;;  %v25531_v2 = vld [vmem:[%s26807_s3 + $0x1b68] ss:$16 sps:$4 sm:$0xff]   ;;  %v21523_v3 = vcombine.high %v21396_v61, %v21396_v61  ;;  %v21525_v16 = vcombine.high %v21397_v58, %v21397_v58 }
 0x9b5   : > { %10158 = vmatpush1.bf16.msra.mxu0 %v25456_v47  ;;  %10264 = vmatpush1.bf16.msra.mxu1 %v25459_v7  ;;  %v21522_v47 = vcombine.low %v21396_v61, %v21396_v61  ;;  %v21524_v7 = vcombine.low %v21397_v58, %v21397_v58 }
 0x9b6   : > { %10159 = vmatprep.subr.bf16.mxu0 %v25464_v4  ;;  %10265 = vmatprep.subr.bf16.mxu1 %v25467_v10  ;;  %v10328_v10 = vld [vmem:[%s26812_s8] sm:$0xf] }
 0x9b7   : > { %21527 = vmatprep.mubr.msk.bf16.mxu0 %vm3546_vm8, %v9320_v26  ;;  %21530 = vmatprep.mubr.msk.bf16.mxu1 %vm3546_vm8, %v9320_v26  ;;  %v25518_v26 = vld [vmem:[%s26807_s3 + $0x1b24] ss:$16 sps:$4 sm:$0xff]   ;;  %v10089_v55 = vsel %vm3553_vm9, %v21522_v47, 0  ;;  %v10095_v4 = vsel %vm3553_vm9, %v21524_v7, 0 }
 0x9b9   : > { %10160 = vmatpush1.bf16.msra.mxu0 %v25462_v11  ;;  %10266 = vmatpush1.bf16.msra.mxu1 %v25465_v12  ;;  %v10366_v11 = vld [vmem:[%s26817_s14] sm:$0xf]  ;;  %v28473_v12 = vrot.slane %v10328_v10, %v27110_v42 }
 0x9ba   : > { %10161 = vmatprep.subr.bf16.mxu0 %v25470_v25  ;;  %10267 = vmatprep.subr.bf16.mxu1 %v25473_v62  ;;  %v28479_v25 = vrot.slane %v10328_v10, %v27115_v45  ;;  %v28488_v62 = vrot.slane %v10366_v11, %v27112_v43 }
 0x9bd   : > { %10162 = vmatpush1.bf16.msra.mxu0 %v25468_v48  ;;  %10268 = vmatpush1.bf16.msra.mxu1 %v25471_v51 }
 0x9be   : > { %10163 = vmatprep.subr.bf16.mxu0 %v25476_v9  ;;  %10269 = vmatprep.subr.bf16.mxu1 %v25479_v24  ;;  %v28491_v9 = vrot.slane %v10366_v11, %v27115_v45  ;;  %v28494_v24 = vrot.slane %v10366_v11, %v27117_v46 }
 0x9c1   : > { %10164 = vmatpush1.bf16.msra.mxu0 %v25474_v17  ;;  %10270 = vmatpush1.bf16.msra.mxu1 %v25477_v18 }
 0x9c2   : > { %10165 = vmatprep.subr.bf16.mxu0 %v25482_v19  ;;  %10271 = vmatprep.subr.bf16.mxu1 %v25485_v21 }
 0x9c5   : > { %10166 = vmatpush1.bf16.msra.mxu0 %v25480_v37  ;;  %10272 = vmatpush1.bf16.msra.mxu1 %v25483_v39 }
 0x9c6   : > { %10167 = vmatprep.subr.bf16.mxu0 %v25488_v54  ;;  %10273 = vmatprep.subr.bf16.mxu1 %v25491_v57 }
 0x9c9   : > { %10168 = vmatpush1.bf16.msra.mxu0 %v25486_v34  ;;  %10274 = vmatpush1.bf16.msra.mxu1 %v25489_v35 }
 0x9ca   : > { %10169 = vmatprep.subr.bf16.mxu0 %v25494_v63  ;;  %10275 = vmatprep.subr.bf16.mxu1 %v25497_v5 }
 0x9cd   : > { %10170 = vmatpush1.bf16.msra.mxu0 %v25492_v29  ;;  %10276 = vmatpush1.bf16.msra.mxu1 %v25495_v53 }
 0x9ce   : > { %10171 = vmatprep.subr.bf16.mxu0 %v25500_v60  ;;  %10277 = vmatprep.subr.bf16.mxu1 %v25503_v6 }
 0x9d1   : > { %10172 = vmatpush1.bf16.msra.mxu0 %v25498_v56  ;;  %10278 = vmatpush1.bf16.msra.mxu1 %v25501_v31 }
 0x9d2   : > { %10173 = vmatprep.subr.bf16.mxu0 %v25506_v20  ;;  %10279 = vmatprep.subr.bf16.mxu1 %v25509_v32 }
 0x9d5   : > { %10174 = vmatpush1.bf16.msra.mxu0 %v25504_v52  ;;  %10280 = vmatpush1.bf16.msra.mxu1 %v25507_v59 }
 0x9d6   : > { %10175 = vmatprep.subr.bf16.mxu0 %v25512_v22  ;;  %10281 = vmatprep.subr.bf16.mxu1 %v25515_v23 }
 0x9d9   : > { %10176 = vmatpush1.bf16.msra.mxu0 %v25510_v13  ;;  %10282 = vmatpush1.bf16.msra.mxu1 %v25513_v14 }
 0x9da   : > { %10177 = vmatprep.subr.bf16.mxu0 %v25518_v26  ;;  %10283 = vmatprep.subr.bf16.mxu1 %v25521_v30 }
 0x9dd   : > { %10178 = vmatpush1.bf16.msra.mxu0 %v25516_v28  ;;  %10284 = vmatpush1.bf16.msra.mxu1 %v25519_v0 }
 0x9de   : > { %10179 = vmatprep.subr.bf16.mxu0 %v25524_v40  ;;  %10285 = vmatprep.subr.bf16.mxu1 %v25527_v49 }
 0x9e1   : > { %10180 = vmatpush1.bf16.msra.mxu0 %v25522_v33  ;;  %10286 = vmatpush1.bf16.msra.mxu1 %v25525_v50 }
 0x9e2   : > { %10181 = vmatprep.subr.bf16.mxu0 %v25530_v44  ;;  %10287 = vmatprep.subr.bf16.mxu1 %v25533_v41 }
 0x9e5   : > { %10182 = vmatpush1.bf16.msra.mxu0 %v25528_v15  ;;  %10288 = vmatpush1.bf16.msra.mxu1 %v25531_v2 }
 0x9e6   : > { %21526 = vmatprep.subr.msk.bf16.mxu0 %vm3553_vm9, %v21523_v3  ;;  %21529 = vmatprep.subr.msk.bf16.mxu1 %vm3553_vm9, %v21525_v16 }
 0x9e9   : > { %10184 = vmatpush1.bf16.msra.mxu0 %v10089_v55  ;;  %10290 = vmatpush1.bf16.msra.mxu1 %v10095_v4 }
 0x9ec   : > { %10186 = vmatmul.mubr.bf16.vlgmr.msra.gmra.mrb[48].mxu0 %v28388_v27  ;;  %10292 = vmatmul.mubr.bf16.vlgmr.msra.gmra.mrb[48].mxu1 %v28388_v27  ;;  %v28476_v27 = vrot.slane %v10328_v10, %v27112_v43 }
 0x9ed   : > { %21528 = vmatprep.mubr.msk.bf16.mxu0 %vm3546_vm8, %v28402_v8  ;;  %21531 = vmatprep.mubr.msk.bf16.mxu1 %vm3546_vm8, %v28402_v8  ;;  %v28482_v8 = vrot.slane %v10328_v10, %v27117_v46 }
 0x9f4   : > { %10196 = vmatmul.mubr.bf16.gmra.mrb[52].mxu0 %v28398_v36  ;;  %10302 = vmatmul.mubr.bf16.gmra.mrb[52].mxu1 %v28398_v36  ;;  %v28485_v36 = vrot.slane %v10366_v11, %v27110_v42 }
 0x9f5   : > { %10518 = vmatprep.mubr.bf16.mxu0 %v26760_v1  ;;  %10561 = vmatprep.mubr.bf16.mxu1 %v26760_v1 }
 0xabf   : > { %v10187_v48 = vpop.f32.mrb[48].mxu0  ;;  %v10293_v51 = vpop.f32.mrb[48].mxu1 }
 0xac0   : > { %v10350_v17 = vmul.f32 %v28473_v12, %v10187_v48  ;;  %v10352_v18 = vmul.f32 %v28476_v27, %v10293_v51  ;;  %v10189_v19 = vpop.f32.mrb[49].mxu0  ;;  %v10295_v21 = vpop.f32.mrb[49].mxu1 }
 0xac1   : > { %v10351_v37 = vmul.f32 %v28479_v25, %v10189_v19  ;;  %v10353_v39 = vmul.f32 %v28482_v8, %v10295_v21  ;;  %v10191_v54 = vpop.f32.mrb[50].mxu0  ;;  %v10297_v57 = vpop.f32.mrb[50].mxu1 }
 0xac2   : > { %v10388_v34 = vadd.f32 %v28485_v36, %v10350_v17  ;;  %v10390_v35 = vadd.f32 %v28488_v62, %v10352_v18  ;;  %v10354_v63 = vmul.f32 %v28473_v12, %v10191_v54  ;;  %v10356_v5 = vmul.f32 %v28476_v27, %v10297_v57  ;;  %v10193_v29 = vpop.f32.mrb[51].mxu0  ;;  %v10299_v53 = vpop.f32.mrb[51].mxu1 }
 0xac3   : > { %v10389_v60 = vadd.f32 %v28491_v9, %v10351_v37  ;;  %v10391_v6 = vadd.f32 %v28494_v24, %v10353_v39  ;;  %v10355_v56 = vmul.f32 %v28479_v25, %v10193_v29  ;;  %v10357_v31 = vmul.f32 %v28482_v8, %v10299_v53 }
 0xac4   : > { %vm10404_vm10 = vcmp.gt.f32.partialorder %v10388_v34, 0.0  ;;  %v10420_v20 = vmul.f32 0.02, %v10388_v34  ;;  %vm10406_vm11 = vcmp.gt.f32.partialorder %v10390_v35, 0.0  ;;  %v10422_v32 = vmul.f32 0.02, %v10390_v35 }
 0xac5   : > { %vm10405_vm12 = vcmp.gt.f32.partialorder %v10389_v60, 0.0  ;;  %v10421_v52 = vmul.f32 0.02, %v10389_v60  ;;  %vm10407_vm13 = vcmp.gt.f32.partialorder %v10391_v6, 0.0  ;;  %v10423_v59 = vmul.f32 0.02, %v10391_v6 }
 0xac6   : > { %v10436_v22 = vsel %vm10404_vm10, %v10388_v34, %v10420_v20  ;;  %v10438_v23 = vsel %vm10406_vm11, %v10390_v35, %v10422_v32  ;;  %v10392_v13 = vadd.f32 %v28485_v36, %v10354_v63  ;;  %v10394_v14 = vadd.f32 %v28488_v62, %v10356_v5 }
 0xac7   : > { %v10437_v26 = vsel %vm10405_vm12, %v10389_v60, %v10421_v52  ;;  %v10439_v30 = vsel %vm10407_vm13, %v10391_v6, %v10423_v59  ;;  %v10393_v28 = vadd.f32 %v28491_v9, %v10355_v56  ;;  %v10395_v0 = vadd.f32 %v28494_v24, %v10357_v31  ;;  %v10197_v40 = vpop.f32.mrb[52].mxu0  ;;  %v10303_v49 = vpop.f32.mrb[52].mxu1 }
 0xac8   : > { %vm10408_vm14 = vcmp.gt.f32.partialorder %v10392_v13, 0.0  ;;  %v10424_v33 = vmul.f32 0.02, %v10392_v13  ;;  %vm10410_vm15 = vcmp.gt.f32.partialorder %v10394_v14, 0.0  ;;  %v10426_v50 = vmul.f32 0.02, %v10394_v14 }
 0xac9   : > { %vm10409_vm1 = vcmp.gt.f32.partialorder %v10393_v28, 0.0  ;;  %v10425_v44 = vmul.f32 0.02, %v10393_v28  ;;  %vm10411_vm3 = vcmp.gt.f32.partialorder %v10395_v0, 0.0  ;;  %v10427_v41 = vmul.f32 0.02, %v10395_v0 }
 0xaca   : > { %v10440_v61 = vsel %vm10408_vm14, %v10392_v13, %v10424_v33  ;;  %v10442_v58 = vsel %vm10410_vm15, %v10394_v14, %v10426_v50  ;;  %v10358_v15 = vmul.f32 %v28473_v12, %v10197_v40  ;;  %v10360_v2 = vmul.f32 %v28476_v27, %v10303_v49  ;;  %v10199_v3 = vpop.f32.mrb[53].mxu0  ;;  %v10305_v16 = vpop.f32.mrb[53].mxu1  ;;  %v25538_v33 = vld [vmem:[%s26822_s19] sm:$0x7f]  }
 0xacb   : > { %v28514_v47 = vpack.c.bf16 %v10440_v61, %v10436_v22  ;;  %v28516_v7 = vpack.c.bf16 %v10442_v58, %v10438_v23  ;;  %v10441_v55 = vsel %vm10409_vm1, %v10393_v28, %v10425_v44  ;;  %v10443_v4 = vsel %vm10411_vm3, %v10395_v0, %v10427_v41  ;;  %v10201_v10 = vpop.f32.mrb[54].mxu0  ;;  %v10307_v11 = vpop.f32.mrb[54].mxu1  ;;  %v25542_v50 = vld [vmem:[%s26827_s24 + $0x3a4] ss:$16 sps:$4 sm:$0xff]   ;;  %v25545_v44 = vld [vmem:[%s26827_s24 + $0x3ac] ss:$16 sps:$4 sm:$0xff]  }
 0xacc   : > { %v28518_v48 = vpack.c.bf16 %v10441_v55, %v10437_v26  ;;  %v28520_v51 = vpack.c.bf16 %v10443_v4, %v10439_v30  ;;  %v10396_v17 = vadd.f32 %v28485_v36, %v10358_v15  ;;  %v10398_v18 = vadd.f32 %v28488_v62, %v10360_v2  ;;  %v10203_v19 = vpop.f32.mrb[55].mxu0  ;;  %v10309_v21 = vpop.f32.mrb[55].mxu1  ;;  %v25539_v41 = vld [vmem:[%s26822_s19 + $0x8] sm:$0x7f]   ;;  %v25540_v61 = vld [vmem:[%s26827_s24 + $0x3a0] ss:$16 sps:$4 sm:$0xff]  }
 0xacd   : > { %v10359_v37 = vmul.f32 %v28479_v25, %v10199_v3  ;;  %v10361_v39 = vmul.f32 %v28482_v8, %v10305_v16  ;;  %v10362_v54 = vmul.f32 %v28473_v12, %v10201_v10  ;;  %v10364_v57 = vmul.f32 %v28476_v27, %v10307_v11  ;;  %v25543_v58 = vld [vmem:[%s26827_s24 + $0x3a8] ss:$16 sps:$4 sm:$0xff]   ;;  %v25548_v15 = vld [vmem:[%s26827_s24 + $0x3c4] ss:$16 sps:$4 sm:$0xff]   ;;  %v25551_v2 = vld [vmem:[%s26827_s24 + $0x3cc] ss:$16 sps:$4 sm:$0xff]  }
 0xace   : > { %vm10412_vm2 = vcmp.gt.f32.partialorder %v10396_v17, 0.0  ;;  %v10428_v34 = vmul.f32 0.02, %v10396_v17  ;;  %vm10414_vm4 = vcmp.gt.f32.partialorder %v10398_v18, 0.0  ;;  %v10430_v35 = vmul.f32 0.02, %v10398_v18  ;;  %10486 = vmatprep.subr.bf16.mxu0 %v28518_v48  ;;  %10529 = vmatprep.subr.bf16.mxu1 %v28520_v51 }
 0xacf   : > { %v10397_v63 = vadd.f32 %v28491_v9, %v10359_v37  ;;  %v10400_v5 = vadd.f32 %v28485_v36, %v10362_v54  ;;  %v10402_v29 = vadd.f32 %v28488_v62, %v10364_v57  ;;  %10487 = vmatpush1.bf16.msra.mxu0 %v28514_v47  ;;  %v10399_v12 = vadd.f32 %v28494_v24, %v10361_v39  ;;  %v25546_v3 = vld [vmem:[%s26827_s24 + $0x3c0] ss:$16 sps:$4 sm:$0xff]   ;;  %v25549_v16 = vld [vmem:[%s26827_s24 + $0x3c8] ss:$16 sps:$4 sm:$0xff]   ;;  %v25554_v55 = vld [vmem:[%s26827_s24 + $0x3e4] ss:$16 sps:$4 sm:$0xff]  }
 0xad0   : > { %v10363_v27 = vmul.f32 %v28479_v25, %v10203_v19  ;;  %v10365_v53 = vmul.f32 %v28482_v8, %v10309_v21  ;;  %10530 = vmatpush1.bf16.msra.mxu1 %v28516_v7  ;;  %v10444_v60 = vsel %vm10412_vm2, %v10396_v17, %v10428_v34  ;;  %v10446_v6 = vsel %vm10414_vm4, %v10398_v18, %v10430_v35  ;;  %v25557_v4 = vld [vmem:[%s26827_s24 + $0x3ec] ss:$16 sps:$4 sm:$0xff]   ;;  %v25552_v10 = vld [vmem:[%s26827_s24 + $0x3e0] ss:$16 sps:$4 sm:$0xff]   ;;  %v25555_v11 = vld [vmem:[%s26827_s24 + $0x3e8] ss:$16 sps:$4 sm:$0xff]  }
 0xad1   : > { %vm10416_vm5 = vcmp.gt.f32.partialorder %v10400_v5, 0.0  ;;  %v10432_v56 = vmul.f32 0.02, %v10400_v5  ;;  %vm10418_vm6 = vcmp.gt.f32.partialorder %v10402_v29, 0.0  ;;  %v10434_v31 = vmul.f32 0.02, %v10402_v29 }
 0xad2   : > { %vm10413_vm7 = vcmp.gt.f32.partialorder %v10397_v63, 0.0  ;;  %v10429_v36 = vmul.f32 0.02, %v10397_v63  ;;  %v10401_v62 = vadd.f32 %v28491_v9, %v10363_v27  ;;  %v10403_v20 = vadd.f32 %v28494_v24, %v10365_v53  ;;  %v25560_v17 = vld [vmem:[%s26827_s24 + $0x404] ss:$16 sps:$4 sm:$0xff]  }
 0xad3   : > { %vm10415_vm8 = vcmp.gt.f32.partialorder %v10399_v12, 0.0  ;;  %v10431_v32 = vmul.f32 0.02, %v10399_v12  ;;  %v10448_v52 = vsel %vm10416_vm5, %v10400_v5, %v10432_v56  ;;  %v10450_v25 = vsel %vm10418_vm6, %v10402_v29, %v10434_v31  ;;  %v25563_v18 = vld [vmem:[%s26827_s24 + $0x40c] ss:$16 sps:$4 sm:$0xff]  }
 0xad4   : > { %v10456_v59 = vpack.c.bf16 %v10448_v52, %v10444_v60  ;;  %v10458_v8 = vpack.c.bf16 %v10450_v25, %v10446_v6  ;;  %vm10417_vm9 = vcmp.gt.f32.partialorder %v10401_v62, 0.0  ;;  %v10433_v22 = vmul.f32 0.02, %v10401_v62  ;;  %v25558_v19 = vld [vmem:[%s26827_s24 + $0x400] ss:$16 sps:$4 sm:$0xff]  }
 0xad5   : > { %vm10419_vm10 = vcmp.gt.f32.partialorder %v10403_v20, 0.0  ;;  %v10435_v23 = vmul.f32 0.02, %v10403_v20  ;;  %v10445_v13 = vsel %vm10413_vm7, %v10397_v63, %v10429_v36  ;;  %v10447_v26 = vsel %vm10415_vm8, %v10399_v12, %v10431_v32  ;;  %v25561_v21 = vld [vmem:[%s26827_s24 + $0x408] ss:$16 sps:$4 sm:$0xff]  }
 0xad6   : > { %v10449_v14 = vsel %vm10417_vm9, %v10401_v62, %v10433_v22  ;;  %v28544_v24 = vand.u32 %v27107_v38, %v10456_v59  ;;  %v28550_v49 = vand.u32 %v27107_v38, %v10458_v8  ;;  %vm10467_vm11 = vcmask 236544   ;;  %v25566_v37 = vld [vmem:[%s26827_s24 + $0x424] ss:$16 sps:$4 sm:$0xff]   ;;  %v25569_v39 = vld [vmem:[%s26827_s24 + $0x42c] ss:$16 sps:$4 sm:$0xff]  }
 0xad7   : > { %v10457_v30 = vpack.c.bf16 %v10449_v14, %v10445_v13  ;;  %v10451_v28 = vsel %vm10419_vm10, %v10403_v20, %v10435_v23  ;;  %v25564_v54 = vld [vmem:[%s26827_s24 + $0x420] ss:$16 sps:$4 sm:$0xff]   ;;  %v25567_v57 = vld [vmem:[%s26827_s24 + $0x428] ss:$16 sps:$4 sm:$0xff]   ;;  %v25572_v34 = vld [vmem:[%s26827_s24 + $0x444] ss:$16 sps:$4 sm:$0xff]  }
 0xad8   : > { %v10459_v0 = vpack.c.bf16 %v10451_v28, %v10447_v26  ;;  %v25575_v35 = vld [vmem:[%s26827_s24 + $0x44c] ss:$16 sps:$4 sm:$0xff]   ;;  %v25570_v63 = vld [vmem:[%s26827_s24 + $0x440] ss:$16 sps:$4 sm:$0xff]   ;;  %v25573_v5 = vld [vmem:[%s26827_s24 + $0x448] ss:$16 sps:$4 sm:$0xff]  }
 0xad9   : > { %v28541_v9 = vand.u32 %v27107_v38, %v10457_v30  ;;  %v25578_v29 = vld [vmem:[%s26827_s24 + $0x464] ss:$16 sps:$4 sm:$0xff]   ;;  %v25581_v12 = vld [vmem:[%s26827_s24 + $0x46c] ss:$16 sps:$4 sm:$0xff]   ;;  %v25576_v27 = vld [vmem:[%s26827_s24 + $0x460] ss:$16 sps:$4 sm:$0xff]  }
 0xada   : > { %v28547_v40 = vand.u32 %v27107_v38, %v10459_v0  ;;  %v25579_v53 = vld [vmem:[%s26827_s24 + $0x468] ss:$16 sps:$4 sm:$0xff]   ;;  %v25584_v60 = vld [vmem:[%s26827_s24 + $0x484] ss:$16 sps:$4 sm:$0xff]   ;;  %v25587_v6 = vld [vmem:[%s26827_s24 + $0x48c] ss:$16 sps:$4 sm:$0xff]  }
 0xadb   : > { %10488 = vmatprep.subr.bf16.mxu0 %v28541_v9  ;;  %v25582_v56 = vld [vmem:[%s26827_s24 + $0x480] ss:$16 sps:$4 sm:$0xff]   ;;  %v25585_v31 = vld [vmem:[%s26827_s24 + $0x488] ss:$16 sps:$4 sm:$0xff]   ;;  %v25590_v36 = vld [vmem:[%s26827_s24 + $0x4a4] ss:$16 sps:$4 sm:$0xff]  }
 0xadc   : > { %10531 = vmatprep.subr.bf16.mxu1 %v28547_v40  ;;  %10489 = vmatpush1.bf16.msra.mxu0 %v28544_v24  ;;  %v25593_v62 = vld [vmem:[%s26827_s24 + $0x4ac] ss:$16 sps:$4 sm:$0xff]   ;;  %v25588_v20 = vld [vmem:[%s26827_s24 + $0x4a0] ss:$16 sps:$4 sm:$0xff]   ;;  %v25591_v32 = vld [vmem:[%s26827_s24 + $0x4a8] ss:$16 sps:$4 sm:$0xff]  }
 0xadd   : > { %10532 = vmatpush1.bf16.msra.mxu1 %v28550_v49  ;;  %10703 = vmatprep.subr.bf16.mxu0 %v28518_v48  ;;  %v25596_v52 = vld [vmem:[%s26827_s24 + $0x4c4] ss:$16 sps:$4 sm:$0xff]   ;;  %v25599_v25 = vld [vmem:[%s26827_s24 + $0x4cc] ss:$16 sps:$4 sm:$0xff]   ;;  %v25594_v59 = vld [vmem:[%s26827_s24 + $0x4c0] ss:$16 sps:$4 sm:$0xff]  }
 0xade   : > { %10746 = vmatprep.subr.bf16.mxu1 %v28520_v51  ;;  %v25597_v8 = vld [vmem:[%s26827_s24 + $0x4c8] ss:$16 sps:$4 sm:$0xff]   ;;  %v25602_v22 = vld [vmem:[%s26827_s24 + $0x4e4] ss:$16 sps:$4 sm:$0xff]   ;;  %v25605_v23 = vld [vmem:[%s26827_s24 + $0x4ec] ss:$16 sps:$4 sm:$0xff]  }
 0xadf   : > { %21533 = vmatmul.mubr.msk.bf16.vlgmr.msra.gmra.mrb[96].mxu0 %vm10467_vm11, %v25538_v33  ;;  %v25600_v13 = vld [vmem:[%s26827_s24 + $0x4e0] ss:$16 sps:$4 sm:$0xff]   ;;  %v25603_v14 = vld [vmem:[%s26827_s24 + $0x4e8] ss:$16 sps:$4 sm:$0xff]   ;;  %v25608_v26 = vld [vmem:[%s26827_s24 + $0x504] ss:$16 sps:$4 sm:$0xff]  }
 0xae0   : > { %21534 = vmatmul.mubr.msk.bf16.vlgmr.msra.gmra.mrb[96].mxu1 %vm10467_vm11, %v25538_v33  ;;  %10704 = vmatpush1.bf16.msra.mxu0 %v28514_v47  ;;  %v25611_v30 = vld [vmem:[%s26827_s24 + $0x50c] ss:$16 sps:$4 sm:$0xff]   ;;  %v25606_v28 = vld [vmem:[%s26827_s24 + $0x500] ss:$16 sps:$4 sm:$0xff]   ;;  %v25609_v0 = vld [vmem:[%s26827_s24 + $0x508] ss:$16 sps:$4 sm:$0xff]  }
 0xae1   : > { %10747 = vmatpush1.bf16.msra.mxu1 %v28516_v7  ;;  %10705 = vmatprep.subr.bf16.mxu0 %v28541_v9  ;;  %v25614_v33 = vld [vmem:[%s26827_s24 + $0x524] ss:$16 sps:$4 sm:$0xff]   ;;  %vm11490_vm12 = vcmask 654336   ;;  %vm15453_vm6 = vcmask 105472   ;;  %vm15907_vm7 = vcmask 261120   ;;  %vm26763_vm8 = vmmov 0  }
 0xae2   : > { %10748 = vmatprep.subr.bf16.mxu1 %v28547_v40  ;;  %10735 = vmatprep.mubr.bf16.mxu0 %v26760_v1  ;;  %vm18175_vm10 = vcmask 1041408  }
 0xae3   : > { %10778 = vmatprep.mubr.bf16.mxu1 %v26760_v1 }
 0xae4   : > { %10706 = vmatpush1.bf16.msra.mxu0 %v28544_v24 }
 0xae5   : > { %10749 = vmatpush1.bf16.msra.mxu1 %v28550_v49  ;;  %11494 = vmatprep.subr.bf16.mxu0 %v25542_v50  ;;  %v25617_v50 = vld [vmem:[%s26827_s24 + $0x52c] ss:$16 sps:$4 sm:$0xff]  }
 0xae6   : > { %11580 = vmatprep.subr.bf16.mxu1 %v25545_v44  ;;  %v25612_v44 = vld [vmem:[%s26827_s24 + $0x520] ss:$16 sps:$4 sm:$0xff]  }
 0xae7   : > { %21538 = vmatmul.mubr.msk.bf16.vlgmr.msra.gmra.mrb[100].mxu0 %vm10467_vm11, %v25539_v41 }
 0xae8   : > { %21539 = vmatmul.mubr.msk.bf16.vlgmr.msra.gmra.mrb[100].mxu1 %vm10467_vm11, %v25539_v41  ;;  %11495 = vmatpush1.bf16.msra.mxu0 %v25540_v61  ;;  %v25615_v41 = vld [vmem:[%s26827_s24 + $0x528] ss:$16 sps:$4 sm:$0xff]   ;;  %v25620_v61 = vld [vmem:[%s26827_s24 + $0x544] ss:$16 sps:$4 sm:$0xff]  }
 0xae9   : > { %11581 = vmatpush1.bf16.msra.mxu1 %v25543_v58  ;;  %11496 = vmatprep.subr.bf16.mxu0 %v25548_v15  ;;  %v25623_v58 = vld [vmem:[%s26827_s24 + $0x54c] ss:$16 sps:$4 sm:$0xff]   ;;  %v25618_v15 = vld [vmem:[%s26827_s24 + $0x540] ss:$16 sps:$4 sm:$0xff]  }
 0xaea   : > { %11582 = vmatprep.subr.bf16.mxu1 %v25551_v2  ;;  %v25621_v2 = vld [vmem:[%s26827_s24 + $0x548] ss:$16 sps:$4 sm:$0xff]  }
 0xaec   : > { %11497 = vmatpush1.bf16.msra.mxu0 %v25546_v3  ;;  %v25624_v3 = vld [vmem:[%s26827_s24 + $0x560] ss:$16 sps:$4 sm:$0xff]  }
 0xaed   : > { %11583 = vmatpush1.bf16.msra.mxu1 %v25549_v16  ;;  %11498 = vmatprep.subr.bf16.mxu0 %v25554_v55  ;;  %v25626_v16 = vld [vmem:[%s26827_s24 + $0x564] ss:$16 sps:$4 sm:$0xff]   ;;  %v25627_v55 = vld [vmem:[%s26827_s24 + $0x568] ss:$16 sps:$4 sm:$0xff]  }
 0xaee   : > { %11584 = vmatprep.subr.bf16.mxu1 %v25557_v4  ;;  %v25629_v4 = vld [vmem:[%s26827_s24 + $0x56c] ss:$16 sps:$4 sm:$0xff]  }
 0xaf0   : > { %11499 = vmatpush1.bf16.msra.mxu0 %v25552_v10  ;;  %v25632_v10 = vld [vmem:[%s26827_s24 + $0x584] ss:$16 sps:$4 sm:$0xff]  }
 0xaf1   : > { %11585 = vmatpush1.bf16.msra.mxu1 %v25555_v11  ;;  %11500 = vmatprep.subr.bf16.mxu0 %v25560_v17  ;;  %v25635_v11 = vld [vmem:[%s26827_s24 + $0x58c] ss:$16 sps:$4 sm:$0xff]   ;;  %v25630_v17 = vld [vmem:[%s26827_s24 + $0x580] ss:$16 sps:$4 sm:$0xff]  }
 0xaf2   : > { %11586 = vmatprep.subr.bf16.mxu1 %v25563_v18  ;;  %v25633_v18 = vld [vmem:[%s26827_s24 + $0x588] ss:$16 sps:$4 sm:$0xff]  }
 0xaf4   : > { %11501 = vmatpush1.bf16.msra.mxu0 %v25558_v19  ;;  %v25638_v19 = vld [vmem:[%s26827_s24 + $0x5a4] ss:$16 sps:$4 sm:$0xff]  }
 0xaf5   : > { %11587 = vmatpush1.bf16.msra.mxu1 %v25561_v21  ;;  %11502 = vmatprep.subr.bf16.mxu0 %v25566_v37  ;;  %v25641_v21 = vld [vmem:[%s26827_s24 + $0x5ac] ss:$16 sps:$4 sm:$0xff]  }
 0xaf6   : > { %11588 = vmatprep.subr.bf16.mxu1 %v25569_v39 }
 0xaf8   : > { %11503 = vmatpush1.bf16.msra.mxu0 %v25564_v54 }
 0xaf9   : > { %11589 = vmatpush1.bf16.msra.mxu1 %v25567_v57  ;;  %11504 = vmatprep.subr.bf16.mxu0 %v25572_v34 }
 0xafa   : > { %11590 = vmatprep.subr.bf16.mxu1 %v25575_v35 }
 0xafc   : > { %11505 = vmatpush1.bf16.msra.mxu0 %v25570_v63 }
 0xafd   : > { %11591 = vmatpush1.bf16.msra.mxu1 %v25573_v5  ;;  %11506 = vmatprep.subr.bf16.mxu0 %v25578_v29 }
 0xafe   : > { %11592 = vmatprep.subr.bf16.mxu1 %v25581_v12 }
 0xb00   : > { %11507 = vmatpush1.bf16.msra.mxu0 %v25576_v27 }
 0xb01   : > { %11593 = vmatpush1.bf16.msra.mxu1 %v25579_v53  ;;  %11508 = vmatprep.subr.bf16.mxu0 %v25584_v60 }
 0xb02   : > { %11594 = vmatprep.subr.bf16.mxu1 %v25587_v6 }
 0xb04   : > { %11509 = vmatpush1.bf16.msra.mxu0 %v25582_v56 }
 0xb05   : > { %11595 = vmatpush1.bf16.msra.mxu1 %v25585_v31  ;;  %11510 = vmatprep.subr.bf16.mxu0 %v25590_v36 }
 0xb06   : > { %11596 = vmatprep.subr.bf16.mxu1 %v25593_v62 }
 0xb08   : > { %11511 = vmatpush1.bf16.msra.mxu0 %v25588_v20 }
 0xb09   : > { %11597 = vmatpush1.bf16.msra.mxu1 %v25591_v32  ;;  %11512 = vmatprep.subr.bf16.mxu0 %v25596_v52 }
 0xb0a   : > { %11598 = vmatprep.subr.bf16.mxu1 %v25599_v25  ;;  %v25636_v25 = vld [vmem:[%s26827_s24 + $0x5a0] ss:$16 sps:$4 sm:$0xff]  }
 0xb0c   : > { %11513 = vmatpush1.bf16.msra.mxu0 %v25594_v59  ;;  %v25639_v59 = vld [vmem:[%s26827_s24 + $0x5a8] ss:$16 sps:$4 sm:$0xff]  }
 0xb0d   : > { %11599 = vmatpush1.bf16.msra.mxu1 %v25597_v8  ;;  %11514 = vmatprep.subr.bf16.mxu0 %v25602_v22 }
 0xb0e   : > { %11600 = vmatprep.subr.bf16.mxu1 %v25605_v23  ;;  %v25644_v23 = vld [vmem:[%s26827_s24 + $0x5c4] ss:$16 sps:$4 sm:$0xff]  }
 0xb10   : > { %11515 = vmatpush1.bf16.msra.mxu0 %v25600_v13  ;;  %v25647_v13 = vld [vmem:[%s26827_s24 + $0x5cc] ss:$16 sps:$4 sm:$0xff]  }
 0xb11   : > { %11601 = vmatpush1.bf16.msra.mxu1 %v25603_v14  ;;  %11516 = vmatprep.subr.bf16.mxu0 %v25608_v26  ;;  %v25642_v26 = vld [vmem:[%s26827_s24 + $0x5c0] ss:$16 sps:$4 sm:$0xff]  }
 0xb12   : > { %11602 = vmatprep.subr.bf16.mxu1 %v25611_v30  ;;  %v25645_v30 = vld [vmem:[%s26827_s24 + $0x5c8] ss:$16 sps:$4 sm:$0xff]  }
 0xb14   : > { %11517 = vmatpush1.bf16.msra.mxu0 %v25606_v28  ;;  %v25650_v28 = vld [vmem:[%s26827_s24 + $0x5e4] ss:$16 sps:$4 sm:$0xff]  }
 0xb15   : > { %11603 = vmatpush1.bf16.msra.mxu1 %v25609_v0  ;;  %11518 = vmatprep.subr.bf16.mxu0 %v25614_v33  ;;  %v25653_v0 = vld [vmem:[%s26827_s24 + $0x5ec] ss:$16 sps:$4 sm:$0xff]   ;;  %v25648_v33 = vld [vmem:[%s26827_s24 + $0x5e0] ss:$16 sps:$4 sm:$0xff]  }
 0xb16   : > { %11604 = vmatprep.subr.bf16.mxu1 %v25617_v50  ;;  %v25651_v50 = vld [vmem:[%s26827_s24 + $0x5e8] ss:$16 sps:$4 sm:$0xff]  }
 0xb18   : > { %11519 = vmatpush1.bf16.msra.mxu0 %v25612_v44  ;;  %v25656_v44 = vld [vmem:[%s26827_s24 + $0x604] ss:$16 sps:$4 sm:$0xff]  }
 0xb19   : > { %11605 = vmatpush1.bf16.msra.mxu1 %v25615_v41  ;;  %11520 = vmatprep.subr.bf16.mxu0 %v25620_v61  ;;  %v25659_v41 = vld [vmem:[%s26827_s24 + $0x60c] ss:$16 sps:$4 sm:$0xff]   ;;  %v25654_v61 = vld [vmem:[%s26827_s24 + $0x600] ss:$16 sps:$4 sm:$0xff]  }
 0xb1a   : > { %11606 = vmatprep.subr.bf16.mxu1 %v25623_v58  ;;  %v25657_v58 = vld [vmem:[%s26827_s24 + $0x608] ss:$16 sps:$4 sm:$0xff]  }
 0xb1c   : > { %11521 = vmatpush1.bf16.msra.mxu0 %v25618_v15  ;;  %v25662_v15 = vld [vmem:[%s26827_s24 + $0x624] ss:$16 sps:$4 sm:$0xff]  }
 0xb1d   : > { %11607 = vmatpush1.bf16.msra.mxu1 %v25621_v2  ;;  %11522 = vmatprep.subr.bf16.mxu0 %v25626_v16  ;;  %v25665_v2 = vld [vmem:[%s26827_s24 + $0x62c] ss:$16 sps:$4 sm:$0xff]   ;;  %v25663_v16 = vld [vmem:[%s26827_s24 + $0x628] ss:$16 sps:$4 sm:$0xff]  }
 0xb1e   : > { %11608 = vmatprep.subr.bf16.mxu1 %v25629_v4  ;;  %v25671_v4 = vld [vmem:[%s26827_s24 + $0x64c] ss:$16 sps:$4 sm:$0xff]  }
 0xb20   : > { %11523 = vmatpush1.bf16.msra.mxu0 %v25624_v3  ;;  %v25660_v3 = vld [vmem:[%s26827_s24 + $0x620] ss:$16 sps:$4 sm:$0xff]  }
 0xb21   : > { %11609 = vmatpush1.bf16.msra.mxu1 %v25627_v55  ;;  %11524 = vmatprep.subr.bf16.mxu0 %v25632_v10  ;;  %v25668_v55 = vld [vmem:[%s26827_s24 + $0x644] ss:$16 sps:$4 sm:$0xff]   ;;  %v25666_v10 = vld [vmem:[%s26827_s24 + $0x640] ss:$16 sps:$4 sm:$0xff]  }
 0xb22   : > { %11610 = vmatprep.subr.bf16.mxu1 %v25635_v11  ;;  %v25669_v11 = vld [vmem:[%s26827_s24 + $0x648] ss:$16 sps:$4 sm:$0xff]  }
 0xb24   : > { %11525 = vmatpush1.bf16.msra.mxu0 %v25630_v17  ;;  %v25674_v17 = vld [vmem:[%s26827_s24 + $0x664] ss:$16 sps:$4 sm:$0xff]  }
 0xb25   : > { %11611 = vmatpush1.bf16.msra.mxu1 %v25633_v18  ;;  %11537 = vmatprep.subr.bf16.mxu0 %v25638_v19  ;;  %v25677_v18 = vld [vmem:[%s26827_s24 + $0x66c] ss:$16 sps:$4 sm:$0xff]   ;;  %v25672_v19 = vld [vmem:[%s26827_s24 + $0x660] ss:$16 sps:$4 sm:$0xff]  }
 0xb26   : > { %11623 = vmatprep.subr.bf16.mxu1 %v25641_v21  ;;  %v25675_v21 = vld [vmem:[%s26827_s24 + $0x668] ss:$16 sps:$4 sm:$0xff]  }
 0xbb2   : > { %v10520_v37 = vpop.f32.mrb[96].mxu0 }
 0xbb3   : > { %v10522_v39 = vpop.f32.mrb[97].mxu0  ;;  %v10563_v54 = vpop.f32.mrb[96].mxu1 }
 0xbb4   : > { %v10524_v57 = vpop.f32.mrb[98].mxu0  ;;  %v10565_v34 = vpop.f32.mrb[97].mxu1 }
 0xbb5   : > { %v28638_v35 = vpack.c.bf16 %v10524_v57, %v10520_v37  ;;  %v10526_v63 = vpop.f32.mrb[99].mxu0  ;;  %v10567_v5 = vpop.f32.mrb[98].mxu1  ;;  %v25680_v37 = vld [vmem:[%s26827_s24 + $0x684] ss:$16 sps:$4 sm:$0xff]   ;;  %v25681_v57 = vld [vmem:[%s26827_s24 + $0x688] ss:$16 sps:$4 sm:$0xff]  }
 0xbb6   : > { %v28640_v29 = vpack.c.bf16 %v10526_v63, %v10522_v39  ;;  %v28642_v12 = vpack.c.bf16 %v10567_v5, %v10563_v54  ;;  %v10569_v27 = vpop.f32.mrb[99].mxu1  ;;  %v25683_v39 = vld [vmem:[%s26827_s24 + $0x68c] ss:$16 sps:$4 sm:$0xff]   ;;  %v25678_v54 = vld [vmem:[%s26827_s24 + $0x680] ss:$16 sps:$4 sm:$0xff]  }
 0xbb7   : > { %v28644_v53 = vpack.c.bf16 %v10569_v27, %v10565_v34  ;;  %v25686_v34 = vld [vmem:[%s26827_s24 + $0x6a4] ss:$16 sps:$4 sm:$0xff]   ;;  %v25689_v63 = vld [vmem:[%s26827_s24 + $0x6ac] ss:$16 sps:$4 sm:$0xff]   ;;  %v25684_v5 = vld [vmem:[%s26827_s24 + $0x6a0] ss:$16 sps:$4 sm:$0xff]  }
 0xbb8   : > { %v25687_v27 = vld [vmem:[%s26827_s24 + $0x6a8] ss:$16 sps:$4 sm:$0xff]  }
 0xbba   : > { %v10737_v60 = vpop.f32.mrb[100].mxu0 }
 0xbbb   : > { %v10739_v6 = vpop.f32.mrb[101].mxu0  ;;  %v10780_v56 = vpop.f32.mrb[100].mxu1 }
 0xbbc   : > { %v10741_v31 = vpop.f32.mrb[102].mxu0  ;;  %v10782_v36 = vpop.f32.mrb[101].mxu1 }
 0xbbd   : > { %v10789_v62 = vpack.c.bf16 %v10741_v31, %v10737_v60  ;;  %v10743_v20 = vpop.f32.mrb[103].mxu0  ;;  %v10784_v32 = vpop.f32.mrb[102].mxu1  ;;  %v25692_v60 = vld [vmem:[%s26827_s24 + $0x6c4] ss:$16 sps:$4 sm:$0xff]   ;;  %v25693_v31 = vld [vmem:[%s26827_s24 + $0x6c8] ss:$16 sps:$4 sm:$0xff]  }
 0xbbe   : > { %v10790_v52 = vpack.c.bf16 %v10743_v20, %v10739_v6  ;;  %v28648_v8 = vpack.c.bf16 %v10784_v32, %v10780_v56  ;;  %v10786_v22 = vpop.f32.mrb[103].mxu1  ;;  %v25695_v6 = vld [vmem:[%s26827_s24 + $0x6cc] ss:$16 sps:$4 sm:$0xff]   ;;  %v25690_v56 = vld [vmem:[%s26827_s24 + $0x6c0] ss:$16 sps:$4 sm:$0xff]  }
 0xbbf   : > { %v10792_v14 = vpack.c.bf16 %v10786_v22, %v10782_v36  ;;  %v25698_v36 = vld [vmem:[%s26827_s24 + $0x6e4] ss:$16 sps:$4 sm:$0xff]   ;;  %v25696_v20 = vld [vmem:[%s26827_s24 + $0x6e0] ss:$16 sps:$4 sm:$0xff]   ;;  %v25699_v32 = vld [vmem:[%s26827_s24 + $0x6e8] ss:$16 sps:$4 sm:$0xff]  }
 0xbc0   : > { %11526 = vmatprep.mubr.bf16.mxu0 %v10790_v52  ;;  %11612 = vmatprep.mubr.bf16.mxu1 %v10790_v52  ;;  %v25704_v52 = vld [vmem:[%s26827_s24 + $0x704] ss:$16 sps:$4 sm:$0xff]   ;;  %v25705_v22 = vld [vmem:[%s26827_s24 + $0x708] ss:$16 sps:$4 sm:$0xff]  }
 0xbc1   : > { %11527 = vmatmul.mubr.bf16.vlgmr.msra.gmra.mrb[104].mxu0 %v10789_v62  ;;  %11613 = vmatmul.mubr.bf16.vlgmr.msra.gmra.mrb[104].mxu1 %v10789_v62  ;;  %v25701_v62 = vld [vmem:[%s26827_s24 + $0x6ec] ss:$16 sps:$4 sm:$0xff]  }
 0xbc2   : > { %11538 = vmatpush1.bf16.msra.mxu0 %v25636_v25  ;;  %11624 = vmatpush1.bf16.msra.mxu1 %v25639_v59  ;;  %v25707_v25 = vld [vmem:[%s26827_s24 + $0x70c] ss:$16 sps:$4 sm:$0xff]   ;;  %v25702_v59 = vld [vmem:[%s26827_s24 + $0x700] ss:$16 sps:$4 sm:$0xff]  }
 0xbc3   : > { %11539 = vmatprep.subr.bf16.mxu0 %v25644_v23  ;;  %11625 = vmatprep.subr.bf16.mxu1 %v25647_v13  ;;  %v25710_v23 = vld [vmem:[%s26827_s24 + $0x724] ss:$16 sps:$4 sm:$0xff]   ;;  %v25713_v13 = vld [vmem:[%s26827_s24 + $0x72c] ss:$16 sps:$4 sm:$0xff]  }
 0xbc4   : > { %21772 = vmatprep.mubr.msk.bf16.mxu0 %vm11490_vm12, %v10792_v14  ;;  %21773 = vmatprep.mubr.msk.bf16.mxu1 %vm11490_vm12, %v10792_v14  ;;  %v25708_v14 = vld [vmem:[%s26827_s24 + $0x720] ss:$16 sps:$4 sm:$0xff]  }
 0xbc6   : > { %11540 = vmatpush1.bf16.msra.mxu0 %v25642_v26  ;;  %11626 = vmatpush1.bf16.msra.mxu1 %v25645_v30  ;;  %v25711_v26 = vld [vmem:[%s26827_s24 + $0x728] ss:$16 sps:$4 sm:$0xff]   ;;  %v25716_v30 = vld [vmem:[%s26827_s24 + $0x4] ss:$16 sps:$4 sm:$0xff]  }
 0xbc7   : > { %11541 = vmatprep.subr.bf16.mxu0 %v25650_v28  ;;  %11627 = vmatprep.subr.bf16.mxu1 %v25653_v0  ;;  %v25719_v28 = vld [vmem:[%s26827_s24 + $0xc] ss:$16 sps:$4 sm:$0xff]   ;;  %v25714_v0 = vld [vmem:[%s26827_s24] ss:$16 sps:$4 sm:$0xff]  }
 0xbca   : > { %11542 = vmatpush1.bf16.msra.mxu0 %v25648_v33  ;;  %11628 = vmatpush1.bf16.msra.mxu1 %v25651_v50  ;;  %v25717_v33 = vld [vmem:[%s26827_s24 + $0x8] ss:$16 sps:$4 sm:$0xff]   ;;  %v25722_v50 = vld [vmem:[%s26827_s24 + $0x24] ss:$16 sps:$4 sm:$0xff]  }
 0xbcb   : > { %11543 = vmatprep.subr.bf16.mxu0 %v25656_v44  ;;  %11629 = vmatprep.subr.bf16.mxu1 %v25659_v41  ;;  %v25725_v44 = vld [vmem:[%s26827_s24 + $0x2c] ss:$16 sps:$4 sm:$0xff]   ;;  %v25720_v41 = vld [vmem:[%s26827_s24 + $0x20] ss:$16 sps:$4 sm:$0xff]  }
 0xbce   : > { %11544 = vmatpush1.bf16.msra.mxu0 %v25654_v61  ;;  %11630 = vmatpush1.bf16.msra.mxu1 %v25657_v58  ;;  %v25723_v61 = vld [vmem:[%s26827_s24 + $0x28] ss:$16 sps:$4 sm:$0xff]   ;;  %v25728_v58 = vld [vmem:[%s26827_s24 + $0x44] ss:$16 sps:$4 sm:$0xff]  }
 0xbcf   : > { %11545 = vmatprep.subr.bf16.mxu0 %v25662_v15  ;;  %11631 = vmatprep.subr.bf16.mxu1 %v25665_v2  ;;  %v25731_v15 = vld [vmem:[%s26827_s24 + $0x4c] ss:$16 sps:$4 sm:$0xff]   ;;  %v25729_v2 = vld [vmem:[%s26827_s24 + $0x48] ss:$16 sps:$4 sm:$0xff]  }
 0xbd2   : > { %11546 = vmatpush1.bf16.msra.mxu0 %v25660_v3  ;;  %11632 = vmatpush1.bf16.msra.mxu1 %v25663_v16  ;;  %v25734_v3 = vld [vmem:[%s26827_s24 + $0x64] ss:$16 sps:$4 sm:$0xff]   ;;  %v25737_v16 = vld [vmem:[%s26827_s24 + $0x6c] ss:$16 sps:$4 sm:$0xff]  }
 0xbd3   : > { %11547 = vmatprep.subr.bf16.mxu0 %v25668_v55  ;;  %11633 = vmatprep.subr.bf16.mxu1 %v25671_v4  ;;  %v25735_v55 = vld [vmem:[%s26827_s24 + $0x68] ss:$16 sps:$4 sm:$0xff]   ;;  %v25740_v4 = vld [vmem:[%s26827_s24 + $0x84] ss:$16 sps:$4 sm:$0xff]  }
 0xbd6   : > { %11548 = vmatpush1.bf16.msra.mxu0 %v25666_v10  ;;  %11634 = vmatpush1.bf16.msra.mxu1 %v25669_v11  ;;  %v25743_v10 = vld [vmem:[%s26827_s24 + $0x8c] ss:$16 sps:$4 sm:$0xff]   ;;  %v25738_v11 = vld [vmem:[%s26827_s24 + $0x80] ss:$16 sps:$4 sm:$0xff]  }
 0xbd7   : > { %11549 = vmatprep.subr.bf16.mxu0 %v25674_v17  ;;  %11635 = vmatprep.subr.bf16.mxu1 %v25677_v18  ;;  %v25741_v17 = vld [vmem:[%s26827_s24 + $0x88] ss:$16 sps:$4 sm:$0xff]   ;;  %v25746_v18 = vld [vmem:[%s26827_s24 + $0xa4] ss:$16 sps:$4 sm:$0xff]  }
 0xbda   : > { %11550 = vmatpush1.bf16.msra.mxu0 %v25672_v19  ;;  %11636 = vmatpush1.bf16.msra.mxu1 %v25675_v21  ;;  %v25749_v19 = vld [vmem:[%s26827_s24 + $0xac] ss:$16 sps:$4 sm:$0xff]   ;;  %v25744_v21 = vld [vmem:[%s26827_s24 + $0xa0] ss:$16 sps:$4 sm:$0xff]  }
 0xbdb   : > { %11551 = vmatprep.subr.bf16.mxu0 %v25680_v37  ;;  %11637 = vmatprep.subr.bf16.mxu1 %v25683_v39  ;;  %v25747_v37 = vld [vmem:[%s26827_s24 + $0xa8] ss:$16 sps:$4 sm:$0xff]   ;;  %v25752_v39 = vld [vmem:[%s26827_s24 + $0xc4] ss:$16 sps:$4 sm:$0xff]  }
 0xbde   : > { %11552 = vmatpush1.bf16.msra.mxu0 %v25678_v54  ;;  %11638 = vmatpush1.bf16.msra.mxu1 %v25681_v57  ;;  %v25755_v54 = vld [vmem:[%s26827_s24 + $0xcc] ss:$16 sps:$4 sm:$0xff]   ;;  %v25750_v57 = vld [vmem:[%s26827_s24 + $0xc0] ss:$16 sps:$4 sm:$0xff]  }
 0xbdf   : > { %11553 = vmatprep.subr.bf16.mxu0 %v25686_v34  ;;  %11639 = vmatprep.subr.bf16.mxu1 %v25689_v63  ;;  %v25753_v34 = vld [vmem:[%s26827_s24 + $0xc8] ss:$16 sps:$4 sm:$0xff]   ;;  %v25758_v63 = vld [vmem:[%s26827_s24 + $0xe4] ss:$16 sps:$4 sm:$0xff]  }
 0xbe2   : > { %11554 = vmatpush1.bf16.msra.mxu0 %v25684_v5  ;;  %11640 = vmatpush1.bf16.msra.mxu1 %v25687_v27  ;;  %v25761_v5 = vld [vmem:[%s26827_s24 + $0xec] ss:$16 sps:$4 sm:$0xff]   ;;  %v25756_v27 = vld [vmem:[%s26827_s24 + $0xe0] ss:$16 sps:$4 sm:$0xff]  }
 0xbe3   : > { %11555 = vmatprep.subr.bf16.mxu0 %v25692_v60  ;;  %11641 = vmatprep.subr.bf16.mxu1 %v25695_v6  ;;  %v25759_v60 = vld [vmem:[%s26827_s24 + $0xe8] ss:$16 sps:$4 sm:$0xff]   ;;  %v25764_v6 = vld [vmem:[%s26827_s24 + $0x104] ss:$16 sps:$4 sm:$0xff]  }
 0xbe6   : > { %11556 = vmatpush1.bf16.msra.mxu0 %v25690_v56  ;;  %11642 = vmatpush1.bf16.msra.mxu1 %v25693_v31  ;;  %v25767_v56 = vld [vmem:[%s26827_s24 + $0x10c] ss:$16 sps:$4 sm:$0xff]   ;;  %v25762_v31 = vld [vmem:[%s26827_s24 + $0x100] ss:$16 sps:$4 sm:$0xff]  }
 0xbe7   : > { %11557 = vmatprep.subr.bf16.mxu0 %v25698_v36  ;;  %11643 = vmatprep.subr.bf16.mxu1 %v25701_v62  ;;  %v25765_v36 = vld [vmem:[%s26827_s24 + $0x108] ss:$16 sps:$4 sm:$0xff]   ;;  %v25770_v62 = vld [vmem:[%s26827_s24 + $0x124] ss:$16 sps:$4 sm:$0xff]  }
 0xbea   : > { %11558 = vmatpush1.bf16.msra.mxu0 %v25696_v20  ;;  %11644 = vmatpush1.bf16.msra.mxu1 %v25699_v32  ;;  %v25773_v20 = vld [vmem:[%s26827_s24 + $0x12c] ss:$16 sps:$4 sm:$0xff]   ;;  %v25768_v32 = vld [vmem:[%s26827_s24 + $0x120] ss:$16 sps:$4 sm:$0xff]  }
 0xbeb   : > { %11559 = vmatprep.subr.bf16.mxu0 %v25704_v52  ;;  %11645 = vmatprep.subr.bf16.mxu1 %v25707_v25  ;;  %v25771_v52 = vld [vmem:[%s26827_s24 + $0x128] ss:$16 sps:$4 sm:$0xff]   ;;  %v25776_v25 = vld [vmem:[%s26827_s24 + $0x144] ss:$16 sps:$4 sm:$0xff]  }
 0xbee   : > { %11560 = vmatpush1.bf16.msra.mxu0 %v25702_v59  ;;  %11646 = vmatpush1.bf16.msra.mxu1 %v25705_v22  ;;  %v25779_v59 = vld [vmem:[%s26827_s24 + $0x14c] ss:$16 sps:$4 sm:$0xff]   ;;  %v25774_v22 = vld [vmem:[%s26827_s24 + $0x140] ss:$16 sps:$4 sm:$0xff]  }
 0xbef   : > { %11561 = vmatprep.subr.bf16.mxu0 %v25710_v23  ;;  %11647 = vmatprep.subr.bf16.mxu1 %v25713_v13  ;;  %v25777_v23 = vld [vmem:[%s26827_s24 + $0x148] ss:$16 sps:$4 sm:$0xff]   ;;  %v25782_v13 = vld [vmem:[%s26827_s24 + $0x164] ss:$16 sps:$4 sm:$0xff]  }
 0xbf2   : > { %11562 = vmatpush1.bf16.msra.mxu0 %v25708_v14  ;;  %11648 = vmatpush1.bf16.msra.mxu1 %v25711_v26  ;;  %v25785_v14 = vld [vmem:[%s26827_s24 + $0x16c] ss:$16 sps:$4 sm:$0xff]   ;;  %v25780_v26 = vld [vmem:[%s26827_s24 + $0x160] ss:$16 sps:$4 sm:$0xff]  }
 0xbf3   : > { %12249 = vmatprep.subr.bf16.mxu0 %v25716_v30  ;;  %12335 = vmatprep.subr.bf16.mxu1 %v25719_v28  ;;  %v25783_v30 = vld [vmem:[%s26827_s24 + $0x168] ss:$16 sps:$4 sm:$0xff]   ;;  %v25788_v28 = vld [vmem:[%s26827_s24 + $0x184] ss:$16 sps:$4 sm:$0xff]  }
 0xbf5   : > { %11570 = vmatmul.mubr.bf16.vlgmr.msra.gmra.mrb[104].mxu0 %v28648_v8  ;;  %11656 = vmatmul.mubr.bf16.vlgmr.msra.gmra.mrb[104].mxu1 %v28648_v8  ;;  %v25726_v8 = vld [vmem:[%s26827_s24 + $0x40] ss:$16 sps:$4 sm:$0xff]  }
 0xbf6   : > { %12250 = vmatpush1.bf16.msra.mxu0 %v25714_v0  ;;  %12281 = vmatprep.mubr.bf16.mxu0 %v28640_v29  ;;  %v25791_v0 = vld [vmem:[%s26827_s24 + $0x18c] ss:$16 sps:$4 sm:$0xff]  }
 0xbf7   : > { %12336 = vmatpush1.bf16.msra.mxu1 %v25717_v33  ;;  %12367 = vmatprep.mubr.bf16.mxu1 %v28640_v29  ;;  %v25732_v29 = vld [vmem:[%s26827_s24 + $0x60] ss:$16 sps:$4 sm:$0xff]  }
 0xbf8   : > { %12251 = vmatprep.subr.bf16.mxu0 %v25722_v50  ;;  %12337 = vmatprep.subr.bf16.mxu1 %v25725_v44  ;;  %v25786_v33 = vld [vmem:[%s26827_s24 + $0x180] ss:$16 sps:$4 sm:$0xff]   ;;  %v25789_v50 = vld [vmem:[%s26827_s24 + $0x188] ss:$16 sps:$4 sm:$0xff]   ;;  %v25794_v44 = vld [vmem:[%s26827_s24 + $0x1a4] ss:$16 sps:$4 sm:$0xff]  }
 0xbfa   : > { %12252 = vmatpush1.bf16.msra.mxu0 %v25720_v41  ;;  %v25797_v41 = vld [vmem:[%s26827_s24 + $0x1ac] ss:$16 sps:$4 sm:$0xff]  }
 0xbfb   : > { %12338 = vmatpush1.bf16.msra.mxu1 %v25723_v61  ;;  %12253 = vmatprep.subr.bf16.mxu0 %v25728_v58  ;;  %v25792_v61 = vld [vmem:[%s26827_s24 + $0x1a0] ss:$16 sps:$4 sm:$0xff]   ;;  %v25795_v58 = vld [vmem:[%s26827_s24 + $0x1a8] ss:$16 sps:$4 sm:$0xff]  }
 0xbfc   : > { %12339 = vmatprep.subr.bf16.mxu1 %v25731_v15  ;;  %v25800_v15 = vld [vmem:[%s26827_s24 + $0x1c4] ss:$16 sps:$4 sm:$0xff]  }
 0xbfe   : > { %12254 = vmatpush1.bf16.msra.mxu0 %v25726_v8  ;;  %v25803_v8 = vld [vmem:[%s26827_s24 + $0x1cc] ss:$16 sps:$4 sm:$0xff]  }
 0xbff   : > { %12340 = vmatpush1.bf16.msra.mxu1 %v25729_v2  ;;  %12255 = vmatprep.subr.bf16.mxu0 %v25734_v3  ;;  %v25798_v2 = vld [vmem:[%s26827_s24 + $0x1c0] ss:$16 sps:$4 sm:$0xff]   ;;  %v25801_v3 = vld [vmem:[%s26827_s24 + $0x1c8] ss:$16 sps:$4 sm:$0xff]  }
 0xc00   : > { %12341 = vmatprep.subr.bf16.mxu1 %v25737_v16  ;;  %v25806_v16 = vld [vmem:[%s26827_s24 + $0x1e4] ss:$16 sps:$4 sm:$0xff]  }
 0xc02   : > { %12256 = vmatpush1.bf16.msra.mxu0 %v25732_v29  ;;  %v25809_v29 = vld [vmem:[%s26827_s24 + $0x1ec] ss:$16 sps:$4 sm:$0xff]  }
 0xc03   : > { %12342 = vmatpush1.bf16.msra.mxu1 %v25735_v55  ;;  %12257 = vmatprep.subr.bf16.mxu0 %v25740_v4  ;;  %v25804_v55 = vld [vmem:[%s26827_s24 + $0x1e0] ss:$16 sps:$4 sm:$0xff]   ;;  %v25807_v4 = vld [vmem:[%s26827_s24 + $0x1e8] ss:$16 sps:$4 sm:$0xff]  }
 0xc04   : > { %12343 = vmatprep.subr.bf16.mxu1 %v25743_v10  ;;  %v25812_v10 = vld [vmem:[%s26827_s24 + $0x204] ss:$16 sps:$4 sm:$0xff]  }
 0xc06   : > { %12258 = vmatpush1.bf16.msra.mxu0 %v25738_v11  ;;  %v25815_v11 = vld [vmem:[%s26827_s24 + $0x20c] ss:$16 sps:$4 sm:$0xff]  }
 0xc07   : > { %12344 = vmatpush1.bf16.msra.mxu1 %v25741_v17  ;;  %12259 = vmatprep.subr.bf16.mxu0 %v25746_v18  ;;  %v25810_v17 = vld [vmem:[%s26827_s24 + $0x200] ss:$16 sps:$4 sm:$0xff]   ;;  %v25813_v18 = vld [vmem:[%s26827_s24 + $0x208] ss:$16 sps:$4 sm:$0xff]  }
 0xc08   : > { %12345 = vmatprep.subr.bf16.mxu1 %v25749_v19  ;;  %v25818_v19 = vld [vmem:[%s26827_s24 + $0x224] ss:$16 sps:$4 sm:$0xff]  }
 0xc0a   : > { %12260 = vmatpush1.bf16.msra.mxu0 %v25744_v21  ;;  %v25821_v21 = vld [vmem:[%s26827_s24 + $0x22c] ss:$16 sps:$4 sm:$0xff]  }
 0xc0b   : > { %12346 = vmatpush1.bf16.msra.mxu1 %v25747_v37  ;;  %12261 = vmatprep.subr.bf16.mxu0 %v25752_v39  ;;  %v25816_v37 = vld [vmem:[%s26827_s24 + $0x220] ss:$16 sps:$4 sm:$0xff]   ;;  %v25819_v39 = vld [vmem:[%s26827_s24 + $0x228] ss:$16 sps:$4 sm:$0xff]  }
 0xc0c   : > { %12347 = vmatprep.subr.bf16.mxu1 %v25755_v54  ;;  %v25824_v54 = vld [vmem:[%s26827_s24 + $0x244] ss:$16 sps:$4 sm:$0xff]  }
 0xc0e   : > { %12262 = vmatpush1.bf16.msra.mxu0 %v25750_v57  ;;  %v25827_v57 = vld [vmem:[%s26827_s24 + $0x24c] ss:$16 sps:$4 sm:$0xff]  }
 0xc0f   : > { %12348 = vmatpush1.bf16.msra.mxu1 %v25753_v34  ;;  %12263 = vmatprep.subr.bf16.mxu0 %v25758_v63  ;;  %v25825_v34 = vld [vmem:[%s26827_s24 + $0x248] ss:$16 sps:$4 sm:$0xff]   ;;  %v25830_v63 = vld [vmem:[%s26827_s24 + $0x264] ss:$16 sps:$4 sm:$0xff]  }
 0xc10   : > { %12349 = vmatprep.subr.bf16.mxu1 %v25761_v5  ;;  %v25833_v5 = vld [vmem:[%s26827_s24 + $0x26c] ss:$16 sps:$4 sm:$0xff]  }
 0xc12   : > { %12264 = vmatpush1.bf16.msra.mxu0 %v25756_v27  ;;  %v25831_v27 = vld [vmem:[%s26827_s24 + $0x268] ss:$16 sps:$4 sm:$0xff]  }
 0xc13   : > { %12350 = vmatpush1.bf16.msra.mxu1 %v25759_v60  ;;  %12265 = vmatprep.subr.bf16.mxu0 %v25764_v6  ;;  %v25836_v60 = vld [vmem:[%s26827_s24 + $0x284] ss:$16 sps:$4 sm:$0xff]   ;;  %v25839_v6 = vld [vmem:[%s26827_s24 + $0x28c] ss:$16 sps:$4 sm:$0xff]  }
 0xc14   : > { %12351 = vmatprep.subr.bf16.mxu1 %v25767_v56  ;;  %v25834_v56 = vld [vmem:[%s26827_s24 + $0x280] ss:$16 sps:$4 sm:$0xff]  }
 0xc16   : > { %12266 = vmatpush1.bf16.msra.mxu0 %v25762_v31  ;;  %v25837_v31 = vld [vmem:[%s26827_s24 + $0x288] ss:$16 sps:$4 sm:$0xff]  }
 0xc17   : > { %12352 = vmatpush1.bf16.msra.mxu1 %v25765_v36  ;;  %12267 = vmatprep.subr.bf16.mxu0 %v25770_v62  ;;  %v25842_v36 = vld [vmem:[%s26827_s24 + $0x2a4] ss:$16 sps:$4 sm:$0xff]   ;;  %v25845_v62 = vld [vmem:[%s26827_s24 + $0x2ac] ss:$16 sps:$4 sm:$0xff]  }
 0xc18   : > { %12353 = vmatprep.subr.bf16.mxu1 %v25773_v20  ;;  %v25840_v20 = vld [vmem:[%s26827_s24 + $0x2a0] ss:$16 sps:$4 sm:$0xff]  }
 0xc1a   : > { %12268 = vmatpush1.bf16.msra.mxu0 %v25768_v32  ;;  %v25843_v32 = vld [vmem:[%s26827_s24 + $0x2a8] ss:$16 sps:$4 sm:$0xff]  }
 0xc1b   : > { %12354 = vmatpush1.bf16.msra.mxu1 %v25771_v52  ;;  %12269 = vmatprep.subr.bf16.mxu0 %v25776_v25  ;;  %v25848_v52 = vld [vmem:[%s26827_s24 + $0x2c4] ss:$16 sps:$4 sm:$0xff]   ;;  %v25851_v25 = vld [vmem:[%s26827_s24 + $0x2cc] ss:$16 sps:$4 sm:$0xff]  }
 0xc1c   : > { %12355 = vmatprep.subr.bf16.mxu1 %v25779_v59  ;;  %v25846_v59 = vld [vmem:[%s26827_s24 + $0x2c0] ss:$16 sps:$4 sm:$0xff]  }
 0xc1e   : > { %12270 = vmatpush1.bf16.msra.mxu0 %v25774_v22  ;;  %v25849_v22 = vld [vmem:[%s26827_s24 + $0x2c8] ss:$16 sps:$4 sm:$0xff]  }
 0xc1f   : > { %12356 = vmatpush1.bf16.msra.mxu1 %v25777_v23  ;;  %12271 = vmatprep.subr.bf16.mxu0 %v25782_v13  ;;  %v25854_v23 = vld [vmem:[%s26827_s24 + $0x2e4] ss:$16 sps:$4 sm:$0xff]   ;;  %v25857_v13 = vld [vmem:[%s26827_s24 + $0x2ec] ss:$16 sps:$4 sm:$0xff]  }
 0xc20   : > { %12357 = vmatprep.subr.bf16.mxu1 %v25785_v14  ;;  %v25852_v14 = vld [vmem:[%s26827_s24 + $0x2e0] ss:$16 sps:$4 sm:$0xff]  }
 0xc22   : > { %12272 = vmatpush1.bf16.msra.mxu0 %v25780_v26  ;;  %v25855_v26 = vld [vmem:[%s26827_s24 + $0x2e8] ss:$16 sps:$4 sm:$0xff]  }
 0xc23   : > { %12358 = vmatpush1.bf16.msra.mxu1 %v25783_v30  ;;  %12273 = vmatprep.subr.bf16.mxu0 %v25788_v28  ;;  %v25860_v30 = vld [vmem:[%s26827_s24 + $0x304] ss:$16 sps:$4 sm:$0xff]   ;;  %v25863_v28 = vld [vmem:[%s26827_s24 + $0x30c] ss:$16 sps:$4 sm:$0xff]  }
 0xc24   : > { %12359 = vmatprep.subr.bf16.mxu1 %v25791_v0  ;;  %v25858_v0 = vld [vmem:[%s26827_s24 + $0x300] ss:$16 sps:$4 sm:$0xff]  }
 0xc26   : > { %12274 = vmatpush1.bf16.msra.mxu0 %v25786_v33  ;;  %v25861_v33 = vld [vmem:[%s26827_s24 + $0x308] ss:$16 sps:$4 sm:$0xff]  }
 0xc27   : > { %12360 = vmatpush1.bf16.msra.mxu1 %v25789_v50  ;;  %12275 = vmatprep.subr.bf16.mxu0 %v25794_v44  ;;  %v25866_v50 = vld [vmem:[%s26827_s24 + $0x324] ss:$16 sps:$4 sm:$0xff]   ;;  %v25869_v44 = vld [vmem:[%s26827_s24 + $0x32c] ss:$16 sps:$4 sm:$0xff]  }
 0xc28   : > { %12361 = vmatprep.subr.bf16.mxu1 %v25797_v41  ;;  %v25864_v41 = vld [vmem:[%s26827_s24 + $0x320] ss:$16 sps:$4 sm:$0xff]  }
 0xc2a   : > { %12276 = vmatpush1.bf16.msra.mxu0 %v25792_v61  ;;  %v25867_v61 = vld [vmem:[%s26827_s24 + $0x328] ss:$16 sps:$4 sm:$0xff]  }
 0xc2b   : > { %12362 = vmatpush1.bf16.msra.mxu1 %v25795_v58  ;;  %12277 = vmatprep.subr.bf16.mxu0 %v25800_v15  ;;  %v25872_v58 = vld [vmem:[%s26827_s24 + $0x344] ss:$16 sps:$4 sm:$0xff]   ;;  %v25875_v15 = vld [vmem:[%s26827_s24 + $0x34c] ss:$16 sps:$4 sm:$0xff]  }
 0xc2c   : > { %12363 = vmatprep.subr.bf16.mxu1 %v25803_v8  ;;  %v25870_v8 = vld [vmem:[%s26827_s24 + $0x340] ss:$16 sps:$4 sm:$0xff]  }
 0xc2e   : > { %12278 = vmatpush1.bf16.msra.mxu0 %v25798_v2  ;;  %v25873_v2 = vld [vmem:[%s26827_s24 + $0x348] ss:$16 sps:$4 sm:$0xff]  }
 0xc2f   : > { %12364 = vmatpush1.bf16.msra.mxu1 %v25801_v3  ;;  %12279 = vmatprep.subr.bf16.mxu0 %v25806_v16  ;;  %v25878_v3 = vld [vmem:[%s26827_s24 + $0x364] ss:$16 sps:$4 sm:$0xff]   ;;  %v25881_v16 = vld [vmem:[%s26827_s24 + $0x36c] ss:$16 sps:$4 sm:$0xff]  }
 0xc30   : > { %12365 = vmatprep.subr.bf16.mxu1 %v25809_v29  ;;  %v25876_v29 = vld [vmem:[%s26827_s24 + $0x360] ss:$16 sps:$4 sm:$0xff]  }
 0xc32   : > { %12280 = vmatpush1.bf16.msra.mxu0 %v25804_v55  ;;  %v25879_v55 = vld [vmem:[%s26827_s24 + $0x368] ss:$16 sps:$4 sm:$0xff]  }
 0xc33   : > { %12366 = vmatpush1.bf16.msra.mxu1 %v25807_v4  ;;  %12292 = vmatprep.subr.bf16.mxu0 %v25812_v10  ;;  %v25884_v4 = vld [vmem:[%s26827_s24 + $0x384] ss:$16 sps:$4 sm:$0xff]   ;;  %v25887_v10 = vld [vmem:[%s26827_s24 + $0x38c] ss:$16 sps:$4 sm:$0xff]  }
 0xc34   : > { %12378 = vmatprep.subr.bf16.mxu1 %v25815_v11  ;;  %v25882_v11 = vld [vmem:[%s26827_s24 + $0x380] ss:$16 sps:$4 sm:$0xff]  }
 0xc35   : > { %12282 = vmatmul.mubr.bf16.vlgmr.msra.gmra.mrb[104].mxu0 %v28638_v35 }
 0xc36   : > { %12368 = vmatmul.mubr.bf16.vlgmr.msra.gmra.mrb[104].mxu1 %v28638_v35  ;;  %12293 = vmatpush1.bf16.msra.mxu0 %v25810_v17  ;;  %v25822_v35 = vld [vmem:[%s26827_s24 + $0x240] ss:$16 sps:$4 sm:$0xff]   ;;  %v25885_v17 = vld [vmem:[%s26827_s24 + $0x388] ss:$16 sps:$4 sm:$0xff]  }
 0xc37   : > { %21890 = vmatprep.mubr.msk.bf16.mxu0 %vm11490_vm12, %v28644_v53  ;;  %12379 = vmatpush1.bf16.msra.mxu1 %v25813_v18  ;;  %v25891_v18 = vld [vmem:[%s26827_s24 + $0x744] ss:$16 sps:$4 sm:$0xff]  }
 0xc38   : > { %21891 = vmatprep.mubr.msk.bf16.mxu1 %vm11490_vm12, %v28644_v53  ;;  %12294 = vmatprep.subr.bf16.mxu0 %v25818_v19  ;;  %v25828_v53 = vld [vmem:[%s26827_s24 + $0x260] ss:$16 sps:$4 sm:$0xff]   ;;  %v25894_v19 = vld [vmem:[%s26827_s24 + $0x74c] ss:$16 sps:$4 sm:$0xff]  }
 0xc39   : > { %12380 = vmatprep.subr.bf16.mxu1 %v25821_v21  ;;  %v25888_v21 = vld [vmem:[%s26822_s19 + $0x10] sm:$0x7f]  }
 0xc3a   : > { %12295 = vmatpush1.bf16.msra.mxu0 %v25816_v37  ;;  %v25892_v37 = vld [vmem:[%s26827_s24 + $0x748] ss:$16 sps:$4 sm:$0xff]  }
 0xc3b   : > { %12381 = vmatpush1.bf16.msra.mxu1 %v25819_v39  ;;  %12296 = vmatprep.subr.bf16.mxu0 %v25824_v54  ;;  %v25897_v39 = vld [vmem:[%s26827_s24 + $0x764] ss:$16 sps:$4 sm:$0xff]   ;;  %v25900_v54 = vld [vmem:[%s26827_s24 + $0x76c] ss:$16 sps:$4 sm:$0xff]  }
 0xc3c   : > { %12382 = vmatprep.subr.bf16.mxu1 %v25827_v57  ;;  %v25895_v57 = vld [vmem:[%s26827_s24 + $0x760] ss:$16 sps:$4 sm:$0xff]  }
 0xc3e   : > { %12297 = vmatpush1.bf16.msra.mxu0 %v25822_v35  ;;  %v25898_v35 = vld [vmem:[%s26827_s24 + $0x768] ss:$16 sps:$4 sm:$0xff]  }
 0xc3f   : > { %12383 = vmatpush1.bf16.msra.mxu1 %v25825_v34  ;;  %12298 = vmatprep.subr.bf16.mxu0 %v25830_v63  ;;  %v25903_v34 = vld [vmem:[%s26827_s24 + $0x784] ss:$16 sps:$4 sm:$0xff]   ;;  %v25906_v63 = vld [vmem:[%s26827_s24 + $0x78c] ss:$16 sps:$4 sm:$0xff]  }
 0xc40   : > { %12384 = vmatprep.subr.bf16.mxu1 %v25833_v5  ;;  %v25901_v5 = vld [vmem:[%s26827_s24 + $0x780] ss:$16 sps:$4 sm:$0xff]  }
 0xc42   : > { %12299 = vmatpush1.bf16.msra.mxu0 %v25828_v53  ;;  %v25904_v53 = vld [vmem:[%s26827_s24 + $0x788] ss:$16 sps:$4 sm:$0xff]  }
 0xc43   : > { %12385 = vmatpush1.bf16.msra.mxu1 %v25831_v27  ;;  %12300 = vmatprep.subr.bf16.mxu0 %v25836_v60  ;;  %v25909_v27 = vld [vmem:[%s26827_s24 + $0x7a4] ss:$16 sps:$4 sm:$0xff]   ;;  %v25912_v60 = vld [vmem:[%s26827_s24 + $0x7ac] ss:$16 sps:$4 sm:$0xff]  }
 0xc44   : > { %12386 = vmatprep.subr.bf16.mxu1 %v25839_v6  ;;  %v25907_v6 = vld [vmem:[%s26827_s24 + $0x7a0] ss:$16 sps:$4 sm:$0xff]  }
 0xc46   : > { %12301 = vmatpush1.bf16.msra.mxu0 %v25834_v56  ;;  %v25910_v56 = vld [vmem:[%s26827_s24 + $0x7a8] ss:$16 sps:$4 sm:$0xff]  }
 0xc47   : > { %12387 = vmatpush1.bf16.msra.mxu1 %v25837_v31  ;;  %12302 = vmatprep.subr.bf16.mxu0 %v25842_v36  ;;  %v25915_v31 = vld [vmem:[%s26827_s24 + $0x7c4] ss:$16 sps:$4 sm:$0xff]   ;;  %v25918_v36 = vld [vmem:[%s26827_s24 + $0x7cc] ss:$16 sps:$4 sm:$0xff]  }
 0xc48   : > { %12388 = vmatprep.subr.bf16.mxu1 %v25845_v62  ;;  %v25913_v62 = vld [vmem:[%s26827_s24 + $0x7c0] ss:$16 sps:$4 sm:$0xff]  }
 0xc4a   : > { %12303 = vmatpush1.bf16.msra.mxu0 %v25840_v20  ;;  %v25916_v20 = vld [vmem:[%s26827_s24 + $0x7c8] ss:$16 sps:$4 sm:$0xff]  }
 0xc4b   : > { %12389 = vmatpush1.bf16.msra.mxu1 %v25843_v32  ;;  %12304 = vmatprep.subr.bf16.mxu0 %v25848_v52  ;;  %v25921_v32 = vld [vmem:[%s26827_s24 + $0x7e4] ss:$16 sps:$4 sm:$0xff]   ;;  %v25924_v52 = vld [vmem:[%s26827_s24 + $0x7ec] ss:$16 sps:$4 sm:$0xff]  }
 0xc4c   : > { %12390 = vmatprep.subr.bf16.mxu1 %v25851_v25  ;;  %v25919_v25 = vld [vmem:[%s26827_s24 + $0x7e0] ss:$16 sps:$4 sm:$0xff]  }
 0xc4e   : > { %12305 = vmatpush1.bf16.msra.mxu0 %v25846_v59  ;;  %v25922_v59 = vld [vmem:[%s26827_s24 + $0x7e8] ss:$16 sps:$4 sm:$0xff]  }
 0xc4f   : > { %12391 = vmatpush1.bf16.msra.mxu1 %v25849_v22  ;;  %12306 = vmatprep.subr.bf16.mxu0 %v25854_v23  ;;  %v25927_v22 = vld [vmem:[%s26827_s24 + $0x804] ss:$16 sps:$4 sm:$0xff]   ;;  %v25930_v23 = vld [vmem:[%s26827_s24 + $0x80c] ss:$16 sps:$4 sm:$0xff]  }
 0xc50   : > { %12392 = vmatprep.subr.bf16.mxu1 %v25857_v13  ;;  %v25925_v13 = vld [vmem:[%s26827_s24 + $0x800] ss:$16 sps:$4 sm:$0xff]  }
 0xc52   : > { %12307 = vmatpush1.bf16.msra.mxu0 %v25852_v14  ;;  %v25928_v14 = vld [vmem:[%s26827_s24 + $0x808] ss:$16 sps:$4 sm:$0xff]  }
 0xc53   : > { %12393 = vmatpush1.bf16.msra.mxu1 %v25855_v26  ;;  %12308 = vmatprep.subr.bf16.mxu0 %v25860_v30  ;;  %v25933_v26 = vld [vmem:[%s26827_s24 + $0x824] ss:$16 sps:$4 sm:$0xff]   ;;  %v25936_v30 = vld [vmem:[%s26827_s24 + $0x82c] ss:$16 sps:$4 sm:$0xff]  }
 0xc54   : > { %12394 = vmatprep.subr.bf16.mxu1 %v25863_v28  ;;  %v25931_v28 = vld [vmem:[%s26827_s24 + $0x820] ss:$16 sps:$4 sm:$0xff]  }
 0xc56   : > { %12309 = vmatpush1.bf16.msra.mxu0 %v25858_v0  ;;  %v25934_v0 = vld [vmem:[%s26827_s24 + $0x828] ss:$16 sps:$4 sm:$0xff]  }
 0xc57   : > { %12395 = vmatpush1.bf16.msra.mxu1 %v25861_v33  ;;  %12310 = vmatprep.subr.bf16.mxu0 %v25866_v50  ;;  %v25939_v33 = vld [vmem:[%s26827_s24 + $0x844] ss:$16 sps:$4 sm:$0xff]   ;;  %v25942_v50 = vld [vmem:[%s26827_s24 + $0x84c] ss:$16 sps:$4 sm:$0xff]  }
 0xc58   : > { %12396 = vmatprep.subr.bf16.mxu1 %v25869_v44  ;;  %v25937_v44 = vld [vmem:[%s26827_s24 + $0x840] ss:$16 sps:$4 sm:$0xff]  }
 0xc5a   : > { %12311 = vmatpush1.bf16.msra.mxu0 %v25864_v41  ;;  %v25940_v41 = vld [vmem:[%s26827_s24 + $0x848] ss:$16 sps:$4 sm:$0xff]  }
 0xc5b   : > { %12397 = vmatpush1.bf16.msra.mxu1 %v25867_v61  ;;  %12312 = vmatprep.subr.bf16.mxu0 %v25872_v58  ;;  %v25945_v61 = vld [vmem:[%s26827_s24 + $0x864] ss:$16 sps:$4 sm:$0xff]   ;;  %v25948_v58 = vld [vmem:[%s26827_s24 + $0x86c] ss:$16 sps:$4 sm:$0xff]  }
 0xc5c   : > { %12398 = vmatprep.subr.bf16.mxu1 %v25875_v15  ;;  %v25943_v15 = vld [vmem:[%s26827_s24 + $0x860] ss:$16 sps:$4 sm:$0xff]  }
 0xc5e   : > { %12313 = vmatpush1.bf16.msra.mxu0 %v25870_v8  ;;  %v25946_v8 = vld [vmem:[%s26827_s24 + $0x868] ss:$16 sps:$4 sm:$0xff]  }
 0xc5f   : > { %12399 = vmatpush1.bf16.msra.mxu1 %v25873_v2  ;;  %12314 = vmatprep.subr.bf16.mxu0 %v25878_v3  ;;  %v25951_v2 = vld [vmem:[%s26827_s24 + $0x884] ss:$16 sps:$4 sm:$0xff]   ;;  %v25954_v3 = vld [vmem:[%s26827_s24 + $0x88c] ss:$16 sps:$4 sm:$0xff]  }
 0xc60   : > { %12400 = vmatprep.subr.bf16.mxu1 %v25881_v16  ;;  %v25949_v16 = vld [vmem:[%s26827_s24 + $0x880] ss:$16 sps:$4 sm:$0xff]  }
 0xc62   : > { %12315 = vmatpush1.bf16.msra.mxu0 %v25876_v29  ;;  %v25952_v29 = vld [vmem:[%s26827_s24 + $0x888] ss:$16 sps:$4 sm:$0xff]  }
 0xc63   : > { %12401 = vmatpush1.bf16.msra.mxu1 %v25879_v55  ;;  %12316 = vmatprep.subr.bf16.mxu0 %v25884_v4  ;;  %v25957_v55 = vld [vmem:[%s26827_s24 + $0x8a4] ss:$16 sps:$4 sm:$0xff]   ;;  %v25960_v4 = vld [vmem:[%s26827_s24 + $0x8ac] ss:$16 sps:$4 sm:$0xff]  }
 0xc64   : > { %12402 = vmatprep.subr.bf16.mxu1 %v25887_v10  ;;  %v25955_v10 = vld [vmem:[%s26827_s24 + $0x8a0] ss:$16 sps:$4 sm:$0xff]  }
 0xc66   : > { %12317 = vmatpush1.bf16.msra.mxu0 %v25882_v11  ;;  %v25958_v11 = vld [vmem:[%s26827_s24 + $0x8a8] ss:$16 sps:$4 sm:$0xff]  }
 0xc67   : > { %12403 = vmatpush1.bf16.msra.mxu1 %v25885_v17  ;;  %12432 = vmatprep.subr.bf16.mxu0 %v28518_v48  ;;  %v25963_v17 = vld [vmem:[%s26827_s24 + $0x8c4] ss:$16 sps:$4 sm:$0xff]  }
 0xc68   : > { %12475 = vmatprep.subr.bf16.mxu1 %v28520_v51 }
 0xc69   : > { %12325 = vmatmul.mubr.bf16.vlgmr.msra.gmra.mrb[104].mxu0 %v28642_v12 }
 0xc6a   : > { %12411 = vmatmul.mubr.bf16.vlgmr.msra.gmra.mrb[104].mxu1 %v28642_v12  ;;  %12433 = vmatpush1.bf16.msra.mxu0 %v28514_v47  ;;  %v25889_v12 = vld [vmem:[%s26827_s24 + $0x740] ss:$16 sps:$4 sm:$0xff]  }
 0xc6b   : > { %12476 = vmatpush1.bf16.msra.mxu1 %v28516_v7  ;;  %12434 = vmatprep.subr.bf16.mxu0 %v28541_v9 }
 0xc6c   : > { %12477 = vmatprep.subr.bf16.mxu1 %v28547_v40  ;;  %12464 = vmatprep.mubr.bf16.mxu0 %v26760_v1 }
 0xc6d   : > { %12507 = vmatprep.mubr.bf16.mxu1 %v26760_v1 }
 0xc6e   : > { %12435 = vmatpush1.bf16.msra.mxu0 %v28544_v24 }
 0xc6f   : > { %12478 = vmatpush1.bf16.msra.mxu1 %v28550_v49  ;;  %13222 = vmatprep.subr.bf16.mxu0 %v25891_v18  ;;  %v25966_v18 = vld [vmem:[%s26827_s24 + $0x8cc] ss:$16 sps:$4 sm:$0xff]  }
 0xc70   : > { %13308 = vmatprep.subr.bf16.mxu1 %v25894_v19  ;;  %v25961_v19 = vld [vmem:[%s26827_s24 + $0x8c0] ss:$16 sps:$4 sm:$0xff]  }
 0xc71   : > { %21895 = vmatmul.mubr.msk.bf16.vlgmr.msra.gmra.mrb[108].mxu0 %vm10467_vm11, %v25888_v21 }
 0xc72   : > { %21896 = vmatmul.mubr.msk.bf16.vlgmr.msra.gmra.mrb[108].mxu1 %vm10467_vm11, %v25888_v21  ;;  %13223 = vmatpush1.bf16.msra.mxu0 %v25889_v12  ;;  %v25964_v21 = vld [vmem:[%s26827_s24 + $0x8c8] ss:$16 sps:$4 sm:$0xff]   ;;  %v25969_v12 = vld [vmem:[%s26827_s24 + $0x8e4] ss:$16 sps:$4 sm:$0xff]  }
 0xc73   : > { %13309 = vmatpush1.bf16.msra.mxu1 %v25892_v37  ;;  %13224 = vmatprep.subr.bf16.mxu0 %v25897_v39  ;;  %v25972_v37 = vld [vmem:[%s26827_s24 + $0x8ec] ss:$16 sps:$4 sm:$0xff]   ;;  %v25967_v39 = vld [vmem:[%s26827_s24 + $0x8e0] ss:$16 sps:$4 sm:$0xff]  }
 0xc74   : > { %13310 = vmatprep.subr.bf16.mxu1 %v25900_v54  ;;  %v25970_v54 = vld [vmem:[%s26827_s24 + $0x8e8] ss:$16 sps:$4 sm:$0xff]  }
 0xc76   : > { %13225 = vmatpush1.bf16.msra.mxu0 %v25895_v57  ;;  %v25975_v57 = vld [vmem:[%s26827_s24 + $0x904] ss:$16 sps:$4 sm:$0xff]  }
 0xc77   : > { %13311 = vmatpush1.bf16.msra.mxu1 %v25898_v35  ;;  %13226 = vmatprep.subr.bf16.mxu0 %v25903_v34  ;;  %v25978_v35 = vld [vmem:[%s26827_s24 + $0x90c] ss:$16 sps:$4 sm:$0xff]   ;;  %v25973_v34 = vld [vmem:[%s26827_s24 + $0x900] ss:$16 sps:$4 sm:$0xff]  }
 0xc78   : > { %13312 = vmatprep.subr.bf16.mxu1 %v25906_v63  ;;  %v25976_v63 = vld [vmem:[%s26827_s24 + $0x908] ss:$16 sps:$4 sm:$0xff]  }
 0xc7a   : > { %13227 = vmatpush1.bf16.msra.mxu0 %v25901_v5  ;;  %v25981_v5 = vld [vmem:[%s26827_s24 + $0x924] ss:$16 sps:$4 sm:$0xff]  }
 0xc7b   : > { %13313 = vmatpush1.bf16.msra.mxu1 %v25904_v53  ;;  %13228 = vmatprep.subr.bf16.mxu0 %v25909_v27  ;;  %v25984_v53 = vld [vmem:[%s26827_s24 + $0x92c] ss:$16 sps:$4 sm:$0xff]   ;;  %v25979_v27 = vld [vmem:[%s26827_s24 + $0x920] ss:$16 sps:$4 sm:$0xff]  }
 0xc7c   : > { %13314 = vmatprep.subr.bf16.mxu1 %v25912_v60  ;;  %v25982_v60 = vld [vmem:[%s26827_s24 + $0x928] ss:$16 sps:$4 sm:$0xff]  }
 0xc7e   : > { %13229 = vmatpush1.bf16.msra.mxu0 %v25907_v6  ;;  %v25987_v6 = vld [vmem:[%s26827_s24 + $0x944] ss:$16 sps:$4 sm:$0xff]  }
 0xc7f   : > { %13315 = vmatpush1.bf16.msra.mxu1 %v25910_v56  ;;  %13230 = vmatprep.subr.bf16.mxu0 %v25915_v31  ;;  %v25990_v56 = vld [vmem:[%s26827_s24 + $0x94c] ss:$16 sps:$4 sm:$0xff]  }
 0xc80   : > { %13316 = vmatprep.subr.bf16.mxu1 %v25918_v36 }
 0xc82   : > { %13231 = vmatpush1.bf16.msra.mxu0 %v25913_v62 }
 0xc83   : > { %13317 = vmatpush1.bf16.msra.mxu1 %v25916_v20  ;;  %13232 = vmatprep.subr.bf16.mxu0 %v25921_v32 }
 0xc84   : > { %13318 = vmatprep.subr.bf16.mxu1 %v25924_v52 }
 0xc86   : > { %13233 = vmatpush1.bf16.msra.mxu0 %v25919_v25 }
 0xc87   : > { %13319 = vmatpush1.bf16.msra.mxu1 %v25922_v59  ;;  %13234 = vmatprep.subr.bf16.mxu0 %v25927_v22 }
 0xc88   : > { %13320 = vmatprep.subr.bf16.mxu1 %v25930_v23  ;;  %v25985_v23 = vld [vmem:[%s26827_s24 + $0x940] ss:$16 sps:$4 sm:$0xff]  }
 0xc8a   : > { %13235 = vmatpush1.bf16.msra.mxu0 %v25925_v13  ;;  %v25988_v13 = vld [vmem:[%s26827_s24 + $0x948] ss:$16 sps:$4 sm:$0xff]  }
 0xc8b   : > { %13321 = vmatpush1.bf16.msra.mxu1 %v25928_v14  ;;  %13236 = vmatprep.subr.bf16.mxu0 %v25933_v26 }
 0xc8c   : > { %13322 = vmatprep.subr.bf16.mxu1 %v25936_v30  ;;  %v25993_v30 = vld [vmem:[%s26827_s24 + $0x964] ss:$16 sps:$4 sm:$0xff]  }
 0xc8e   : > { %13237 = vmatpush1.bf16.msra.mxu0 %v25931_v28  ;;  %v25996_v28 = vld [vmem:[%s26827_s24 + $0x96c] ss:$16 sps:$4 sm:$0xff]  }
 0xc8f   : > { %13323 = vmatpush1.bf16.msra.mxu1 %v25934_v0  ;;  %13238 = vmatprep.subr.bf16.mxu0 %v25939_v33  ;;  %v25991_v33 = vld [vmem:[%s26827_s24 + $0x960] ss:$16 sps:$4 sm:$0xff]  }
 0xc90   : > { %13324 = vmatprep.subr.bf16.mxu1 %v25942_v50  ;;  %v25994_v50 = vld [vmem:[%s26827_s24 + $0x968] ss:$16 sps:$4 sm:$0xff]  }
 0xc92   : > { %13239 = vmatpush1.bf16.msra.mxu0 %v25937_v44  ;;  %v25999_v44 = vld [vmem:[%s26827_s24 + $0x984] ss:$16 sps:$4 sm:$0xff]  }
 0xc93   : > { %13325 = vmatpush1.bf16.msra.mxu1 %v25940_v41  ;;  %13240 = vmatprep.subr.bf16.mxu0 %v25945_v61  ;;  %v26002_v41 = vld [vmem:[%s26827_s24 + $0x98c] ss:$16 sps:$4 sm:$0xff]   ;;  %v25997_v61 = vld [vmem:[%s26827_s24 + $0x980] ss:$16 sps:$4 sm:$0xff]  }
 0xc94   : > { %13326 = vmatprep.subr.bf16.mxu1 %v25948_v58  ;;  %v26000_v58 = vld [vmem:[%s26827_s24 + $0x988] ss:$16 sps:$4 sm:$0xff]  }
 0xc96   : > { %13241 = vmatpush1.bf16.msra.mxu0 %v25943_v15  ;;  %v26005_v15 = vld [vmem:[%s26827_s24 + $0x9a4] ss:$16 sps:$4 sm:$0xff]  }
 0xc97   : > { %13327 = vmatpush1.bf16.msra.mxu1 %v25946_v8  ;;  %13242 = vmatprep.subr.bf16.mxu0 %v25951_v2  ;;  %v26008_v8 = vld [vmem:[%s26827_s24 + $0x9ac] ss:$16 sps:$4 sm:$0xff]   ;;  %v26003_v2 = vld [vmem:[%s26827_s24 + $0x9a0] ss:$16 sps:$4 sm:$0xff]  }
 0xc98   : > { %13328 = vmatprep.subr.bf16.mxu1 %v25954_v3  ;;  %v26006_v3 = vld [vmem:[%s26827_s24 + $0x9a8] ss:$16 sps:$4 sm:$0xff]  }
 0xc9a   : > { %13243 = vmatpush1.bf16.msra.mxu0 %v25949_v16  ;;  %v26011_v16 = vld [vmem:[%s26827_s24 + $0x9c4] ss:$16 sps:$4 sm:$0xff]  }
 0xc9b   : > { %13329 = vmatpush1.bf16.msra.mxu1 %v25952_v29  ;;  %13244 = vmatprep.subr.bf16.mxu0 %v25957_v55  ;;  %v26014_v29 = vld [vmem:[%s26827_s24 + $0x9cc] ss:$16 sps:$4 sm:$0xff]   ;;  %v26009_v55 = vld [vmem:[%s26827_s24 + $0x9c0] ss:$16 sps:$4 sm:$0xff]  }
 0xc9c   : > { %13330 = vmatprep.subr.bf16.mxu1 %v25960_v4  ;;  %v26012_v4 = vld [vmem:[%s26827_s24 + $0x9c8] ss:$16 sps:$4 sm:$0xff]  }
 0xc9e   : > { %13245 = vmatpush1.bf16.msra.mxu0 %v25955_v10  ;;  %v26017_v10 = vld [vmem:[%s26827_s24 + $0x9e4] ss:$16 sps:$4 sm:$0xff]  }
 0xc9f   : > { %13331 = vmatpush1.bf16.msra.mxu1 %v25958_v11  ;;  %13246 = vmatprep.subr.bf16.mxu0 %v25963_v17  ;;  %v26020_v11 = vld [vmem:[%s26827_s24 + $0x9ec] ss:$16 sps:$4 sm:$0xff]   ;;  %v26015_v17 = vld [vmem:[%s26827_s24 + $0x9e0] ss:$16 sps:$4 sm:$0xff]  }
 0xca0   : > { %13332 = vmatprep.subr.bf16.mxu1 %v25966_v18  ;;  %v26018_v18 = vld [vmem:[%s26827_s24 + $0x9e8] ss:$16 sps:$4 sm:$0xff]  }
 0xca2   : > { %13247 = vmatpush1.bf16.msra.mxu0 %v25961_v19  ;;  %v26023_v19 = vld [vmem:[%s26827_s24 + $0xa04] ss:$16 sps:$4 sm:$0xff]  }
 0xca3   : > { %13333 = vmatpush1.bf16.msra.mxu1 %v25964_v21  ;;  %13248 = vmatprep.subr.bf16.mxu0 %v25969_v12  ;;  %v26026_v21 = vld [vmem:[%s26827_s24 + $0xa0c] ss:$16 sps:$4 sm:$0xff]   ;;  %v26021_v12 = vld [vmem:[%s26827_s24 + $0xa00] ss:$16 sps:$4 sm:$0xff]  }
 0xca4   : > { %13334 = vmatprep.subr.bf16.mxu1 %v25972_v37  ;;  %v26024_v37 = vld [vmem:[%s26827_s24 + $0xa08] ss:$16 sps:$4 sm:$0xff]  }
 0xca6   : > { %13249 = vmatpush1.bf16.msra.mxu0 %v25967_v39  ;;  %v26029_v39 = vld [vmem:[%s26827_s24 + $0xa24] ss:$16 sps:$4 sm:$0xff]  }
 0xca7   : > { %13335 = vmatpush1.bf16.msra.mxu1 %v25970_v54  ;;  %13250 = vmatprep.subr.bf16.mxu0 %v25975_v57  ;;  %v26032_v54 = vld [vmem:[%s26827_s24 + $0xa2c] ss:$16 sps:$4 sm:$0xff]   ;;  %v26027_v57 = vld [vmem:[%s26827_s24 + $0xa20] ss:$16 sps:$4 sm:$0xff]  }
 0xca8   : > { %13336 = vmatprep.subr.bf16.mxu1 %v25978_v35  ;;  %v26030_v35 = vld [vmem:[%s26827_s24 + $0xa28] ss:$16 sps:$4 sm:$0xff]  }
 0xcaa   : > { %13251 = vmatpush1.bf16.msra.mxu0 %v25973_v34  ;;  %v26035_v34 = vld [vmem:[%s26827_s24 + $0xa44] ss:$16 sps:$4 sm:$0xff]  }
 0xcab   : > { %13337 = vmatpush1.bf16.msra.mxu1 %v25976_v63  ;;  %13252 = vmatprep.subr.bf16.mxu0 %v25981_v5  ;;  %v26038_v63 = vld [vmem:[%s26827_s24 + $0xa4c] ss:$16 sps:$4 sm:$0xff]   ;;  %v26033_v5 = vld [vmem:[%s26827_s24 + $0xa40] ss:$16 sps:$4 sm:$0xff]  }
 0xcac   : > { %13338 = vmatprep.subr.bf16.mxu1 %v25984_v53  ;;  %v26036_v53 = vld [vmem:[%s26827_s24 + $0xa48] ss:$16 sps:$4 sm:$0xff]  }
 0xcae   : > { %13253 = vmatpush1.bf16.msra.mxu0 %v25979_v27  ;;  %v26041_v27 = vld [vmem:[%s26827_s24 + $0xa64] ss:$16 sps:$4 sm:$0xff]  }
 0xcaf   : > { %13339 = vmatpush1.bf16.msra.mxu1 %v25982_v60  ;;  %13265 = vmatprep.subr.bf16.mxu0 %v25987_v6  ;;  %v26044_v60 = vld [vmem:[%s26827_s24 + $0xa6c] ss:$16 sps:$4 sm:$0xff]   ;;  %v26039_v6 = vld [vmem:[%s26827_s24 + $0xa60] ss:$16 sps:$4 sm:$0xff]  }
 0xcb0   : > { %13351 = vmatprep.subr.bf16.mxu1 %v25990_v56  ;;  %v26042_v56 = vld [vmem:[%s26827_s24 + $0xa68] ss:$16 sps:$4 sm:$0xff]  }
 0xd44   : > { %v12466_v31 = vpop.f32.mrb[108].mxu0 }
 0xd45   : > { %v12468_v36 = vpop.f32.mrb[109].mxu0  ;;  %v12509_v62 = vpop.f32.mrb[108].mxu1 }
 0xd46   : > { %v12470_v20 = vpop.f32.mrb[110].mxu0  ;;  %v12511_v32 = vpop.f32.mrb[109].mxu1 }
 0xd47   : > { %v12518_v52 = vpack.c.bf16 %v12470_v20, %v12466_v31  ;;  %v12472_v25 = vpop.f32.mrb[111].mxu0  ;;  %v12513_v59 = vpop.f32.mrb[110].mxu1  ;;  %v26047_v31 = vld [vmem:[%s26827_s24 + $0xa84] ss:$16 sps:$4 sm:$0xff]   ;;  %v26048_v20 = vld [vmem:[%s26827_s24 + $0xa88] ss:$16 sps:$4 sm:$0xff]  }
 0xd48   : > { %v12519_v22 = vpack.c.bf16 %v12472_v25, %v12468_v36  ;;  %v28909_v14 = vpack.c.bf16 %v12513_v59, %v12509_v62  ;;  %v12515_v26 = vpop.f32.mrb[111].mxu1  ;;  %v26050_v36 = vld [vmem:[%s26827_s24 + $0xa8c] ss:$16 sps:$4 sm:$0xff]   ;;  %v26045_v62 = vld [vmem:[%s26827_s24 + $0xa80] ss:$16 sps:$4 sm:$0xff]  }
 0xd49   : > { %v12521_v0 = vpack.c.bf16 %v12515_v26, %v12511_v32  ;;  %v26053_v32 = vld [vmem:[%s26827_s24 + $0xaa4] ss:$16 sps:$4 sm:$0xff]   ;;  %v26051_v25 = vld [vmem:[%s26827_s24 + $0xaa0] ss:$16 sps:$4 sm:$0xff]   ;;  %v26054_v59 = vld [vmem:[%s26827_s24 + $0xaa8] ss:$16 sps:$4 sm:$0xff]  }
 0xd4a   : > { %13254 = vmatprep.mubr.bf16.mxu0 %v12519_v22  ;;  %13340 = vmatprep.mubr.bf16.mxu1 %v12519_v22  ;;  %v26059_v22 = vld [vmem:[%s26827_s24 + $0xac4] ss:$16 sps:$4 sm:$0xff]   ;;  %v26060_v26 = vld [vmem:[%s26827_s24 + $0xac8] ss:$16 sps:$4 sm:$0xff]  }
 0xd4b   : > { %13255 = vmatmul.mubr.bf16.vlgmr.msra.gmra.mrb[104].mxu0 %v12518_v52  ;;  %13341 = vmatmul.mubr.bf16.vlgmr.msra.gmra.mrb[104].mxu1 %v12518_v52  ;;  %v26056_v52 = vld [vmem:[%s26827_s24 + $0xaac] ss:$16 sps:$4 sm:$0xff]  }
 0xd4c   : > { %13266 = vmatpush1.bf16.msra.mxu0 %v25985_v23  ;;  %13352 = vmatpush1.bf16.msra.mxu1 %v25988_v13  ;;  %v26062_v23 = vld [vmem:[%s26827_s24 + $0xacc] ss:$16 sps:$4 sm:$0xff]   ;;  %v26057_v13 = vld [vmem:[%s26827_s24 + $0xac0] ss:$16 sps:$4 sm:$0xff]  }
 0xd4d   : > { %13267 = vmatprep.subr.bf16.mxu0 %v25993_v30  ;;  %13353 = vmatprep.subr.bf16.mxu1 %v25996_v28  ;;  %v26066_v30 = vld [vmem:[%s26827_s24 + $0xae4] ss:$16 sps:$4 sm:$0xff]   ;;  %v26069_v28 = vld [vmem:[%s26827_s24 + $0xaec] ss:$16 sps:$4 sm:$0xff]  }
 0xd4e   : > { %22129 = vmatprep.mubr.msk.bf16.mxu0 %vm11490_vm12, %v12521_v0  ;;  %22130 = vmatprep.mubr.msk.bf16.mxu1 %vm11490_vm12, %v12521_v0  ;;  %v26063_v0 = vld [vmem:[%s26822_s19 + $0x18] sm:$0x7f]  }
 0xd50   : > { %13268 = vmatpush1.bf16.msra.mxu0 %v25991_v33  ;;  %13354 = vmatpush1.bf16.msra.mxu1 %v25994_v50  ;;  %v26067_v33 = vld [vmem:[%s26827_s24 + $0xae8] ss:$16 sps:$4 sm:$0xff]   ;;  %v26072_v50 = vld [vmem:[%s26827_s24 + $0xb04] ss:$16 sps:$4 sm:$0xff]  }
 0xd51   : > { %13269 = vmatprep.subr.bf16.mxu0 %v25999_v44  ;;  %13355 = vmatprep.subr.bf16.mxu1 %v26002_v41  ;;  %v26075_v44 = vld [vmem:[%s26827_s24 + $0xb0c] ss:$16 sps:$4 sm:$0xff]   ;;  %v26070_v41 = vld [vmem:[%s26827_s24 + $0xb00] ss:$16 sps:$4 sm:$0xff]  }
 0xd54   : > { %13270 = vmatpush1.bf16.msra.mxu0 %v25997_v61  ;;  %13356 = vmatpush1.bf16.msra.mxu1 %v26000_v58  ;;  %v26073_v61 = vld [vmem:[%s26827_s24 + $0xb08] ss:$16 sps:$4 sm:$0xff]   ;;  %v26078_v58 = vld [vmem:[%s26827_s24 + $0xb24] ss:$16 sps:$4 sm:$0xff]  }
 0xd55   : > { %13271 = vmatprep.subr.bf16.mxu0 %v26005_v15  ;;  %13357 = vmatprep.subr.bf16.mxu1 %v26008_v8  ;;  %v26081_v15 = vld [vmem:[%s26827_s24 + $0xb2c] ss:$16 sps:$4 sm:$0xff]   ;;  %v26076_v8 = vld [vmem:[%s26827_s24 + $0xb20] ss:$16 sps:$4 sm:$0xff]  }
 0xd58   : > { %13272 = vmatpush1.bf16.msra.mxu0 %v26003_v2  ;;  %13358 = vmatpush1.bf16.msra.mxu1 %v26006_v3  ;;  %v26079_v2 = vld [vmem:[%s26827_s24 + $0xb28] ss:$16 sps:$4 sm:$0xff]   ;;  %v26084_v3 = vld [vmem:[%s26827_s24 + $0xb44] ss:$16 sps:$4 sm:$0xff]  }
 0xd59   : > { %13273 = vmatprep.subr.bf16.mxu0 %v26011_v16  ;;  %13359 = vmatprep.subr.bf16.mxu1 %v26014_v29  ;;  %v26087_v16 = vld [vmem:[%s26827_s24 + $0xb4c] ss:$16 sps:$4 sm:$0xff]   ;;  %v26082_v29 = vld [vmem:[%s26827_s24 + $0xb40] ss:$16 sps:$4 sm:$0xff]  }
 0xd5c   : > { %13274 = vmatpush1.bf16.msra.mxu0 %v26009_v55  ;;  %13360 = vmatpush1.bf16.msra.mxu1 %v26012_v4  ;;  %v26085_v55 = vld [vmem:[%s26827_s24 + $0xb48] ss:$16 sps:$4 sm:$0xff]   ;;  %v26090_v4 = vld [vmem:[%s26827_s24 + $0xb64] ss:$16 sps:$4 sm:$0xff]  }
 0xd5d   : > { %13275 = vmatprep.subr.bf16.mxu0 %v26017_v10  ;;  %13361 = vmatprep.subr.bf16.mxu1 %v26020_v11  ;;  %v26093_v10 = vld [vmem:[%s26827_s24 + $0xb6c] ss:$16 sps:$4 sm:$0xff]   ;;  %v26088_v11 = vld [vmem:[%s26827_s24 + $0xb60] ss:$16 sps:$4 sm:$0xff]  }
 0xd60   : > { %13276 = vmatpush1.bf16.msra.mxu0 %v26015_v17  ;;  %13362 = vmatpush1.bf16.msra.mxu1 %v26018_v18  ;;  %v26091_v17 = vld [vmem:[%s26827_s24 + $0xb68] ss:$16 sps:$4 sm:$0xff]   ;;  %v26096_v18 = vld [vmem:[%s26827_s24 + $0xb84] ss:$16 sps:$4 sm:$0xff]  }
 0xd61   : > { %13277 = vmatprep.subr.bf16.mxu0 %v26023_v19  ;;  %13363 = vmatprep.subr.bf16.mxu1 %v26026_v21  ;;  %v26099_v19 = vld [vmem:[%s26827_s24 + $0xb8c] ss:$16 sps:$4 sm:$0xff]   ;;  %v26094_v21 = vld [vmem:[%s26827_s24 + $0xb80] ss:$16 sps:$4 sm:$0xff]  }
 0xd64   : > { %13278 = vmatpush1.bf16.msra.mxu0 %v26021_v12  ;;  %13364 = vmatpush1.bf16.msra.mxu1 %v26024_v37  ;;  %v26097_v12 = vld [vmem:[%s26827_s24 + $0xb88] ss:$16 sps:$4 sm:$0xff]   ;;  %v26102_v37 = vld [vmem:[%s26827_s24 + $0xba4] ss:$16 sps:$4 sm:$0xff]  }
 0xd65   : > { %13279 = vmatprep.subr.bf16.mxu0 %v26029_v39  ;;  %13365 = vmatprep.subr.bf16.mxu1 %v26032_v54  ;;  %v26105_v39 = vld [vmem:[%s26827_s24 + $0xbac] ss:$16 sps:$4 sm:$0xff]   ;;  %v26100_v54 = vld [vmem:[%s26827_s24 + $0xba0] ss:$16 sps:$4 sm:$0xff]  }
 0xd68   : > { %13280 = vmatpush1.bf16.msra.mxu0 %v26027_v57  ;;  %13366 = vmatpush1.bf16.msra.mxu1 %v26030_v35  ;;  %v26103_v57 = vld [vmem:[%s26827_s24 + $0xba8] ss:$16 sps:$4 sm:$0xff]   ;;  %v26108_v35 = vld [vmem:[%s26827_s24 + $0xbc4] ss:$16 sps:$4 sm:$0xff]  }
 0xd69   : > { %13281 = vmatprep.subr.bf16.mxu0 %v26035_v34  ;;  %13367 = vmatprep.subr.bf16.mxu1 %v26038_v63  ;;  %v26111_v34 = vld [vmem:[%s26827_s24 + $0xbcc] ss:$16 sps:$4 sm:$0xff]   ;;  %v26106_v63 = vld [vmem:[%s26827_s24 + $0xbc0] ss:$16 sps:$4 sm:$0xff]  }
 0xd6c   : > { %13282 = vmatpush1.bf16.msra.mxu0 %v26033_v5  ;;  %13368 = vmatpush1.bf16.msra.mxu1 %v26036_v53  ;;  %v26109_v5 = vld [vmem:[%s26827_s24 + $0xbc8] ss:$16 sps:$4 sm:$0xff]   ;;  %v26114_v53 = vld [vmem:[%s26827_s24 + $0xbe4] ss:$16 sps:$4 sm:$0xff]  }
 0xd6d   : > { %13283 = vmatprep.subr.bf16.mxu0 %v26041_v27  ;;  %13369 = vmatprep.subr.bf16.mxu1 %v26044_v60  ;;  %v26117_v27 = vld [vmem:[%s26827_s24 + $0xbec] ss:$16 sps:$4 sm:$0xff]   ;;  %v26112_v60 = vld [vmem:[%s26827_s24 + $0xbe0] ss:$16 sps:$4 sm:$0xff]  }
 0xd70   : > { %13284 = vmatpush1.bf16.msra.mxu0 %v26039_v6  ;;  %13370 = vmatpush1.bf16.msra.mxu1 %v26042_v56  ;;  %v26115_v6 = vld [vmem:[%s26827_s24 + $0xbe8] ss:$16 sps:$4 sm:$0xff]   ;;  %v26120_v56 = vld [vmem:[%s26827_s24 + $0xc04] ss:$16 sps:$4 sm:$0xff]  }
 0xd71   : > { %13285 = vmatprep.subr.bf16.mxu0 %v26047_v31  ;;  %13371 = vmatprep.subr.bf16.mxu1 %v26050_v36  ;;  %v26123_v31 = vld [vmem:[%s26827_s24 + $0xc0c] ss:$16 sps:$4 sm:$0xff]   ;;  %v26118_v36 = vld [vmem:[%s26827_s24 + $0xc00] ss:$16 sps:$4 sm:$0xff]  }
 0xd74   : > { %13286 = vmatpush1.bf16.msra.mxu0 %v26045_v62  ;;  %13372 = vmatpush1.bf16.msra.mxu1 %v26048_v20  ;;  %v26121_v62 = vld [vmem:[%s26827_s24 + $0xc08] ss:$16 sps:$4 sm:$0xff]   ;;  %v26126_v20 = vld [vmem:[%s26827_s24 + $0xc24] ss:$16 sps:$4 sm:$0xff]  }
 0xd75   : > { %13287 = vmatprep.subr.bf16.mxu0 %v26053_v32  ;;  %13373 = vmatprep.subr.bf16.mxu1 %v26056_v52  ;;  %v26129_v32 = vld [vmem:[%s26827_s24 + $0xc2c] ss:$16 sps:$4 sm:$0xff]   ;;  %v26124_v52 = vld [vmem:[%s26827_s24 + $0xc20] ss:$16 sps:$4 sm:$0xff]  }
 0xd78   : > { %13288 = vmatpush1.bf16.msra.mxu0 %v26051_v25  ;;  %13374 = vmatpush1.bf16.msra.mxu1 %v26054_v59  ;;  %v26127_v25 = vld [vmem:[%s26827_s24 + $0xc28] ss:$16 sps:$4 sm:$0xff]   ;;  %v26132_v59 = vld [vmem:[%s26827_s24 + $0xc44] ss:$16 sps:$4 sm:$0xff]  }
 0xd79   : > { %13289 = vmatprep.subr.bf16.mxu0 %v26059_v22  ;;  %13375 = vmatprep.subr.bf16.mxu1 %v26062_v23  ;;  %v26135_v22 = vld [vmem:[%s26827_s24 + $0xc4c] ss:$16 sps:$4 sm:$0xff]   ;;  %v26130_v23 = vld [vmem:[%s26827_s24 + $0xc40] ss:$16 sps:$4 sm:$0xff]  }
 0xd7c   : > { %13290 = vmatpush1.bf16.msra.mxu0 %v26057_v13  ;;  %13376 = vmatpush1.bf16.msra.mxu1 %v26060_v26  ;;  %v26133_v13 = vld [vmem:[%s26827_s24 + $0xc48] ss:$16 sps:$4 sm:$0xff]   ;;  %v26138_v26 = vld [vmem:[%s26827_s24 + $0xc64] ss:$16 sps:$4 sm:$0xff]  }
 0xd7d   : > { %13413 = vmatprep.subr.bf16.mxu0 %v28518_v48  ;;  %13456 = vmatprep.subr.bf16.mxu1 %v28520_v51 }
 0xd7f   : > { %13298 = vmatmul.mubr.bf16.vlgmr.msra.gmra.mrb[104].mxu0 %v28909_v14  ;;  %13384 = vmatmul.mubr.bf16.vlgmr.msra.gmra.mrb[104].mxu1 %v28909_v14  ;;  %v26064_v14 = vld [vmem:[%s26827_s24 + $0xae0] ss:$16 sps:$4 sm:$0xff]  }
 0xd80   : > { %13414 = vmatpush1.bf16.msra.mxu0 %v28514_v47  ;;  %13457 = vmatpush1.bf16.msra.mxu1 %v28516_v7 }
 0xd81   : > { %13415 = vmatprep.subr.bf16.mxu0 %v28541_v9  ;;  %13458 = vmatprep.subr.bf16.mxu1 %v28547_v40 }
 0xd82   : > { %13445 = vmatprep.mubr.bf16.mxu0 %v26760_v1  ;;  %13488 = vmatprep.mubr.bf16.mxu1 %v26760_v1 }
 0xd84   : > { %13416 = vmatpush1.bf16.msra.mxu0 %v28544_v24  ;;  %13459 = vmatpush1.bf16.msra.mxu1 %v28550_v49 }
 0xd85   : > { %14203 = vmatprep.subr.bf16.mxu0 %v26066_v30  ;;  %14289 = vmatprep.subr.bf16.mxu1 %v26069_v28  ;;  %v26141_v30 = vld [vmem:[%s26827_s24 + $0xc6c] ss:$16 sps:$4 sm:$0xff]   ;;  %v26136_v28 = vld [vmem:[%s26827_s24 + $0xc60] ss:$16 sps:$4 sm:$0xff]  }
 0xd87   : > { %22134 = vmatmul.mubr.msk.bf16.vlgmr.msra.gmra.mrb[112].mxu0 %vm10467_vm11, %v26063_v0  ;;  %22135 = vmatmul.mubr.msk.bf16.vlgmr.msra.gmra.mrb[112].mxu1 %vm10467_vm11, %v26063_v0  ;;  %v26139_v0 = vld [vmem:[%s26827_s24 + $0xc68] ss:$16 sps:$4 sm:$0xff]  }
 0xd88   : > { %14204 = vmatpush1.bf16.msra.mxu0 %v26064_v14  ;;  %14290 = vmatpush1.bf16.msra.mxu1 %v26067_v33  ;;  %v26144_v14 = vld [vmem:[%s26827_s24 + $0xc84] ss:$16 sps:$4 sm:$0xff]   ;;  %v26147_v33 = vld [vmem:[%s26827_s24 + $0xc8c] ss:$16 sps:$4 sm:$0xff]  }
 0xd89   : > { %14205 = vmatprep.subr.bf16.mxu0 %v26072_v50  ;;  %14291 = vmatprep.subr.bf16.mxu1 %v26075_v44  ;;  %v26142_v50 = vld [vmem:[%s26827_s24 + $0xc80] ss:$16 sps:$4 sm:$0xff]   ;;  %v26145_v44 = vld [vmem:[%s26827_s24 + $0xc88] ss:$16 sps:$4 sm:$0xff]  }
 0xd8c   : > { %14206 = vmatpush1.bf16.msra.mxu0 %v26070_v41  ;;  %14292 = vmatpush1.bf16.msra.mxu1 %v26073_v61  ;;  %v26150_v41 = vld [vmem:[%s26827_s24 + $0xca4] ss:$16 sps:$4 sm:$0xff]   ;;  %v26153_v61 = vld [vmem:[%s26827_s24 + $0xcac] ss:$16 sps:$4 sm:$0xff]  }
 0xd8d   : > { %14207 = vmatprep.subr.bf16.mxu0 %v26078_v58  ;;  %14293 = vmatprep.subr.bf16.mxu1 %v26081_v15  ;;  %v26148_v58 = vld [vmem:[%s26827_s24 + $0xca0] ss:$16 sps:$4 sm:$0xff]   ;;  %v26151_v15 = vld [vmem:[%s26827_s24 + $0xca8] ss:$16 sps:$4 sm:$0xff]  }
 0xd90   : > { %14208 = vmatpush1.bf16.msra.mxu0 %v26076_v8  ;;  %14294 = vmatpush1.bf16.msra.mxu1 %v26079_v2  ;;  %v26156_v8 = vld [vmem:[%s26827_s24 + $0xcc4] ss:$16 sps:$4 sm:$0xff]   ;;  %v26159_v2 = vld [vmem:[%s26827_s24 + $0xccc] ss:$16 sps:$4 sm:$0xff]  }
 0xd91   : > { %14209 = vmatprep.subr.bf16.mxu0 %v26084_v3  ;;  %14295 = vmatprep.subr.bf16.mxu1 %v26087_v16  ;;  %v26154_v3 = vld [vmem:[%s26827_s24 + $0xcc0] ss:$16 sps:$4 sm:$0xff]   ;;  %v26157_v16 = vld [vmem:[%s26827_s24 + $0xcc8] ss:$16 sps:$4 sm:$0xff]  }
 0xd94   : > { %14210 = vmatpush1.bf16.msra.mxu0 %v26082_v29  ;;  %14296 = vmatpush1.bf16.msra.mxu1 %v26085_v55  ;;  %v26162_v29 = vld [vmem:[%s26827_s24 + $0xce4] ss:$16 sps:$4 sm:$0xff]   ;;  %v26165_v55 = vld [vmem:[%s26827_s24 + $0xcec] ss:$16 sps:$4 sm:$0xff]  }
 0xd95   : > { %14211 = vmatprep.subr.bf16.mxu0 %v26090_v4  ;;  %14297 = vmatprep.subr.bf16.mxu1 %v26093_v10 }
 0xd98   : > { %14212 = vmatpush1.bf16.msra.mxu0 %v26088_v11  ;;  %14298 = vmatpush1.bf16.msra.mxu1 %v26091_v17 }
 0xd99   : > { %14213 = vmatprep.subr.bf16.mxu0 %v26096_v18  ;;  %14299 = vmatprep.subr.bf16.mxu1 %v26099_v19 }
 0xd9c   : > { %14214 = vmatpush1.bf16.msra.mxu0 %v26094_v21  ;;  %14300 = vmatpush1.bf16.msra.mxu1 %v26097_v12 }
 0xd9d   : > { %14215 = vmatprep.subr.bf16.mxu0 %v26102_v37  ;;  %14301 = vmatprep.subr.bf16.mxu1 %v26105_v39 }
 0xda0   : > { %14216 = vmatpush1.bf16.msra.mxu0 %v26100_v54  ;;  %14302 = vmatpush1.bf16.msra.mxu1 %v26103_v57  ;;  %v26160_v57 = vld [vmem:[%s26827_s24 + $0xce0] ss:$16 sps:$4 sm:$0xff]  }
 0xda1   : > { %14217 = vmatprep.subr.bf16.mxu0 %v26108_v35  ;;  %14303 = vmatprep.subr.bf16.mxu1 %v26111_v34  ;;  %v26163_v35 = vld [vmem:[%s26827_s24 + $0xce8] ss:$16 sps:$4 sm:$0xff]  }
 0xda4   : > { %14218 = vmatpush1.bf16.msra.mxu0 %v26106_v63  ;;  %14304 = vmatpush1.bf16.msra.mxu1 %v26109_v5  ;;  %v26168_v63 = vld [vmem:[%s26827_s24 + $0xd04] ss:$16 sps:$4 sm:$0xff]   ;;  %v26171_v5 = vld [vmem:[%s26827_s24 + $0xd0c] ss:$16 sps:$4 sm:$0xff]  }
 0xda5   : > { %14219 = vmatprep.subr.bf16.mxu0 %v26114_v53  ;;  %14305 = vmatprep.subr.bf16.mxu1 %v26117_v27  ;;  %v26166_v53 = vld [vmem:[%s26827_s24 + $0xd00] ss:$16 sps:$4 sm:$0xff]   ;;  %v26169_v27 = vld [vmem:[%s26827_s24 + $0xd08] ss:$16 sps:$4 sm:$0xff]  }
 0xda8   : > { %14220 = vmatpush1.bf16.msra.mxu0 %v26112_v60  ;;  %14306 = vmatpush1.bf16.msra.mxu1 %v26115_v6  ;;  %v26174_v60 = vld [vmem:[%s26827_s24 + $0xd24] ss:$16 sps:$4 sm:$0xff]   ;;  %v26177_v6 = vld [vmem:[%s26827_s24 + $0xd2c] ss:$16 sps:$4 sm:$0xff]  }
 0xda9   : > { %14221 = vmatprep.subr.bf16.mxu0 %v26120_v56  ;;  %14307 = vmatprep.subr.bf16.mxu1 %v26123_v31  ;;  %v26172_v56 = vld [vmem:[%s26827_s24 + $0xd20] ss:$16 sps:$4 sm:$0xff]   ;;  %v26175_v31 = vld [vmem:[%s26827_s24 + $0xd28] ss:$16 sps:$4 sm:$0xff]  }
 0xdac   : > { %14222 = vmatpush1.bf16.msra.mxu0 %v26118_v36  ;;  %14308 = vmatpush1.bf16.msra.mxu1 %v26121_v62  ;;  %v26180_v36 = vld [vmem:[%s26827_s24 + $0xd44] ss:$16 sps:$4 sm:$0xff]   ;;  %v26183_v62 = vld [vmem:[%s26827_s24 + $0xd4c] ss:$16 sps:$4 sm:$0xff]  }
 0xdad   : > { %14223 = vmatprep.subr.bf16.mxu0 %v26126_v20  ;;  %14309 = vmatprep.subr.bf16.mxu1 %v26129_v32  ;;  %v26178_v20 = vld [vmem:[%s26827_s24 + $0xd40] ss:$16 sps:$4 sm:$0xff]   ;;  %v26181_v32 = vld [vmem:[%s26827_s24 + $0xd48] ss:$16 sps:$4 sm:$0xff]  }
 0xdb0   : > { %14224 = vmatpush1.bf16.msra.mxu0 %v26124_v52  ;;  %14310 = vmatpush1.bf16.msra.mxu1 %v26127_v25  ;;  %v26186_v52 = vld [vmem:[%s26827_s24 + $0xd64] ss:$16 sps:$4 sm:$0xff]   ;;  %v26189_v25 = vld [vmem:[%s26827_s24 + $0xd6c] ss:$16 sps:$4 sm:$0xff]  }
 0xdb1   : > { %14225 = vmatprep.subr.bf16.mxu0 %v26132_v59  ;;  %14311 = vmatprep.subr.bf16.mxu1 %v26135_v22  ;;  %v26184_v59 = vld [vmem:[%s26827_s24 + $0xd60] ss:$16 sps:$4 sm:$0xff]   ;;  %v26187_v22 = vld [vmem:[%s26827_s24 + $0xd68] ss:$16 sps:$4 sm:$0xff]  }
 0xdb4   : > { %14226 = vmatpush1.bf16.msra.mxu0 %v26130_v23  ;;  %14312 = vmatpush1.bf16.msra.mxu1 %v26133_v13  ;;  %v26192_v23 = vld [vmem:[%s26827_s24 + $0xd84] ss:$16 sps:$4 sm:$0xff]   ;;  %v26195_v13 = vld [vmem:[%s26827_s24 + $0xd8c] ss:$16 sps:$4 sm:$0xff]  }
 0xdb5   : > { %14227 = vmatprep.subr.bf16.mxu0 %v26138_v26  ;;  %14313 = vmatprep.subr.bf16.mxu1 %v26141_v30  ;;  %v26190_v26 = vld [vmem:[%s26827_s24 + $0xd80] ss:$16 sps:$4 sm:$0xff]   ;;  %v26193_v30 = vld [vmem:[%s26827_s24 + $0xd88] ss:$16 sps:$4 sm:$0xff]  }
 0xdb8   : > { %14228 = vmatpush1.bf16.msra.mxu0 %v26136_v28  ;;  %14314 = vmatpush1.bf16.msra.mxu1 %v26139_v0  ;;  %v26198_v28 = vld [vmem:[%s26827_s24 + $0xda4] ss:$16 sps:$4 sm:$0xff]   ;;  %v26201_v0 = vld [vmem:[%s26827_s24 + $0xdac] ss:$16 sps:$4 sm:$0xff]  }
 0xdb9   : > { %14229 = vmatprep.subr.bf16.mxu0 %v26144_v14  ;;  %14315 = vmatprep.subr.bf16.mxu1 %v26147_v33  ;;  %v26196_v14 = vld [vmem:[%s26827_s24 + $0xda0] ss:$16 sps:$4 sm:$0xff]   ;;  %v26199_v33 = vld [vmem:[%s26827_s24 + $0xda8] ss:$16 sps:$4 sm:$0xff]  }
 0xdbc   : > { %14230 = vmatpush1.bf16.msra.mxu0 %v26142_v50  ;;  %14316 = vmatpush1.bf16.msra.mxu1 %v26145_v44  ;;  %v26204_v50 = vld [vmem:[%s26827_s24 + $0xdc4] ss:$16 sps:$4 sm:$0xff]   ;;  %v26207_v44 = vld [vmem:[%s26827_s24 + $0xdcc] ss:$16 sps:$4 sm:$0xff]  }
 0xdbd   : > { %14231 = vmatprep.subr.bf16.mxu0 %v26150_v41  ;;  %14317 = vmatprep.subr.bf16.mxu1 %v26153_v61  ;;  %v26202_v41 = vld [vmem:[%s26827_s24 + $0xdc0] ss:$16 sps:$4 sm:$0xff]   ;;  %v26205_v61 = vld [vmem:[%s26827_s24 + $0xdc8] ss:$16 sps:$4 sm:$0xff]  }
 0xdc0   : > { %14232 = vmatpush1.bf16.msra.mxu0 %v26148_v58  ;;  %14318 = vmatpush1.bf16.msra.mxu1 %v26151_v15  ;;  %v26210_v58 = vld [vmem:[%s26827_s24 + $0xde4] ss:$16 sps:$4 sm:$0xff]   ;;  %v26213_v15 = vld [vmem:[%s26827_s24 + $0xdec] ss:$16 sps:$4 sm:$0xff]  }
 0xdc1   : > { %14233 = vmatprep.subr.bf16.mxu0 %v26156_v8  ;;  %14319 = vmatprep.subr.bf16.mxu1 %v26159_v2  ;;  %v26208_v8 = vld [vmem:[%s26827_s24 + $0xde0] ss:$16 sps:$4 sm:$0xff]   ;;  %v26211_v2 = vld [vmem:[%s26827_s24 + $0xde8] ss:$16 sps:$4 sm:$0xff]  }
 0xdc4   : > { %14234 = vmatpush1.bf16.msra.mxu0 %v26154_v3  ;;  %14320 = vmatpush1.bf16.msra.mxu1 %v26157_v16  ;;  %v26216_v3 = vld [vmem:[%s26827_s24 + $0xe04] ss:$16 sps:$4 sm:$0xff]   ;;  %v26219_v16 = vld [vmem:[%s26827_s24 + $0xe0c] ss:$16 sps:$4 sm:$0xff]  }
 0xdc5   : > { %14246 = vmatprep.subr.bf16.mxu0 %v26162_v29  ;;  %14332 = vmatprep.subr.bf16.mxu1 %v26165_v55  ;;  %v26214_v29 = vld [vmem:[%s26827_s24 + $0xe00] ss:$16 sps:$4 sm:$0xff]   ;;  %v26217_v55 = vld [vmem:[%s26827_s24 + $0xe08] ss:$16 sps:$4 sm:$0xff]  }
 0xe5a   : > { %v13447_v4 = vpop.f32.mrb[112].mxu0  ;;  %v13490_v10 = vpop.f32.mrb[112].mxu1 }
 0xe5b   : > { %v13449_v11 = vpop.f32.mrb[113].mxu0  ;;  %v13492_v17 = vpop.f32.mrb[113].mxu1 }
 0xe5c   : > { %v13451_v18 = vpop.f32.mrb[114].mxu0  ;;  %v13494_v19 = vpop.f32.mrb[114].mxu1 }
 0xe5d   : > { %v13499_v21 = vpack.c.bf16 %v13451_v18, %v13447_v4  ;;  %v13453_v12 = vpop.f32.mrb[115].mxu0  ;;  %v29042_v37 = vpack.c.bf16 %v13494_v19, %v13490_v10  ;;  %v13496_v39 = vpop.f32.mrb[115].mxu1  ;;  %v26222_v4 = vld [vmem:[%s26827_s24 + $0xe24] ss:$16 sps:$4 sm:$0xff]   ;;  %v26225_v10 = vld [vmem:[%s26827_s24 + $0xe2c] ss:$16 sps:$4 sm:$0xff]  }
 0xe5e   : > { %v13500_v54 = vpack.c.bf16 %v13453_v12, %v13449_v11  ;;  %v13502_v34 = vpack.c.bf16 %v13496_v39, %v13492_v17  ;;  %v26220_v11 = vld [vmem:[%s26827_s24 + $0xe20] ss:$16 sps:$4 sm:$0xff]   ;;  %v26223_v17 = vld [vmem:[%s26827_s24 + $0xe28] ss:$16 sps:$4 sm:$0xff]   ;;  %v26228_v18 = vld [vmem:[%s26827_s24 + $0xe44] ss:$16 sps:$4 sm:$0xff]  }
 0xe5f   : > { %v26231_v19 = vld [vmem:[%s26827_s24 + $0xe4c] ss:$16 sps:$4 sm:$0xff]   ;;  %v26229_v12 = vld [vmem:[%s26827_s24 + $0xe48] ss:$16 sps:$4 sm:$0xff]   ;;  %v26234_v39 = vld [vmem:[%s26827_s24 + $0xe64] ss:$16 sps:$4 sm:$0xff]  }
 0xe60   : > { %14235 = vmatprep.mubr.bf16.mxu0 %v13500_v54  ;;  %14321 = vmatprep.mubr.bf16.mxu1 %v13500_v54  ;;  %v26237_v54 = vld [vmem:[%s26827_s24 + $0xe6c] ss:$16 sps:$4 sm:$0xff]  }
 0xe61   : > { %14236 = vmatmul.mubr.bf16.vlgmr.msra.gmra.mrb[104].mxu0 %v13499_v21  ;;  %14322 = vmatmul.mubr.bf16.vlgmr.msra.gmra.mrb[104].mxu1 %v13499_v21  ;;  %v26226_v21 = vld [vmem:[%s26827_s24 + $0xe40] ss:$16 sps:$4 sm:$0xff]  }
 0xe62   : > { %14247 = vmatpush1.bf16.msra.mxu0 %v26160_v57  ;;  %14333 = vmatpush1.bf16.msra.mxu1 %v26163_v35  ;;  %v26232_v57 = vld [vmem:[%s26827_s24 + $0xe60] ss:$16 sps:$4 sm:$0xff]   ;;  %v26235_v35 = vld [vmem:[%s26827_s24 + $0xe68] ss:$16 sps:$4 sm:$0xff]  }
 0xe63   : > { %14248 = vmatprep.subr.bf16.mxu0 %v26168_v63  ;;  %14334 = vmatprep.subr.bf16.mxu1 %v26171_v5  ;;  %v26244_v63 = vld [vmem:[%s26827_s24 + $0xe8c] ss:$16 sps:$4 sm:$0xff]   ;;  %v26251_v5 = vld [vmem:[%s26827_s24 + $0xec0] ss:$16 sps:$4 sm:$0xff]  }
 0xe64   : > { %22368 = vmatprep.mubr.msk.bf16.mxu0 %vm11490_vm12, %v13502_v34  ;;  %22369 = vmatprep.mubr.msk.bf16.mxu1 %vm11490_vm12, %v13502_v34  ;;  %v26241_v34 = vld [vmem:[%s26827_s24 + $0xe84] ss:$16 sps:$4 sm:$0xff]  }
 0xe66   : > { %14249 = vmatpush1.bf16.msra.mxu0 %v26166_v53  ;;  %14335 = vmatpush1.bf16.msra.mxu1 %v26169_v27  ;;  %v26254_v53 = vld [vmem:[%s26827_s24 + $0xec8] ss:$16 sps:$4 sm:$0xff]   ;;  %v26259_v27 = vld [vmem:[%s26827_s24 + $0xee4] ss:$16 sps:$4 sm:$0xff]  }
 0xe67   : > { %14250 = vmatprep.subr.bf16.mxu0 %v26174_v60  ;;  %14336 = vmatprep.subr.bf16.mxu1 %v26177_v6  ;;  %v26262_v60 = vld [vmem:[%s26827_s24 + $0xeec] ss:$16 sps:$4 sm:$0xff]   ;;  %v26257_v6 = vld [vmem:[%s26827_s24 + $0xee0] ss:$16 sps:$4 sm:$0xff]  }
 0xe6a   : > { %14251 = vmatpush1.bf16.msra.mxu0 %v26172_v56  ;;  %14337 = vmatpush1.bf16.msra.mxu1 %v26175_v31  ;;  %v26260_v56 = vld [vmem:[%s26827_s24 + $0xee8] ss:$16 sps:$4 sm:$0xff]   ;;  %v26265_v31 = vld [vmem:[%s26827_s24 + $0xf04] ss:$16 sps:$4 sm:$0xff]  }
 0xe6b   : > { %14252 = vmatprep.subr.bf16.mxu0 %v26180_v36  ;;  %14338 = vmatprep.subr.bf16.mxu1 %v26183_v62  ;;  %v26268_v36 = vld [vmem:[%s26827_s24 + $0xf0c] ss:$16 sps:$4 sm:$0xff]   ;;  %v26263_v62 = vld [vmem:[%s26827_s24 + $0xf00] ss:$16 sps:$4 sm:$0xff]  }
 0xe6e   : > { %14253 = vmatpush1.bf16.msra.mxu0 %v26178_v20  ;;  %14339 = vmatpush1.bf16.msra.mxu1 %v26181_v32  ;;  %v26266_v20 = vld [vmem:[%s26827_s24 + $0xf08] ss:$16 sps:$4 sm:$0xff]   ;;  %v26271_v32 = vld [vmem:[%s26827_s24 + $0xf24] ss:$16 sps:$4 sm:$0xff]  }
 0xe6f   : > { %14254 = vmatprep.subr.bf16.mxu0 %v26186_v52  ;;  %14340 = vmatprep.subr.bf16.mxu1 %v26189_v25  ;;  %v26274_v52 = vld [vmem:[%s26827_s24 + $0xf2c] ss:$16 sps:$4 sm:$0xff]   ;;  %v26269_v25 = vld [vmem:[%s26827_s24 + $0xf20] ss:$16 sps:$4 sm:$0xff]  }
 0xe72   : > { %14255 = vmatpush1.bf16.msra.mxu0 %v26184_v59  ;;  %14341 = vmatpush1.bf16.msra.mxu1 %v26187_v22  ;;  %v26272_v59 = vld [vmem:[%s26827_s24 + $0xf28] ss:$16 sps:$4 sm:$0xff]   ;;  %v26277_v22 = vld [vmem:[%s26827_s24 + $0xf44] ss:$16 sps:$4 sm:$0xff]  }
 0xe73   : > { %14256 = vmatprep.subr.bf16.mxu0 %v26192_v23  ;;  %14342 = vmatprep.subr.bf16.mxu1 %v26195_v13  ;;  %v26280_v23 = vld [vmem:[%s26827_s24 + $0xf4c] ss:$16 sps:$4 sm:$0xff]   ;;  %v26275_v13 = vld [vmem:[%s26827_s24 + $0xf40] ss:$16 sps:$4 sm:$0xff]  }
 0xe76   : > { %14257 = vmatpush1.bf16.msra.mxu0 %v26190_v26  ;;  %14343 = vmatpush1.bf16.msra.mxu1 %v26193_v30  ;;  %v26278_v26 = vld [vmem:[%s26827_s24 + $0xf48] ss:$16 sps:$4 sm:$0xff]   ;;  %v26283_v30 = vld [vmem:[%s26827_s24 + $0xf64] ss:$16 sps:$4 sm:$0xff]  }
 0xe77   : > { %14258 = vmatprep.subr.bf16.mxu0 %v26198_v28  ;;  %14344 = vmatprep.subr.bf16.mxu1 %v26201_v0  ;;  %v26286_v28 = vld [vmem:[%s26827_s24 + $0xf6c] ss:$16 sps:$4 sm:$0xff]   ;;  %v26281_v0 = vld [vmem:[%s26827_s24 + $0xf60] ss:$16 sps:$4 sm:$0xff]  }
 0xe7a   : > { %14259 = vmatpush1.bf16.msra.mxu0 %v26196_v14  ;;  %14345 = vmatpush1.bf16.msra.mxu1 %v26199_v33  ;;  %v26284_v14 = vld [vmem:[%s26827_s24 + $0xf68] ss:$16 sps:$4 sm:$0xff]   ;;  %v26289_v33 = vld [vmem:[%s26827_s24 + $0xf84] ss:$16 sps:$4 sm:$0xff]  }
 0xe7b   : > { %14260 = vmatprep.subr.bf16.mxu0 %v26204_v50  ;;  %14346 = vmatprep.subr.bf16.mxu1 %v26207_v44  ;;  %v26292_v50 = vld [vmem:[%s26827_s24 + $0xf8c] ss:$16 sps:$4 sm:$0xff]   ;;  %v26287_v44 = vld [vmem:[%s26827_s24 + $0xf80] ss:$16 sps:$4 sm:$0xff]  }
 0xe7e   : > { %14261 = vmatpush1.bf16.msra.mxu0 %v26202_v41  ;;  %14347 = vmatpush1.bf16.msra.mxu1 %v26205_v61  ;;  %v26290_v41 = vld [vmem:[%s26827_s24 + $0xf88] ss:$16 sps:$4 sm:$0xff]   ;;  %v26295_v61 = vld [vmem:[%s26827_s24 + $0xfa4] ss:$16 sps:$4 sm:$0xff]  }
 0xe7f   : > { %14262 = vmatprep.subr.bf16.mxu0 %v26210_v58  ;;  %14348 = vmatprep.subr.bf16.mxu1 %v26213_v15  ;;  %v26298_v58 = vld [vmem:[%s26827_s24 + $0xfac] ss:$16 sps:$4 sm:$0xff]   ;;  %v26293_v15 = vld [vmem:[%s26827_s24 + $0xfa0] ss:$16 sps:$4 sm:$0xff]  }
 0xe82   : > { %14263 = vmatpush1.bf16.msra.mxu0 %v26208_v8  ;;  %14349 = vmatpush1.bf16.msra.mxu1 %v26211_v2  ;;  %v26296_v8 = vld [vmem:[%s26827_s24 + $0xfa8] ss:$16 sps:$4 sm:$0xff]   ;;  %v26301_v2 = vld [vmem:[%s26827_s24 + $0xfc4] ss:$16 sps:$4 sm:$0xff]  }
 0xe83   : > { %14264 = vmatprep.subr.bf16.mxu0 %v26216_v3  ;;  %14350 = vmatprep.subr.bf16.mxu1 %v26219_v16  ;;  %v26304_v3 = vld [vmem:[%s26827_s24 + $0xfcc] ss:$16 sps:$4 sm:$0xff]   ;;  %v26299_v16 = vld [vmem:[%s26827_s24 + $0xfc0] ss:$16 sps:$4 sm:$0xff]  }
 0xe86   : > { %14265 = vmatpush1.bf16.msra.mxu0 %v26214_v29  ;;  %14351 = vmatpush1.bf16.msra.mxu1 %v26217_v55  ;;  %v26302_v29 = vld [vmem:[%s26827_s24 + $0xfc8] ss:$16 sps:$4 sm:$0xff]   ;;  %v26307_v55 = vld [vmem:[%s26827_s24 + $0xfe4] ss:$16 sps:$4 sm:$0xff]  }
 0xe87   : > { %14266 = vmatprep.subr.bf16.mxu0 %v26222_v4  ;;  %14352 = vmatprep.subr.bf16.mxu1 %v26225_v10  ;;  %v26310_v4 = vld [vmem:[%s26827_s24 + $0xfec] ss:$16 sps:$4 sm:$0xff]   ;;  %v26305_v10 = vld [vmem:[%s26827_s24 + $0xfe0] ss:$16 sps:$4 sm:$0xff]  }
 0xe8a   : > { %14267 = vmatpush1.bf16.msra.mxu0 %v26220_v11  ;;  %14353 = vmatpush1.bf16.msra.mxu1 %v26223_v17  ;;  %v26308_v11 = vld [vmem:[%s26827_s24 + $0xfe8] ss:$16 sps:$4 sm:$0xff]   ;;  %v26313_v17 = vld [vmem:[%s26827_s24 + $0x1004] ss:$16 sps:$4 sm:$0xff]  }
 0xe8b   : > { %14268 = vmatprep.subr.bf16.mxu0 %v26228_v18  ;;  %14354 = vmatprep.subr.bf16.mxu1 %v26231_v19  ;;  %v26316_v18 = vld [vmem:[%s26827_s24 + $0x100c] ss:$16 sps:$4 sm:$0xff]   ;;  %v26311_v19 = vld [vmem:[%s26827_s24 + $0x1000] ss:$16 sps:$4 sm:$0xff]  }
 0xe8e   : > { %14269 = vmatpush1.bf16.msra.mxu0 %v26226_v21  ;;  %14355 = vmatpush1.bf16.msra.mxu1 %v26229_v12  ;;  %v26314_v21 = vld [vmem:[%s26827_s24 + $0x1008] ss:$16 sps:$4 sm:$0xff]   ;;  %v26319_v12 = vld [vmem:[%s26827_s24 + $0x1024] ss:$16 sps:$4 sm:$0xff]  }
 0xe8f   : > { %14270 = vmatprep.subr.bf16.mxu0 %v26234_v39  ;;  %14356 = vmatprep.subr.bf16.mxu1 %v26237_v54  ;;  %v26322_v39 = vld [vmem:[%s26827_s24 + $0x102c] ss:$16 sps:$4 sm:$0xff]   ;;  %v26317_v54 = vld [vmem:[%s26827_s24 + $0x1020] ss:$16 sps:$4 sm:$0xff]  }
 0xe92   : > { %14271 = vmatpush1.bf16.msra.mxu0 %v26232_v57  ;;  %14357 = vmatpush1.bf16.msra.mxu1 %v26235_v35  ;;  %v26320_v57 = vld [vmem:[%s26827_s24 + $0x1028] ss:$16 sps:$4 sm:$0xff]   ;;  %v26325_v35 = vld [vmem:[%s26827_s24 + $0x1044] ss:$16 sps:$4 sm:$0xff]  }
 0xe93   : > { %14394 = vmatprep.subr.bf16.mxu0 %v28518_v48  ;;  %14437 = vmatprep.subr.bf16.mxu1 %v28520_v51  ;;  %v26238_v48 = vld [vmem:[%s26822_s19 + $0x20] sm:$0x7f]  }
 0xe94   : > { %v26247_v51 = vld [vmem:[%s26827_s24 + $0xea4] ss:$16 sps:$4 sm:$0xff]  }
 0xe95   : > { %14279 = vmatmul.mubr.bf16.vlgmr.msra.gmra.mrb[104].mxu0 %v29042_v37  ;;  %14365 = vmatmul.mubr.bf16.vlgmr.msra.gmra.mrb[104].mxu1 %v29042_v37  ;;  %v26256_v37 = vld [vmem:[%s26827_s24 + $0xecc] ss:$16 sps:$4 sm:$0xff]  }
 0xe96   : > { %14395 = vmatpush1.bf16.msra.mxu0 %v28514_v47  ;;  %14438 = vmatpush1.bf16.msra.mxu1 %v28516_v7  ;;  %v26239_v47 = vld [vmem:[%s26827_s24 + $0xe80] ss:$16 sps:$4 sm:$0xff]   ;;  %v26242_v7 = vld [vmem:[%s26827_s24 + $0xe88] ss:$16 sps:$4 sm:$0xff]  }
 0xe97   : > { %14396 = vmatprep.subr.bf16.mxu0 %v28541_v9  ;;  %14439 = vmatprep.subr.bf16.mxu1 %v28547_v40  ;;  %v26250_v9 = vld [vmem:[%s26827_s24 + $0xeac] ss:$16 sps:$4 sm:$0xff]   ;;  %v26248_v40 = vld [vmem:[%s26827_s24 + $0xea8] ss:$16 sps:$4 sm:$0xff]  }
 0xe98   : > { %14426 = vmatprep.mubr.bf16.mxu0 %v26760_v1  ;;  %14469 = vmatprep.mubr.bf16.mxu1 %v26760_v1 }
 0xe9a   : > { %14397 = vmatpush1.bf16.msra.mxu0 %v28544_v24  ;;  %14440 = vmatpush1.bf16.msra.mxu1 %v28550_v49  ;;  %v26245_v24 = vld [vmem:[%s26827_s24 + $0xea0] ss:$16 sps:$4 sm:$0xff]   ;;  %v26253_v49 = vld [vmem:[%s26827_s24 + $0xec4] ss:$16 sps:$4 sm:$0xff]  }
 0xe9b   : > { %15184 = vmatprep.subr.bf16.mxu0 %v26241_v34  ;;  %15270 = vmatprep.subr.bf16.mxu1 %v26244_v63  ;;  %v26328_v34 = vld [vmem:[%s26827_s24 + $0x104c] ss:$16 sps:$4 sm:$0xff]   ;;  %v26323_v63 = vld [vmem:[%s26827_s24 + $0x1040] ss:$16 sps:$4 sm:$0xff]  }
 0xe9d   : > { %22373 = vmatmul.mubr.msk.bf16.vlgmr.msra.gmra.mrb[116].mxu0 %vm10467_vm11, %v26238_v48  ;;  %22374 = vmatmul.mubr.msk.bf16.vlgmr.msra.gmra.mrb[116].mxu1 %vm10467_vm11, %v26238_v48  ;;  %v26326_v48 = vld [vmem:[%s26827_s24 + $0x1048] ss:$16 sps:$4 sm:$0xff]   ;;  %vm18171_vm11 = vcmask 31744  }
 0xe9e   : > { %15185 = vmatpush1.bf16.msra.mxu0 %v26239_v47  ;;  %15271 = vmatpush1.bf16.msra.mxu1 %v26242_v7  ;;  %v26331_v47 = vld [vmem:[%s26827_s24 + $0x1064] ss:$16 sps:$4 sm:$0xff]   ;;  %v26334_v7 = vld [vmem:[%s26827_s24 + $0x106c] ss:$16 sps:$4 sm:$0xff]  }
 0xe9f   : > { %15186 = vmatprep.subr.bf16.mxu0 %v26247_v51  ;;  %15272 = vmatprep.subr.bf16.mxu1 %v26250_v9  ;;  %v26329_v51 = vld [vmem:[%s26827_s24 + $0x1060] ss:$16 sps:$4 sm:$0xff]   ;;  %v26332_v9 = vld [vmem:[%s26827_s24 + $0x1068] ss:$16 sps:$4 sm:$0xff]  }
 0xea2   : > { %15187 = vmatpush1.bf16.msra.mxu0 %v26245_v24  ;;  %15273 = vmatpush1.bf16.msra.mxu1 %v26248_v40  ;;  %v26337_v24 = vld [vmem:[%s26827_s24 + $0x1084] ss:$16 sps:$4 sm:$0xff]   ;;  %v26340_v40 = vld [vmem:[%s26827_s24 + $0x108c] ss:$16 sps:$4 sm:$0xff]  }
 0xea3   : > { %15188 = vmatprep.subr.bf16.mxu0 %v26253_v49  ;;  %15274 = vmatprep.subr.bf16.mxu1 %v26256_v37 }
 0xea6   : > { %15189 = vmatpush1.bf16.msra.mxu0 %v26251_v5  ;;  %15275 = vmatpush1.bf16.msra.mxu1 %v26254_v53 }
 0xea7   : > { %15190 = vmatprep.subr.bf16.mxu0 %v26259_v27  ;;  %15276 = vmatprep.subr.bf16.mxu1 %v26262_v60 }
 0xeaa   : > { %15191 = vmatpush1.bf16.msra.mxu0 %v26257_v6  ;;  %15277 = vmatpush1.bf16.msra.mxu1 %v26260_v56 }
 0xeab   : > { %15192 = vmatprep.subr.bf16.mxu0 %v26265_v31  ;;  %15278 = vmatprep.subr.bf16.mxu1 %v26268_v36 }
 0xeae   : > { %15193 = vmatpush1.bf16.msra.mxu0 %v26263_v62  ;;  %15279 = vmatpush1.bf16.msra.mxu1 %v26266_v20  ;;  %v26335_v20 = vld [vmem:[%s26827_s24 + $0x1080] ss:$16 sps:$4 sm:$0xff]  }
 0xeaf   : > { %15194 = vmatprep.subr.bf16.mxu0 %v26271_v32  ;;  %15280 = vmatprep.subr.bf16.mxu1 %v26274_v52  ;;  %v26338_v32 = vld [vmem:[%s26827_s24 + $0x1088] ss:$16 sps:$4 sm:$0xff]  }
 0xeb2   : > { %15195 = vmatpush1.bf16.msra.mxu0 %v26269_v25  ;;  %15281 = vmatpush1.bf16.msra.mxu1 %v26272_v59  ;;  %v26343_v25 = vld [vmem:[%s26827_s24 + $0x10a4] ss:$16 sps:$4 sm:$0xff]   ;;  %v26346_v59 = vld [vmem:[%s26827_s24 + $0x10ac] ss:$16 sps:$4 sm:$0xff]  }
 0xeb3   : > { %15196 = vmatprep.subr.bf16.mxu0 %v26277_v22  ;;  %15282 = vmatprep.subr.bf16.mxu1 %v26280_v23  ;;  %v26341_v22 = vld [vmem:[%s26827_s24 + $0x10a0] ss:$16 sps:$4 sm:$0xff]   ;;  %v26344_v23 = vld [vmem:[%s26827_s24 + $0x10a8] ss:$16 sps:$4 sm:$0xff]  }
 0xeb6   : > { %15197 = vmatpush1.bf16.msra.mxu0 %v26275_v13  ;;  %15283 = vmatpush1.bf16.msra.mxu1 %v26278_v26  ;;  %v26349_v13 = vld [vmem:[%s26827_s24 + $0x10c4] ss:$16 sps:$4 sm:$0xff]   ;;  %v26352_v26 = vld [vmem:[%s26827_s24 + $0x10cc] ss:$16 sps:$4 sm:$0xff]  }
 0xeb7   : > { %15198 = vmatprep.subr.bf16.mxu0 %v26283_v30  ;;  %15284 = vmatprep.subr.bf16.mxu1 %v26286_v28  ;;  %v26347_v30 = vld [vmem:[%s26827_s24 + $0x10c0] ss:$16 sps:$4 sm:$0xff]   ;;  %v26350_v28 = vld [vmem:[%s26827_s24 + $0x10c8] ss:$16 sps:$4 sm:$0xff]  }
 0xeba   : > { %15199 = vmatpush1.bf16.msra.mxu0 %v26281_v0  ;;  %15285 = vmatpush1.bf16.msra.mxu1 %v26284_v14  ;;  %v26355_v0 = vld [vmem:[%s26827_s24 + $0x10e4] ss:$16 sps:$4 sm:$0xff]   ;;  %v26358_v14 = vld [vmem:[%s26827_s24 + $0x10ec] ss:$16 sps:$4 sm:$0xff]  }
 0xebb   : > { %15200 = vmatprep.subr.bf16.mxu0 %v26289_v33  ;;  %15286 = vmatprep.subr.bf16.mxu1 %v26292_v50  ;;  %v26353_v33 = vld [vmem:[%s26827_s24 + $0x10e0] ss:$16 sps:$4 sm:$0xff]   ;;  %v26356_v50 = vld [vmem:[%s26827_s24 + $0x10e8] ss:$16 sps:$4 sm:$0xff]  }
 0xebe   : > { %15201 = vmatpush1.bf16.msra.mxu0 %v26287_v44  ;;  %15287 = vmatpush1.bf16.msra.mxu1 %v26290_v41  ;;  %v26361_v44 = vld [vmem:[%s26827_s24 + $0x1104] ss:$16 sps:$4 sm:$0xff]   ;;  %v26364_v41 = vld [vmem:[%s26827_s24 + $0x110c] ss:$16 sps:$4 sm:$0xff]  }
 0xebf   : > { %15202 = vmatprep.subr.bf16.mxu0 %v26295_v61  ;;  %15288 = vmatprep.subr.bf16.mxu1 %v26298_v58  ;;  %v26359_v61 = vld [vmem:[%s26827_s24 + $0x1100] ss:$16 sps:$4 sm:$0xff]   ;;  %v26362_v58 = vld [vmem:[%s26827_s24 + $0x1108] ss:$16 sps:$4 sm:$0xff]  }
 0xec2   : > { %15203 = vmatpush1.bf16.msra.mxu0 %v26293_v15  ;;  %15289 = vmatpush1.bf16.msra.mxu1 %v26296_v8  ;;  %v26367_v15 = vld [vmem:[%s26827_s24 + $0x1124] ss:$16 sps:$4 sm:$0xff]   ;;  %v26370_v8 = vld [vmem:[%s26827_s24 + $0x112c] ss:$16 sps:$4 sm:$0xff]  }
 0xec3   : > { %15204 = vmatprep.subr.bf16.mxu0 %v26301_v2  ;;  %15290 = vmatprep.subr.bf16.mxu1 %v26304_v3  ;;  %v26365_v2 = vld [vmem:[%s26827_s24 + $0x1120] ss:$16 sps:$4 sm:$0xff]   ;;  %v26368_v3 = vld [vmem:[%s26827_s24 + $0x1128] ss:$16 sps:$4 sm:$0xff]  }
 0xec6   : > { %15205 = vmatpush1.bf16.msra.mxu0 %v26299_v16  ;;  %15291 = vmatpush1.bf16.msra.mxu1 %v26302_v29  ;;  %v26373_v16 = vld [vmem:[%s26827_s24 + $0x1144] ss:$16 sps:$4 sm:$0xff]   ;;  %v26376_v29 = vld [vmem:[%s26827_s24 + $0x114c] ss:$16 sps:$4 sm:$0xff]  }
 0xec7   : > { %15206 = vmatprep.subr.bf16.mxu0 %v26307_v55  ;;  %15292 = vmatprep.subr.bf16.mxu1 %v26310_v4  ;;  %v26371_v55 = vld [vmem:[%s26827_s24 + $0x1140] ss:$16 sps:$4 sm:$0xff]   ;;  %v26374_v4 = vld [vmem:[%s26827_s24 + $0x1148] ss:$16 sps:$4 sm:$0xff]  }
 0xeca   : > { %15207 = vmatpush1.bf16.msra.mxu0 %v26305_v10  ;;  %15293 = vmatpush1.bf16.msra.mxu1 %v26308_v11  ;;  %v26379_v10 = vld [vmem:[%s26827_s24 + $0x1164] ss:$16 sps:$4 sm:$0xff]   ;;  %v26382_v11 = vld [vmem:[%s26827_s24 + $0x116c] ss:$16 sps:$4 sm:$0xff]  }
 0xecb   : > { %15208 = vmatprep.subr.bf16.mxu0 %v26313_v17  ;;  %15294 = vmatprep.subr.bf16.mxu1 %v26316_v18  ;;  %v26377_v17 = vld [vmem:[%s26827_s24 + $0x1160] ss:$16 sps:$4 sm:$0xff]   ;;  %v26380_v18 = vld [vmem:[%s26827_s24 + $0x1168] ss:$16 sps:$4 sm:$0xff]  }
 0xece   : > { %15209 = vmatpush1.bf16.msra.mxu0 %v26311_v19  ;;  %15295 = vmatpush1.bf16.msra.mxu1 %v26314_v21  ;;  %v26385_v19 = vld [vmem:[%s26827_s24 + $0x1184] ss:$16 sps:$4 sm:$0xff]   ;;  %v26388_v21 = vld [vmem:[%s26827_s24 + $0x118c] ss:$16 sps:$4 sm:$0xff]  }
 0xecf   : > { %15210 = vmatprep.subr.bf16.mxu0 %v26319_v12  ;;  %15296 = vmatprep.subr.bf16.mxu1 %v26322_v39  ;;  %v26383_v12 = vld [vmem:[%s26827_s24 + $0x1180] ss:$16 sps:$4 sm:$0xff]   ;;  %v26386_v39 = vld [vmem:[%s26827_s24 + $0x1188] ss:$16 sps:$4 sm:$0xff]  }
 0xed2   : > { %15211 = vmatpush1.bf16.msra.mxu0 %v26317_v54  ;;  %15297 = vmatpush1.bf16.msra.mxu1 %v26320_v57  ;;  %v26391_v54 = vld [vmem:[%s26827_s24 + $0x11a4] ss:$16 sps:$4 sm:$0xff]   ;;  %v26394_v57 = vld [vmem:[%s26827_s24 + $0x11ac] ss:$16 sps:$4 sm:$0xff]  }
 0xed3   : > { %15212 = vmatprep.subr.bf16.mxu0 %v26325_v35  ;;  %15298 = vmatprep.subr.bf16.mxu1 %v26328_v34  ;;  %v26389_v35 = vld [vmem:[%s26827_s24 + $0x11a0] ss:$16 sps:$4 sm:$0xff]   ;;  %v26392_v34 = vld [vmem:[%s26827_s24 + $0x11a8] ss:$16 sps:$4 sm:$0xff]  }
 0xed6   : > { %15213 = vmatpush1.bf16.msra.mxu0 %v26323_v63  ;;  %15299 = vmatpush1.bf16.msra.mxu1 %v26326_v48  ;;  %v26397_v63 = vld [vmem:[%s26827_s24 + $0x11c4] ss:$16 sps:$4 sm:$0xff]   ;;  %v26400_v48 = vld [vmem:[%s26827_s24 + $0x11cc] ss:$16 sps:$4 sm:$0xff]  }
 0xed7   : > { %15214 = vmatprep.subr.bf16.mxu0 %v26331_v47  ;;  %15300 = vmatprep.subr.bf16.mxu1 %v26334_v7  ;;  %v26395_v47 = vld [vmem:[%s26827_s24 + $0x11c0] ss:$16 sps:$4 sm:$0xff]   ;;  %v26398_v7 = vld [vmem:[%s26827_s24 + $0x11c8] ss:$16 sps:$4 sm:$0xff]  }
 0xeda   : > { %15215 = vmatpush1.bf16.msra.mxu0 %v26329_v51  ;;  %15301 = vmatpush1.bf16.msra.mxu1 %v26332_v9  ;;  %v26403_v51 = vld [vmem:[%s26827_s24 + $0x11e4] ss:$16 sps:$4 sm:$0xff]   ;;  %v26406_v9 = vld [vmem:[%s26827_s24 + $0x11ec] ss:$16 sps:$4 sm:$0xff]  }
 0xedb   : > { %15227 = vmatprep.subr.bf16.mxu0 %v26337_v24  ;;  %15313 = vmatprep.subr.bf16.mxu1 %v26340_v40  ;;  %v26401_v24 = vld [vmem:[%s26827_s24 + $0x11e0] ss:$16 sps:$4 sm:$0xff]   ;;  %v26404_v40 = vld [vmem:[%s26827_s24 + $0x11e8] ss:$16 sps:$4 sm:$0xff]  }
 0xf70   : > { %v14428_v49 = vpop.f32.mrb[116].mxu0  ;;  %v14471_v37 = vpop.f32.mrb[116].mxu1 }
 0xf71   : > { %v14430_v5 = vpop.f32.mrb[117].mxu0  ;;  %v14473_v53 = vpop.f32.mrb[117].mxu1 }
 0xf72   : > { %v14432_v27 = vpop.f32.mrb[118].mxu0  ;;  %v14475_v60 = vpop.f32.mrb[118].mxu1 }
 0xf73   : > { %v14480_v6 = vpack.c.bf16 %v14432_v27, %v14428_v49  ;;  %v14434_v56 = vpop.f32.mrb[119].mxu0  ;;  %v29177_v31 = vpack.c.bf16 %v14475_v60, %v14471_v37  ;;  %v14477_v36 = vpop.f32.mrb[119].mxu1  ;;  %v26409_v49 = vld [vmem:[%s26827_s24 + $0x1204] ss:$16 sps:$4 sm:$0xff]   ;;  %v26412_v37 = vld [vmem:[%s26827_s24 + $0x120c] ss:$16 sps:$4 sm:$0xff]  }
 0xf74   : > { %v14481_v62 = vpack.c.bf16 %v14434_v56, %v14430_v5  ;;  %v14483_v52 = vpack.c.bf16 %v14477_v36, %v14473_v53  ;;  %v26407_v5 = vld [vmem:[%s26827_s24 + $0x1200] ss:$16 sps:$4 sm:$0xff]   ;;  %v26410_v53 = vld [vmem:[%s26827_s24 + $0x1208] ss:$16 sps:$4 sm:$0xff]  }
 0xf75   : > { %v15364_v27 = vld [vmem:[%s26832_s30] sm:$0xf] }
 0xf76   : > { %15216 = vmatprep.mubr.bf16.mxu0 %v14481_v62  ;;  %15302 = vmatprep.mubr.bf16.mxu1 %v14481_v62  ;;  %v15394_v60 = vld [vmem:[%s26837_s6] sm:$0xf]  ;;  %v15377_v56 = vrot.slane %v15364_v27, %v27112_v43  ;;  %v15373_v36 = vrot.slane %v15364_v27, %v27115_v45  ;;  %v15381_v62 = vrot.slane %v15364_v27, %v27117_v46 }
 0xf77   : > { %15217 = vmatmul.mubr.bf16.vlgmr.msra.gmra.mrb[104].mxu0 %v14480_v6  ;;  %15303 = vmatmul.mubr.bf16.vlgmr.msra.gmra.mrb[104].mxu1 %v14480_v6  ;;  %v15369_v6 = vrot.slane %v15364_v27, %v27110_v42  ;;  %v26429_v27 = vld [vmem:[%s29835_s26 + $0x110] sm:$0xff]  }
 0xf78   : > { %15228 = vmatpush1.bf16.msra.mxu0 %v26335_v20  ;;  %15314 = vmatpush1.bf16.msra.mxu1 %v26338_v32  ;;  %v15399_v20 = vrot.slane %v15394_v60, %v27110_v42  ;;  %v15407_v32 = vrot.slane %v15394_v60, %v27112_v43 }
 0xf79   : > { %15229 = vmatprep.subr.bf16.mxu0 %v26343_v25  ;;  %15315 = vmatprep.subr.bf16.mxu1 %v26346_v59  ;;  %v15403_v25 = vrot.slane %v15394_v60, %v27115_v45  ;;  %v15411_v59 = vrot.slane %v15394_v60, %v27117_v46  ;;  %v22611_v60 = vld [vmem:[%s26842_s12 + $0x2] sm:$0x3] }
 0xf7a   : > { %22607 = vmatprep.mubr.msk.bf16.mxu0 %vm11490_vm12, %v14483_v52  ;;  %22608 = vmatprep.mubr.msk.bf16.mxu1 %vm11490_vm12, %v14483_v52 }
 0xf7c   : > { %15230 = vmatpush1.bf16.msra.mxu0 %v26341_v22  ;;  %15316 = vmatpush1.bf16.msra.mxu1 %v26344_v23 }
 0xf7d   : > { %15231 = vmatprep.subr.bf16.mxu0 %v26349_v13  ;;  %15317 = vmatprep.subr.bf16.mxu1 %v26352_v26 }
 0xf80   : > { %15232 = vmatpush1.bf16.msra.mxu0 %v26347_v30  ;;  %15318 = vmatpush1.bf16.msra.mxu1 %v26350_v28 }
 0xf81   : > { %15233 = vmatprep.subr.bf16.mxu0 %v26355_v0  ;;  %15319 = vmatprep.subr.bf16.mxu1 %v26358_v14 }
 0xf84   : > { %15234 = vmatpush1.bf16.msra.mxu0 %v26353_v33  ;;  %15320 = vmatpush1.bf16.msra.mxu1 %v26356_v50 }
 0xf85   : > { %15235 = vmatprep.subr.bf16.mxu0 %v26361_v44  ;;  %15321 = vmatprep.subr.bf16.mxu1 %v26364_v41 }
 0xf88   : > { %15236 = vmatpush1.bf16.msra.mxu0 %v26359_v61  ;;  %15322 = vmatpush1.bf16.msra.mxu1 %v26362_v58 }
 0xf89   : > { %15237 = vmatprep.subr.bf16.mxu0 %v26367_v15  ;;  %15323 = vmatprep.subr.bf16.mxu1 %v26370_v8 }
 0xf8c   : > { %15238 = vmatpush1.bf16.msra.mxu0 %v26365_v2  ;;  %15324 = vmatpush1.bf16.msra.mxu1 %v26368_v3 }
 0xf8d   : > { %15239 = vmatprep.subr.bf16.mxu0 %v26373_v16  ;;  %15325 = vmatprep.subr.bf16.mxu1 %v26376_v29 }
 0xf90   : > { %15240 = vmatpush1.bf16.msra.mxu0 %v26371_v55  ;;  %15326 = vmatpush1.bf16.msra.mxu1 %v26374_v4 }
 0xf91   : > { %15241 = vmatprep.subr.bf16.mxu0 %v26379_v10  ;;  %15327 = vmatprep.subr.bf16.mxu1 %v26382_v11 }
 0xf94   : > { %15242 = vmatpush1.bf16.msra.mxu0 %v26377_v17  ;;  %15328 = vmatpush1.bf16.msra.mxu1 %v26380_v18 }
 0xf95   : > { %15243 = vmatprep.subr.bf16.mxu0 %v26385_v19  ;;  %15329 = vmatprep.subr.bf16.mxu1 %v26388_v21 }
 0xf98   : > { %15244 = vmatpush1.bf16.msra.mxu0 %v26383_v12  ;;  %15330 = vmatpush1.bf16.msra.mxu1 %v26386_v39 }
 0xf99   : > { %15245 = vmatprep.subr.bf16.mxu0 %v26391_v54  ;;  %15331 = vmatprep.subr.bf16.mxu1 %v26394_v57 }
 0xf9c   : > { %15246 = vmatpush1.bf16.msra.mxu0 %v26389_v35  ;;  %15332 = vmatpush1.bf16.msra.mxu1 %v26392_v34 }
 0xf9d   : > { %15247 = vmatprep.subr.bf16.mxu0 %v26397_v63  ;;  %15333 = vmatprep.subr.bf16.mxu1 %v26400_v48 }
 0xfa0   : > { %15248 = vmatpush1.bf16.msra.mxu0 %v26395_v47  ;;  %15334 = vmatpush1.bf16.msra.mxu1 %v26398_v7 }
 0xfa1   : > { %15249 = vmatprep.subr.bf16.mxu0 %v26403_v51  ;;  %15335 = vmatprep.subr.bf16.mxu1 %v26406_v9 }
 0xfa4   : > { %15250 = vmatpush1.bf16.msra.mxu0 %v26401_v24  ;;  %15336 = vmatpush1.bf16.msra.mxu1 %v26404_v40 }
 0xfa5   : > { %15251 = vmatprep.subr.bf16.mxu0 %v26409_v49  ;;  %15337 = vmatprep.subr.bf16.mxu1 %v26412_v37 }
 0xfa8   : > { %15252 = vmatpush1.bf16.msra.mxu0 %v26407_v5  ;;  %15338 = vmatpush1.bf16.msra.mxu1 %v26410_v53  ;;  %v15452_v53 = vld [vmem:[%s26842_s12] sm:$0x3] }
 0xfab   : > { %15260 = vmatmul.mubr.bf16.vlgmr.msra.gmra.mrb[104].mxu0 %v29177_v31  ;;  %15346 = vmatmul.mubr.bf16.vlgmr.msra.gmra.mrb[104].mxu1 %v29177_v31 }
 0xfac   : > { %15501 = vmatprep.mubr.bf16.mxu0 %v26760_v1  ;;  %15542 = vmatprep.mubr.bf16.mxu1 %v26760_v1 }
0x107e   : > { %v15261_v52 = vpop.f32.mrb[104].mxu0  ;;  %v15347_v31 = vpop.f32.mrb[104].mxu1 }
0x107f   : > { %v15386_v22 = vmul.f32 %v15369_v6, %v15261_v52  ;;  %v15388_v23 = vmul.f32 %v15377_v56, %v15347_v31  ;;  %v15263_v13 = vpop.f32.mrb[105].mxu0  ;;  %v15349_v26 = vpop.f32.mrb[105].mxu1  ;;  %v26417_v52 = vld [vmem:[%s29835_s26 + $0x50] sm:$0xff]   ;;  %v26433_v31 = vld [vmem:[%s29835_s26 + $0x120] sm:$0xff]  }
0x1080   : > { %v15387_v30 = vmul.f32 %v15373_v36, %v15263_v13  ;;  %v15389_v28 = vmul.f32 %v15381_v62, %v15349_v26  ;;  %v15265_v0 = vpop.f32.mrb[106].mxu0  ;;  %v15351_v14 = vpop.f32.mrb[106].mxu1  ;;  %v26420_v13 = vld [vmem:[%s29835_s26 + $0x18] sm:$0xff]   ;;  %v26436_v26 = vld [vmem:[%s29835_s26 + $0xe8] sm:$0xff]  }
0x1081   : > { %v15416_v33 = vadd.f32 %v15399_v20, %v15386_v22  ;;  %v15418_v50 = vadd.f32 %v15407_v32, %v15388_v23  ;;  %v15390_v44 = vmul.f32 %v15369_v6, %v15265_v0  ;;  %v15392_v41 = vmul.f32 %v15377_v56, %v15351_v14  ;;  %v15267_v61 = vpop.f32.mrb[107].mxu0  ;;  %v15353_v58 = vpop.f32.mrb[107].mxu1  ;;  %v26414_v6 = vld [vmem:[%s29835_s26] sm:$0xff]   ;;  %v26430_v56 = vld [vmem:[%s29835_s26 + $0xd0] sm:$0xff]   ;;  %v26419_v22 = vld [vmem:[%s29835_s26 + $0x58] sm:$0xff]  }
0x1082   : > { %v15417_v15 = vadd.f32 %v15403_v25, %v15387_v30  ;;  %v15419_v8 = vadd.f32 %v15411_v59, %v15389_v28  ;;  %v15391_v2 = vmul.f32 %v15373_v36, %v15267_v61  ;;  %v15393_v3 = vmul.f32 %v15381_v62, %v15353_v58  ;;  %v26415_v36 = vld [vmem:[%s29835_s26 + $0x48] sm:$0xff]   ;;  %v26431_v62 = vld [vmem:[%s29835_s26 + $0x118] sm:$0xff]   ;;  %v26421_v30 = vld [vmem:[%s29835_s26 + $0x60] sm:$0xff]  }
0x1083   : > { %vm15424_vm13 = vcmp.gt.f32.partialorder %v15416_v33, 0.0  ;;  %v15432_v46 = vmul.f32 0.02, %v15416_v33  ;;  %vm15426_vm14 = vcmp.gt.f32.partialorder %v15418_v50, 0.0  ;;  %v15434_v16 = vmul.f32 0.02, %v15418_v50 }
0x1084   : > { %vm15425_vm15 = vcmp.gt.f32.partialorder %v15417_v15, 0.0  ;;  %v15433_v29 = vmul.f32 0.02, %v15417_v15  ;;  %vm15427_vm1 = vcmp.gt.f32.partialorder %v15419_v8, 0.0  ;;  %v15435_v55 = vmul.f32 0.02, %v15419_v8 }
0x1085   : > { %v15420_v4 = vadd.f32 %v15399_v20, %v15390_v44  ;;  %v15422_v10 = vadd.f32 %v15407_v32, %v15392_v41  ;;  %v15440_v11 = vsel %vm15424_vm13, %v15416_v33, %v15432_v46  ;;  %v15442_v17 = vsel %vm15426_vm14, %v15418_v50, %v15434_v16  ;;  %v26416_v20 = vld [vmem:[%s29835_s26 + $0x8] sm:$0xff]   ;;  %v26432_v32 = vld [vmem:[%s29835_s26 + $0xd8] sm:$0xff]   ;;  %v26437_v28 = vld [vmem:[%s29835_s26 + $0x130] sm:$0xff]  }
0x1086   : > { %v15421_v18 = vadd.f32 %v15403_v25, %v15391_v2  ;;  %v15423_v19 = vadd.f32 %v15411_v59, %v15393_v3  ;;  %v15441_v57 = vsel %vm15425_vm15, %v15417_v15, %v15433_v29  ;;  %v15443_v35 = vsel %vm15427_vm1, %v15419_v8, %v15435_v55  ;;  %v26418_v25 = vld [vmem:[%s29835_s26 + $0x10] sm:$0xff]   ;;  %v26434_v59 = vld [vmem:[%s29835_s26 + $0xe0] sm:$0xff]   ;;  %v26435_v23 = vld [vmem:[%s29835_s26 + $0x128] sm:$0xff]  }
0x1087   : > { %vm15428_vm3 = vcmp.gt.f32.partialorder %v15420_v4, 0.0  ;;  %v15436_v21 = vmul.f32 0.02, %v15420_v4  ;;  %vm15430_vm2 = vcmp.gt.f32.partialorder %v15422_v10, 0.0  ;;  %v15438_v12 = vmul.f32 0.02, %v15422_v10 }
0x1088   : > { %vm15429_vm4 = vcmp.gt.f32.partialorder %v15421_v18, 0.0  ;;  %v15437_v39 = vmul.f32 0.02, %v15421_v18  ;;  %vm15431_vm5 = vcmp.gt.f32.partialorder %v15423_v19, 0.0  ;;  %v15439_v54 = vmul.f32 0.02, %v15423_v19 }
0x1089   : > { %v15444_v34 = vsel %vm15428_vm3, %v15420_v4, %v15436_v21  ;;  %v15446_v63 = vsel %vm15430_vm2, %v15422_v10, %v15438_v12  ;;  %v26422_v0 = vld [vmem:[%s29835_s26 + $0x20] sm:$0xff]   ;;  %v26438_v14 = vld [vmem:[%s29835_s26 + $0xf0] sm:$0xff]   ;;  %v26423_v33 = vld [vmem:[%s29835_s26 + $0x68] sm:$0xff]   ;;  %vm19476_vm2 = vcmask 1040384  }
0x108a   : > { %v15448_v48 = vpack.c.bf16 %v15444_v34, %v15440_v11  ;;  %v15450_v47 = vpack.c.bf16 %v15446_v63, %v15442_v17  ;;  %v15445_v7 = vsel %vm15429_vm4, %v15421_v18, %v15437_v39  ;;  %v15447_v51 = vsel %vm15431_vm5, %v15423_v19, %v15439_v54  ;;  %v26424_v50 = vld [vmem:[%s29835_s26 + $0x28] sm:$0xff]   ;;  %v26425_v44 = vld [vmem:[%s29835_s26 + $0x70] sm:$0xff]   ;;  %v26427_v61 = vld [vmem:[%s29835_s26 + $0x78] sm:$0xff]  }
0x108b   : > { %v15449_v9 = vpack.c.bf16 %v15445_v7, %v15441_v57  ;;  %v15451_v24 = vpack.c.bf16 %v15447_v51, %v15443_v35  ;;  %v26426_v41 = vld [vmem:[%s29835_s26 + $0x30] sm:$0xff]   ;;  %v26428_v58 = vld [vmem:[%s29835_s26 + $0x38] sm:$0xff]   ;;  %v26441_v2 = vld [vmem:[%s29835_s26 + $0x140] sm:$0xff]   ;;  %vm19484_vm4 = vcmask 0  }
0x108c   : > { %v29254_v37 = vand.u32 %v15448_v48, %v27107_v38  ;;  %v29257_v5 = vand.u32 %v15450_v47, %v27107_v38  ;;  %v26439_v15 = vld [vmem:[%s29835_s26 + $0x138] sm:$0xff]   ;;  %v26442_v3 = vld [vmem:[%s29835_s26 + $0x100] sm:$0xff]   ;;  %v26443_v46 = vld [vmem:[%s29835_s26 + $0x148] sm:$0xff]  }
0x108d   : > { %v29248_v40 = vand.u32 %v15449_v9, %v27107_v38  ;;  %v29251_v49 = vand.u32 %v15451_v24, %v27107_v38  ;;  %v26413_v38 = vld [vmem:[%s29835_s26 + $0x40] sm:$0xff]   ;;  %v26440_v8 = vld [vmem:[%s29835_s26 + $0xf8] sm:$0xff]   ;;  %v26444_v16 = vld [vmem:[%s29835_s26 + $0x108] sm:$0xff]  }
0x108e   : > { %v22720_v54 = vld [vmem:[%s26842_s12 + $0x4] sm:$0x3]  ;;  %v26447_v48 = vld [vmem:[%s29835_s26 + $0x1e8] sm:$0xff]   ;;  %v26449_v7 = vld [vmem:[%s29835_s26 + $0x1f0] sm:$0xff]  }
0x108f   : > { %15469 = vmatprep.subr.bf16.mxu0 %v29248_v40  ;;  %15510 = vmatprep.subr.bf16.mxu1 %v29251_v49  ;;  %v26445_v35 = vld [vmem:[%s29835_s26 + $0x1e0] sm:$0xff]   ;;  %v26448_v47 = vld [vmem:[%s29835_s26 + $0x1a8] sm:$0xff]   ;;  %v26450_v51 = vld [vmem:[%s29835_s26 + $0x1b0] sm:$0xff]  }
0x1090   : > { %15470 = vmatpush1.bf16.msra.mxu0 %v29254_v37  ;;  %15511 = vmatpush1.bf16.msra.mxu1 %v29257_v5  ;;  %v26446_v63 = vld [vmem:[%s29835_s26 + $0x1a0] sm:$0xff]   ;;  %v26451_v9 = vld [vmem:[%s29835_s26 + $0x1f8] sm:$0xff]  }
0x1091   : > { %15612 = vmatprep.subr.bf16.mxu0 %v29248_v40  ;;  %15653 = vmatprep.subr.bf16.mxu1 %v29251_v49  ;;  %v26452_v24 = vld [vmem:[%s29835_s26 + $0x1b8] sm:$0xff]  }
0x1093   : > { %22609 = vmatmul.mubr.msk.bf16.vlgmr.msra.gmra.mrb[120].mxu0 %vm15453_vm6, %v15452_v53  ;;  %22610 = vmatmul.mubr.msk.bf16.vlgmr.msra.gmra.mrb[120].mxu1 %vm15453_vm6, %v15452_v53  ;;  %v26453_v53 = vld [vmem:[%s29835_s26 + $0x200] sm:$0xff]  }
0x1094   : > { %15613 = vmatpush1.bf16.msra.mxu0 %v29254_v37  ;;  %15654 = vmatpush1.bf16.msra.mxu1 %v29257_v5 }
0x1095   : > { %15644 = vmatprep.mubr.bf16.mxu0 %v26760_v1  ;;  %23312 = vmatprep.subr.bf16.mxu0 %v26413_v38  ;;  %v26454_v38 = vld [vmem:[%s29835_s26 + $0x1c0] sm:$0xff]  }
0x1096   : > { %15685 = vmatprep.mubr.bf16.mxu1 %v26760_v1  ;;  %23290 = vmatprep.subr.bf16.mxu1 %v26429_v27  ;;  %v26455_v27 = vld [vmem:[%s29835_s26 + $0x208] sm:$0xff]  }
0x109b   : > { %22612 = vmatmul.mubr.msk.bf16.vlgmr.msra.gmra.mrb[124].mxu0 %vm15453_vm6, %v22611_v60  ;;  %22613 = vmatmul.mubr.msk.bf16.vlgmr.msra.gmra.mrb[124].mxu1 %vm15453_vm6, %v22611_v60  ;;  %v26456_v60 = vld [vmem:[%s29835_s26 + $0x1c8] sm:$0xff]  }
0x109c   : > { %23313 = vmatpush3.bf16.msra.mxu0 %v26414_v6  ;;  %23291 = vmatpush3.bf16.msra.mxu1 %v26430_v56  ;;  %v26457_v6 = vld [vmem:[%s29835_s26 + $0x210] sm:$0xff]  }
0x109d   : > { %23314 = vmatprep.subr.bf16.mxu0 %v26415_v36  ;;  %23292 = vmatprep.subr.bf16.mxu1 %v26431_v62  ;;  %v26458_v56 = vld [vmem:[%s29835_s26 + $0x1d0] sm:$0xff]   ;;  %v26459_v36 = vld [vmem:[%s29835_s26 + $0x218] sm:$0xff]  }
0x109e   : > { %v26460_v62 = vld [vmem:[%s29835_s26 + $0x1d8] sm:$0xff]  }
0x10a0   : > { %23315 = vmatpush3.bf16.msra.mxu0 %v26416_v20  ;;  %23293 = vmatpush3.bf16.msra.mxu1 %v26432_v32 }
0x10a1   : > { %23316 = vmatprep.subr.bf16.mxu0 %v26417_v52  ;;  %23294 = vmatprep.subr.bf16.mxu1 %v26433_v31 }
0x10a4   : > { %23317 = vmatpush3.bf16.msra.mxu0 %v26418_v25  ;;  %23295 = vmatpush3.bf16.msra.mxu1 %v26434_v59 }
0x10a5   : > { %23318 = vmatprep.subr.bf16.mxu0 %v26419_v22  ;;  %23296 = vmatprep.subr.bf16.mxu1 %v26435_v23 }
0x10a8   : > { %23319 = vmatpush3.bf16.msra.mxu0 %v26420_v13  ;;  %23297 = vmatpush3.bf16.msra.mxu1 %v26436_v26  ;;  %v26477_v13 = vld [vmem:[%s29835_s26 + $0x150] sm:$0xff]   ;;  %v26478_v26 = vld [vmem:[%s29835_s26 + $0x158] sm:$0xff]  }
0x10a9   : > { %23320 = vmatprep.subr.bf16.mxu0 %v26421_v30  ;;  %23298 = vmatprep.subr.bf16.mxu1 %v26437_v28  ;;  %v26479_v30 = vld [vmem:[%s29835_s26 + $0x160] sm:$0xff]   ;;  %v26480_v28 = vld [vmem:[%s29835_s26 + $0x168] sm:$0xff]  }
0x10ac   : > { %23321 = vmatpush3.bf16.msra.mxu0 %v26422_v0  ;;  %23299 = vmatpush3.bf16.msra.mxu1 %v26438_v14  ;;  %v26481_v0 = vld [vmem:[%s29835_s26 + $0x170] sm:$0xff]   ;;  %v26482_v14 = vld [vmem:[%s29835_s26 + $0x178] sm:$0xff]  }
0x10ad   : > { %23322 = vmatprep.subr.bf16.mxu0 %v26423_v33  ;;  %23300 = vmatprep.subr.bf16.mxu1 %v26439_v15  ;;  %v26483_v33 = vld [vmem:[%s29835_s26 + $0x180] sm:$0xff]  }
0x10ae   : > { %v26487_v15 = vld [vmem:[%s29835_s26 + $0x80] sm:$0xff]  }
0x10b0   : > { %23323 = vmatpush3.bf16.msra.mxu0 %v26424_v50  ;;  %23301 = vmatpush3.bf16.msra.mxu1 %v26440_v8  ;;  %v26484_v50 = vld [vmem:[%s29835_s26 + $0x188] sm:$0xff]  }
0x10b1   : > { %23324 = vmatprep.subr.bf16.mxu0 %v26425_v44  ;;  %23302 = vmatprep.subr.bf16.mxu1 %v26441_v2  ;;  %v26485_v44 = vld [vmem:[%s29835_s26 + $0x190] sm:$0xff]   ;;  %v26488_v8 = vld [vmem:[%s29835_s26 + $0x88] sm:$0xff]  }
0x10b2   : > { %v26489_v2 = vld [vmem:[%s29835_s26 + $0x90] sm:$0xff]  }
0x10b4   : > { %23325 = vmatpush3.bf16.msra.mxu0 %v26426_v41  ;;  %23303 = vmatpush3.bf16.msra.mxu1 %v26442_v3  ;;  %v26486_v41 = vld [vmem:[%s29835_s26 + $0x198] sm:$0xff]  }
0x10b5   : > { %23326 = vmatprep.subr.bf16.mxu0 %v26427_v61  ;;  %23304 = vmatprep.subr.bf16.mxu1 %v26443_v46  ;;  %v26490_v3 = vld [vmem:[%s29835_s26 + $0x98] sm:$0xff]  }
0x10b8   : > { %23327 = vmatpush3.bf16.msra.mxu0 %v26428_v58  ;;  %23305 = vmatpush3.bf16.msra.mxu1 %v26444_v16 }
0x10b9   : > { %16235 = vmatprep.subr.bf16.mxu0 %v29248_v40  ;;  %15951 = vmatprep.subr.bf16.mxu1 %v26760_v1 }
0x1166   : > { %v15503_v29 = vpop.f32.mrb[120].mxu0  ;;  %v29309_v55 = vpop.f32.mrb[120].mxu1 }
0x1167   : > { %v15505_v4 = vpop.f32.mrb[121].mxu0  ;;  %v15551_v17 = vpack.c.bf16 %v15503_v29, %v15503_v29  ;;  %v15546_v20 = vpop.f32.mrb[121].mxu1  ;;  %v26491_v29 = vld [vmem:[%s29835_s26 + $0xa0] sm:$0xff]  }
0x1168   : > { %v15552_v10 = vpack.c.bf16 %v15505_v4, %v15505_v4  ;;  %v15507_v11 = vpop.f32.mrb[122].mxu0  ;;  %v15548_v32 = vpop.f32.mrb[122].mxu1  ;;  %v15554_v58 = vpack.c.bf16 %v15546_v20, %v15546_v20  ;;  %v26498_v20 = vld [vmem:[%s29835_s26 + $0x228] sm:$0xff]  }
0x1169   : > { %v15508_v18 = vpop.f32.mrb[123].mxu0  ;;  %v15549_v52 = vpop.f32.mrb[123].mxu1  ;;  %v22884_v32 = vld [vmem:[%s26842_s12 + $0x8] sm:$0x3] }
0x116a   : > { %16182 = vmatprep.mubr.bf16.mxu0 %v15552_v10  ;;  %v26461_v52 = vld [vmem:[%s29835_s26 + $0x380] sm:$0xff]  }
0x116b   : > { %16183 = vmatmul.mubr.bf16.vlgmr.msra.gmra.mrb[128].mxu0 %v15551_v17  ;;  %v26492_v17 = vld [vmem:[%s29835_s26 + $0xa8] sm:$0xff]  }
0x116c   : > { %16236 = vmatpush1.bf16.msra.mxu0 %v29254_v37  ;;  %16267 = vmatprep.mubr.bf16.mxu0 %v26760_v1 }
0x116d   : > { %16276 = vmatprep.subr.bf16.mxu0 %v29251_v49 }
0x116e   : > { %v15646_v19 = vpop.f32.mrb[124].mxu0  ;;  %v15687_v31 = vpop.f32.mrb[124].mxu1 }
0x116f   : > { %v15694_v21 = vpack.c.bf16 %v15646_v19, %v15646_v19  ;;  %v15648_v12 = vpop.f32.mrb[125].mxu0  ;;  %v15689_v25 = vpop.f32.mrb[125].mxu1  ;;  %v15696_v61 = vpack.c.bf16 %v15687_v31, %v15687_v31  ;;  %v26500_v31 = vld [vmem:[%s29835_s26 + $0x238] sm:$0xff]  }
0x1170   : > { %v15695_v39 = vpack.c.bf16 %v15648_v12, %v15648_v12  ;;  %v15650_v57 = vpop.f32.mrb[126].mxu0  ;;  %v15691_v59 = vpop.f32.mrb[126].mxu1  ;;  %v15697_v23 = vpack.c.bf16 %v15689_v25, %v15689_v25  ;;  %v26501_v25 = vld [vmem:[%s29835_s26 + $0x240] sm:$0xff]  }
0x1171   : > { %v15651_v34 = vpop.f32.mrb[127].mxu0  ;;  %v15692_v22 = vpop.f32.mrb[127].mxu1  ;;  %v26462_v59 = vld [vmem:[%s29835_s26 + $0x340] sm:$0xff]  }
0x1172   : > { %15943 = vmatprep.mubr.bf16.mxu1 %v15695_v39  ;;  %v26493_v39 = vld [vmem:[%s29835_s26 + $0xb0] sm:$0xff]   ;;  %v26463_v22 = vld [vmem:[%s29835_s26 + $0x388] sm:$0xff]  }
0x1173   : > { %15944 = vmatmul.mubr.bf16.vlgmr.msra.gmra.mrb[128].mxu1 %v15694_v21  ;;  %22721 = vmatmul.mubr.msk.bf16.vlgmr.msra.gmra.mrb[132].mxu0 %vm15453_vm6, %v22720_v54 }
0x1174   : > { %16277 = vmatpush1.bf16.msra.mxu0 %v29257_v5  ;;  %16308 = vmatprep.mubr.bf16.mxu0 %v26760_v1 }
0x1175   : > { %23334 = vmatprep.subr.bf16.mxu0 %v26445_v35  ;;  %22692 = vmatprep.mubr.msk.bf16.mxu1 %vm15907_vm7, %v15697_v23  ;;  %v26502_v23 = vld [vmem:[%s29835_s26 + $0x248] sm:$0xff]  }
0x1176   : > { %15952 = vmatpush1.bf16.msra.mxu1 %v26477_v13  ;;  %v26464_v13 = vld [vmem:[%s29835_s26 + $0x348] sm:$0xff]  }
0x1177   : > { %15953 = vmatprep.subr.bf16.mxu1 %v26760_v1 }
0x117a   : > { %15954 = vmatpush1.bf16.msra.mxu1 %v26478_v26  ;;  %v26465_v26 = vld [vmem:[%s29835_s26 + $0x390] sm:$0xff]  }
0x117b   : > { %22722 = vmatmul.mubr.msk.bf16.vlgmr.msra.gmra.mrb[136].mxu0 %vm15453_vm6, %v22720_v54  ;;  %15955 = vmatprep.subr.bf16.mxu1 %v26760_v1 }
0x117c   : > { %23335 = vmatpush3.bf16.msra.mxu0 %v26446_v63 }
0x117d   : > { %23336 = vmatprep.subr.bf16.mxu0 %v26447_v48 }
0x117e   : > { %15956 = vmatpush1.bf16.msra.mxu1 %v26479_v30  ;;  %v26503_v30 = vld [vmem:[%s29835_s26 + $0x250] sm:$0xff]  }
0x117f   : > { %15957 = vmatprep.subr.bf16.mxu1 %v26760_v1 }
0x1180   : > { %23337 = vmatpush3.bf16.msra.mxu0 %v26448_v47 }
0x1181   : > { %23338 = vmatprep.subr.bf16.mxu0 %v26449_v7 }
0x1182   : > { %15958 = vmatpush1.bf16.msra.mxu1 %v26480_v28  ;;  %v26466_v28 = vld [vmem:[%s29835_s26 + $0x350] sm:$0xff]  }
0x1183   : > { %15959 = vmatprep.subr.bf16.mxu1 %v26760_v1 }
0x1184   : > { %23339 = vmatpush3.bf16.msra.mxu0 %v26450_v51  ;;  %v26494_v51 = vld [vmem:[%s29835_s26 + $0xb8] sm:$0xff]  }
0x1185   : > { %23340 = vmatprep.subr.bf16.mxu0 %v26451_v9 }
0x1186   : > { %15960 = vmatpush1.bf16.msra.mxu1 %v26481_v0  ;;  %v26467_v0 = vld [vmem:[%s29835_s26 + $0x398] sm:$0xff]  }
0x1187   : > { %15961 = vmatprep.subr.bf16.mxu1 %v26760_v1 }
0x1188   : > { %23341 = vmatpush3.bf16.msra.mxu0 %v26452_v24  ;;  %v26495_v24 = vld [vmem:[%s29835_s26 + $0xc0] sm:$0xff]  }
0x1189   : > { %23342 = vmatprep.subr.bf16.mxu0 %v26453_v53 }
0x118a   : > { %15962 = vmatpush1.bf16.msra.mxu1 %v26482_v14  ;;  %v26504_v14 = vld [vmem:[%s29835_s26 + $0x258] sm:$0xff]  }
0x118b   : > { %15963 = vmatprep.subr.bf16.mxu1 %v26760_v1 }
0x118c   : > { %23343 = vmatpush3.bf16.msra.mxu0 %v26454_v38  ;;  %v22802_v38 = vld [vmem:[%s26842_s12 + $0x6] sm:$0x3] }
0x118d   : > { %23344 = vmatprep.subr.bf16.mxu0 %v26455_v27 }
0x118e   : > { %15964 = vmatpush1.bf16.msra.mxu1 %v26483_v33  ;;  %v26468_v33 = vld [vmem:[%s29835_s26 + $0x358] sm:$0xff]  }
0x118f   : > { %15965 = vmatprep.subr.bf16.mxu1 %v26760_v1 }
0x1190   : > { %23345 = vmatpush3.bf16.msra.mxu0 %v26456_v60 }
0x1191   : > { %23346 = vmatprep.subr.bf16.mxu0 %v26457_v6  ;;  %v26496_v6 = vld [vmem:[%s29835_s26 + $0xc8] sm:$0xff]  }
0x1192   : > { %15966 = vmatpush1.bf16.msra.mxu1 %v26484_v50  ;;  %v26469_v50 = vld [vmem:[%s29835_s26 + $0x3a0] sm:$0xff]  }
0x1193   : > { %15967 = vmatprep.subr.bf16.mxu1 %v26760_v1 }
0x1194   : > { %23347 = vmatpush3.bf16.msra.mxu0 %v26458_v56  ;;  %v15553_v56 = vpack.c.bf16 %v29309_v55, %v29309_v55  ;;  %v26499_v55 = vld [vmem:[%s29835_s26 + $0x230] sm:$0xff]  }
0x1195   : > { %23348 = vmatprep.subr.bf16.mxu0 %v26459_v36  ;;  %v26497_v36 = vld [vmem:[%s29835_s26 + $0x220] sm:$0xff]  }
0x1196   : > { %15968 = vmatpush1.bf16.msra.mxu1 %v26485_v44  ;;  %v26505_v44 = vld [vmem:[%s29835_s26 + $0x260] sm:$0xff]  }
0x1197   : > { %15969 = vmatprep.subr.bf16.mxu1 %v26760_v1 }
0x1198   : > { %23349 = vmatpush3.bf16.msra.mxu0 %v26460_v62 }
0x1199   : > { %16619 = vmatprep.subr.bf16.mxu0 %v29248_v40 }
0x119a   : > { %15970 = vmatpush1.bf16.msra.mxu1 %v26486_v41  ;;  %v26470_v41 = vld [vmem:[%s29835_s26 + $0x360] sm:$0xff]  }
0x119b   : > { %16190 = vmatprep.subr.bf16.mxu1 %v26760_v1 }
0x119d   : > { %15984 = vmatmul.mubr.bf16.vlgmr.msra.gmra.mrb[132].mxu1 %v15696_v61  ;;  %v26471_v61 = vld [vmem:[%s29835_s26 + $0x3a8] sm:$0xff]  }
0x119e   : > { %16191 = vmatpush1.bf16.msra.mxu1 %v26487_v15  ;;  %22719 = vmatprep.mubr.msk.bf16.mxu1 %vm15907_vm7, %v15554_v58  ;;  %v26506_v58 = vld [vmem:[%s29835_s26 + $0x268] sm:$0xff]  }
0x119f   : > { %16192 = vmatprep.subr.bf16.mxu1 %v26760_v1  ;;  %v26472_v15 = vld [vmem:[%s29835_s26 + $0x368] sm:$0xff]  }
0x11a2   : > { %16193 = vmatpush1.bf16.msra.mxu1 %v26488_v8  ;;  %v26507_v8 = vld [vmem:[%s29835_s26 + $0x2b0] sm:$0xff]  }
0x11a3   : > { %16194 = vmatprep.subr.bf16.mxu1 %v26760_v1 }
0x11a6   : > { %16195 = vmatpush1.bf16.msra.mxu1 %v26489_v2  ;;  %v26473_v2 = vld [vmem:[%s29835_s26 + $0x3b0] sm:$0xff]  }
0x11a7   : > { %16196 = vmatprep.subr.bf16.mxu1 %v26760_v1 }
0x11aa   : > { %16197 = vmatpush1.bf16.msra.mxu1 %v26490_v3 }
0x11ab   : > { %16198 = vmatprep.subr.bf16.mxu1 %v26760_v1 }
0x11ae   : > { %16199 = vmatpush1.bf16.msra.mxu1 %v26491_v29  ;;  %v26509_v29 = vld [vmem:[%s29835_s26 + $0x2b8] sm:$0xff]  }
0x11af   : > { %16200 = vmatprep.subr.bf16.mxu1 %v26760_v1 }
0x11b2   : > { %16201 = vmatpush1.bf16.msra.mxu1 %v26492_v17  ;;  %v26511_v17 = vld [vmem:[%s29835_s26 + $0x2c0] sm:$0xff]  }
0x11b3   : > { %16202 = vmatprep.subr.bf16.mxu1 %v26760_v1 }
0x11b6   : > { %16203 = vmatpush1.bf16.msra.mxu1 %v26493_v39  ;;  %v26516_v39 = vld [vmem:[%s29835_s26 + $0x290] sm:$0xff]  }
0x11b7   : > { %16204 = vmatprep.subr.bf16.mxu1 %v26760_v1 }
0x11ba   : > { %16205 = vmatpush1.bf16.msra.mxu1 %v26494_v51 }
0x11bb   : > { %16206 = vmatprep.subr.bf16.mxu1 %v26760_v1 }
0x11be   : > { %16207 = vmatpush1.bf16.msra.mxu1 %v26495_v24 }
0x11bf   : > { %16208 = vmatprep.subr.bf16.mxu1 %v26760_v1 }
0x11c2   : > { %16209 = vmatpush1.bf16.msra.mxu1 %v26496_v6 }
0x11c3   : > { %16573 = vmatprep.subr.bf16.mxu1 %v26760_v1 }
0x11c5   : > { %16223 = vmatmul.mubr.bf16.vlgmr.msra.gmra.mrb[132].mxu1 %v15553_v56 }
0x11c6   : > { %16574 = vmatpush1.bf16.msra.mxu1 %v26497_v36  ;;  %v26523_v36 = vld [vmem:[%s29835_s26 + $0x2f0] sm:$0xff]  }
0x11c7   : > { %16575 = vmatprep.subr.bf16.mxu1 %v26760_v1 }
0x11ca   : > { %16576 = vmatpush1.bf16.msra.mxu1 %v26498_v20 }
0x11cb   : > { %16577 = vmatprep.subr.bf16.mxu1 %v26760_v1 }
0x11ce   : > { %16578 = vmatpush1.bf16.msra.mxu1 %v26499_v55  ;;  %v26524_v55 = vld [vmem:[%s29835_s26 + $0x2f8] sm:$0xff]  }
0x11cf   : > { %16579 = vmatprep.subr.bf16.mxu1 %v26760_v1 }
0x11d2   : > { %16580 = vmatpush1.bf16.msra.mxu1 %v26500_v31 }
0x11d3   : > { %16581 = vmatprep.subr.bf16.mxu1 %v26760_v1 }
0x11d6   : > { %16582 = vmatpush1.bf16.msra.mxu1 %v26501_v25  ;;  %v26525_v25 = vld [vmem:[%s29835_s26 + $0x300] sm:$0xff]  }
0x11d7   : > { %16583 = vmatprep.subr.bf16.mxu1 %v26760_v1 }
0x11da   : > { %16584 = vmatpush1.bf16.msra.mxu1 %v26502_v23 }
0x11db   : > { %16585 = vmatprep.subr.bf16.mxu1 %v26760_v1 }
0x11de   : > { %16586 = vmatpush1.bf16.msra.mxu1 %v26503_v30 }
0x11df   : > { %16587 = vmatprep.subr.bf16.mxu1 %v26760_v1 }
0x11e2   : > { %16588 = vmatpush1.bf16.msra.mxu1 %v26504_v14 }
0x11e3   : > { %16589 = vmatprep.subr.bf16.mxu1 %v26760_v1 }
0x11e6   : > { %16590 = vmatpush1.bf16.msra.mxu1 %v26505_v44 }
0x11e7   : > { %16591 = vmatprep.subr.bf16.mxu1 %v26760_v1 }
0x11ea   : > { %16592 = vmatpush1.bf16.msra.mxu1 %v26506_v58 }
0x11eb   : > { %23356 = vmatprep.subr.bf16.mxu1 %v26507_v8  ;;  %v26531_v8 = vld [vmem:[%s29835_s26 + $0x450] sm:$0xff]  }
0x123e   : > { %v23328_v46 = vpop.f32.mrb[128].mxu0 }
0x123f   : > { %v23329_v16 = vpop.f32.mrb[129].mxu0 }
0x1240   : > { %v23330_v4 = vadd.f32 %v23329_v16, %v23328_v46  ;;  %v23331_v10 = vpop.f32.mrb[130].mxu0  ;;  %v26508_v46 = vld [vmem:[%s29835_s26 + $0x270] sm:$0xff]  }
0x1241   : > { %v23332_v11 = vpop.f32.mrb[131].mxu0  ;;  %v26474_v16 = vld [vmem:[%s29835_s26 + $0x370] sm:$0xff]   ;;  %v26510_v10 = vld [vmem:[%s29835_s26 + $0x278] sm:$0xff]  }
0x1242   : > { %v26476_v11 = vld [vmem:[%s29835_s26 + $0x378] sm:$0xff]  }
0x1246   : > { %v23306_v18 = vpop.f32.mrb[128].mxu1  ;;  %v16269_v19 = vpop.f32.mrb[132].mxu0 }
0x1247   : > { %v23307_v21 = vpop.f32.mrb[129].mxu1  ;;  %v16271_v12 = vpop.f32.mrb[133].mxu0  ;;  %v16317_v63 = vpack.c.bf16 %v16269_v19, %v16269_v19  ;;  %v26513_v19 = vld [vmem:[%s29835_s26 + $0x2c8] sm:$0xff]  }
0x1248   : > { %v23308_v54 = vadd.f32 %v23307_v21, %v23306_v18  ;;  %v16318_v57 = vpack.c.bf16 %v16271_v12, %v16271_v12  ;;  %v16273_v35 = vpop.f32.mrb[134].mxu0  ;;  %v23309_v34 = vpop.f32.mrb[130].mxu1  ;;  %v26512_v18 = vld [vmem:[%s29835_s26 + $0x280] sm:$0xff]   ;;  %v26514_v21 = vld [vmem:[%s29835_s26 + $0x288] sm:$0xff]   ;;  %v26515_v12 = vld [vmem:[%s29835_s26 + $0x2d0] sm:$0xff]  }
0x1249   : > { %v16274_v48 = vpop.f32.mrb[135].mxu0  ;;  %v23310_v47 = vpop.f32.mrb[131].mxu1  ;;  %v26519_v35 = vld [vmem:[%s29835_s26 + $0x2e0] sm:$0xff]  }
0x124a   : > { %v29371_v7 = vadd.f32 %v23330_v4, %v23308_v54  ;;  %16565 = vmatprep.mubr.bf16.mxu0 %v16318_v57  ;;  %v26475_v4 = vld [vmem:[%s29835_s26 + $0x3b8] sm:$0xff]   ;;  %v26520_v34 = vld [vmem:[%s29835_s26 + $0x2a0] sm:$0xff]   ;;  %v26522_v48 = vld [vmem:[%s29835_s26 + $0x2a8] sm:$0xff]  }
0x124b   : > { %16566 = vmatmul.mubr.bf16.vlgmr.msra.gmra.mrb[140].mxu0 %v16317_v63  ;;  %v26517_v54 = vld [vmem:[%s29835_s26 + $0x2d8] sm:$0xff]   ;;  %v26521_v63 = vld [vmem:[%s29835_s26 + $0x2e8] sm:$0xff]  }
0x124c   : > { %16620 = vmatpush1.bf16.msra.mxu0 %v29254_v37  ;;  %16651 = vmatprep.mubr.bf16.mxu0 %v26760_v1  ;;  %v26518_v57 = vld [vmem:[%s29835_s26 + $0x298] sm:$0xff]  }
0x124d   : > { %16660 = vmatprep.subr.bf16.mxu0 %v29251_v49 }
0x124e   : > { %v29378_v9 = vpop.f32.mrb[136].mxu0 }
0x124f   : > { %v16312_v53 = vpop.f32.mrb[137].mxu0  ;;  %v16319_v3 = vpack.c.bf16 %v29378_v9, %v29378_v9 }
0x1250   : > { %v16314_v27 = vpop.f32.mrb[138].mxu0  ;;  %v16320_v62 = vpack.c.bf16 %v16312_v53, %v16312_v53 }
0x1251   : > { %v16315_v60 = vpop.f32.mrb[139].mxu0 }
0x1252   : > { %22801 = vmatprep.mubr.msk.bf16.mxu1 %vm15907_vm7, %v16320_v62 }
0x1253   : > { %22803 = vmatmul.mubr.msk.bf16.vlgmr.msra.gmra.mrb[144].mxu0 %vm15453_vm6, %v22802_v38  ;;  %16606 = vmatmul.mubr.bf16.vlgmr.msra.gmra.mrb[132].mxu1 %v16319_v3  ;;  %v26532_v3 = vld [vmem:[%s29835_s26 + $0x330] sm:$0xff]  }
0x1254   : > { %16661 = vmatpush1.bf16.msra.mxu0 %v29257_v5  ;;  %16692 = vmatprep.mubr.bf16.mxu0 %v26760_v1 }
0x1255   : > { %17003 = vmatprep.subr.bf16.mxu0 %v29248_v40  ;;  %23357 = vmatpush3.bf16.msra.mxu1 %v26508_v46  ;;  %v26533_v46 = vld [vmem:[%s29835_s26 + $0x410] sm:$0xff]  }
0x1256   : > { %23358 = vmatprep.subr.bf16.mxu1 %v26509_v29  ;;  %v26535_v29 = vld [vmem:[%s29835_s26 + $0x338] sm:$0xff]  }
0x1259   : > { %23359 = vmatpush3.bf16.msra.mxu1 %v26510_v10  ;;  %v26537_v10 = vld [vmem:[%s29835_s26 + $0x460] sm:$0xff]  }
0x125a   : > { %23360 = vmatprep.subr.bf16.mxu1 %v26511_v17  ;;  %v26549_v17 = vld [vmem:[%s29835_s26 + $0x3c0] sm:$0xff]  }
0x125b   : > { %22804 = vmatmul.mubr.msk.bf16.vlgmr.msra.gmra.mrb[148].mxu0 %vm15453_vm6, %v22802_v38 }
0x125c   : > { %17004 = vmatpush1.bf16.msra.mxu0 %v29254_v37  ;;  %17035 = vmatprep.mubr.bf16.mxu0 %v26760_v1 }
0x125d   : > { %17044 = vmatprep.subr.bf16.mxu0 %v29251_v49  ;;  %23361 = vmatpush3.bf16.msra.mxu1 %v26512_v18 }
0x125e   : > { %23362 = vmatprep.subr.bf16.mxu1 %v26513_v19  ;;  %v26539_v19 = vld [vmem:[%s29835_s26 + $0x468] sm:$0xff]  }
0x1261   : > { %23363 = vmatpush3.bf16.msra.mxu1 %v26514_v21 }
0x1262   : > { %23364 = vmatprep.subr.bf16.mxu1 %v26515_v12  ;;  %v26540_v12 = vld [vmem:[%s29835_s26 + $0x428] sm:$0xff]  }
0x1263   : > { %22885 = vmatmul.mubr.msk.bf16.vlgmr.msra.gmra.mrb[152].mxu0 %vm15453_vm6, %v22884_v32 }
0x1264   : > { %17045 = vmatpush1.bf16.msra.mxu0 %v29257_v5  ;;  %17076 = vmatprep.mubr.bf16.mxu0 %v26760_v1 }
0x1265   : > { %23378 = vmatprep.subr.bf16.mxu0 %v26461_v52  ;;  %23365 = vmatpush3.bf16.msra.mxu1 %v26516_v39  ;;  %v26550_v39 = vld [vmem:[%s29835_s26 + $0x3c8] sm:$0xff]  }
0x1266   : > { %23366 = vmatprep.subr.bf16.mxu1 %v26517_v54  ;;  %v26541_v54 = vld [vmem:[%s29835_s26 + $0x470] sm:$0xff]  }
0x1269   : > { %23367 = vmatpush3.bf16.msra.mxu1 %v26518_v57  ;;  %v26542_v57 = vld [vmem:[%s29835_s26 + $0x430] sm:$0xff]  }
0x126a   : > { %23368 = vmatprep.subr.bf16.mxu1 %v26519_v35  ;;  %v26551_v35 = vld [vmem:[%s29835_s26 + $0x3d0] sm:$0xff]  }
0x126b   : > { %22886 = vmatmul.mubr.msk.bf16.vlgmr.msra.gmra.mrb[156].mxu0 %vm15453_vm6, %v22884_v32 }
0x126c   : > { %23379 = vmatpush3.bf16.msra.mxu0 %v26462_v59 }
0x126d   : > { %23380 = vmatprep.subr.bf16.mxu0 %v26463_v22  ;;  %23369 = vmatpush3.bf16.msra.mxu1 %v26520_v34  ;;  %v26526_v22 = vld [vmem:[%s29835_s26 + $0x308] sm:$0xff]   ;;  %v26543_v34 = vld [vmem:[%s29835_s26 + $0x478] sm:$0xff]  }
0x126e   : > { %23370 = vmatprep.subr.bf16.mxu1 %v26521_v63  ;;  %v26544_v63 = vld [vmem:[%s29835_s26 + $0x438] sm:$0xff]  }
0x1270   : > { %23381 = vmatpush3.bf16.msra.mxu0 %v26464_v13 }
0x1271   : > { %23382 = vmatprep.subr.bf16.mxu0 %v26465_v26  ;;  %23371 = vmatpush3.bf16.msra.mxu1 %v26522_v48  ;;  %v26552_v48 = vld [vmem:[%s29835_s26 + $0x3d8] sm:$0xff]  }
0x1272   : > { %16957 = vmatprep.subr.bf16.mxu1 %v26760_v1 }
0x1274   : > { %23383 = vmatpush3.bf16.msra.mxu0 %v26466_v28  ;;  %v26527_v28 = vld [vmem:[%s29835_s26 + $0x310] sm:$0xff]  }
0x1275   : > { %23384 = vmatprep.subr.bf16.mxu0 %v26467_v0 }
0x1278   : > { %23385 = vmatpush3.bf16.msra.mxu0 %v26468_v33  ;;  %v26528_v33 = vld [vmem:[%s29835_s26 + $0x318] sm:$0xff]  }
0x1279   : > { %23386 = vmatprep.subr.bf16.mxu0 %v26469_v50 }
0x127c   : > { %23387 = vmatpush3.bf16.msra.mxu0 %v26470_v41  ;;  %v26529_v41 = vld [vmem:[%s29835_s26 + $0x320] sm:$0xff]  }
0x127d   : > { %23388 = vmatprep.subr.bf16.mxu0 %v26471_v61  ;;  %v22966_v61 = vld [vmem:[%s26842_s12 + $0xa] sm:$0x3] }
0x1280   : > { %23389 = vmatpush3.bf16.msra.mxu0 %v26472_v15 }
0x1281   : > { %23390 = vmatprep.subr.bf16.mxu0 %v26473_v2  ;;  %v26530_v2 = vld [vmem:[%s29835_s26 + $0x328] sm:$0xff]  }
0x1284   : > { %23391 = vmatpush3.bf16.msra.mxu0 %v26474_v16  ;;  %v26534_v16 = vld [vmem:[%s29835_s26 + $0x458] sm:$0xff]  }
0x1285   : > { %23392 = vmatprep.subr.bf16.mxu0 %v26475_v4  ;;  %v26536_v4 = vld [vmem:[%s29835_s26 + $0x418] sm:$0xff]  }
0x1288   : > { %23393 = vmatpush3.bf16.msra.mxu0 %v26476_v11  ;;  %v26538_v11 = vld [vmem:[%s29835_s26 + $0x420] sm:$0xff]  }
0x1289   : > { %17387 = vmatprep.subr.bf16.mxu0 %v29248_v40 }
0x131e   : > { %v23350_v47 = vpop.f32.mrb[140].mxu0 }
0x131f   : > { %v23351_v51 = vpop.f32.mrb[141].mxu0 }
0x1320   : > { %v23352_v9 = vadd.f32 %v23351_v51, %v23350_v47  ;;  %v23353_v24 = vpop.f32.mrb[142].mxu0  ;;  %v26545_v47 = vld [vmem:[%s29835_s26 + $0x480] sm:$0xff]  }
0x1321   : > { %v23354_v53 = vpop.f32.mrb[143].mxu0  ;;  %v26546_v51 = vld [vmem:[%s29835_s26 + $0x440] sm:$0xff]   ;;  %v26547_v24 = vld [vmem:[%s29835_s26 + $0x488] sm:$0xff]  }
0x1322   : > { %v29458_v38 = vadd.f32 %v29371_v7, %v23352_v9  ;;  %v26553_v9 = vld [vmem:[%s29835_s26 + $0x3e0] sm:$0xff]   ;;  %v26548_v53 = vld [vmem:[%s29835_s26 + $0x448] sm:$0xff]  }
0x1326   : > { %v16653_v27 = vpop.f32.mrb[144].mxu0 }
0x1327   : > { %v16655_v60 = vpop.f32.mrb[145].mxu0  ;;  %v16701_v62 = vpack.c.bf16 %v16653_v27, %v16653_v27  ;;  %v26554_v27 = vld [vmem:[%s29835_s26 + $0x3e8] sm:$0xff]  }
0x1328   : > { %v16702_v6 = vpack.c.bf16 %v16655_v60, %v16655_v60  ;;  %v16657_v56 = vpop.f32.mrb[146].mxu0  ;;  %v26555_v60 = vld [vmem:[%s29835_s26 + $0x3f0] sm:$0xff]  }
0x1329   : > { %v16658_v20 = vpop.f32.mrb[147].mxu0  ;;  %v26557_v56 = vld [vmem:[%s29835_s26 + $0x400] sm:$0xff]  }
0x132a   : > { %16949 = vmatprep.mubr.bf16.mxu1 %v16702_v6  ;;  %v26556_v6 = vld [vmem:[%s29835_s26 + $0x3f8] sm:$0xff]  }
0x132b   : > { %16950 = vmatmul.mubr.bf16.vlgmr.msra.gmra.mrb[136].mxu1 %v16701_v62  ;;  %v26559_v62 = vld [vmem:[%s29835_s26 + $0x490] sm:$0xff]   ;;  %v26560_v20 = vld [vmem:[%s29835_s26 + $0x498] sm:$0xff]  }
0x132c   : > { %16958 = vmatpush1.bf16.msra.mxu1 %v26523_v36  ;;  %v26558_v36 = vld [vmem:[%s29835_s26 + $0x408] sm:$0xff]  }
0x132d   : > { %16959 = vmatprep.subr.bf16.mxu1 %v26760_v1 }
0x132e   : > { %v29463_v32 = vpop.f32.mrb[148].mxu0 }
0x132f   : > { %v16696_v52 = vpop.f32.mrb[149].mxu0  ;;  %v16703_v18 = vpack.c.bf16 %v29463_v32, %v29463_v32  ;;  %v26562_v32 = vld [vmem:[%s29835_s26 + $0x4a8] sm:$0xff]  }
0x1330   : > { %v16704_v7 = vpack.c.bf16 %v16696_v52, %v16696_v52  ;;  %16960 = vmatpush1.bf16.msra.mxu1 %v26524_v55  ;;  %v16698_v31 = vpop.f32.mrb[150].mxu0  ;;  %v26561_v55 = vld [vmem:[%s29835_s26 + $0x4a0] sm:$0xff]   ;;  %v26563_v52 = vld [vmem:[%s29835_s26 + $0x4b0] sm:$0xff]  }
0x1331   : > { %v16699_v59 = vpop.f32.mrb[151].mxu0  ;;  %16961 = vmatprep.subr.bf16.mxu1 %v26760_v1  ;;  %v26565_v31 = vld [vmem:[%s29835_s26 + $0x4c0] sm:$0xff]  }
0x1332   : > { %22883 = vmatprep.mubr.msk.bf16.mxu1 %vm15907_vm7, %v16704_v7  ;;  %v26564_v7 = vld [vmem:[%s29835_s26 + $0x4b8] sm:$0xff]   ;;  %v26567_v59 = vld [vmem:[%s29835_s26 + $0x4d0] sm:$0xff]  }
0x1334   : > { %16962 = vmatpush1.bf16.msra.mxu1 %v26525_v25  ;;  %v26566_v25 = vld [vmem:[%s29835_s26 + $0x4c8] sm:$0xff]  }
0x1335   : > { %16963 = vmatprep.subr.bf16.mxu1 %v26760_v1 }
0x1336   : > { %v17037_v23 = vpop.f32.mrb[152].mxu0 }
0x1337   : > { %v17039_v13 = vpop.f32.mrb[153].mxu0  ;;  %v17085_v0 = vpack.c.bf16 %v17037_v23, %v17037_v23 }
0x1338   : > { %16964 = vmatpush1.bf16.msra.mxu1 %v26526_v22  ;;  %v17086_v26 = vpack.c.bf16 %v17039_v13, %v17039_v13  ;;  %v17041_v30 = vpop.f32.mrb[154].mxu0  ;;  %v26568_v22 = vld [vmem:[%s29835_s26 + $0x4d8] sm:$0xff]  }
0x1339   : > { %v17042_v14 = vpop.f32.mrb[155].mxu0  ;;  %16965 = vmatprep.subr.bf16.mxu1 %v26760_v1 }
0x133a   : > { %17333 = vmatprep.mubr.bf16.mxu0 %v17086_v26 }
0x133b   : > { %17334 = vmatmul.mubr.bf16.vlgmr.msra.gmra.mrb[160].mxu0 %v17085_v0 }
0x133c   : > { %16966 = vmatpush1.bf16.msra.mxu1 %v26527_v28  ;;  %17388 = vmatpush1.bf16.msra.mxu0 %v29254_v37 }
0x133d   : > { %17428 = vmatprep.subr.bf16.mxu0 %v29251_v49  ;;  %16967 = vmatprep.subr.bf16.mxu1 %v26760_v1 }
0x133e   : > { %17419 = vmatprep.mubr.bf16.mxu0 %v26760_v1  ;;  %v29477_v50 = vpop.f32.mrb[156].mxu0 }
0x133f   : > { %v17080_v44 = vpop.f32.mrb[157].mxu0 }
0x1340   : > { %16968 = vmatpush1.bf16.msra.mxu1 %v26528_v33  ;;  %v17082_v58 = vpop.f32.mrb[158].mxu0  ;;  %v17088_v21 = vpack.c.bf16 %v17080_v44, %v17080_v44 }
0x1341   : > { %16969 = vmatprep.subr.bf16.mxu1 %v26760_v1  ;;  %v17083_v15 = vpop.f32.mrb[159].mxu0 }
0x1343   : > { %22967 = vmatmul.mubr.msk.bf16.vlgmr.msra.gmra.mrb[164].mxu0 %vm15453_vm6, %v22966_v61 }
0x1344   : > { %16970 = vmatpush1.bf16.msra.mxu1 %v26529_v41  ;;  %17429 = vmatpush1.bf16.msra.mxu0 %v29257_v5 }
0x1345   : > { %16971 = vmatprep.subr.bf16.mxu1 %v26760_v1  ;;  %17460 = vmatprep.mubr.bf16.mxu0 %v26760_v1 }
0x1346   : > { %23400 = vmatprep.subr.bf16.mxu0 %v26531_v8 }
0x1348   : > { %16972 = vmatpush1.bf16.msra.mxu1 %v26530_v2 }
0x1349   : > { %16973 = vmatprep.subr.bf16.mxu1 %v26760_v1 }
0x134b   : > { %22968 = vmatmul.mubr.msk.bf16.vlgmr.msra.gmra.mrb[168].mxu0 %vm15453_vm6, %v22966_v61 }
0x134c   : > { %16974 = vmatpush1.bf16.msra.mxu1 %v26532_v3  ;;  %23401 = vmatpush3.bf16.msra.mxu0 %v26533_v46 }
0x134d   : > { %16975 = vmatprep.subr.bf16.mxu1 %v26760_v1  ;;  %23402 = vmatprep.subr.bf16.mxu0 %v26534_v16 }
0x1350   : > { %16976 = vmatpush1.bf16.msra.mxu1 %v26535_v29  ;;  %23403 = vmatpush3.bf16.msra.mxu0 %v26536_v4  ;;  %v23048_v4 = vld [vmem:[%s26842_s12 + $0xc] sm:$0x3] }
0x1351   : > { %23404 = vmatprep.subr.bf16.mxu0 %v26537_v10  ;;  %17341 = vmatprep.subr.bf16.mxu1 %v26760_v1 }
0x1353   : > { %16990 = vmatmul.mubr.bf16.vlgmr.msra.gmra.mrb[132].mxu1 %v16703_v18  ;;  %v26569_v18 = vld [vmem:[%s29835_s26 + $0x520] sm:$0xff]  }
0x1354   : > { %23405 = vmatpush3.bf16.msra.mxu0 %v26538_v11  ;;  %17342 = vmatpush1.bf16.msra.mxu1 %v26549_v17 }
0x1355   : > { %23406 = vmatprep.subr.bf16.mxu0 %v26539_v19  ;;  %17343 = vmatprep.subr.bf16.mxu1 %v26760_v1  ;;  %v26571_v19 = vld [vmem:[%s29835_s26 + $0x560] sm:$0xff]  }
0x1356   : > { %22965 = vmatprep.mubr.msk.bf16.mxu1 %vm15907_vm7, %v17088_v21  ;;  %v26572_v21 = vld [vmem:[%s29835_s26 + $0x528] sm:$0xff]  }
0x1358   : > { %23407 = vmatpush3.bf16.msra.mxu0 %v26540_v12  ;;  %17344 = vmatpush1.bf16.msra.mxu1 %v26550_v39  ;;  %v26577_v12 = vld [vmem:[%s29835_s26 + $0x570] sm:$0xff]  }
0x1359   : > { %23408 = vmatprep.subr.bf16.mxu0 %v26541_v54  ;;  %17345 = vmatprep.subr.bf16.mxu1 %v26760_v1  ;;  %v26575_v39 = vld [vmem:[%s29835_s26 + $0x530] sm:$0xff]   ;;  %v26580_v54 = vld [vmem:[%s29835_s26 + $0x578] sm:$0xff]  }
0x135c   : > { %23409 = vmatpush3.bf16.msra.mxu0 %v26542_v57  ;;  %17346 = vmatpush1.bf16.msra.mxu1 %v26551_v35  ;;  %v26576_v57 = vld [vmem:[%s29835_s26 + $0x4f0] sm:$0xff]   ;;  %v26578_v35 = vld [vmem:[%s29835_s26 + $0x538] sm:$0xff]  }
0x135d   : > { %23410 = vmatprep.subr.bf16.mxu0 %v26543_v34  ;;  %17347 = vmatprep.subr.bf16.mxu1 %v26760_v1  ;;  %v26583_v34 = vld [vmem:[%s29835_s26 + $0x580] sm:$0xff]  }
0x1360   : > { %23411 = vmatpush3.bf16.msra.mxu0 %v26544_v63  ;;  %17348 = vmatpush1.bf16.msra.mxu1 %v26552_v48  ;;  %v26579_v63 = vld [vmem:[%s29835_s26 + $0x4f8] sm:$0xff]   ;;  %v26581_v48 = vld [vmem:[%s29835_s26 + $0x540] sm:$0xff]  }
0x1361   : > { %23412 = vmatprep.subr.bf16.mxu0 %v26545_v47  ;;  %17349 = vmatprep.subr.bf16.mxu1 %v26760_v1  ;;  %v26582_v47 = vld [vmem:[%s29835_s26 + $0x500] sm:$0xff]  }
0x1364   : > { %23413 = vmatpush3.bf16.msra.mxu0 %v26546_v51  ;;  %17350 = vmatpush1.bf16.msra.mxu1 %v26553_v9  ;;  %v26584_v51 = vld [vmem:[%s29835_s26 + $0x548] sm:$0xff]  }
0x1365   : > { %23414 = vmatprep.subr.bf16.mxu0 %v26547_v24  ;;  %17351 = vmatprep.subr.bf16.mxu1 %v26760_v1  ;;  %v26585_v9 = vld [vmem:[%s29835_s26 + $0x508] sm:$0xff]  }
0x1366   : > { %v26586_v24 = vld [vmem:[%s29835_s26 + $0x588] sm:$0xff]  }
0x1368   : > { %23415 = vmatpush3.bf16.msra.mxu0 %v26548_v53  ;;  %17352 = vmatpush1.bf16.msra.mxu1 %v26554_v27  ;;  %v26587_v53 = vld [vmem:[%s29835_s26 + $0x550] sm:$0xff]  }
0x1369   : > { %17771 = vmatprep.subr.bf16.mxu0 %v29248_v40  ;;  %17353 = vmatprep.subr.bf16.mxu1 %v26760_v1  ;;  %v17087_v40 = vpack.c.bf16 %v29477_v50, %v29477_v50  ;;  %v26588_v27 = vld [vmem:[%s29835_s26 + $0x510] sm:$0xff]  }
0x136c   : > { %17354 = vmatpush1.bf16.msra.mxu1 %v26555_v60  ;;  %v26589_v60 = vld [vmem:[%s29835_s26 + $0x590] sm:$0xff]  }
0x136d   : > { %17355 = vmatprep.subr.bf16.mxu1 %v26760_v1 }
0x1370   : > { %17356 = vmatpush1.bf16.msra.mxu1 %v26556_v6  ;;  %v26590_v6 = vld [vmem:[%s29835_s26 + $0x558] sm:$0xff]  }
0x1371   : > { %17357 = vmatprep.subr.bf16.mxu1 %v26760_v1 }
0x1374   : > { %17358 = vmatpush1.bf16.msra.mxu1 %v26557_v56  ;;  %v26591_v56 = vld [vmem:[%s29835_s26 + $0x518] sm:$0xff]  }
0x1375   : > { %17359 = vmatprep.subr.bf16.mxu1 %v26760_v1 }
0x1378   : > { %17360 = vmatpush1.bf16.msra.mxu1 %v26558_v36  ;;  %v26592_v36 = vld [vmem:[%s29835_s26 + $0x598] sm:$0xff]  }
0x1379   : > { %17725 = vmatprep.subr.bf16.mxu1 %v26760_v1 }
0x137b   : > { %17374 = vmatmul.mubr.bf16.vlgmr.msra.gmra.mrb[132].mxu1 %v17087_v40  ;;  %v26593_v40 = vld [vmem:[%s29835_s26 + $0x5a0] sm:$0xff]  }
0x137c   : > { %17726 = vmatpush1.bf16.msra.mxu1 %v26559_v62  ;;  %v26594_v62 = vld [vmem:[%s29835_s26 + $0x5a8] sm:$0xff]  }
0x137d   : > { %17727 = vmatprep.subr.bf16.mxu1 %v26760_v1 }
0x1380   : > { %17728 = vmatpush1.bf16.msra.mxu1 %v26560_v20 }
0x1381   : > { %17729 = vmatprep.subr.bf16.mxu1 %v26760_v1 }
0x1384   : > { %17730 = vmatpush1.bf16.msra.mxu1 %v26561_v55 }
0x1385   : > { %17731 = vmatprep.subr.bf16.mxu1 %v26760_v1 }
0x1388   : > { %17732 = vmatpush1.bf16.msra.mxu1 %v26562_v32 }
0x1389   : > { %17733 = vmatprep.subr.bf16.mxu1 %v26760_v1 }
0x138c   : > { %17734 = vmatpush1.bf16.msra.mxu1 %v26563_v52 }
0x138d   : > { %17735 = vmatprep.subr.bf16.mxu1 %v26760_v1 }
0x1390   : > { %17736 = vmatpush1.bf16.msra.mxu1 %v26564_v7 }
0x1391   : > { %17737 = vmatprep.subr.bf16.mxu1 %v26760_v1 }
0x1394   : > { %17738 = vmatpush1.bf16.msra.mxu1 %v26565_v31 }
0x1395   : > { %17739 = vmatprep.subr.bf16.mxu1 %v26760_v1 }
0x1398   : > { %17740 = vmatpush1.bf16.msra.mxu1 %v26566_v25 }
0x1399   : > { %17741 = vmatprep.subr.bf16.mxu1 %v26760_v1 }
0x139c   : > { %17742 = vmatpush1.bf16.msra.mxu1 %v26567_v59 }
0x139d   : > { %17743 = vmatprep.subr.bf16.mxu1 %v26760_v1 }
0x13a0   : > { %17744 = vmatpush1.bf16.msra.mxu1 %v26568_v22 }
0x13a1   : > { %18109 = vmatprep.subr.bf16.mxu1 %v26760_v1 }
0x13fe   : > { %v23372_v23 = vpop.f32.mrb[136].mxu1 }
0x13ff   : > { %v23373_v13 = vpop.f32.mrb[137].mxu1 }
0x1400   : > { %v23374_v26 = vadd.f32 %v23373_v13, %v23372_v23  ;;  %v23375_v30 = vpop.f32.mrb[138].mxu1 }
0x1401   : > { %v23376_v28 = vpop.f32.mrb[139].mxu1 }
0x1402   : > { %v23634_v0 = vadd.f32 %v29458_v38, %v23374_v26 }
0x140e   : > { %v23394_v14 = vpop.f32.mrb[160].mxu0 }
0x140f   : > { %v23395_v33 = vpop.f32.mrb[161].mxu0 }
0x1410   : > { %v23396_v50 = vadd.f32 %v23395_v33, %v23394_v14  ;;  %v23397_v44 = vpop.f32.mrb[162].mxu0 }
0x1411   : > { %v23398_v41 = vpop.f32.mrb[163].mxu0  ;;  %v26762_v44 = vmov 0.0  }
0x1412   : > { %v29556_v61 = vadd.f32 %v23634_v0, %v23396_v50 }
0x1416   : > { %v17421_v58 = vpop.f32.mrb[164].mxu0 }
0x1417   : > { %v17423_v15 = vpop.f32.mrb[165].mxu0  ;;  %v17469_v3 = vpack.c.bf16 %v17421_v58, %v17421_v58 }
0x1418   : > { %v17470_v8 = vpack.c.bf16 %v17423_v15, %v17423_v15  ;;  %v17425_v2 = vpop.f32.mrb[166].mxu0 }
0x1419   : > { %v17426_v46 = vpop.f32.mrb[167].mxu0 }
0x141a   : > { %17717 = vmatprep.mubr.bf16.mxu0 %v17470_v8  ;;  %v23130_v46 = vld [vmem:[%s29836_s28] ss:$0 sm:$0xff]  ;;  %s29846_s28 = sld [smem:[#allocation9_spill]] }
0x141b   : > { %17718 = vmatmul.mubr.bf16.vlgmr.msra.gmra.mrb[172].mxu0 %v17469_v3 }
0x141c   : > { %17772 = vmatpush1.bf16.msra.mxu0 %v29254_v37  ;;  %17803 = vmatprep.mubr.bf16.mxu0 %v26760_v1  ;;  %v26570_v37 = vld [vmem:[%s29835_s26 + $0x4e0] sm:$0xff]  }
0x141d   : > { %17812 = vmatprep.subr.bf16.mxu0 %v29251_v49  ;;  %v26574_v49 = vld [vmem:[%s29835_s26 + $0x568] sm:$0xff]  }
0x141e   : > { %v17462_v38 = vpop.f32.mrb[168].mxu0 }
0x141f   : > { %v17471_v16 = vpack.c.bf16 %v17462_v38, %v17462_v38  ;;  %v17464_v29 = vpop.f32.mrb[169].mxu0 }
0x1420   : > { %v17472_v10 = vpack.c.bf16 %v17464_v29, %v17464_v29  ;;  %v17466_v11 = vpop.f32.mrb[170].mxu0  ;;  %v23131_v29 = vld [vmem:[%s29837_s1] ss:$0 sm:$0xff]  ;;  %s29847_s1 = sld [smem:[#allocation10_spill]] }
0x1421   : > { %v17467_v17 = vpop.f32.mrb[171].mxu0 }
0x1422   : > { %23047 = vmatprep.mubr.msk.bf16.mxu1 %vm15907_vm7, %v17472_v10 }
0x1423   : > { %23049 = vmatmul.mubr.msk.bf16.vlgmr.msra.gmra.mrb[176].mxu0 %vm15453_vm6, %v23048_v4  ;;  %17758 = vmatmul.mubr.bf16.vlgmr.msra.gmra.mrb[132].mxu1 %v17471_v16 }
0x1424   : > { %17813 = vmatpush1.bf16.msra.mxu0 %v29257_v5  ;;  %17844 = vmatprep.mubr.bf16.mxu0 %v26760_v1  ;;  %v26573_v5 = vld [vmem:[%s29835_s26 + $0x4e8] sm:$0xff]  }
0x1425   : > { %23422 = vmatprep.subr.bf16.mxu0 %v26569_v18  ;;  %18110 = vmatpush1.bf16.msra.mxu1 %v26571_v19 }
0x1426   : > { %18111 = vmatprep.subr.bf16.mxu1 %v26760_v1 }
0x1429   : > { %18112 = vmatpush1.bf16.msra.mxu1 %v26574_v49 }
0x142a   : > { %18113 = vmatprep.subr.bf16.mxu1 %v26760_v1 }
0x142b   : > { %23050 = vmatmul.mubr.msk.bf16.vlgmr.msra.gmra.mrb[180].mxu0 %vm15453_vm6, %v23048_v4 }
0x142c   : > { %23423 = vmatpush3.bf16.msra.mxu0 %v26570_v37 }
0x142d   : > { %23424 = vmatprep.subr.bf16.mxu0 %v26572_v21  ;;  %18114 = vmatpush1.bf16.msra.mxu1 %v26577_v12  ;;  %v18170_v21 = vld [vmem:[%s29838_s2] sm:$0x1]  ;;  %v23167_v12 = vld [vmem:[%s29838_s2 + $0x2] sm:$0x1] }
0x142e   : > { %18115 = vmatprep.subr.bf16.mxu1 %v26760_v1 }
0x1430   : > { %23425 = vmatpush3.bf16.msra.mxu0 %v26573_v5  ;;  %v23133_v5 = vld [vmem:[%s29838_s2 + $0x1] sm:$0x1] }
0x1431   : > { %23426 = vmatprep.subr.bf16.mxu0 %v26575_v39  ;;  %18116 = vmatpush1.bf16.msra.mxu1 %v26580_v54  ;;  %v23193_v39 = vld [vmem:[%s29838_s2 + $0x3] sm:$0x1] }
0x1432   : > { %18117 = vmatprep.subr.bf16.mxu1 %v26760_v1  ;;  %v26595_v54 = vld [vmem:[%s29839_s7] sm:$0xff]  }
0x1434   : > { %23427 = vmatpush3.bf16.msra.mxu0 %v26576_v57  ;;  %v26597_v57 = vld [vmem:[%s29840_s10 + $0x40] sm:$0xff]  }
0x1435   : > { %23428 = vmatprep.subr.bf16.mxu0 %v26578_v35  ;;  %18118 = vmatpush1.bf16.msra.mxu1 %v26583_v34  ;;  %v26596_v35 = vld [vmem:[%s29839_s7 + $0x8] sm:$0xff]  }
0x1436   : > { %18119 = vmatprep.subr.bf16.mxu1 %v26760_v1  ;;  %v26598_v34 = vld [vmem:[%s29840_s10 + $0x48] sm:$0xff]  }
0x1438   : > { %23429 = vmatpush3.bf16.msra.mxu0 %v26579_v63  ;;  %v18787_v63 = vld [vmem:[%s967_s16] sm:$0x1]  ;;  %s970_s16 = scalar_lea.vmem %s26925_s20, %s29850_s23 }
0x1439   : > { %23430 = vmatprep.subr.bf16.mxu0 %v26581_v48  ;;  %18120 = vmatpush1.bf16.msra.mxu1 %v26586_v24  ;;  %v26599_v48 = vld [vmem:[%s29840_s10 + $0x50] sm:$0xff]  }
0x143a   : > { %18121 = vmatprep.subr.bf16.mxu1 %v26760_v1  ;;  %v26603_v24 = vld [vmem:[%s29840_s10 + $0x70] sm:$0xff]  }
0x143c   : > { %23431 = vmatpush3.bf16.msra.mxu0 %v26582_v47  ;;  %v26600_v47 = vld [vmem:[%s29840_s10 + $0x58] sm:$0xff]  }
0x143d   : > { %23432 = vmatprep.subr.bf16.mxu0 %v26584_v51  ;;  %18122 = vmatpush1.bf16.msra.mxu1 %v26589_v60  ;;  %v26601_v51 = vld [vmem:[%s29840_s10 + $0x60] sm:$0xff]   ;;  %v26620_v60 = vld [vmem:[%s29842_s15 + $0x8] sm:$0xff]  }
0x143e   : > { %18123 = vmatprep.subr.bf16.mxu1 %v26760_v1 }
0x1440   : > { %23433 = vmatpush3.bf16.msra.mxu0 %v26585_v9  ;;  %v26602_v9 = vld [vmem:[%s29840_s10 + $0x68] sm:$0xff]  }
0x1441   : > { %23434 = vmatprep.subr.bf16.mxu0 %v26587_v53  ;;  %18124 = vmatpush1.bf16.msra.mxu1 %v26592_v36  ;;  %v26604_v53 = vld [vmem:[%s29840_s10 + $0x78] sm:$0xff]   ;;  %v26626_v36 = vld [vmem:[%s29842_s15 + $0x20] sm:$0xff]  }
0x1442   : > { %18125 = vmatprep.subr.bf16.mxu1 %v26760_v1 }
0x1444   : > { %23435 = vmatpush3.bf16.msra.mxu0 %v26588_v27  ;;  %v26618_v27 = vld [vmem:[%s29842_s15] sm:$0xff]  }
0x1445   : > { %23436 = vmatprep.subr.bf16.mxu0 %v26590_v6  ;;  %18126 = vmatpush1.bf16.msra.mxu1 %v26593_v40  ;;  %v26622_v6 = vld [vmem:[%s29842_s15 + $0x10] sm:$0xff]   ;;  %v26628_v40 = vld [vmem:[%s29842_s15 + $0x28] sm:$0xff]  }
0x1446   : > { %18127 = vmatprep.subr.bf16.mxu1 %v26760_v1 }
0x1448   : > { %23437 = vmatpush3.bf16.msra.mxu0 %v26591_v56  ;;  %v26624_v56 = vld [vmem:[%s29842_s15 + $0x18] sm:$0xff]  }
0x1449   : > { %18128 = vmatpush1.bf16.msra.mxu1 %v26594_v62  ;;  %23500 = vmatprep.subr.bf16.mxu0 %v26762_v44  ;;  %v26630_v62 = vld [vmem:[%s29842_s15 + $0x30] sm:$0xff]  }
0x144a   : > { %23552 = vmatprep.subr.bf16.mxu1 %v26762_v44 }
0x14ee   : > { %v23416_v20 = vpop.f32.mrb[172].mxu0 }
0x14ef   : > { %v23417_v55 = vpop.f32.mrb[173].mxu0 }
0x14f0   : > { %v23418_v32 = vadd.f32 %v23417_v55, %v23416_v20  ;;  %v23419_v52 = vpop.f32.mrb[174].mxu0  ;;  %v26632_v20 = vld [vmem:[%s29842_s15 + $0x38] sm:$0xff]   ;;  %v26639_v55 = vld [vmem:[%s29843_s18 + $0x4] ss:$8 sps:$4 sm:$0xff]  }
0x14f1   : > { %v23420_v7 = vpop.f32.mrb[175].mxu0 }
0x14f2   : > { %v23636_v31 = vadd.f32 %v29556_v61, %v23418_v32 }
0x14f6   : > { %v17805_v25 = vpop.f32.mrb[176].mxu0 }
0x14f7   : > { %v17807_v59 = vpop.f32.mrb[177].mxu0  ;;  %v17853_v13 = vpack.c.bf16 %v17805_v25, %v17805_v25 }
0x14f8   : > { %v17854_v22 = vpack.c.bf16 %v17807_v59, %v17807_v59  ;;  %v17809_v23 = vpop.f32.mrb[178].mxu0 }
0x14f9   : > { %v17810_v26 = vpop.f32.mrb[179].mxu0 }
0x14fa   : > { %18101 = vmatprep.mubr.bf16.mxu0 %v17854_v22  ;;  %v26605_v26 = vld [vmem:[%s29840_s10] sm:$0xff]  }
0x14fb   : > { %18102 = vmatmul.mubr.bf16.vlgmr.msra.gmra.mrb[184].mxu0 %v17853_v13 }
0x14fc   : > { %23502 = vmatprep.mubr.msk.bf16.mxu0 %vm26763_vm8, %v26762_v44 }
0x14fe   : > { %v17846_v30 = vpop.f32.mrb[180].mxu0 }
0x14ff   : > { %v17848_v28 = vpop.f32.mrb[181].mxu0  ;;  %v17855_v33 = vpack.c.bf16 %v17846_v30, %v17846_v30 }
0x1500   : > { %v17856_v0 = vpack.c.bf16 %v17848_v28, %v17848_v28  ;;  %v17850_v14 = vpop.f32.mrb[182].mxu0 }
0x1501   : > { %v17851_v50 = vpop.f32.mrb[183].mxu0 }
0x1502   : > { %23129 = vmatprep.mubr.msk.bf16.mxu1 %vm15907_vm7, %v17856_v0 }
0x1503   : > { %18142 = vmatmul.mubr.bf16.vlgmr.msra.gmra.mrb[132].mxu1 %v17855_v33 }
0x1504   : > { %23554 = vmatprep.mubr.msk.bf16.mxu1 %vm26763_vm8, %v26762_v44 }
0x15ce   : > { %v23438_v41 = vpop.f32.mrb[184].mxu0 }
0x15cf   : > { %v23439_v61 = vpop.f32.mrb[185].mxu0 }
0x15d0   : > { %v23440_v58 = vadd.f32 %v23439_v61, %v23438_v41  ;;  %v23441_v15 = vpop.f32.mrb[186].mxu0 }
0x15d1   : > { %v23442_v8 = vpop.f32.mrb[187].mxu0  ;;  %v26607_v15 = vld [vmem:[%s29840_s10 + $0x10] sm:$0xff]  }
0x15d2   : > { %v23637_v2 = vadd.f32 %v23636_v31, %v23440_v58  ;;  %v26606_v58 = vld [vmem:[%s29840_s10 + $0x8] sm:$0xff]  }
0x15d6   : > { %v18143_v3 = vpop.f32.mrb[132].mxu1 }
0x15d7   : > { %v23638_v38 = vadd.f32 %v23637_v2, %v18143_v3  ;;  %v18145_v16 = vpop.f32.mrb[133].mxu1 }
0x15d8   : > { %v18146_v4 = vpop.f32.mrb[134].mxu1 }
0x15d9   : > { %v18157_v10 = vmul.f32 %v23638_v38, %v23130_v46  ;;  %v18147_v11 = vpop.f32.mrb[135].mxu1  ;;  %v26608_v4 = vld [vmem:[%s29840_s10 + $0x18] sm:$0xff]  }
0x15da   : > { %v26642_v11 = vld [vmem:[%s29843_s18 + $0x14] ss:$8 sps:$4 sm:$0xff]  }
0x15db   : > { %v18165_v17 = vadd.f32 %v23131_v29, %v18157_v10  ;;  %v26637_v29 = vld [vmem:[%s29843_s18] ss:$8 sps:$4 sm:$0xff]  }
0x15dd   : > { %v18167_v18 = vmul.f32 0.02, %v18165_v17  ;;  %vm18166_vm9 = vcmp.gt.f32.partialorder %v18165_v17, 0.0 }
0x15df   : > { %v18168_v19 = vsel %vm18166_vm9, %v18165_v17, %v18167_v18  ;;  %v26640_v17 = vld [vmem:[%s29843_s18 + $0x10] ss:$8 sps:$4 sm:$0xff]   ;;  %v26609_v18 = vld [vmem:[%s29840_s10 + $0x20] sm:$0xff]  }
0x15e0   : > { %v18169_v49 = vpack.c.bf16 %v18168_v19, %v18168_v19  ;;  %v26645_v19 = vld [vmem:[%s29843_s18 + $0x24] ss:$8 sps:$4 sm:$0xff]  }
0x15e2   : > { %v18177_v37 = vsel %vm18175_vm10, %v18169_v49, 0  ;;  %v26643_v49 = vld [vmem:[%s29843_s18 + $0x20] ss:$8 sps:$4 sm:$0xff]  }
0x15e3   : > { %23501 = vmatpush3.bf16.msra.mxu0 %v18177_v37  ;;  %23553 = vmatpush3.bf16.msra.mxu1 %v18177_v37 }
0x15e4   : > { %23506 = vmatprep.subr.bf16.mxu0 %v26762_v44  ;;  %23578 = vmatprep.subr.bf16.mxu1 %v26762_v44 }
0x15e6   : > { %23503 = vmatmul.mubr.msk.bf16.vlgmr.msra.gmra.mrb[188].mxu0 %vm18171_vm11, %v18170_v21  ;;  %23555 = vmatmul.mubr.msk.bf16.vlgmr.msra.gmra.mrb[140].mxu1 %vm18171_vm11, %v23167_v12  ;;  %v26648_v21 = vld [vmem:[%s29843_s18 + $0x34] ss:$8 sps:$4 sm:$0xff]   ;;  %v26646_v12 = vld [vmem:[%s29843_s18 + $0x30] ss:$8 sps:$4 sm:$0xff]  }
0x15e7   : > { %23507 = vmatpush3.bf16.msra.mxu0 %v18177_v37  ;;  %23579 = vmatpush3.bf16.msra.mxu1 %v18177_v37  ;;  %v26610_v37 = vld [vmem:[%s29840_s10 + $0x28] sm:$0xff]  }
0x15e8   : > { %23508 = vmatprep.mubr.msk.bf16.mxu0 %vm26763_vm8, %v26762_v44  ;;  %23580 = vmatprep.mubr.msk.bf16.mxu1 %vm26763_vm8, %v26762_v44 }
0x15e9   : > { %23604 = vmatprep.subr.bf16.mxu1 %v26762_v44  ;;  %23512 = vmatprep.subr.bf16.mxu0 %v26762_v44 }
0x15ee   : > { %23509 = vmatmul.mubr.msk.bf16.vlgmr.msra.gmra.mrb[192].mxu0 %vm18171_vm11, %v23133_v5  ;;  %23581 = vmatmul.mubr.msk.bf16.vlgmr.msra.gmra.mrb[144].mxu1 %vm18171_vm11, %v23193_v39  ;;  %v26611_v5 = vld [vmem:[%s29840_s10 + $0x30] sm:$0xff]   ;;  %v26651_v39 = vld [vmem:[%s29843_s18 + $0x44] ss:$8 sps:$4 sm:$0xff]  }
0x15ef   : > { %23605 = vmatpush3.bf16.msra.mxu1 %v26595_v54  ;;  %23608 = vmatprep.mubr.msk.bf16.mxu1 %vm26763_vm8, %v26762_v44  ;;  %v26649_v54 = vld [vmem:[%s29843_s18 + $0x40] ss:$8 sps:$4 sm:$0xff]  }
0x15f0   : > { %23606 = vmatprep.subr.bf16.mxu1 %v26762_v44  ;;  %23513 = vmatpush3.bf16.msra.mxu0 %v26597_v57  ;;  %v26612_v57 = vld [vmem:[%s29840_s10 + $0x38] sm:$0xff]  }
0x15f1   : > { %23514 = vmatprep.subr.bf16.mxu0 %v26762_v44  ;;  %23528 = vmatprep.mubr.msk.bf16.mxu0 %vm26763_vm8, %v26762_v44 }
0x15f3   : > { %23607 = vmatpush3.bf16.msra.mxu1 %v26596_v35  ;;  %v26654_v35 = vld [vmem:[%s29843_s18 + $0x54] ss:$8 sps:$4 sm:$0xff]  }
0x15f4   : > { %23515 = vmatpush3.bf16.msra.mxu0 %v26598_v34  ;;  %23612 = vmatprep.subr.bf16.mxu1 %v26762_v44  ;;  %v26652_v34 = vld [vmem:[%s29843_s18 + $0x50] ss:$8 sps:$4 sm:$0xff]  }
0x15f5   : > { %23516 = vmatprep.subr.bf16.mxu0 %v26762_v44 }
0x15f6   : > { %23609 = vmatmul.mubr.msk.bf16.vlgmr.msra.gmra.mrb[148].mxu1 %vm15907_vm7, %v18787_v63  ;;  %v26613_v63 = vld [vmem:[%s29840_s10 + $0x80] sm:$0xff]  }
0x15f7   : > { %23628 = vmatprep.mubr.msk.bf16.mxu1 %vm26763_vm8, %v26762_v44  ;;  %23613 = vmatpush3.bf16.msra.mxu1 %v26618_v27  ;;  %v26617_v27 = vld [vmem:[%s29840_s10 + $0xa0] sm:$0xff]  }
0x15f8   : > { %23517 = vmatpush3.bf16.msra.mxu0 %v26599_v48  ;;  %23614 = vmatprep.subr.bf16.mxu1 %v26762_v44 }
0x15f9   : > { %23518 = vmatprep.subr.bf16.mxu0 %v26762_v44 }
0x15fb   : > { %23615 = vmatpush3.bf16.msra.mxu1 %v26620_v60  ;;  %v26619_v60 = vld [vmem:[%s29840_s10 + $0xa8] sm:$0xff]  }
0x15fc   : > { %23519 = vmatpush3.bf16.msra.mxu0 %v26600_v47  ;;  %23616 = vmatprep.subr.bf16.mxu1 %v26762_v44  ;;  %v26657_v47 = vld [vmem:[%s29843_s18 + $0x64] ss:$8 sps:$4 sm:$0xff]  }
0x15fd   : > { %23520 = vmatprep.subr.bf16.mxu0 %v26762_v44 }
0x15ff   : > { %23617 = vmatpush3.bf16.msra.mxu1 %v26622_v6  ;;  %v26621_v6 = vld [vmem:[%s29840_s10 + $0xb0] sm:$0xff]  }
0x1600   : > { %23521 = vmatpush3.bf16.msra.mxu0 %v26601_v51  ;;  %23618 = vmatprep.subr.bf16.mxu1 %v26762_v44  ;;  %v26655_v51 = vld [vmem:[%s29843_s18 + $0x60] ss:$8 sps:$4 sm:$0xff]  }
0x1601   : > { %23522 = vmatprep.subr.bf16.mxu0 %v26762_v44 }
0x1603   : > { %23619 = vmatpush3.bf16.msra.mxu1 %v26624_v56  ;;  %v26623_v56 = vld [vmem:[%s29840_s10 + $0xb8] sm:$0xff]  }
0x1604   : > { %23523 = vmatpush3.bf16.msra.mxu0 %v26602_v9  ;;  %23620 = vmatprep.subr.bf16.mxu1 %v26762_v44  ;;  %v26614_v9 = vld [vmem:[%s29840_s10 + $0x88] sm:$0xff]  }
0x1605   : > { %23524 = vmatprep.subr.bf16.mxu0 %v26762_v44 }
0x1607   : > { %23621 = vmatpush3.bf16.msra.mxu1 %v26626_v36 }
0x1608   : > { %23525 = vmatpush3.bf16.msra.mxu0 %v26603_v24  ;;  %23622 = vmatprep.subr.bf16.mxu1 %v26762_v44  ;;  %v26615_v24 = vld [vmem:[%s29840_s10 + $0x90] sm:$0xff]  }
0x1609   : > { %23526 = vmatprep.subr.bf16.mxu0 %v26762_v44 }
0x160b   : > { %23623 = vmatpush3.bf16.msra.mxu1 %v26628_v40  ;;  %v26625_v40 = vld [vmem:[%s29840_s10 + $0xc0] sm:$0xff]  }
0x160c   : > { %23527 = vmatpush3.bf16.msra.mxu0 %v26604_v53  ;;  %23624 = vmatprep.subr.bf16.mxu1 %v26762_v44  ;;  %v26616_v53 = vld [vmem:[%s29840_s10 + $0x98] sm:$0xff]  }
0x160d   : > { %23532 = vmatprep.subr.bf16.mxu0 %v26762_v44 }
0x160f   : > { %23625 = vmatpush3.bf16.msra.mxu1 %v26630_v62  ;;  %v26627_v62 = vld [vmem:[%s29840_s10 + $0xc8] sm:$0xff]  }
0x1610   : > { %23626 = vmatprep.subr.bf16.mxu1 %v26762_v44 }
0x1613   : > { %23627 = vmatpush3.bf16.msra.mxu1 %v26632_v20  ;;  %v26629_v20 = vld [vmem:[%s29840_s10 + $0xd0] sm:$0xff]  }
0x1614   : > { %19063 = vmatprep.subr.bf16.mxu1 %v26639_v55  ;;  %v26631_v55 = vld [vmem:[%s29840_s10 + $0xd8] sm:$0xff]  }
0x16b9   : > { %v29673_v32 = vpop.f32.mrb[188].mxu0  ;;  %v29675_v52 = vpop.f32.mrb[140].mxu1 }
0x16ba   : > { %v23504_v7 = vpop.f32.mrb[189].mxu0  ;;  %v23556_v31 = vpop.f32.mrb[141].mxu1  ;;  %v18219_v48 = vpack.c.bf16 %v29673_v32, %v29673_v32  ;;  %v18520_v36 = vpack.c.bf16 %v29675_v52, %v29675_v52  ;;  %v26633_v32 = vld [vmem:[%s29840_s10 + $0xe0] sm:$0xff]   ;;  %v26634_v52 = vld [vmem:[%s29840_s10 + $0xe8] sm:$0xff]  }
0x16bb   : > { %v18216_v25 = vpop.f32.mrb[190].mxu0  ;;  %v18517_v59 = vpop.f32.mrb[142].mxu1  ;;  %v26635_v7 = vld [vmem:[%s29840_s10 + $0xf0] sm:$0xff]   ;;  %v26636_v31 = vld [vmem:[%s29840_s10 + $0xf8] sm:$0xff]  }
0x16bc   : > { %v23505_v22 = vpop.f32.mrb[191].mxu0  ;;  %v23557_v23 = vpop.f32.mrb[143].mxu1  ;;  %v26658_v59 = vld [vmem:[%s29843_s18 + $0x70] ss:$8 sps:$4 sm:$0xff]  }
0x16bd   : > { %v26660_v22 = vld [vmem:[%s29843_s18 + $0x74] ss:$8 sps:$4 sm:$0xff]   ;;  %v26663_v23 = vld [vmem:[%s29844_s0 + $0x4] ss:$8 sps:$4 sm:$0xff]  }
0x16c1   : > { %v18275_v13 = vpop.f32.mrb[192].mxu0  ;;  %v29678_v30 = vpop.f32.mrb[144].mxu1 }
0x16c2   : > { %v18281_v28 = vpack.c.bf16 %v18275_v13, %v18275_v13  ;;  %v23510_v0 = vpop.f32.mrb[193].mxu0  ;;  %v23582_v14 = vpop.f32.mrb[145].mxu1  ;;  %v18672_v25 = vpack.c.bf16 %v29678_v30, %v29678_v30  ;;  %v26673_v13 = vld [vmem:[%s29845_s9] ss:$8 sps:$4 sm:$0xff]   ;;  %v26681_v30 = vld [vmem:[%s29845_s9 + $0x24] ss:$8 sps:$4 sm:$0xff]  }
0x16c3   : > { %v18278_v33 = vpop.f32.mrb[194].mxu0  ;;  %v18669_v50 = vpop.f32.mrb[146].mxu1  ;;  %v26679_v0 = vld [vmem:[%s29845_s9 + $0x20] ss:$8 sps:$4 sm:$0xff]   ;;  %v26684_v14 = vld [vmem:[%s29845_s9 + $0x34] ss:$8 sps:$4 sm:$0xff]  }
0x16c4   : > { %23529 = vmatmul.mubr.bf16.vlgmr.msra.gmra.mrb[196].mxu0 %v18281_v28  ;;  %v23511_v41 = vpop.f32.mrb[195].mxu0  ;;  %v23583_v61 = vpop.f32.mrb[147].mxu1  ;;  %v26676_v28 = vld [vmem:[%s29845_s9 + $0x10] ss:$8 sps:$4 sm:$0xff]   ;;  %v26687_v50 = vld [vmem:[%s29845_s9 + $0x44] ss:$8 sps:$4 sm:$0xff]  }
0x16c5   : > { %23533 = vmatpush3.bf16.msra.mxu0 %v26605_v26  ;;  %23548 = vmatprep.mubr.msk.bf16.mxu0 %vm26763_vm8, %v26762_v44  ;;  %v26675_v26 = vld [vmem:[%s29845_s9 + $0x4] ss:$8 sps:$4 sm:$0xff]   ;;  %v26682_v33 = vld [vmem:[%s29845_s9 + $0x30] ss:$8 sps:$4 sm:$0xff]   ;;  %v26685_v41 = vld [vmem:[%s29845_s9 + $0x40] ss:$8 sps:$4 sm:$0xff]  }
0x16c6   : > { %23534 = vmatprep.subr.bf16.mxu0 %v26762_v44  ;;  %v26690_v61 = vld [vmem:[%s29845_s9 + $0x54] ss:$8 sps:$4 sm:$0xff]  }
0x16c9   : > { %23535 = vmatpush3.bf16.msra.mxu0 %v26606_v58  ;;  %v18841_v8 = vpop.f32.mrb[148].mxu1  ;;  %v26688_v58 = vld [vmem:[%s29845_s9 + $0x50] ss:$8 sps:$4 sm:$0xff]  }
0x16ca   : > { %23536 = vmatprep.subr.bf16.mxu0 %v26762_v44  ;;  %vm18847_vm12 = vcmp.gt.f32.partialorder %v18841_v8, 0.0  ;;  %v18848_v2 = vmul.f32 0.02, %v18841_v8  ;;  %v23610_v3 = vpop.f32.mrb[149].mxu1 }
0x16cb   : > { %v18844_v46 = vpop.f32.mrb[150].mxu1  ;;  %v26694_v3 = vld [vmem:[%s29845_s9 + $0x70] ss:$8 sps:$4 sm:$0xff]  }
0x16cc   : > { %v18849_v38 = vsel %vm18847_vm12, %v18841_v8, %v18848_v2  ;;  %v23611_v16 = vpop.f32.mrb[151].mxu1  ;;  %v26691_v8 = vld [vmem:[%s29845_s9 + $0x60] ss:$8 sps:$4 sm:$0xff]   ;;  %v26696_v2 = vld [vmem:[%s29845_s9 + $0x74] ss:$8 sps:$4 sm:$0xff]  }
0x16cd   : > { %23537 = vmatpush3.bf16.msra.mxu0 %v26607_v15  ;;  %v18850_v10 = vpack.c.bf16 %v18849_v38, %v18849_v38  ;;  %v26693_v15 = vld [vmem:[%s29845_s9 + $0x64] ss:$8 sps:$4 sm:$0xff]   ;;  %v26697_v38 = vld [vmem:[%s29845_s9 + $0x80] ss:$8 sps:$4 sm:$0xff]  }
0x16ce   : > { %23538 = vmatprep.subr.bf16.mxu0 %v26762_v44  ;;  %v26699_v46 = vld [vmem:[%s29845_s9 + $0x84] ss:$8 sps:$4 sm:$0xff]  }
0x16cf   : > { %23629 = vmatmul.mubr.bf16.vlgmr.msra.gmra.mrb[152].mxu1 %v18850_v10 }
0x16d0   : > { %19064 = vmatpush1.bf16.msra.mxu1 %v26637_v29  ;;  %19095 = vmatprep.mubr.bf16.mxu1 %v26760_v1 }
0x16d1   : > { %23539 = vmatpush3.bf16.msra.mxu0 %v26608_v4  ;;  %19065 = vmatprep.subr.bf16.mxu1 %v26642_v11 }
0x16d2   : > { %23540 = vmatprep.subr.bf16.mxu0 %v26762_v44 }
0x16d4   : > { %19066 = vmatpush1.bf16.msra.mxu1 %v26640_v17 }
0x16d5   : > { %23541 = vmatpush3.bf16.msra.mxu0 %v26609_v18  ;;  %19067 = vmatprep.subr.bf16.mxu1 %v26645_v19  ;;  %v26661_v18 = vld [vmem:[%s29844_s0] ss:$8 sps:$4 sm:$0xff]  }
0x16d6   : > { %23542 = vmatprep.subr.bf16.mxu0 %v26762_v44 }
0x16d8   : > { %19068 = vmatpush1.bf16.msra.mxu1 %v26643_v49  ;;  %v26666_v49 = vld [vmem:[%s29844_s0 + $0x14] ss:$8 sps:$4 sm:$0xff]  }
0x16d9   : > { %23543 = vmatpush3.bf16.msra.mxu0 %v26610_v37  ;;  %19069 = vmatprep.subr.bf16.mxu1 %v26648_v21  ;;  %v26664_v37 = vld [vmem:[%s29844_s0 + $0x10] ss:$8 sps:$4 sm:$0xff]   ;;  %v26669_v21 = vld [vmem:[%s29844_s0 + $0x24] ss:$8 sps:$4 sm:$0xff]  }
0x16da   : > { %23544 = vmatprep.subr.bf16.mxu0 %v26762_v44 }
0x16dc   : > { %19070 = vmatpush1.bf16.msra.mxu1 %v26646_v12  ;;  %v26667_v12 = vld [vmem:[%s29844_s0 + $0x20] ss:$8 sps:$4 sm:$0xff]  }
0x16dd   : > { %23545 = vmatpush3.bf16.msra.mxu0 %v26611_v5  ;;  %19071 = vmatprep.subr.bf16.mxu1 %v26651_v39  ;;  %v26672_v5 = vld [vmem:[%s29844_s0 + $0x34] ss:$8 sps:$4 sm:$0xff]   ;;  %v26670_v39 = vld [vmem:[%s29844_s0 + $0x30] ss:$8 sps:$4 sm:$0xff]  }
0x16de   : > { %23546 = vmatprep.subr.bf16.mxu0 %v26762_v44 }
0x16e0   : > { %19072 = vmatpush1.bf16.msra.mxu1 %v26649_v54  ;;  %v18779_v54 = vld [vmem:[%s29846_s28] sm:$0x1] }
0x16e1   : > { %23547 = vmatpush3.bf16.msra.mxu0 %v26612_v57  ;;  %19073 = vmatprep.subr.bf16.mxu1 %v26654_v35  ;;  %v18781_v35 = vld [vmem:[%s29847_s1] sm:$0x1] }
0x16e2   : > { %23558 = vmatprep.subr.bf16.mxu0 %v26762_v44 }
0x16e4   : > { %23549 = vmatmul.mubr.bf16.vlgmr.msra.gmra.mrb[196].mxu0 %v18219_v48  ;;  %19074 = vmatpush1.bf16.msra.mxu1 %v26652_v34 }
0x16e5   : > { %23559 = vmatpush3.bf16.msra.mxu0 %v26613_v63  ;;  %23574 = vmatprep.mubr.msk.bf16.mxu0 %vm26763_vm8, %v26762_v44 }
0x16e6   : > { %23560 = vmatprep.subr.bf16.mxu0 %v26762_v44  ;;  %19075 = vmatprep.subr.bf16.mxu1 %v26657_v47 }
0x16e8   : > { %19076 = vmatpush1.bf16.msra.mxu1 %v26655_v51 }
0x16e9   : > { %23561 = vmatpush3.bf16.msra.mxu0 %v26614_v9  ;;  %19077 = vmatprep.subr.bf16.mxu1 %v26660_v22  ;;  %v26700_v9 = vld [vmem:[%s29845_s9 + $0x90] ss:$8 sps:$4 sm:$0xff]  }
0x16ea   : > { %23562 = vmatprep.subr.bf16.mxu0 %v26762_v44 }
0x16ec   : > { %19078 = vmatpush1.bf16.msra.mxu1 %v26658_v59 }
0x16ed   : > { %23563 = vmatpush3.bf16.msra.mxu0 %v26615_v24  ;;  %19147 = vmatprep.subr.bf16.mxu1 %v26663_v23  ;;  %v26702_v24 = vld [vmem:[%s29845_s9 + $0x94] ss:$8 sps:$4 sm:$0xff]  }
0x16ee   : > { %23564 = vmatprep.subr.bf16.mxu0 %v26762_v44 }
0x16f1   : > { %23565 = vmatpush3.bf16.msra.mxu0 %v26616_v53 }
0x16f2   : > { %23566 = vmatprep.subr.bf16.mxu0 %v26762_v44 }
0x16f5   : > { %23567 = vmatpush3.bf16.msra.mxu0 %v26617_v27  ;;  %v26705_v27 = vld [vmem:[%s29845_s9 + $0xa4] ss:$8 sps:$4 sm:$0xff]  }
0x16f6   : > { %23568 = vmatprep.subr.bf16.mxu0 %v26762_v44 }
0x16f9   : > { %23569 = vmatpush3.bf16.msra.mxu0 %v26619_v60 }
0x16fa   : > { %23570 = vmatprep.subr.bf16.mxu0 %v26762_v44 }
0x16fd   : > { %23571 = vmatpush3.bf16.msra.mxu0 %v26621_v6  ;;  %v26703_v6 = vld [vmem:[%s29845_s9 + $0xa0] ss:$8 sps:$4 sm:$0xff]  }
0x16fe   : > { %23572 = vmatprep.subr.bf16.mxu0 %v26762_v44 }
0x1701   : > { %23573 = vmatpush3.bf16.msra.mxu0 %v26623_v56  ;;  %v26708_v56 = vld [vmem:[%s29845_s9 + $0xb4] ss:$8 sps:$4 sm:$0xff]  }
0x1702   : > { %23584 = vmatprep.subr.bf16.mxu0 %v26762_v44 }
0x1704   : > { %23575 = vmatmul.mubr.bf16.vlgmr.msra.gmra.mrb[196].mxu0 %v18520_v36  ;;  %v26706_v36 = vld [vmem:[%s29845_s9 + $0xb0] ss:$8 sps:$4 sm:$0xff]  }
0x1705   : > { %23585 = vmatpush3.bf16.msra.mxu0 %v26625_v40  ;;  %23600 = vmatprep.mubr.msk.bf16.mxu0 %vm26763_vm8, %v26762_v44  ;;  %v26711_v40 = vld [vmem:[%s29845_s9 + $0xc4] ss:$8 sps:$4 sm:$0xff]  }
0x1706   : > { %23586 = vmatprep.subr.bf16.mxu0 %v26762_v44 }
0x1709   : > { %23587 = vmatpush3.bf16.msra.mxu0 %v26627_v62  ;;  %v26709_v62 = vld [vmem:[%s29845_s9 + $0xc0] ss:$8 sps:$4 sm:$0xff]  }
0x170a   : > { %23588 = vmatprep.subr.bf16.mxu0 %v26762_v44 }
0x170d   : > { %23589 = vmatpush3.bf16.msra.mxu0 %v26629_v20  ;;  %v26714_v20 = vld [vmem:[%s29845_s9 + $0xd4] ss:$8 sps:$4 sm:$0xff]  }
0x170e   : > { %23590 = vmatprep.subr.bf16.mxu0 %v26762_v44 }
0x1711   : > { %23591 = vmatpush3.bf16.msra.mxu0 %v26631_v55  ;;  %v26712_v55 = vld [vmem:[%s29845_s9 + $0xd0] ss:$8 sps:$4 sm:$0xff]  }
0x1712   : > { %23592 = vmatprep.subr.bf16.mxu0 %v26762_v44 }
0x1715   : > { %23593 = vmatpush3.bf16.msra.mxu0 %v26633_v32  ;;  %v26717_v32 = vld [vmem:[%s29845_s9 + $0xe4] ss:$8 sps:$4 sm:$0xff]  }
0x1716   : > { %23594 = vmatprep.subr.bf16.mxu0 %v26762_v44 }
0x1719   : > { %23595 = vmatpush3.bf16.msra.mxu0 %v26634_v52  ;;  %v26715_v52 = vld [vmem:[%s29845_s9 + $0xe0] ss:$8 sps:$4 sm:$0xff]  }
0x171a   : > { %23596 = vmatprep.subr.bf16.mxu0 %v26762_v44 }
0x171d   : > { %23597 = vmatpush3.bf16.msra.mxu0 %v26635_v7  ;;  %v26720_v7 = vld [vmem:[%s29845_s9 + $0xf4] ss:$8 sps:$4 sm:$0xff]  }
0x171e   : > { %23598 = vmatprep.subr.bf16.mxu0 %v26762_v44  ;;  %v26678_v44 = vld [vmem:[%s29845_s9 + $0x14] ss:$8 sps:$4 sm:$0xff]  }
0x1721   : > { %23599 = vmatpush3.bf16.msra.mxu0 %v26636_v31  ;;  %v26718_v31 = vld [vmem:[%s29845_s9 + $0xf0] ss:$8 sps:$4 sm:$0xff]  }
0x1722   : > { %19414 = vmatprep.subr.bf16.mxu0 %v26675_v26 }
0x1724   : > { %23601 = vmatmul.mubr.bf16.vlgmr.msra.gmra.mrb[196].mxu0 %v18672_v25 }
0x1725   : > { %19415 = vmatpush1.bf16.msra.mxu0 %v26673_v13  ;;  %v19188_v13 = vld [vmem:[%s29848_s11] sm:$0x3] }
0x1726   : > { %19416 = vmatprep.subr.bf16.mxu0 %v26678_v44  ;;  %v19193_v26 = vrot.slane %v19188_v13, %v27110_v42 }
0x1729   : > { %19417 = vmatpush1.bf16.msra.mxu0 %v26676_v28  ;;  %v19197_v28 = vrot.slane %v19188_v13, %v27115_v45 }
0x172a   : > { %19418 = vmatprep.subr.bf16.mxu0 %v26681_v30 }
0x172d   : > { %19419 = vmatpush1.bf16.msra.mxu0 %v26679_v0 }
0x172e   : > { %19420 = vmatprep.subr.bf16.mxu0 %v26684_v14 }
0x1731   : > { %19421 = vmatpush1.bf16.msra.mxu0 %v26682_v33 }
0x1732   : > { %19422 = vmatprep.subr.bf16.mxu0 %v26687_v50 }
0x1735   : > { %19423 = vmatpush1.bf16.msra.mxu0 %v26685_v41 }
0x1736   : > { %19424 = vmatprep.subr.bf16.mxu0 %v26690_v61 }
0x1739   : > { %19425 = vmatpush1.bf16.msra.mxu0 %v26688_v58 }
0x173a   : > { %19426 = vmatprep.subr.bf16.mxu0 %v26693_v15 }
0x173d   : > { %19427 = vmatpush1.bf16.msra.mxu0 %v26691_v8 }
0x173e   : > { %19428 = vmatprep.subr.bf16.mxu0 %v26696_v2 }
0x1741   : > { %19429 = vmatpush1.bf16.msra.mxu0 %v26694_v3 }
0x1742   : > { %19430 = vmatprep.subr.bf16.mxu0 %v26699_v46 }
0x1745   : > { %19431 = vmatpush1.bf16.msra.mxu0 %v26697_v38  ;;  %v19242_v38 = vld [vmem:[%s26912_s27] sm:$0x3] }
0x1746   : > { %19432 = vmatprep.subr.bf16.mxu0 %v26702_v24 }
0x1749   : > { %19433 = vmatpush1.bf16.msra.mxu0 %v26700_v9 }
0x174a   : > { %19434 = vmatprep.subr.bf16.mxu0 %v26705_v27 }
0x174d   : > { %19435 = vmatpush1.bf16.msra.mxu0 %v26703_v6 }
0x174e   : > { %19436 = vmatprep.subr.bf16.mxu0 %v26708_v56 }
0x1751   : > { %19437 = vmatpush1.bf16.msra.mxu0 %v26706_v36 }
0x1752   : > { %19438 = vmatprep.subr.bf16.mxu0 %v26711_v40 }
0x1755   : > { %19439 = vmatpush1.bf16.msra.mxu0 %v26709_v62 }
0x1756   : > { %19440 = vmatprep.subr.bf16.mxu0 %v26714_v20 }
0x1759   : > { %19441 = vmatpush1.bf16.msra.mxu0 %v26712_v55 }
0x175a   : > { %19442 = vmatprep.subr.bf16.mxu0 %v26717_v32 }
0x175d   : > { %19443 = vmatpush1.bf16.msra.mxu0 %v26715_v52 }
0x175e   : > { %19444 = vmatprep.subr.bf16.mxu0 %v26720_v7 }
0x1761   : > { %19445 = vmatpush1.bf16.msra.mxu0 %v26718_v31 }
0x17a2   : > { %v18949_v16 = vpop.f32.mrb[152].mxu1 }
0x17a3   : > { %vm18955_vm13 = vcmp.gt.f32.partialorder %v18949_v16, 0.0  ;;  %v18956_v29 = vmul.f32 0.02, %v18949_v16  ;;  %v23630_v4 = vpop.f32.mrb[153].mxu1 }
0x17a4   : > { %v18952_v10 = vpop.f32.mrb[154].mxu1  ;;  %v19411_v4 = vrot.slane %v19242_v38, %v27115_v45 }
0x17a5   : > { %v18957_v11 = vsel %vm18955_vm13, %v18949_v16, %v18956_v29  ;;  %v23631_v17 = vpop.f32.mrb[155].mxu1  ;;  %v19461_v16 = vld [vmem:[%s26917_s4] sm:$0x3]  ;;  %v19407_v29 = vrot.slane %v19242_v38, %v27110_v42 }
0x17a6   : > { %v18966_v19 = vpack.c.bf16 %v18957_v11, %v18957_v11  ;;  %v19462_v10 = vunpack.c.l.bf16 %v19461_v16 }
0x17a8   : > { %19096 = vmatmul.mubr.bf16.vlgmr.msra.gmra.mrb[156].mxu1 %v18966_v19 }
0x17a9   : > { %19148 = vmatpush1.bf16.msra.mxu1 %v26661_v18  ;;  %19179 = vmatprep.mubr.bf16.mxu1 %v26760_v1 }
0x17aa   : > { %19149 = vmatprep.subr.bf16.mxu1 %v26666_v49 }
0x17ad   : > { %19150 = vmatpush1.bf16.msra.mxu1 %v26664_v37  ;;  %v19467_v37 = vrot.slane %v19462_v10, %v27110_v42 }
0x17ae   : > { %19151 = vmatprep.subr.bf16.mxu1 %v26669_v21 }
0x17b1   : > { %19152 = vmatpush1.bf16.msra.mxu1 %v26667_v12 }
0x17b2   : > { %19153 = vmatprep.subr.bf16.mxu1 %v26672_v5  ;;  %v19471_v5 = vrot.slane %v19462_v10, %v27112_v43 }
0x17b5   : > { %19154 = vmatpush1.bf16.msra.mxu1 %v26670_v39 }
0x17f7   : > { %v18772_v57 = vpop.f32.mrb[196].mxu0 }
0x17f8   : > { %v18780_v34 = vmul.f32 %v18779_v54, %v18772_v57  ;;  %v23602_v63 = vpop.f32.mrb[197].mxu0 }
0x17f9   : > { %v18775_v1 = vpop.f32.mrb[198].mxu0 }
0x17fa   : > { %v18782_v48 = vadd.f32 %v18781_v35, %v18780_v34  ;;  %v23603_v47 = vpop.f32.mrb[199].mxu0 }
0x17fc   : > { %vm18783_vm14 = vcmp.gt.f32.partialorder %v18782_v48, 0.0  ;;  %v18784_v51 = vmul.f32 0.02, %v18782_v48 }
0x17fe   : > { %v18785_v53 = vsel %vm18783_vm14, %v18782_v48, %v18784_v51  ;;  %v19482_v48 = vld [vmem:[#allocation2] sm:$0x1] }
0x17ff   : > { %v18786_v60 = vpack.c.bf16 %v18785_v53, %v18785_v53 }
0x1801   : > { %23254 = vmatmul.mubr.msk.bf16.vlgmr.msra.gmra.mrb[160].mxu1 %vm1048_vm0, %v18786_v60 }
0x187b   : > { %v19097_v25 = vpop.f32.mrb[156].mxu1 }
0x187c   : > { %v19099_v59 = vpop.f32.mrb[157].mxu1 }
0x187d   : > { %v19101_v22 = vpop.f32.mrb[158].mxu1 }
0x187e   : > { %v19102_v23 = vpop.f32.mrb[159].mxu1 }
0x18d4   : > { %v19181_v44 = vpop.f32.mrb[160].mxu1 }
0x18d5   : > { %v19182_v30 = vadd.f32 %v19181_v44, %v19097_v25  ;;  %v19183_v0 = vpop.f32.mrb[161].mxu1 }
0x18d6   : > { %v19184_v14 = vadd.f32 %v19183_v0, %v19099_v59  ;;  %v19185_v33 = vpop.f32.mrb[162].mxu1 }
0x18d7   : > { %v19200_v50 = vadd.f32 %v19193_v26, %v19182_v30  ;;  %v19186_v41 = vpop.f32.mrb[163].mxu1 }
0x18d8   : > { %v19201_v61 = vadd.f32 %v19197_v28, %v19184_v14 }
0x18d9   : > { %vm19202_vm0 = vcmp.gt.f32.partialorder %v19200_v50, 0.0  ;;  %v19204_v58 = vmul.f32 0.02, %v19200_v50 }
0x18da   : > { %v19205_v15 = vmul.f32 0.02, %v19201_v61  ;;  %vm19203_vm15 = vcmp.gt.f32.partialorder %v19201_v61, 0.0 }
0x18db   : > { %v19206_v8 = vsel %vm19202_vm0, %v19200_v50, %v19204_v58 }
0x18dc   : > { %v19207_v2 = vsel %vm19203_vm15, %v19201_v61, %v19205_v15  ;;  %v19208_v46 = vpack.c.bf16 %v19206_v8, %v19206_v8 }
0x18dd   : > { %v19209_v3 = vpack.c.bf16 %v19207_v2, %v19207_v2 }
0x18df   : > { %19446 = vmatprep.mubr.bf16.mxu0 %v19209_v3 }
0x18e0   : > { %19447 = vmatmul.mubr.bf16.vlgmr.msra.gmra.mrb[200].mxu0 %v19208_v46 }
0x19b3   : > { %v19448_v11 = vpop.f32.mrb[200].mxu0 }
0x19b4   : > { %v19449_v17 = vadd.f32 %v19448_v11, %v19407_v29  ;;  %v19450_v18 = vpop.f32.mrb[201].mxu0 }
0x19b5   : > { %v19451_v19 = vadd.f32 %v19450_v18, %v19411_v4  ;;  %v19452_v49 = vpop.f32.mrb[202].mxu0 }
0x19b6   : > { %vm19455_vm1 = vcmp.gt.f32.partialorder %v19449_v17, 0.0  ;;  %v19457_v21 = vmul.f32 0.02, %v19449_v17  ;;  %v19453_v12 = vpop.f32.mrb[203].mxu0 }
0x19b7   : > { %vm19456_vm3 = vcmp.gt.f32.partialorder %v19451_v19, 0.0  ;;  %v19458_v39 = vmul.f32 0.02, %v19451_v19 }
0x19b8   : > { %v19459_v54 = vsel %vm19455_vm1, %v19449_v17, %v19457_v21 }
0x19b9   : > { %v19460_v45 = vsel %vm19456_vm3, %v19451_v19, %v19458_v39  ;;  %v19474_v57 = vmul.f32 %v19467_v37, %v19459_v54 }
0x19ba   : > { %v19475_v35 = vmul.f32 %v19471_v5, %v19460_v45 }
0x19bb   : > { %v19477_v34 = vsel %vm19476_vm2, %v19474_v57, 0.0 }
0x19bc   : > { %v19478_v63 = vsel %vm19476_vm2, %v19475_v35, 0.0 }
0x19bd   : > { %v19479_v1 = vadd.f32 %v19478_v63, %v19477_v34 }
0x19bf   : > { %19480 = vadd.xlane.f32.xlu0 %v19479_v1 }
0x1a4c   : > { %v19481_v42 = vpop.xlane.xlu0 %19480 }
0x1a4d   : > { %v19483_v47 = vadd.f32 %v19482_v48, %v19481_v42 }
0x1a4f   : > { %19485 = vst.msk [vmem:[%s970_s16] sm:$0x1] %vm19484_vm4, %v19483_v47 }
0x1a50 PF: > { %s75_s22 = sadd.s32 1, %s26727_s22  }
0x1a51   : > { %p72_p4 = scmp.ge.s32.totalorder %s75_s22, 4  }
0x1a53   :  { %74 = sbr.rel (!%p72_p4) target bundleno = 58 (0x3a), region = 248 }

</bundles_post_ra>
